<compile_context>
chip_gen: v6e
topology: v6e:2x2x1
jax: 0.10.0
libtpu: 0.0.40
codegen_flags: <defaults>
</compile_context>

<pallas_src>
import functools

import jax
import jax.numpy as jnp
from jax.experimental import pallas as pl
from jax.experimental.pallas import tpu as pltpu


# ----------------------------------------------------------------------------
# schedule helper (mirrors GRASP.__init__)
# ----------------------------------------------------------------------------
def _dilation_schedule(blocks, layers, kernel_size):
    receptive_field = 1
    dilations = []
    for _ in range(blocks):
        additional = kernel_size - 1
        d = 1
        for _ in range(layers):
            dilations.append(d)
            receptive_field += additional
            additional *= 2
            d *= 2
    return dilations, receptive_field


# ----------------------------------------------------------------------------
# fused whole-network kernel (one batch element per grid step)
# ----------------------------------------------------------------------------
def _grasp_kernel(x_ref, nv1_ref, nv2_ref, start_w_ref, start_b_ref,
                  wfg0_ref, wfg1_ref, bfg_ref, wskip_ref, bskip_ref,
                  wg0_ref, wg1_ref, wg2_ref, gshift_ref, bnscale_ref,
                  end1_w_ref, end1_b_ref, end2_w_ref, end2_b_ref,
                  out_ref, *, dilations, t_final, num_nodes, c_dil, c_skip):
    n = num_nodes
    f32 = jnp.float32

    # adaptive adjacency: softmax(relu(nodevec1 @ nodevec2), dim=1)
    logits = jnp.dot(nv1_ref[...], nv2_ref[...], preferred_element_type=f32)
    logits = jnp.maximum(logits, 0.0)
    mx = jnp.max(logits, axis=1, keepdims=True)
    ex = jnp.exp(logits - mx)
    adp = ex / jnp.sum(ex, axis=1, keepdims=True)          # (n, n)
    adp_t = adp.T                                          # adp_t[w, v] = adp[v, w]

    # start 1x1 conv.  Activations live as 2-D rows=(time, node), cols=channels,
    # end-aligned in time.
    x_in = x_ref[0]                                        # (t0, n, c_in)
    t_cur = x_in.shape[0]
    c_in = x_in.shape[2]
    x = jnp.dot(x_in.reshape(t_cur * n, c_in), start_w_ref[...],
                preferred_element_type=f32) + start_b_ref[...]

    skip = jnp.zeros((t_final * n, c_skip), f32)

    for i, d in enumerate(dilations):
        t_out = t_cur - d
        m = t_out * n
        # dilated (1,2) conv taps == static, sublane-aligned row slices
        xl = x[:m]                       # residual[..., :t_out]
        xr = x[d * n:]                   # residual[..., d:] == residual[..., -t_out:]

        # gated conv: stacked filter|gate weights -> 2 matmuls, split halves
        fg = (jnp.dot(xl, wfg0_ref[i], preferred_element_type=f32)
              + jnp.dot(xr, wfg1_ref[i], preferred_element_type=f32)
              + bfg_ref[i])
        xg = jnp.tanh(fg[:, :c_dil]) * jax.nn.sigmoid(fg[:, c_dil:])

        # skip head only ever consumes the last t_final steps of each layer
        s_in = xg[(t_out - t_final) * n:]
        skip = (skip + jnp.dot(s_in, wskip_ref[i], preferred_element_type=f32)
                + bskip_ref[i])

        # graph conv (order 2, single adaptive support): batched node mixing
        xg3 = xg.reshape(t_out, n, c_dil)
        a3 = jnp.broadcast_to(adp_t, (t_out, n, n))
        x1 = jnp.einsum('twv,tvc->twc', a3, xg3, preferred_element_type=f32)
        x2 = jnp.einsum('twv,tvc->twc', a3, x1, preferred_element_type=f32)

        # gcn 1x1 split into 3 blocks (no concat); eval-mode BN folded into
        # weights/bias; residual add fused (residual scaled by BN scale).
        g = (jnp.dot(xg, wg0_ref[i], preferred_element_type=f32)
             + jnp.dot(x1.reshape(m, c_dil), wg1_ref[i],
                       preferred_element_type=f32)
             + jnp.dot(x2.reshape(m, c_dil), wg2_ref[i],
                       preferred_element_type=f32))
        # TODO(synk): F.dropout inside gcn is stochastic; eval-mode identity here.
        x = g + xr * bnscale_ref[i] + gshift_ref[i]
        t_cur = t_out

    # head: relu(skip) -> relu(end_conv_1) -> end_conv_2
    h = jnp.maximum(skip, 0.0)
    h = jnp.maximum(jnp.dot(h, end1_w_ref[...], preferred_element_type=f32)
                    + end1_b_ref[...], 0.0)
    out = jnp.dot(h, end2_w_ref[...], preferred_element_type=f32) + end2_b_ref[...]
    out_ref[0] = out


# ----------------------------------------------------------------------------
# GRASP forward (wrapper: weight folding + one pallas_call)
# ----------------------------------------------------------------------------
def grasp_forward(params, x, *, blocks=4, layers=2, kernel_size=2):
    dilations, receptive_field = _dilation_schedule(blocks, layers, kernel_size)
    B, c_in, n, t_in = x.shape
    if t_in < receptive_field:
        x = jnp.pad(x, ((0, 0), (0, 0), (0, 0), (receptive_field - t_in, 0)))
    t0 = max(t_in, receptive_field)
    t_final = t0 - sum(dilations)

    c_dil = params["filter_w"][0].shape[0]
    c_skip = params["skip_w"][0].shape[0]
    out_dim = params["end2_w"].shape[0]

    # single input layout prep: NCHW -> (B, T, N, C)
    x_cl = jnp.transpose(x, (0, 3, 2, 1)).astype(jnp.float32)

    stk = lambda seq: jnp.stack(seq, axis=0)

    # stacked filter|gate weights per tap: (L, c_res, 2*c_dil)
    wf, wgt = stk(params["filter_w"]), stk(params["gate_w"])     # (L,Cd,Cr,1,2)
    bf, bg = stk(params["filter_b"]), stk(params["gate_b"])      # (L,Cd)
    wfg0 = jnp.concatenate([jnp.transpose(wf[:, :, :, 0, 0], (0, 2, 1)),
                            jnp.transpose(wgt[:, :, :, 0, 0], (0, 2, 1))], axis=2)
    wfg1 = jnp.concatenate([jnp.transpose(wf[:, :, :, 0, 1], (0, 2, 1)),
                            jnp.transpose(wgt[:, :, :, 0, 1], (0, 2, 1))], axis=2)
    bfg = jnp.concatenate([bf, bg], axis=1)[:, None, :]          # (L,1,2Cd)

    wskip = jnp.transpose(stk(params["skip_w"]), (0, 2, 1))      # (L,Cd,Cs)
    bskip = stk(params["skip_b"])[:, None, :]                    # (L,1,Cs)

    # eval-mode BN folded into gcn 1x1 (scale on output columns) + fused shift
    gw = jnp.transpose(stk(params["gconv_w"]), (0, 2, 1))        # (L,3Cd,Cr)
    gb = stk(params["gconv_b"])                                  # (L,Cr)
    scale = stk(params["bn_gamma"]) / jnp.sqrt(stk(params["bn_var"]) + 1e-5)
    shift = stk(params["bn_beta"]) - stk(params["bn_mean"]) * scale
    gw_s = gw * scale[:, None, :]
    wg0 = gw_s[:, 0:c_dil, :]
    wg1 = gw_s[:, c_dil:2 * c_dil, :]
    wg2 = gw_s[:, 2 * c_dil:3 * c_dil, :]
    gshift = (gb * scale + shift)[:, None, :]                    # (L,1,Cr)
    bnscale = scale[:, None, :]                                  # (L,1,Cr)

    weights = (params["nodevec1"], params["nodevec2"],
               params["start_w"].T, params["start_b"][None, :],
               wfg0, wfg1, bfg, wskip, bskip,
               wg0, wg1, wg2, gshift, bnscale,
               params["end1_w"].T, params["end1_b"][None, :],
               params["end2_w"].T, params["end2_b"][None, :])

    def _full(a):   # whole-array block, resident across grid steps
        return pl.BlockSpec(a.shape, lambda b, nd=a.ndim: (0,) * nd)

    kernel = functools.partial(
        _grasp_kernel, dilations=tuple(dilations), t_final=t_final,
        num_nodes=n, c_dil=c_dil, c_skip=c_skip)

    out2 = pl.pallas_call(
        kernel,
        out_shape=jax.ShapeDtypeStruct((B, t_final * n, out_dim), jnp.float32),
        grid=(B,),
        in_specs=[pl.BlockSpec((1, t0, n, c_in), lambda b: (b, 0, 0, 0))]
                + [_full(a) for a in weights],
        out_specs=pl.BlockSpec((1, t_final * n, out_dim), lambda b: (b, 0, 0)),
        compiler_params=pltpu.CompilerParams(
            dimension_semantics=("parallel",)),
    )(x_cl, *weights)

    out = jnp.transpose(out2.reshape(B, t_final, n, out_dim), (0, 3, 2, 1))
    return out, params["nodevec1"]


# ----------------------------------------------------------------------------
# Deterministic parameter init (synthetic; shapes follow GRASP.__init__)
# ----------------------------------------------------------------------------
def init_params(key, num_nodes, in_dim=6, residual_channels=32,
                dilation_channels=32, skip_channels=256, end_channels=512,
                out_dim=12, blocks=4, layers=2, kernel_size=2):
    n_layers = blocks * layers
    keys = iter(jax.random.split(key, 8 + 12 * n_layers))

    def nrm(shape, scale=0.1):
        return scale * jax.random.normal(next(keys), shape, jnp.float32)

    p = {
        "start_w": nrm((residual_channels, in_dim)),
        "start_b": nrm((residual_channels,), 0.01),
        "nodevec1": jax.random.normal(next(keys), (num_nodes, 10), jnp.float32),
        "nodevec2": jax.random.normal(next(keys), (10, num_nodes), jnp.float32),
        "end1_w": nrm((end_channels, skip_channels)),
        "end1_b": nrm((end_channels,), 0.01),
        "end2_w": nrm((out_dim, end_channels)),
        "end2_b": nrm((out_dim,), 0.01),
        "filter_w": [], "filter_b": [], "gate_w": [], "gate_b": [],
        "skip_w": [], "skip_b": [], "gconv_w": [], "gconv_b": [],
        "bn_gamma": [], "bn_beta": [], "bn_mean": [], "bn_var": [],
    }
    gcn_cin = (2 * 1 + 1) * dilation_channels   # order=2, support_len=1
    for _ in range(n_layers):
        p["filter_w"].append(nrm((dilation_channels, residual_channels, 1, kernel_size)))
        p["filter_b"].append(nrm((dilation_channels,), 0.01))
        p["gate_w"].append(nrm((dilation_channels, residual_channels, 1, kernel_size)))
        p["gate_b"].append(nrm((dilation_channels,), 0.01))
        p["skip_w"].append(nrm((skip_channels, dilation_channels)))
        p["skip_b"].append(nrm((skip_channels,), 0.01))
        p["gconv_w"].append(nrm((residual_channels, gcn_cin)))
        p["gconv_b"].append(nrm((residual_channels,), 0.01))
        p["bn_gamma"].append(1.0 + nrm((residual_channels,), 0.01))
        p["bn_beta"].append(nrm((residual_channels,), 0.01))
        p["bn_mean"].append(nrm((residual_channels,), 0.01))
        p["bn_var"].append(1.0 + jnp.abs(nrm((residual_channels,), 0.01)))
    return p


if __name__ == "__main__":
    key = jax.random.PRNGKey(0)
    pkey, xkey = jax.random.split(key)

    B, num_nodes, in_dim, T_in, out_dim = 2, 8, 6, 13, 12
    params = init_params(pkey, num_nodes, in_dim=in_dim, out_dim=out_dim)
    x = jax.random.normal(xkey, (B, in_dim, num_nodes, T_in), jnp.float32)

    fwd = jax.jit(grasp_forward)
    out, nodevec1 = fwd(params, x)
    jax.block_until_ready(out)

    assert out.shape == (B, out_dim, num_nodes, 1), out.shape
    assert nodevec1.shape == (num_nodes, 10), nodevec1.shape
    assert bool(jnp.all(jnp.isfinite(out)))
    print("KERNEL_OK")
</pallas_src>

<mosaic_0001>
module attributes {stable_mosaic.version = 11 : i64} {
  func.func @_grasp_kernel(%arg0: i32, %arg1: memref<1x13x8x6xf32, #tpu.memory_space<vmem>>, %arg2: memref<8x10xf32, #tpu.memory_space<vmem>>, %arg3: memref<10x8xf32, #tpu.memory_space<vmem>>, %arg4: memref<6x32xf32, #tpu.memory_space<vmem>>, %arg5: memref<1x32xf32, #tpu.memory_space<vmem>>, %arg6: memref<8x32x64xf32, #tpu.memory_space<vmem>>, %arg7: memref<8x32x64xf32, #tpu.memory_space<vmem>>, %arg8: memref<8x1x64xf32, #tpu.memory_space<vmem>>, %arg9: memref<8x32x256xf32, #tpu.memory_space<vmem>>, %arg10: memref<8x1x256xf32, #tpu.memory_space<vmem>>, %arg11: memref<8x32x32xf32, #tpu.memory_space<vmem>>, %arg12: memref<8x32x32xf32, #tpu.memory_space<vmem>>, %arg13: memref<8x32x32xf32, #tpu.memory_space<vmem>>, %arg14: memref<8x1x32xf32, #tpu.memory_space<vmem>>, %arg15: memref<8x1x32xf32, #tpu.memory_space<vmem>>, %arg16: memref<256x512xf32, #tpu.memory_space<vmem>>, %arg17: memref<1x512xf32, #tpu.memory_space<vmem>>, %arg18: memref<512x12xf32, #tpu.memory_space<vmem>>, %arg19: memref<1x12xf32, #tpu.memory_space<vmem>>, %arg20: memref<1x8x12xf32, #tpu.memory_space<vmem>>) attributes {dimension_semantics = [#tpu.dimension_semantics<parallel>], iteration_bounds = array<i64: 2>, scalar_prefetch = 0 : i64, scratch_operands = 0 : i64, tpu.core_type = #tpu.core_type<tc>, window_params = [{transform_indices = @transform_0, window_bounds = array<i64: 1, 13, 8, 6>}, {pipeline_mode = #tpu.pipeline_mode<synchronous>, transform_indices = @transform_1, window_bounds = array<i64: 8, 10>}, {pipeline_mode = #tpu.pipeline_mode<synchronous>, transform_indices = @transform_2, window_bounds = array<i64: 10, 8>}, {pipeline_mode = #tpu.pipeline_mode<synchronous>, transform_indices = @transform_3, window_bounds = array<i64: 6, 32>}, {pipeline_mode = #tpu.pipeline_mode<synchronous>, transform_indices = @transform_4, window_bounds = array<i64: 1, 32>}, {pipeline_mode = #tpu.pipeline_mode<synchronous>, transform_indices = @transform_5, window_bounds = array<i64: 8, 32, 64>}, {pipeline_mode = #tpu.pipeline_mode<synchronous>, transform_indices = @transform_6, window_bounds = array<i64: 8, 32, 64>}, {pipeline_mode = #tpu.pipeline_mode<synchronous>, transform_indices = @transform_7, window_bounds = array<i64: 8, 1, 64>}, {pipeline_mode = #tpu.pipeline_mode<synchronous>, transform_indices = @transform_8, window_bounds = array<i64: 8, 32, 256>}, {pipeline_mode = #tpu.pipeline_mode<synchronous>, transform_indices = @transform_9, window_bounds = array<i64: 8, 1, 256>}, {pipeline_mode = #tpu.pipeline_mode<synchronous>, transform_indices = @transform_10, window_bounds = array<i64: 8, 32, 32>}, {pipeline_mode = #tpu.pipeline_mode<synchronous>, transform_indices = @transform_11, window_bounds = array<i64: 8, 32, 32>}, {pipeline_mode = #tpu.pipeline_mode<synchronous>, transform_indices = @transform_12, window_bounds = array<i64: 8, 32, 32>}, {pipeline_mode = #tpu.pipeline_mode<synchronous>, transform_indices = @transform_13, window_bounds = array<i64: 8, 1, 32>}, {pipeline_mode = #tpu.pipeline_mode<synchronous>, transform_indices = @transform_14, window_bounds = array<i64: 8, 1, 32>}, {pipeline_mode = #tpu.pipeline_mode<synchronous>, transform_indices = @transform_15, window_bounds = array<i64: 256, 512>}, {pipeline_mode = #tpu.pipeline_mode<synchronous>, transform_indices = @transform_16, window_bounds = array<i64: 1, 512>}, {pipeline_mode = #tpu.pipeline_mode<synchronous>, transform_indices = @transform_17, window_bounds = array<i64: 512, 12>}, {pipeline_mode = #tpu.pipeline_mode<synchronous>, transform_indices = @transform_18, window_bounds = array<i64: 1, 12>}, {transform_indices = @transform_19, window_bounds = array<i64: 1, 8, 12>}]} {
    %c0 = arith.constant 0 : index
    %c0_0 = arith.constant 0 : index
    %0 = vector.load %arg2[%c0, %c0_0] : memref<8x10xf32, #tpu.memory_space<vmem>>, vector<8x10xf32>
    %c0_1 = arith.constant 0 : index
    %c0_2 = arith.constant 0 : index
    %1 = vector.load %arg3[%c0_1, %c0_2] : memref<10x8xf32, #tpu.memory_space<vmem>>, vector<10x8xf32>
    %cst = arith.constant dense<0.000000e+00> : vector<8x8xf32>
    %2 = tpu.matmul %0, %1, %cst {dimension_numbers = #tpu.dot_dimension_numbers<[1], [0], [0], [1], [0, 0, 1, 1], [], []>} : vector<8x10xf32>, vector<10x8xf32>, vector<8x8xf32> -> vector<8x8xf32>
    %cst_3 = arith.constant 0.000000e+00 : f32
    %3 = vector.broadcast %cst_3 : f32 to vector<8x8xf32>
    %4 = arith.maximumf %2, %3 : vector<8x8xf32>
    %cst_4 = arith.constant dense<0xFF800000> : vector<8xf32>
    %5 = vector.multi_reduction <maximumf>, %4, %cst_4 [1] : vector<8x8xf32> to vector<8xf32>
    %6 = vector.shape_cast %5 : vector<8xf32> to vector<8x1xf32>
    %7 = vector.broadcast %6 : vector<8x1xf32> to vector<8x8xf32>
    %8 = arith.subf %4, %7 : vector<8x8xf32>
    %9 = math.exp %8 : vector<8x8xf32>
    %cst_5 = arith.constant dense<0.000000e+00> : vector<8xf32>
    %10 = vector.multi_reduction <add>, %9, %cst_5 [1] : vector<8x8xf32> to vector<8xf32>
    %11 = vector.shape_cast %10 : vector<8xf32> to vector<8x1xf32>
    %12 = vector.broadcast %11 : vector<8x1xf32> to vector<8x8xf32>
    %13 = arith.divf %9, %12 : vector<8x8xf32>
    %14 = tpu.transpose %13, [1, 0] : vector<8x8xf32> -> vector<8x8xf32>
    %c0_6 = arith.constant 0 : index
    %c0_7 = arith.constant 0 : index
    %c0_8 = arith.constant 0 : index
    %c0_9 = arith.constant 0 : index
    %15 = vector.load %arg1[%c0_6, %c0_7, %c0_8, %c0_9] : memref<1x13x8x6xf32, #tpu.memory_space<vmem>>, vector<1x13x8x6xf32>
    %16 = vector.shape_cast %15 : vector<1x13x8x6xf32> to vector<13x8x6xf32>
    %17 = vector.shape_cast %16 : vector<13x8x6xf32> to vector<104x6xf32>
    %c0_10 = arith.constant 0 : index
    %c0_11 = arith.constant 0 : index
    %18 = vector.load %arg4[%c0_10, %c0_11] : memref<6x32xf32, #tpu.memory_space<vmem>>, vector<6x32xf32>
    %cst_12 = arith.constant dense<0.000000e+00> : vector<104x32xf32>
    %19 = tpu.matmul %17, %18, %cst_12 {dimension_numbers = #tpu.dot_dimension_numbers<[1], [0], [0], [1], [0, 0, 1, 1], [], []>} : vector<104x6xf32>, vector<6x32xf32>, vector<104x32xf32> -> vector<104x32xf32>
    %c0_13 = arith.constant 0 : index
    %c0_14 = arith.constant 0 : index
    %20 = vector.load %arg5[%c0_13, %c0_14] : memref<1x32xf32, #tpu.memory_space<vmem>>, vector<1x32xf32>
    %21 = vector.broadcast %20 : vector<1x32xf32> to vector<104x32xf32>
    %22 = arith.addf %19, %21 : vector<104x32xf32>
    %cst_15 = arith.constant 0.000000e+00 : f32
    %23 = vector.broadcast %cst_15 : f32 to vector<8x256xf32>
    %24 = vector.extract_strided_slice %22 {offsets = [0, 0], sizes = [96, 32], strides = [1, 1]} : vector<104x32xf32> to vector<96x32xf32>
    %25 = vector.extract_strided_slice %22 {offsets = [8, 0], sizes = [96, 32], strides = [1, 1]} : vector<104x32xf32> to vector<96x32xf32>
    %c0_16 = arith.constant 0 : index
    %c0_17 = arith.constant 0 : index
    %c0_18 = arith.constant 0 : index
    %26 = vector.load %arg6[%c0_16, %c0_17, %c0_18] : memref<8x32x64xf32, #tpu.memory_space<vmem>>, vector<1x32x64xf32>
    %27 = vector.shape_cast %26 : vector<1x32x64xf32> to vector<32x64xf32>
    %cst_19 = arith.constant dense<0.000000e+00> : vector<96x64xf32>
    %28 = tpu.matmul %24, %27, %cst_19 {dimension_numbers = #tpu.dot_dimension_numbers<[1], [0], [0], [1], [0, 0, 1, 1], [], []>} : vector<96x32xf32>, vector<32x64xf32>, vector<96x64xf32> -> vector<96x64xf32>
    %c0_20 = arith.constant 0 : index
    %c0_21 = arith.constant 0 : index
    %c0_22 = arith.constant 0 : index
    %29 = vector.load %arg7[%c0_20, %c0_21, %c0_22] : memref<8x32x64xf32, #tpu.memory_space<vmem>>, vector<1x32x64xf32>
    %30 = vector.shape_cast %29 : vector<1x32x64xf32> to vector<32x64xf32>
    %cst_23 = arith.constant dense<0.000000e+00> : vector<96x64xf32>
    %31 = tpu.matmul %25, %30, %cst_23 {dimension_numbers = #tpu.dot_dimension_numbers<[1], [0], [0], [1], [0, 0, 1, 1], [], []>} : vector<96x32xf32>, vector<32x64xf32>, vector<96x64xf32> -> vector<96x64xf32>
    %32 = arith.addf %28, %31 : vector<96x64xf32>
    %c0_24 = arith.constant 0 : index
    %c0_25 = arith.constant 0 : index
    %c0_26 = arith.constant 0 : index
    %33 = vector.load %arg8[%c0_24, %c0_25, %c0_26] : memref<8x1x64xf32, #tpu.memory_space<vmem>>, vector<1x1x64xf32>
    %34 = vector.shape_cast %33 : vector<1x1x64xf32> to vector<1x64xf32>
    %35 = vector.broadcast %34 : vector<1x64xf32> to vector<96x64xf32>
    %36 = arith.addf %32, %35 : vector<96x64xf32>
    %37 = vector.extract_strided_slice %36 {offsets = [0, 0], sizes = [96, 32], strides = [1, 1]} : vector<96x64xf32> to vector<96x32xf32>
    %38 = math.tanh %37 : vector<96x32xf32>
    %39 = vector.extract_strided_slice %36 {offsets = [0, 32], sizes = [96, 32], strides = [1, 1]} : vector<96x64xf32> to vector<96x32xf32>
    %40 = arith.negf %39 : vector<96x32xf32>
    %41 = math.exp %40 : vector<96x32xf32>
    %cst_27 = arith.constant 1.000000e+00 : f32
    %42 = vector.broadcast %cst_27 : f32 to vector<96x32xf32>
    %43 = arith.addf %42, %41 : vector<96x32xf32>
    %44 = arith.divf %42, %43 : vector<96x32xf32>
    %45 = arith.mulf %38, %44 : vector<96x32xf32>
    %46 = vector.extract_strided_slice %45 {offsets = [88, 0], sizes = [8, 32], strides = [1, 1]} : vector<96x32xf32> to vector<8x32xf32>
    %c0_28 = arith.constant 0 : index
    %c0_29 = arith.constant 0 : index
    %c0_30 = arith.constant 0 : index
    %47 = vector.load %arg9[%c0_28, %c0_29, %c0_30] : memref<8x32x256xf32, #tpu.memory_space<vmem>>, vector<1x32x256xf32>
    %48 = vector.shape_cast %47 : vector<1x32x256xf32> to vector<32x256xf32>
    %cst_31 = arith.constant dense<0.000000e+00> : vector<8x256xf32>
    %49 = tpu.matmul %46, %48, %cst_31 {dimension_numbers = #tpu.dot_dimension_numbers<[1], [0], [0], [1], [0, 0, 1, 1], [], []>} : vector<8x32xf32>, vector<32x256xf32>, vector<8x256xf32> -> vector<8x256xf32>
    %50 = arith.addf %23, %49 : vector<8x256xf32>
    %c0_32 = arith.constant 0 : index
    %c0_33 = arith.constant 0 : index
    %c0_34 = arith.constant 0 : index
    %51 = vector.load %arg10[%c0_32, %c0_33, %c0_34] : memref<8x1x256xf32, #tpu.memory_space<vmem>>, vector<1x1x256xf32>
    %52 = vector.shape_cast %51 : vector<1x1x256xf32> to vector<1x256xf32>
    %53 = vector.broadcast %52 : vector<1x256xf32> to vector<8x256xf32>
    %54 = arith.addf %50, %53 : vector<8x256xf32>
    %55 = vector.shape_cast %45 : vector<96x32xf32> to vector<12x8x32xf32>
    %56 = vector.shape_cast %14 : vector<8x8xf32> to vector<1x8x8xf32>
    %57 = vector.broadcast %56 : vector<1x8x8xf32> to vector<12x8x8xf32>
    "tpu.trace_start"() <{level = 10 : i32, message = "twv,tvc->twc"}> : () -> ()
    %cst_35 = arith.constant dense<0.000000e+00> : vector<12x8x32xf32>
    %58 = tpu.matmul %57, %55, %cst_35 {dimension_numbers = #tpu.dot_dimension_numbers<[2], [1], [1], [2], [0, 0, 0, 1, 1, 2], [0], [0]>} : vector<12x8x8xf32>, vector<12x8x32xf32>, vector<12x8x32xf32> -> vector<12x8x32xf32>
    %cst_36 = arith.constant dense<0.000000e+00> : vector<12x8x32xf32>
    %59 = tpu.matmul %57, %58, %cst_36 {dimension_numbers = #tpu.dot_dimension_numbers<[2], [1], [1], [2], [0, 0, 0, 1, 1, 2], [0], [0]>} : vector<12x8x8xf32>, vector<12x8x32xf32>, vector<12x8x32xf32> -> vector<12x8x32xf32>
    "tpu.trace_stop"() : () -> ()
    %c0_37 = arith.constant 0 : index
    %c0_38 = arith.constant 0 : index
    %c0_39 = arith.constant 0 : index
    %60 = vector.load %arg11[%c0_37, %c0_38, %c0_39] : memref<8x32x32xf32, #tpu.memory_space<vmem>>, vector<1x32x32xf32>
    %61 = vector.shape_cast %60 : vector<1x32x32xf32> to vector<32x32xf32>
    %cst_40 = arith.constant dense<0.000000e+00> : vector<96x32xf32>
    %62 = tpu.matmul %45, %61, %cst_40 {dimension_numbers = #tpu.dot_dimension_numbers<[1], [0], [0], [1], [0, 0, 1, 1], [], []>} : vector<96x32xf32>, vector<32x32xf32>, vector<96x32xf32> -> vector<96x32xf32>
    %63 = vector.shape_cast %58 : vector<12x8x32xf32> to vector<96x32xf32>
    %c0_41 = arith.constant 0 : index
    %c0_42 = arith.constant 0 : index
    %c0_43 = arith.constant 0 : index
    %64 = vector.load %arg12[%c0_41, %c0_42, %c0_43] : memref<8x32x32xf32, #tpu.memory_space<vmem>>, vector<1x32x32xf32>
    %65 = vector.shape_cast %64 : vector<1x32x32xf32> to vector<32x32xf32>
    %cst_44 = arith.constant dense<0.000000e+00> : vector<96x32xf32>
    %66 = tpu.matmul %63, %65, %cst_44 {dimension_numbers = #tpu.dot_dimension_numbers<[1], [0], [0], [1], [0, 0, 1, 1], [], []>} : vector<96x32xf32>, vector<32x32xf32>, vector<96x32xf32> -> vector<96x32xf32>
    %67 = arith.addf %62, %66 : vector<96x32xf32>
    %68 = vector.shape_cast %59 : vector<12x8x32xf32> to vector<96x32xf32>
    %c0_45 = arith.constant 0 : index
    %c0_46 = arith.constant 0 : index
    %c0_47 = arith.constant 0 : index
    %69 = vector.load %arg13[%c0_45, %c0_46, %c0_47] : memref<8x32x32xf32, #tpu.memory_space<vmem>>, vector<1x32x32xf32>
    %70 = vector.shape_cast %69 : vector<1x32x32xf32> to vector<32x32xf32>
    %cst_48 = arith.constant dense<0.000000e+00> : vector<96x32xf32>
    %71 = tpu.matmul %68, %70, %cst_48 {dimension_numbers = #tpu.dot_dimension_numbers<[1], [0], [0], [1], [0, 0, 1, 1], [], []>} : vector<96x32xf32>, vector<32x32xf32>, vector<96x32xf32> -> vector<96x32xf32>
    %72 = arith.addf %67, %71 : vector<96x32xf32>
    %c0_49 = arith.constant 0 : index
    %c0_50 = arith.constant 0 : index
    %c0_51 = arith.constant 0 : index
    %73 = vector.load %arg15[%c0_49, %c0_50, %c0_51] : memref<8x1x32xf32, #tpu.memory_space<vmem>>, vector<1x1x32xf32>
    %74 = vector.shape_cast %73 : vector<1x1x32xf32> to vector<1x32xf32>
    %75 = vector.broadcast %74 : vector<1x32xf32> to vector<96x32xf32>
    %76 = arith.mulf %25, %75 : vector<96x32xf32>
    %77 = arith.addf %72, %76 : vector<96x32xf32>
    %c0_52 = arith.constant 0 : index
    %c0_53 = arith.constant 0 : index
    %c0_54 = arith.constant 0 : index
    %78 = vector.load %arg14[%c0_52, %c0_53, %c0_54] : memref<8x1x32xf32, #tpu.memory_space<vmem>>, vector<1x1x32xf32>
    %79 = vector.shape_cast %78 : vector<1x1x32xf32> to vector<1x32xf32>
    %80 = vector.broadcast %79 : vector<1x32xf32> to vector<96x32xf32>
    %81 = arith.addf %77, %80 : vector<96x32xf32>
    %82 = vector.extract_strided_slice %81 {offsets = [0, 0], sizes = [80, 32], strides = [1, 1]} : vector<96x32xf32> to vector<80x32xf32>
    %83 = vector.extract_strided_slice %81 {offsets = [16, 0], sizes = [80, 32], strides = [1, 1]} : vector<96x32xf32> to vector<80x32xf32>
    %c1 = arith.constant 1 : index
    %c0_55 = arith.constant 0 : index
    %c0_56 = arith.constant 0 : index
    %84 = vector.load %arg6[%c1, %c0_55, %c0_56] : memref<8x32x64xf32, #tpu.memory_space<vmem>>, vector<1x32x64xf32>
    %85 = vector.shape_cast %84 : vector<1x32x64xf32> to vector<32x64xf32>
    %cst_57 = arith.constant dense<0.000000e+00> : vector<80x64xf32>
    %86 = tpu.matmul %82, %85, %cst_57 {dimension_numbers = #tpu.dot_dimension_numbers<[1], [0], [0], [1], [0, 0, 1, 1], [], []>} : vector<80x32xf32>, vector<32x64xf32>, vector<80x64xf32> -> vector<80x64xf32>
    %c1_58 = arith.constant 1 : index
    %c0_59 = arith.constant 0 : index
    %c0_60 = arith.constant 0 : index
    %87 = vector.load %arg7[%c1_58, %c0_59, %c0_60] : memref<8x32x64xf32, #tpu.memory_space<vmem>>, vector<1x32x64xf32>
    %88 = vector.shape_cast %87 : vector<1x32x64xf32> to vector<32x64xf32>
    %cst_61 = arith.constant dense<0.000000e+00> : vector<80x64xf32>
    %89 = tpu.matmul %83, %88, %cst_61 {dimension_numbers = #tpu.dot_dimension_numbers<[1], [0], [0], [1], [0, 0, 1, 1], [], []>} : vector<80x32xf32>, vector<32x64xf32>, vector<80x64xf32> -> vector<80x64xf32>
    %90 = arith.addf %86, %89 : vector<80x64xf32>
    %c1_62 = arith.constant 1 : index
    %c0_63 = arith.constant 0 : index
    %c0_64 = arith.constant 0 : index
    %91 = vector.load %arg8[%c1_62, %c0_63, %c0_64] : memref<8x1x64xf32, #tpu.memory_space<vmem>>, vector<1x1x64xf32>
    %92 = vector.shape_cast %91 : vector<1x1x64xf32> to vector<1x64xf32>
    %93 = vector.broadcast %92 : vector<1x64xf32> to vector<80x64xf32>
    %94 = arith.addf %90, %93 : vector<80x64xf32>
    %95 = vector.extract_strided_slice %94 {offsets = [0, 0], sizes = [80, 32], strides = [1, 1]} : vector<80x64xf32> to vector<80x32xf32>
    %96 = math.tanh %95 : vector<80x32xf32>
    %97 = vector.extract_strided_slice %94 {offsets = [0, 32], sizes = [80, 32], strides = [1, 1]} : vector<80x64xf32> to vector<80x32xf32>
    %98 = arith.negf %97 : vector<80x32xf32>
    %99 = math.exp %98 : vector<80x32xf32>
    %cst_65 = arith.constant 1.000000e+00 : f32
    %100 = vector.broadcast %cst_65 : f32 to vector<80x32xf32>
    %101 = arith.addf %100, %99 : vector<80x32xf32>
    %102 = arith.divf %100, %101 : vector<80x32xf32>
    %103 = arith.mulf %96, %102 : vector<80x32xf32>
    %104 = vector.extract_strided_slice %103 {offsets = [72, 0], sizes = [8, 32], strides = [1, 1]} : vector<80x32xf32> to vector<8x32xf32>
    %c1_66 = arith.constant 1 : index
    %c0_67 = arith.constant 0 : index
    %c0_68 = arith.constant 0 : index
    %105 = vector.load %arg9[%c1_66, %c0_67, %c0_68] : memref<8x32x256xf32, #tpu.memory_space<vmem>>, vector<1x32x256xf32>
    %106 = vector.shape_cast %105 : vector<1x32x256xf32> to vector<32x256xf32>
    %cst_69 = arith.constant dense<0.000000e+00> : vector<8x256xf32>
    %107 = tpu.matmul %104, %106, %cst_69 {dimension_numbers = #tpu.dot_dimension_numbers<[1], [0], [0], [1], [0, 0, 1, 1], [], []>} : vector<8x32xf32>, vector<32x256xf32>, vector<8x256xf32> -> vector<8x256xf32>
    %108 = arith.addf %54, %107 : vector<8x256xf32>
    %c1_70 = arith.constant 1 : index
    %c0_71 = arith.constant 0 : index
    %c0_72 = arith.constant 0 : index
    %109 = vector.load %arg10[%c1_70, %c0_71, %c0_72] : memref<8x1x256xf32, #tpu.memory_space<vmem>>, vector<1x1x256xf32>
    %110 = vector.shape_cast %109 : vector<1x1x256xf32> to vector<1x256xf32>
    %111 = vector.broadcast %110 : vector<1x256xf32> to vector<8x256xf32>
    %112 = arith.addf %108, %111 : vector<8x256xf32>
    %113 = vector.shape_cast %103 : vector<80x32xf32> to vector<10x8x32xf32>
    %114 = vector.shape_cast %14 : vector<8x8xf32> to vector<1x8x8xf32>
    %115 = vector.broadcast %114 : vector<1x8x8xf32> to vector<10x8x8xf32>
    "tpu.trace_start"() <{level = 10 : i32, message = "twv,tvc->twc"}> : () -> ()
    %cst_73 = arith.constant dense<0.000000e+00> : vector<10x8x32xf32>
    %116 = tpu.matmul %115, %113, %cst_73 {dimension_numbers = #tpu.dot_dimension_numbers<[2], [1], [1], [2], [0, 0, 0, 1, 1, 2], [0], [0]>} : vector<10x8x8xf32>, vector<10x8x32xf32>, vector<10x8x32xf32> -> vector<10x8x32xf32>
    %cst_74 = arith.constant dense<0.000000e+00> : vector<10x8x32xf32>
    %117 = tpu.matmul %115, %116, %cst_74 {dimension_numbers = #tpu.dot_dimension_numbers<[2], [1], [1], [2], [0, 0, 0, 1, 1, 2], [0], [0]>} : vector<10x8x8xf32>, vector<10x8x32xf32>, vector<10x8x32xf32> -> vector<10x8x32xf32>
    "tpu.trace_stop"() : () -> ()
    %c1_75 = arith.constant 1 : index
    %c0_76 = arith.constant 0 : index
    %c0_77 = arith.constant 0 : index
    %118 = vector.load %arg11[%c1_75, %c0_76, %c0_77] : memref<8x32x32xf32, #tpu.memory_space<vmem>>, vector<1x32x32xf32>
    %119 = vector.shape_cast %118 : vector<1x32x32xf32> to vector<32x32xf32>
    %cst_78 = arith.constant dense<0.000000e+00> : vector<80x32xf32>
    %120 = tpu.matmul %103, %119, %cst_78 {dimension_numbers = #tpu.dot_dimension_numbers<[1], [0], [0], [1], [0, 0, 1, 1], [], []>} : vector<80x32xf32>, vector<32x32xf32>, vector<80x32xf32> -> vector<80x32xf32>
    %121 = vector.shape_cast %116 : vector<10x8x32xf32> to vector<80x32xf32>
    %c1_79 = arith.constant 1 : index
    %c0_80 = arith.constant 0 : index
    %c0_81 = arith.constant 0 : index
    %122 = vector.load %arg12[%c1_79, %c0_80, %c0_81] : memref<8x32x32xf32, #tpu.memory_space<vmem>>, vector<1x32x32xf32>
    %123 = vector.shape_cast %122 : vector<1x32x32xf32> to vector<32x32xf32>
    %cst_82 = arith.constant dense<0.000000e+00> : vector<80x32xf32>
    %124 = tpu.matmul %121, %123, %cst_82 {dimension_numbers = #tpu.dot_dimension_numbers<[1], [0], [0], [1], [0, 0, 1, 1], [], []>} : vector<80x32xf32>, vector<32x32xf32>, vector<80x32xf32> -> vector<80x32xf32>
    %125 = arith.addf %120, %124 : vector<80x32xf32>
    %126 = vector.shape_cast %117 : vector<10x8x32xf32> to vector<80x32xf32>
    %c1_83 = arith.constant 1 : index
    %c0_84 = arith.constant 0 : index
    %c0_85 = arith.constant 0 : index
    %127 = vector.load %arg13[%c1_83, %c0_84, %c0_85] : memref<8x32x32xf32, #tpu.memory_space<vmem>>, vector<1x32x32xf32>
    %128 = vector.shape_cast %127 : vector<1x32x32xf32> to vector<32x32xf32>
    %cst_86 = arith.constant dense<0.000000e+00> : vector<80x32xf32>
    %129 = tpu.matmul %126, %128, %cst_86 {dimension_numbers = #tpu.dot_dimension_numbers<[1], [0], [0], [1], [0, 0, 1, 1], [], []>} : vector<80x32xf32>, vector<32x32xf32>, vector<80x32xf32> -> vector<80x32xf32>
    %130 = arith.addf %125, %129 : vector<80x32xf32>
    %c1_87 = arith.constant 1 : index
    %c0_88 = arith.constant 0 : index
    %c0_89 = arith.constant 0 : index
    %131 = vector.load %arg15[%c1_87, %c0_88, %c0_89] : memref<8x1x32xf32, #tpu.memory_space<vmem>>, vector<1x1x32xf32>
    %132 = vector.shape_cast %131 : vector<1x1x32xf32> to vector<1x32xf32>
    %133 = vector.broadcast %132 : vector<1x32xf32> to vector<80x32xf32>
    %134 = arith.mulf %83, %133 : vector<80x32xf32>
    %135 = arith.addf %130, %134 : vector<80x32xf32>
    %c1_90 = arith.constant 1 : index
    %c0_91 = arith.constant 0 : index
    %c0_92 = arith.constant 0 : index
    %136 = vector.load %arg14[%c1_90, %c0_91, %c0_92] : memref<8x1x32xf32, #tpu.memory_space<vmem>>, vector<1x1x32xf32>
    %137 = vector.shape_cast %136 : vector<1x1x32xf32> to vector<1x32xf32>
    %138 = vector.broadcast %137 : vector<1x32xf32> to vector<80x32xf32>
    %139 = arith.addf %135, %138 : vector<80x32xf32>
    %140 = vector.extract_strided_slice %139 {offsets = [0, 0], sizes = [72, 32], strides = [1, 1]} : vector<80x32xf32> to vector<72x32xf32>
    %141 = vector.extract_strided_slice %139 {offsets = [8, 0], sizes = [72, 32], strides = [1, 1]} : vector<80x32xf32> to vector<72x32xf32>
    %c2 = arith.constant 2 : index
    %c0_93 = arith.constant 0 : index
    %c0_94 = arith.constant 0 : index
    %142 = vector.load %arg6[%c2, %c0_93, %c0_94] : memref<8x32x64xf32, #tpu.memory_space<vmem>>, vector<1x32x64xf32>
    %143 = vector.shape_cast %142 : vector<1x32x64xf32> to vector<32x64xf32>
    %cst_95 = arith.constant dense<0.000000e+00> : vector<72x64xf32>
    %144 = tpu.matmul %140, %143, %cst_95 {dimension_numbers = #tpu.dot_dimension_numbers<[1], [0], [0], [1], [0, 0, 1, 1], [], []>} : vector<72x32xf32>, vector<32x64xf32>, vector<72x64xf32> -> vector<72x64xf32>
    %c2_96 = arith.constant 2 : index
    %c0_97 = arith.constant 0 : index
    %c0_98 = arith.constant 0 : index
    %145 = vector.load %arg7[%c2_96, %c0_97, %c0_98] : memref<8x32x64xf32, #tpu.memory_space<vmem>>, vector<1x32x64xf32>
    %146 = vector.shape_cast %145 : vector<1x32x64xf32> to vector<32x64xf32>
    %cst_99 = arith.constant dense<0.000000e+00> : vector<72x64xf32>
    %147 = tpu.matmul %141, %146, %cst_99 {dimension_numbers = #tpu.dot_dimension_numbers<[1], [0], [0], [1], [0, 0, 1, 1], [], []>} : vector<72x32xf32>, vector<32x64xf32>, vector<72x64xf32> -> vector<72x64xf32>
    %148 = arith.addf %144, %147 : vector<72x64xf32>
    %c2_100 = arith.constant 2 : index
    %c0_101 = arith.constant 0 : index
    %c0_102 = arith.constant 0 : index
    %149 = vector.load %arg8[%c2_100, %c0_101, %c0_102] : memref<8x1x64xf32, #tpu.memory_space<vmem>>, vector<1x1x64xf32>
    %150 = vector.shape_cast %149 : vector<1x1x64xf32> to vector<1x64xf32>
    %151 = vector.broadcast %150 : vector<1x64xf32> to vector<72x64xf32>
    %152 = arith.addf %148, %151 : vector<72x64xf32>
    %153 = vector.extract_strided_slice %152 {offsets = [0, 0], sizes = [72, 32], strides = [1, 1]} : vector<72x64xf32> to vector<72x32xf32>
    %154 = math.tanh %153 : vector<72x32xf32>
    %155 = vector.extract_strided_slice %152 {offsets = [0, 32], sizes = [72, 32], strides = [1, 1]} : vector<72x64xf32> to vector<72x32xf32>
    %156 = arith.negf %155 : vector<72x32xf32>
    %157 = math.exp %156 : vector<72x32xf32>
    %cst_103 = arith.constant 1.000000e+00 : f32
    %158 = vector.broadcast %cst_103 : f32 to vector<72x32xf32>
    %159 = arith.addf %158, %157 : vector<72x32xf32>
    %160 = arith.divf %158, %159 : vector<72x32xf32>
    %161 = arith.mulf %154, %160 : vector<72x32xf32>
    %162 = vector.extract_strided_slice %161 {offsets = [64, 0], sizes = [8, 32], strides = [1, 1]} : vector<72x32xf32> to vector<8x32xf32>
    %c2_104 = arith.constant 2 : index
    %c0_105 = arith.constant 0 : index
    %c0_106 = arith.constant 0 : index
    %163 = vector.load %arg9[%c2_104, %c0_105, %c0_106] : memref<8x32x256xf32, #tpu.memory_space<vmem>>, vector<1x32x256xf32>
    %164 = vector.shape_cast %163 : vector<1x32x256xf32> to vector<32x256xf32>
    %cst_107 = arith.constant dense<0.000000e+00> : vector<8x256xf32>
    %165 = tpu.matmul %162, %164, %cst_107 {dimension_numbers = #tpu.dot_dimension_numbers<[1], [0], [0], [1], [0, 0, 1, 1], [], []>} : vector<8x32xf32>, vector<32x256xf32>, vector<8x256xf32> -> vector<8x256xf32>
    %166 = arith.addf %112, %165 : vector<8x256xf32>
    %c2_108 = arith.constant 2 : index
    %c0_109 = arith.constant 0 : index
    %c0_110 = arith.constant 0 : index
    %167 = vector.load %arg10[%c2_108, %c0_109, %c0_110] : memref<8x1x256xf32, #tpu.memory_space<vmem>>, vector<1x1x256xf32>
    %168 = vector.shape_cast %167 : vector<1x1x256xf32> to vector<1x256xf32>
    %169 = vector.broadcast %168 : vector<1x256xf32> to vector<8x256xf32>
    %170 = arith.addf %166, %169 : vector<8x256xf32>
    %171 = vector.shape_cast %161 : vector<72x32xf32> to vector<9x8x32xf32>
    %172 = vector.shape_cast %14 : vector<8x8xf32> to vector<1x8x8xf32>
    %173 = vector.broadcast %172 : vector<1x8x8xf32> to vector<9x8x8xf32>
    "tpu.trace_start"() <{level = 10 : i32, message = "twv,tvc->twc"}> : () -> ()
    %cst_111 = arith.constant dense<0.000000e+00> : vector<9x8x32xf32>
    %174 = tpu.matmul %173, %171, %cst_111 {dimension_numbers = #tpu.dot_dimension_numbers<[2], [1], [1], [2], [0, 0, 0, 1, 1, 2], [0], [0]>} : vector<9x8x8xf32>, vector<9x8x32xf32>, vector<9x8x32xf32> -> vector<9x8x32xf32>
    %cst_112 = arith.constant dense<0.000000e+00> : vector<9x8x32xf32>
    %175 = tpu.matmul %173, %174, %cst_112 {dimension_numbers = #tpu.dot_dimension_numbers<[2], [1], [1], [2], [0, 0, 0, 1, 1, 2], [0], [0]>} : vector<9x8x8xf32>, vector<9x8x32xf32>, vector<9x8x32xf32> -> vector<9x8x32xf32>
    "tpu.trace_stop"() : () -> ()
    %c2_113 = arith.constant 2 : index
    %c0_114 = arith.constant 0 : index
    %c0_115 = arith.constant 0 : index
    %176 = vector.load %arg11[%c2_113, %c0_114, %c0_115] : memref<8x32x32xf32, #tpu.memory_space<vmem>>, vector<1x32x32xf32>
    %177 = vector.shape_cast %176 : vector<1x32x32xf32> to vector<32x32xf32>
    %cst_116 = arith.constant dense<0.000000e+00> : vector<72x32xf32>
    %178 = tpu.matmul %161, %177, %cst_116 {dimension_numbers = #tpu.dot_dimension_numbers<[1], [0], [0], [1], [0, 0, 1, 1], [], []>} : vector<72x32xf32>, vector<32x32xf32>, vector<72x32xf32> -> vector<72x32xf32>
    %179 = vector.shape_cast %174 : vector<9x8x32xf32> to vector<72x32xf32>
    %c2_117 = arith.constant 2 : index
    %c0_118 = arith.constant 0 : index
    %c0_119 = arith.constant 0 : index
    %180 = vector.load %arg12[%c2_117, %c0_118, %c0_119] : memref<8x32x32xf32, #tpu.memory_space<vmem>>, vector<1x32x32xf32>
    %181 = vector.shape_cast %180 : vector<1x32x32xf32> to vector<32x32xf32>
    %cst_120 = arith.constant dense<0.000000e+00> : vector<72x32xf32>
    %182 = tpu.matmul %179, %181, %cst_120 {dimension_numbers = #tpu.dot_dimension_numbers<[1], [0], [0], [1], [0, 0, 1, 1], [], []>} : vector<72x32xf32>, vector<32x32xf32>, vector<72x32xf32> -> vector<72x32xf32>
    %183 = arith.addf %178, %182 : vector<72x32xf32>
    %184 = vector.shape_cast %175 : vector<9x8x32xf32> to vector<72x32xf32>
    %c2_121 = arith.constant 2 : index
    %c0_122 = arith.constant 0 : index
    %c0_123 = arith.constant 0 : index
    %185 = vector.load %arg13[%c2_121, %c0_122, %c0_123] : memref<8x32x32xf32, #tpu.memory_space<vmem>>, vector<1x32x32xf32>
    %186 = vector.shape_cast %185 : vector<1x32x32xf32> to vector<32x32xf32>
    %cst_124 = arith.constant dense<0.000000e+00> : vector<72x32xf32>
    %187 = tpu.matmul %184, %186, %cst_124 {dimension_numbers = #tpu.dot_dimension_numbers<[1], [0], [0], [1], [0, 0, 1, 1], [], []>} : vector<72x32xf32>, vector<32x32xf32>, vector<72x32xf32> -> vector<72x32xf32>
    %188 = arith.addf %183, %187 : vector<72x32xf32>
    %c2_125 = arith.constant 2 : index
    %c0_126 = arith.constant 0 : index
    %c0_127 = arith.constant 0 : index
    %189 = vector.load %arg15[%c2_125, %c0_126, %c0_127] : memref<8x1x32xf32, #tpu.memory_space<vmem>>, vector<1x1x32xf32>
    %190 = vector.shape_cast %189 : vector<1x1x32xf32> to vector<1x32xf32>
    %191 = vector.broadcast %190 : vector<1x32xf32> to vector<72x32xf32>
    %192 = arith.mulf %141, %191 : vector<72x32xf32>
    %193 = arith.addf %188, %192 : vector<72x32xf32>
    %c2_128 = arith.constant 2 : index
    %c0_129 = arith.constant 0 : index
    %c0_130 = arith.constant 0 : index
    %194 = vector.load %arg14[%c2_128, %c0_129, %c0_130] : memref<8x1x32xf32, #tpu.memory_space<vmem>>, vector<1x1x32xf32>
    %195 = vector.shape_cast %194 : vector<1x1x32xf32> to vector<1x32xf32>
    %196 = vector.broadcast %195 : vector<1x32xf32> to vector<72x32xf32>
    %197 = arith.addf %193, %196 : vector<72x32xf32>
    %198 = vector.extract_strided_slice %197 {offsets = [0, 0], sizes = [56, 32], strides = [1, 1]} : vector<72x32xf32> to vector<56x32xf32>
    %199 = vector.extract_strided_slice %197 {offsets = [16, 0], sizes = [56, 32], strides = [1, 1]} : vector<72x32xf32> to vector<56x32xf32>
    %c3 = arith.constant 3 : index
    %c0_131 = arith.constant 0 : index
    %c0_132 = arith.constant 0 : index
    %200 = vector.load %arg6[%c3, %c0_131, %c0_132] : memref<8x32x64xf32, #tpu.memory_space<vmem>>, vector<1x32x64xf32>
    %201 = vector.shape_cast %200 : vector<1x32x64xf32> to vector<32x64xf32>
    %cst_133 = arith.constant dense<0.000000e+00> : vector<56x64xf32>
    %202 = tpu.matmul %198, %201, %cst_133 {dimension_numbers = #tpu.dot_dimension_numbers<[1], [0], [0], [1], [0, 0, 1, 1], [], []>} : vector<56x32xf32>, vector<32x64xf32>, vector<56x64xf32> -> vector<56x64xf32>
    %c3_134 = arith.constant 3 : index
    %c0_135 = arith.constant 0 : index
    %c0_136 = arith.constant 0 : index
    %203 = vector.load %arg7[%c3_134, %c0_135, %c0_136] : memref<8x32x64xf32, #tpu.memory_space<vmem>>, vector<1x32x64xf32>
    %204 = vector.shape_cast %203 : vector<1x32x64xf32> to vector<32x64xf32>
    %cst_137 = arith.constant dense<0.000000e+00> : vector<56x64xf32>
    %205 = tpu.matmul %199, %204, %cst_137 {dimension_numbers = #tpu.dot_dimension_numbers<[1], [0], [0], [1], [0, 0, 1, 1], [], []>} : vector<56x32xf32>, vector<32x64xf32>, vector<56x64xf32> -> vector<56x64xf32>
    %206 = arith.addf %202, %205 : vector<56x64xf32>
    %c3_138 = arith.constant 3 : index
    %c0_139 = arith.constant 0 : index
    %c0_140 = arith.constant 0 : index
    %207 = vector.load %arg8[%c3_138, %c0_139, %c0_140] : memref<8x1x64xf32, #tpu.memory_space<vmem>>, vector<1x1x64xf32>
    %208 = vector.shape_cast %207 : vector<1x1x64xf32> to vector<1x64xf32>
    %209 = vector.broadcast %208 : vector<1x64xf32> to vector<56x64xf32>
    %210 = arith.addf %206, %209 : vector<56x64xf32>
    %211 = vector.extract_strided_slice %210 {offsets = [0, 0], sizes = [56, 32], strides = [1, 1]} : vector<56x64xf32> to vector<56x32xf32>
    %212 = math.tanh %211 : vector<56x32xf32>
    %213 = vector.extract_strided_slice %210 {offsets = [0, 32], sizes = [56, 32], strides = [1, 1]} : vector<56x64xf32> to vector<56x32xf32>
    %214 = arith.negf %213 : vector<56x32xf32>
    %215 = math.exp %214 : vector<56x32xf32>
    %cst_141 = arith.constant 1.000000e+00 : f32
    %216 = vector.broadcast %cst_141 : f32 to vector<56x32xf32>
    %217 = arith.addf %216, %215 : vector<56x32xf32>
    %218 = arith.divf %216, %217 : vector<56x32xf32>
    %219 = arith.mulf %212, %218 : vector<56x32xf32>
    %220 = vector.extract_strided_slice %219 {offsets = [48, 0], sizes = [8, 32], strides = [1, 1]} : vector<56x32xf32> to vector<8x32xf32>
    %c3_142 = arith.constant 3 : index
    %c0_143 = arith.constant 0 : index
    %c0_144 = arith.constant 0 : index
    %221 = vector.load %arg9[%c3_142, %c0_143, %c0_144] : memref<8x32x256xf32, #tpu.memory_space<vmem>>, vector<1x32x256xf32>
    %222 = vector.shape_cast %221 : vector<1x32x256xf32> to vector<32x256xf32>
    %cst_145 = arith.constant dense<0.000000e+00> : vector<8x256xf32>
    %223 = tpu.matmul %220, %222, %cst_145 {dimension_numbers = #tpu.dot_dimension_numbers<[1], [0], [0], [1], [0, 0, 1, 1], [], []>} : vector<8x32xf32>, vector<32x256xf32>, vector<8x256xf32> -> vector<8x256xf32>
    %224 = arith.addf %170, %223 : vector<8x256xf32>
    %c3_146 = arith.constant 3 : index
    %c0_147 = arith.constant 0 : index
    %c0_148 = arith.constant 0 : index
    %225 = vector.load %arg10[%c3_146, %c0_147, %c0_148] : memref<8x1x256xf32, #tpu.memory_space<vmem>>, vector<1x1x256xf32>
    %226 = vector.shape_cast %225 : vector<1x1x256xf32> to vector<1x256xf32>
    %227 = vector.broadcast %226 : vector<1x256xf32> to vector<8x256xf32>
    %228 = arith.addf %224, %227 : vector<8x256xf32>
    %229 = vector.shape_cast %219 : vector<56x32xf32> to vector<7x8x32xf32>
    %230 = vector.shape_cast %14 : vector<8x8xf32> to vector<1x8x8xf32>
    %231 = vector.broadcast %230 : vector<1x8x8xf32> to vector<7x8x8xf32>
    "tpu.trace_start"() <{level = 10 : i32, message = "twv,tvc->twc"}> : () -> ()
    %cst_149 = arith.constant dense<0.000000e+00> : vector<7x8x32xf32>
    %232 = tpu.matmul %231, %229, %cst_149 {dimension_numbers = #tpu.dot_dimension_numbers<[2], [1], [1], [2], [0, 0, 0, 1, 1, 2], [0], [0]>} : vector<7x8x8xf32>, vector<7x8x32xf32>, vector<7x8x32xf32> -> vector<7x8x32xf32>
    %cst_150 = arith.constant dense<0.000000e+00> : vector<7x8x32xf32>
    %233 = tpu.matmul %231, %232, %cst_150 {dimension_numbers = #tpu.dot_dimension_numbers<[2], [1], [1], [2], [0, 0, 0, 1, 1, 2], [0], [0]>} : vector<7x8x8xf32>, vector<7x8x32xf32>, vector<7x8x32xf32> -> vector<7x8x32xf32>
    "tpu.trace_stop"() : () -> ()
    %c3_151 = arith.constant 3 : index
    %c0_152 = arith.constant 0 : index
    %c0_153 = arith.constant 0 : index
    %234 = vector.load %arg11[%c3_151, %c0_152, %c0_153] : memref<8x32x32xf32, #tpu.memory_space<vmem>>, vector<1x32x32xf32>
    %235 = vector.shape_cast %234 : vector<1x32x32xf32> to vector<32x32xf32>
    %cst_154 = arith.constant dense<0.000000e+00> : vector<56x32xf32>
    %236 = tpu.matmul %219, %235, %cst_154 {dimension_numbers = #tpu.dot_dimension_numbers<[1], [0], [0], [1], [0, 0, 1, 1], [], []>} : vector<56x32xf32>, vector<32x32xf32>, vector<56x32xf32> -> vector<56x32xf32>
    %237 = vector.shape_cast %232 : vector<7x8x32xf32> to vector<56x32xf32>
    %c3_155 = arith.constant 3 : index
    %c0_156 = arith.constant 0 : index
    %c0_157 = arith.constant 0 : index
    %238 = vector.load %arg12[%c3_155, %c0_156, %c0_157] : memref<8x32x32xf32, #tpu.memory_space<vmem>>, vector<1x32x32xf32>
    %239 = vector.shape_cast %238 : vector<1x32x32xf32> to vector<32x32xf32>
    %cst_158 = arith.constant dense<0.000000e+00> : vector<56x32xf32>
    %240 = tpu.matmul %237, %239, %cst_158 {dimension_numbers = #tpu.dot_dimension_numbers<[1], [0], [0], [1], [0, 0, 1, 1], [], []>} : vector<56x32xf32>, vector<32x32xf32>, vector<56x32xf32> -> vector<56x32xf32>
    %241 = arith.addf %236, %240 : vector<56x32xf32>
    %242 = vector.shape_cast %233 : vector<7x8x32xf32> to vector<56x32xf32>
    %c3_159 = arith.constant 3 : index
    %c0_160 = arith.constant 0 : index
    %c0_161 = arith.constant 0 : index
    %243 = vector.load %arg13[%c3_159, %c0_160, %c0_161] : memref<8x32x32xf32, #tpu.memory_space<vmem>>, vector<1x32x32xf32>
    %244 = vector.shape_cast %243 : vector<1x32x32xf32> to vector<32x32xf32>
    %cst_162 = arith.constant dense<0.000000e+00> : vector<56x32xf32>
    %245 = tpu.matmul %242, %244, %cst_162 {dimension_numbers = #tpu.dot_dimension_numbers<[1], [0], [0], [1], [0, 0, 1, 1], [], []>} : vector<56x32xf32>, vector<32x32xf32>, vector<56x32xf32> -> vector<56x32xf32>
    %246 = arith.addf %241, %245 : vector<56x32xf32>
    %c3_163 = arith.constant 3 : index
    %c0_164 = arith.constant 0 : index
    %c0_165 = arith.constant 0 : index
    %247 = vector.load %arg15[%c3_163, %c0_164, %c0_165] : memref<8x1x32xf32, #tpu.memory_space<vmem>>, vector<1x1x32xf32>
    %248 = vector.shape_cast %247 : vector<1x1x32xf32> to vector<1x32xf32>
    %249 = vector.broadcast %248 : vector<1x32xf32> to vector<56x32xf32>
    %250 = arith.mulf %199, %249 : vector<56x32xf32>
    %251 = arith.addf %246, %250 : vector<56x32xf32>
    %c3_166 = arith.constant 3 : index
    %c0_167 = arith.constant 0 : index
    %c0_168 = arith.constant 0 : index
    %252 = vector.load %arg14[%c3_166, %c0_167, %c0_168] : memref<8x1x32xf32, #tpu.memory_space<vmem>>, vector<1x1x32xf32>
    %253 = vector.shape_cast %252 : vector<1x1x32xf32> to vector<1x32xf32>
    %254 = vector.broadcast %253 : vector<1x32xf32> to vector<56x32xf32>
    %255 = arith.addf %251, %254 : vector<56x32xf32>
    %256 = vector.extract_strided_slice %255 {offsets = [0, 0], sizes = [48, 32], strides = [1, 1]} : vector<56x32xf32> to vector<48x32xf32>
    %257 = vector.extract_strided_slice %255 {offsets = [8, 0], sizes = [48, 32], strides = [1, 1]} : vector<56x32xf32> to vector<48x32xf32>
    %c4 = arith.constant 4 : index
    %c0_169 = arith.constant 0 : index
    %c0_170 = arith.constant 0 : index
    %258 = vector.load %arg6[%c4, %c0_169, %c0_170] : memref<8x32x64xf32, #tpu.memory_space<vmem>>, vector<1x32x64xf32>
    %259 = vector.shape_cast %258 : vector<1x32x64xf32> to vector<32x64xf32>
    %cst_171 = arith.constant dense<0.000000e+00> : vector<48x64xf32>
    %260 = tpu.matmul %256, %259, %cst_171 {dimension_numbers = #tpu.dot_dimension_numbers<[1], [0], [0], [1], [0, 0, 1, 1], [], []>} : vector<48x32xf32>, vector<32x64xf32>, vector<48x64xf32> -> vector<48x64xf32>
    %c4_172 = arith.constant 4 : index
    %c0_173 = arith.constant 0 : index
    %c0_174 = arith.constant 0 : index
    %261 = vector.load %arg7[%c4_172, %c0_173, %c0_174] : memref<8x32x64xf32, #tpu.memory_space<vmem>>, vector<1x32x64xf32>
    %262 = vector.shape_cast %261 : vector<1x32x64xf32> to vector<32x64xf32>
    %cst_175 = arith.constant dense<0.000000e+00> : vector<48x64xf32>
    %263 = tpu.matmul %257, %262, %cst_175 {dimension_numbers = #tpu.dot_dimension_numbers<[1], [0], [0], [1], [0, 0, 1, 1], [], []>} : vector<48x32xf32>, vector<32x64xf32>, vector<48x64xf32> -> vector<48x64xf32>
    %264 = arith.addf %260, %263 : vector<48x64xf32>
    %c4_176 = arith.constant 4 : index
    %c0_177 = arith.constant 0 : index
    %c0_178 = arith.constant 0 : index
    %265 = vector.load %arg8[%c4_176, %c0_177, %c0_178] : memref<8x1x64xf32, #tpu.memory_space<vmem>>, vector<1x1x64xf32>
    %266 = vector.shape_cast %265 : vector<1x1x64xf32> to vector<1x64xf32>
    %267 = vector.broadcast %266 : vector<1x64xf32> to vector<48x64xf32>
    %268 = arith.addf %264, %267 : vector<48x64xf32>
    %269 = vector.extract_strided_slice %268 {offsets = [0, 0], sizes = [48, 32], strides = [1, 1]} : vector<48x64xf32> to vector<48x32xf32>
    %270 = math.tanh %269 : vector<48x32xf32>
    %271 = vector.extract_strided_slice %268 {offsets = [0, 32], sizes = [48, 32], strides = [1, 1]} : vector<48x64xf32> to vector<48x32xf32>
    %272 = arith.negf %271 : vector<48x32xf32>
    %273 = math.exp %272 : vector<48x32xf32>
    %cst_179 = arith.constant 1.000000e+00 : f32
    %274 = vector.broadcast %cst_179 : f32 to vector<48x32xf32>
    %275 = arith.addf %274, %273 : vector<48x32xf32>
    %276 = arith.divf %274, %275 : vector<48x32xf32>
    %277 = arith.mulf %270, %276 : vector<48x32xf32>
    %278 = vector.extract_strided_slice %277 {offsets = [40, 0], sizes = [8, 32], strides = [1, 1]} : vector<48x32xf32> to vector<8x32xf32>
    %c4_180 = arith.constant 4 : index
    %c0_181 = arith.constant 0 : index
    %c0_182 = arith.constant 0 : index
    %279 = vector.load %arg9[%c4_180, %c0_181, %c0_182] : memref<8x32x256xf32, #tpu.memory_space<vmem>>, vector<1x32x256xf32>
    %280 = vector.shape_cast %279 : vector<1x32x256xf32> to vector<32x256xf32>
    %cst_183 = arith.constant dense<0.000000e+00> : vector<8x256xf32>
    %281 = tpu.matmul %278, %280, %cst_183 {dimension_numbers = #tpu.dot_dimension_numbers<[1], [0], [0], [1], [0, 0, 1, 1], [], []>} : vector<8x32xf32>, vector<32x256xf32>, vector<8x256xf32> -> vector<8x256xf32>
    %282 = arith.addf %228, %281 : vector<8x256xf32>
    %c4_184 = arith.constant 4 : index
    %c0_185 = arith.constant 0 : index
    %c0_186 = arith.constant 0 : index
    %283 = vector.load %arg10[%c4_184, %c0_185, %c0_186] : memref<8x1x256xf32, #tpu.memory_space<vmem>>, vector<1x1x256xf32>
    %284 = vector.shape_cast %283 : vector<1x1x256xf32> to vector<1x256xf32>
    %285 = vector.broadcast %284 : vector<1x256xf32> to vector<8x256xf32>
    %286 = arith.addf %282, %285 : vector<8x256xf32>
    %287 = vector.shape_cast %277 : vector<48x32xf32> to vector<6x8x32xf32>
    %288 = vector.shape_cast %14 : vector<8x8xf32> to vector<1x8x8xf32>
    %289 = vector.broadcast %288 : vector<1x8x8xf32> to vector<6x8x8xf32>
    "tpu.trace_start"() <{level = 10 : i32, message = "twv,tvc->twc"}> : () -> ()
    %cst_187 = arith.constant dense<0.000000e+00> : vector<6x8x32xf32>
    %290 = tpu.matmul %289, %287, %cst_187 {dimension_numbers = #tpu.dot_dimension_numbers<[2], [1], [1], [2], [0, 0, 0, 1, 1, 2], [0], [0]>} : vector<6x8x8xf32>, vector<6x8x32xf32>, vector<6x8x32xf32> -> vector<6x8x32xf32>
    %cst_188 = arith.constant dense<0.000000e+00> : vector<6x8x32xf32>
    %291 = tpu.matmul %289, %290, %cst_188 {dimension_numbers = #tpu.dot_dimension_numbers<[2], [1], [1], [2], [0, 0, 0, 1, 1, 2], [0], [0]>} : vector<6x8x8xf32>, vector<6x8x32xf32>, vector<6x8x32xf32> -> vector<6x8x32xf32>
    "tpu.trace_stop"() : () -> ()
    %c4_189 = arith.constant 4 : index
    %c0_190 = arith.constant 0 : index
    %c0_191 = arith.constant 0 : index
    %292 = vector.load %arg11[%c4_189, %c0_190, %c0_191] : memref<8x32x32xf32, #tpu.memory_space<vmem>>, vector<1x32x32xf32>
    %293 = vector.shape_cast %292 : vector<1x32x32xf32> to vector<32x32xf32>
    %cst_192 = arith.constant dense<0.000000e+00> : vector<48x32xf32>
    %294 = tpu.matmul %277, %293, %cst_192 {dimension_numbers = #tpu.dot_dimension_numbers<[1], [0], [0], [1], [0, 0, 1, 1], [], []>} : vector<48x32xf32>, vector<32x32xf32>, vector<48x32xf32> -> vector<48x32xf32>
    %295 = vector.shape_cast %290 : vector<6x8x32xf32> to vector<48x32xf32>
    %c4_193 = arith.constant 4 : index
    %c0_194 = arith.constant 0 : index
    %c0_195 = arith.constant 0 : index
    %296 = vector.load %arg12[%c4_193, %c0_194, %c0_195] : memref<8x32x32xf32, #tpu.memory_space<vmem>>, vector<1x32x32xf32>
    %297 = vector.shape_cast %296 : vector<1x32x32xf32> to vector<32x32xf32>
    %cst_196 = arith.constant dense<0.000000e+00> : vector<48x32xf32>
    %298 = tpu.matmul %295, %297, %cst_196 {dimension_numbers = #tpu.dot_dimension_numbers<[1], [0], [0], [1], [0, 0, 1, 1], [], []>} : vector<48x32xf32>, vector<32x32xf32>, vector<48x32xf32> -> vector<48x32xf32>
    %299 = arith.addf %294, %298 : vector<48x32xf32>
    %300 = vector.shape_cast %291 : vector<6x8x32xf32> to vector<48x32xf32>
    %c4_197 = arith.constant 4 : index
    %c0_198 = arith.constant 0 : index
    %c0_199 = arith.constant 0 : index
    %301 = vector.load %arg13[%c4_197, %c0_198, %c0_199] : memref<8x32x32xf32, #tpu.memory_space<vmem>>, vector<1x32x32xf32>
    %302 = vector.shape_cast %301 : vector<1x32x32xf32> to vector<32x32xf32>
    %cst_200 = arith.constant dense<0.000000e+00> : vector<48x32xf32>
    %303 = tpu.matmul %300, %302, %cst_200 {dimension_numbers = #tpu.dot_dimension_numbers<[1], [0], [0], [1], [0, 0, 1, 1], [], []>} : vector<48x32xf32>, vector<32x32xf32>, vector<48x32xf32> -> vector<48x32xf32>
    %304 = arith.addf %299, %303 : vector<48x32xf32>
    %c4_201 = arith.constant 4 : index
    %c0_202 = arith.constant 0 : index
    %c0_203 = arith.constant 0 : index
    %305 = vector.load %arg15[%c4_201, %c0_202, %c0_203] : memref<8x1x32xf32, #tpu.memory_space<vmem>>, vector<1x1x32xf32>
    %306 = vector.shape_cast %305 : vector<1x1x32xf32> to vector<1x32xf32>
    %307 = vector.broadcast %306 : vector<1x32xf32> to vector<48x32xf32>
    %308 = arith.mulf %257, %307 : vector<48x32xf32>
    %309 = arith.addf %304, %308 : vector<48x32xf32>
    %c4_204 = arith.constant 4 : index
    %c0_205 = arith.constant 0 : index
    %c0_206 = arith.constant 0 : index
    %310 = vector.load %arg14[%c4_204, %c0_205, %c0_206] : memref<8x1x32xf32, #tpu.memory_space<vmem>>, vector<1x1x32xf32>
    %311 = vector.shape_cast %310 : vector<1x1x32xf32> to vector<1x32xf32>
    %312 = vector.broadcast %311 : vector<1x32xf32> to vector<48x32xf32>
    %313 = arith.addf %309, %312 : vector<48x32xf32>
    %314 = vector.extract_strided_slice %313 {offsets = [0, 0], sizes = [32, 32], strides = [1, 1]} : vector<48x32xf32> to vector<32x32xf32>
    %315 = vector.extract_strided_slice %313 {offsets = [16, 0], sizes = [32, 32], strides = [1, 1]} : vector<48x32xf32> to vector<32x32xf32>
    %c5 = arith.constant 5 : index
    %c0_207 = arith.constant 0 : index
    %c0_208 = arith.constant 0 : index
    %316 = vector.load %arg6[%c5, %c0_207, %c0_208] : memref<8x32x64xf32, #tpu.memory_space<vmem>>, vector<1x32x64xf32>
    %317 = vector.shape_cast %316 : vector<1x32x64xf32> to vector<32x64xf32>
    %cst_209 = arith.constant dense<0.000000e+00> : vector<32x64xf32>
    %318 = tpu.matmul %314, %317, %cst_209 {dimension_numbers = #tpu.dot_dimension_numbers<[1], [0], [0], [1], [0, 0, 1, 1], [], []>} : vector<32x32xf32>, vector<32x64xf32>, vector<32x64xf32> -> vector<32x64xf32>
    %c5_210 = arith.constant 5 : index
    %c0_211 = arith.constant 0 : index
    %c0_212 = arith.constant 0 : index
    %319 = vector.load %arg7[%c5_210, %c0_211, %c0_212] : memref<8x32x64xf32, #tpu.memory_space<vmem>>, vector<1x32x64xf32>
    %320 = vector.shape_cast %319 : vector<1x32x64xf32> to vector<32x64xf32>
    %cst_213 = arith.constant dense<0.000000e+00> : vector<32x64xf32>
    %321 = tpu.matmul %315, %320, %cst_213 {dimension_numbers = #tpu.dot_dimension_numbers<[1], [0], [0], [1], [0, 0, 1, 1], [], []>} : vector<32x32xf32>, vector<32x64xf32>, vector<32x64xf32> -> vector<32x64xf32>
    %322 = arith.addf %318, %321 : vector<32x64xf32>
    %c5_214 = arith.constant 5 : index
    %c0_215 = arith.constant 0 : index
    %c0_216 = arith.constant 0 : index
    %323 = vector.load %arg8[%c5_214, %c0_215, %c0_216] : memref<8x1x64xf32, #tpu.memory_space<vmem>>, vector<1x1x64xf32>
    %324 = vector.shape_cast %323 : vector<1x1x64xf32> to vector<1x64xf32>
    %325 = vector.broadcast %324 : vector<1x64xf32> to vector<32x64xf32>
    %326 = arith.addf %322, %325 : vector<32x64xf32>
    %327 = vector.extract_strided_slice %326 {offsets = [0, 0], sizes = [32, 32], strides = [1, 1]} : vector<32x64xf32> to vector<32x32xf32>
    %328 = math.tanh %327 : vector<32x32xf32>
    %329 = vector.extract_strided_slice %326 {offsets = [0, 32], sizes = [32, 32], strides = [1, 1]} : vector<32x64xf32> to vector<32x32xf32>
    %330 = arith.negf %329 : vector<32x32xf32>
    %331 = math.exp %330 : vector<32x32xf32>
    %cst_217 = arith.constant 1.000000e+00 : f32
    %332 = vector.broadcast %cst_217 : f32 to vector<32x32xf32>
    %333 = arith.addf %332, %331 : vector<32x32xf32>
    %334 = arith.divf %332, %333 : vector<32x32xf32>
    %335 = arith.mulf %328, %334 : vector<32x32xf32>
    %336 = vector.extract_strided_slice %335 {offsets = [24, 0], sizes = [8, 32], strides = [1, 1]} : vector<32x32xf32> to vector<8x32xf32>
    %c5_218 = arith.constant 5 : index
    %c0_219 = arith.constant 0 : index
    %c0_220 = arith.constant 0 : index
    %337 = vector.load %arg9[%c5_218, %c0_219, %c0_220] : memref<8x32x256xf32, #tpu.memory_space<vmem>>, vector<1x32x256xf32>
    %338 = vector.shape_cast %337 : vector<1x32x256xf32> to vector<32x256xf32>
    %cst_221 = arith.constant dense<0.000000e+00> : vector<8x256xf32>
    %339 = tpu.matmul %336, %338, %cst_221 {dimension_numbers = #tpu.dot_dimension_numbers<[1], [0], [0], [1], [0, 0, 1, 1], [], []>} : vector<8x32xf32>, vector<32x256xf32>, vector<8x256xf32> -> vector<8x256xf32>
    %340 = arith.addf %286, %339 : vector<8x256xf32>
    %c5_222 = arith.constant 5 : index
    %c0_223 = arith.constant 0 : index
    %c0_224 = arith.constant 0 : index
    %341 = vector.load %arg10[%c5_222, %c0_223, %c0_224] : memref<8x1x256xf32, #tpu.memory_space<vmem>>, vector<1x1x256xf32>
    %342 = vector.shape_cast %341 : vector<1x1x256xf32> to vector<1x256xf32>
    %343 = vector.broadcast %342 : vector<1x256xf32> to vector<8x256xf32>
    %344 = arith.addf %340, %343 : vector<8x256xf32>
    %345 = vector.shape_cast %335 : vector<32x32xf32> to vector<4x8x32xf32>
    %346 = vector.shape_cast %14 : vector<8x8xf32> to vector<1x8x8xf32>
    %347 = vector.broadcast %346 : vector<1x8x8xf32> to vector<4x8x8xf32>
    "tpu.trace_start"() <{level = 10 : i32, message = "twv,tvc->twc"}> : () -> ()
    %cst_225 = arith.constant dense<0.000000e+00> : vector<4x8x32xf32>
    %348 = tpu.matmul %347, %345, %cst_225 {dimension_numbers = #tpu.dot_dimension_numbers<[2], [1], [1], [2], [0, 0, 0, 1, 1, 2], [0], [0]>} : vector<4x8x8xf32>, vector<4x8x32xf32>, vector<4x8x32xf32> -> vector<4x8x32xf32>
    %cst_226 = arith.constant dense<0.000000e+00> : vector<4x8x32xf32>
    %349 = tpu.matmul %347, %348, %cst_226 {dimension_numbers = #tpu.dot_dimension_numbers<[2], [1], [1], [2], [0, 0, 0, 1, 1, 2], [0], [0]>} : vector<4x8x8xf32>, vector<4x8x32xf32>, vector<4x8x32xf32> -> vector<4x8x32xf32>
    "tpu.trace_stop"() : () -> ()
    %c5_227 = arith.constant 5 : index
    %c0_228 = arith.constant 0 : index
    %c0_229 = arith.constant 0 : index
    %350 = vector.load %arg11[%c5_227, %c0_228, %c0_229] : memref<8x32x32xf32, #tpu.memory_space<vmem>>, vector<1x32x32xf32>
    %351 = vector.shape_cast %350 : vector<1x32x32xf32> to vector<32x32xf32>
    %cst_230 = arith.constant dense<0.000000e+00> : vector<32x32xf32>
    %352 = tpu.matmul %335, %351, %cst_230 {dimension_numbers = #tpu.dot_dimension_numbers<[1], [0], [0], [1], [0, 0, 1, 1], [], []>} : vector<32x32xf32>, vector<32x32xf32>, vector<32x32xf32> -> vector<32x32xf32>
    %353 = vector.shape_cast %348 : vector<4x8x32xf32> to vector<32x32xf32>
    %c5_231 = arith.constant 5 : index
    %c0_232 = arith.constant 0 : index
    %c0_233 = arith.constant 0 : index
    %354 = vector.load %arg12[%c5_231, %c0_232, %c0_233] : memref<8x32x32xf32, #tpu.memory_space<vmem>>, vector<1x32x32xf32>
    %355 = vector.shape_cast %354 : vector<1x32x32xf32> to vector<32x32xf32>
    %cst_234 = arith.constant dense<0.000000e+00> : vector<32x32xf32>
    %356 = tpu.matmul %353, %355, %cst_234 {dimension_numbers = #tpu.dot_dimension_numbers<[1], [0], [0], [1], [0, 0, 1, 1], [], []>} : vector<32x32xf32>, vector<32x32xf32>, vector<32x32xf32> -> vector<32x32xf32>
    %357 = arith.addf %352, %356 : vector<32x32xf32>
    %358 = vector.shape_cast %349 : vector<4x8x32xf32> to vector<32x32xf32>
    %c5_235 = arith.constant 5 : index
    %c0_236 = arith.constant 0 : index
    %c0_237 = arith.constant 0 : index
    %359 = vector.load %arg13[%c5_235, %c0_236, %c0_237] : memref<8x32x32xf32, #tpu.memory_space<vmem>>, vector<1x32x32xf32>
    %360 = vector.shape_cast %359 : vector<1x32x32xf32> to vector<32x32xf32>
    %cst_238 = arith.constant dense<0.000000e+00> : vector<32x32xf32>
    %361 = tpu.matmul %358, %360, %cst_238 {dimension_numbers = #tpu.dot_dimension_numbers<[1], [0], [0], [1], [0, 0, 1, 1], [], []>} : vector<32x32xf32>, vector<32x32xf32>, vector<32x32xf32> -> vector<32x32xf32>
    %362 = arith.addf %357, %361 : vector<32x32xf32>
    %c5_239 = arith.constant 5 : index
    %c0_240 = arith.constant 0 : index
    %c0_241 = arith.constant 0 : index
    %363 = vector.load %arg15[%c5_239, %c0_240, %c0_241] : memref<8x1x32xf32, #tpu.memory_space<vmem>>, vector<1x1x32xf32>
    %364 = vector.shape_cast %363 : vector<1x1x32xf32> to vector<1x32xf32>
    %365 = vector.broadcast %364 : vector<1x32xf32> to vector<32x32xf32>
    %366 = arith.mulf %315, %365 : vector<32x32xf32>
    %367 = arith.addf %362, %366 : vector<32x32xf32>
    %c5_242 = arith.constant 5 : index
    %c0_243 = arith.constant 0 : index
    %c0_244 = arith.constant 0 : index
    %368 = vector.load %arg14[%c5_242, %c0_243, %c0_244] : memref<8x1x32xf32, #tpu.memory_space<vmem>>, vector<1x1x32xf32>
    %369 = vector.shape_cast %368 : vector<1x1x32xf32> to vector<1x32xf32>
    %370 = vector.broadcast %369 : vector<1x32xf32> to vector<32x32xf32>
    %371 = arith.addf %367, %370 : vector<32x32xf32>
    %372 = vector.extract_strided_slice %371 {offsets = [0, 0], sizes = [24, 32], strides = [1, 1]} : vector<32x32xf32> to vector<24x32xf32>
    %373 = vector.extract_strided_slice %371 {offsets = [8, 0], sizes = [24, 32], strides = [1, 1]} : vector<32x32xf32> to vector<24x32xf32>
    %c6 = arith.constant 6 : index
    %c0_245 = arith.constant 0 : index
    %c0_246 = arith.constant 0 : index
    %374 = vector.load %arg6[%c6, %c0_245, %c0_246] : memref<8x32x64xf32, #tpu.memory_space<vmem>>, vector<1x32x64xf32>
    %375 = vector.shape_cast %374 : vector<1x32x64xf32> to vector<32x64xf32>
    %cst_247 = arith.constant dense<0.000000e+00> : vector<24x64xf32>
    %376 = tpu.matmul %372, %375, %cst_247 {dimension_numbers = #tpu.dot_dimension_numbers<[1], [0], [0], [1], [0, 0, 1, 1], [], []>} : vector<24x32xf32>, vector<32x64xf32>, vector<24x64xf32> -> vector<24x64xf32>
    %c6_248 = arith.constant 6 : index
    %c0_249 = arith.constant 0 : index
    %c0_250 = arith.constant 0 : index
    %377 = vector.load %arg7[%c6_248, %c0_249, %c0_250] : memref<8x32x64xf32, #tpu.memory_space<vmem>>, vector<1x32x64xf32>
    %378 = vector.shape_cast %377 : vector<1x32x64xf32> to vector<32x64xf32>
    %cst_251 = arith.constant dense<0.000000e+00> : vector<24x64xf32>
    %379 = tpu.matmul %373, %378, %cst_251 {dimension_numbers = #tpu.dot_dimension_numbers<[1], [0], [0], [1], [0, 0, 1, 1], [], []>} : vector<24x32xf32>, vector<32x64xf32>, vector<24x64xf32> -> vector<24x64xf32>
    %380 = arith.addf %376, %379 : vector<24x64xf32>
    %c6_252 = arith.constant 6 : index
    %c0_253 = arith.constant 0 : index
    %c0_254 = arith.constant 0 : index
    %381 = vector.load %arg8[%c6_252, %c0_253, %c0_254] : memref<8x1x64xf32, #tpu.memory_space<vmem>>, vector<1x1x64xf32>
    %382 = vector.shape_cast %381 : vector<1x1x64xf32> to vector<1x64xf32>
    %383 = vector.broadcast %382 : vector<1x64xf32> to vector<24x64xf32>
    %384 = arith.addf %380, %383 : vector<24x64xf32>
    %385 = vector.extract_strided_slice %384 {offsets = [0, 0], sizes = [24, 32], strides = [1, 1]} : vector<24x64xf32> to vector<24x32xf32>
    %386 = math.tanh %385 : vector<24x32xf32>
    %387 = vector.extract_strided_slice %384 {offsets = [0, 32], sizes = [24, 32], strides = [1, 1]} : vector<24x64xf32> to vector<24x32xf32>
    %388 = arith.negf %387 : vector<24x32xf32>
    %389 = math.exp %388 : vector<24x32xf32>
    %cst_255 = arith.constant 1.000000e+00 : f32
    %390 = vector.broadcast %cst_255 : f32 to vector<24x32xf32>
    %391 = arith.addf %390, %389 : vector<24x32xf32>
    %392 = arith.divf %390, %391 : vector<24x32xf32>
    %393 = arith.mulf %386, %392 : vector<24x32xf32>
    %394 = vector.extract_strided_slice %393 {offsets = [16, 0], sizes = [8, 32], strides = [1, 1]} : vector<24x32xf32> to vector<8x32xf32>
    %c6_256 = arith.constant 6 : index
    %c0_257 = arith.constant 0 : index
    %c0_258 = arith.constant 0 : index
    %395 = vector.load %arg9[%c6_256, %c0_257, %c0_258] : memref<8x32x256xf32, #tpu.memory_space<vmem>>, vector<1x32x256xf32>
    %396 = vector.shape_cast %395 : vector<1x32x256xf32> to vector<32x256xf32>
    %cst_259 = arith.constant dense<0.000000e+00> : vector<8x256xf32>
    %397 = tpu.matmul %394, %396, %cst_259 {dimension_numbers = #tpu.dot_dimension_numbers<[1], [0], [0], [1], [0, 0, 1, 1], [], []>} : vector<8x32xf32>, vector<32x256xf32>, vector<8x256xf32> -> vector<8x256xf32>
    %398 = arith.addf %344, %397 : vector<8x256xf32>
    %c6_260 = arith.constant 6 : index
    %c0_261 = arith.constant 0 : index
    %c0_262 = arith.constant 0 : index
    %399 = vector.load %arg10[%c6_260, %c0_261, %c0_262] : memref<8x1x256xf32, #tpu.memory_space<vmem>>, vector<1x1x256xf32>
    %400 = vector.shape_cast %399 : vector<1x1x256xf32> to vector<1x256xf32>
    %401 = vector.broadcast %400 : vector<1x256xf32> to vector<8x256xf32>
    %402 = arith.addf %398, %401 : vector<8x256xf32>
    %403 = vector.shape_cast %393 : vector<24x32xf32> to vector<3x8x32xf32>
    %404 = vector.shape_cast %14 : vector<8x8xf32> to vector<1x8x8xf32>
    %405 = vector.broadcast %404 : vector<1x8x8xf32> to vector<3x8x8xf32>
    "tpu.trace_start"() <{level = 10 : i32, message = "twv,tvc->twc"}> : () -> ()
    %cst_263 = arith.constant dense<0.000000e+00> : vector<3x8x32xf32>
    %406 = tpu.matmul %405, %403, %cst_263 {dimension_numbers = #tpu.dot_dimension_numbers<[2], [1], [1], [2], [0, 0, 0, 1, 1, 2], [0], [0]>} : vector<3x8x8xf32>, vector<3x8x32xf32>, vector<3x8x32xf32> -> vector<3x8x32xf32>
    %cst_264 = arith.constant dense<0.000000e+00> : vector<3x8x32xf32>
    %407 = tpu.matmul %405, %406, %cst_264 {dimension_numbers = #tpu.dot_dimension_numbers<[2], [1], [1], [2], [0, 0, 0, 1, 1, 2], [0], [0]>} : vector<3x8x8xf32>, vector<3x8x32xf32>, vector<3x8x32xf32> -> vector<3x8x32xf32>
    "tpu.trace_stop"() : () -> ()
    %c6_265 = arith.constant 6 : index
    %c0_266 = arith.constant 0 : index
    %c0_267 = arith.constant 0 : index
    %408 = vector.load %arg11[%c6_265, %c0_266, %c0_267] : memref<8x32x32xf32, #tpu.memory_space<vmem>>, vector<1x32x32xf32>
    %409 = vector.shape_cast %408 : vector<1x32x32xf32> to vector<32x32xf32>
    %cst_268 = arith.constant dense<0.000000e+00> : vector<24x32xf32>
    %410 = tpu.matmul %393, %409, %cst_268 {dimension_numbers = #tpu.dot_dimension_numbers<[1], [0], [0], [1], [0, 0, 1, 1], [], []>} : vector<24x32xf32>, vector<32x32xf32>, vector<24x32xf32> -> vector<24x32xf32>
    %411 = vector.shape_cast %406 : vector<3x8x32xf32> to vector<24x32xf32>
    %c6_269 = arith.constant 6 : index
    %c0_270 = arith.constant 0 : index
    %c0_271 = arith.constant 0 : index
    %412 = vector.load %arg12[%c6_269, %c0_270, %c0_271] : memref<8x32x32xf32, #tpu.memory_space<vmem>>, vector<1x32x32xf32>
    %413 = vector.shape_cast %412 : vector<1x32x32xf32> to vector<32x32xf32>
    %cst_272 = arith.constant dense<0.000000e+00> : vector<24x32xf32>
    %414 = tpu.matmul %411, %413, %cst_272 {dimension_numbers = #tpu.dot_dimension_numbers<[1], [0], [0], [1], [0, 0, 1, 1], [], []>} : vector<24x32xf32>, vector<32x32xf32>, vector<24x32xf32> -> vector<24x32xf32>
    %415 = arith.addf %410, %414 : vector<24x32xf32>
    %416 = vector.shape_cast %407 : vector<3x8x32xf32> to vector<24x32xf32>
    %c6_273 = arith.constant 6 : index
    %c0_274 = arith.constant 0 : index
    %c0_275 = arith.constant 0 : index
    %417 = vector.load %arg13[%c6_273, %c0_274, %c0_275] : memref<8x32x32xf32, #tpu.memory_space<vmem>>, vector<1x32x32xf32>
    %418 = vector.shape_cast %417 : vector<1x32x32xf32> to vector<32x32xf32>
    %cst_276 = arith.constant dense<0.000000e+00> : vector<24x32xf32>
    %419 = tpu.matmul %416, %418, %cst_276 {dimension_numbers = #tpu.dot_dimension_numbers<[1], [0], [0], [1], [0, 0, 1, 1], [], []>} : vector<24x32xf32>, vector<32x32xf32>, vector<24x32xf32> -> vector<24x32xf32>
    %420 = arith.addf %415, %419 : vector<24x32xf32>
    %c6_277 = arith.constant 6 : index
    %c0_278 = arith.constant 0 : index
    %c0_279 = arith.constant 0 : index
    %421 = vector.load %arg15[%c6_277, %c0_278, %c0_279] : memref<8x1x32xf32, #tpu.memory_space<vmem>>, vector<1x1x32xf32>
    %422 = vector.shape_cast %421 : vector<1x1x32xf32> to vector<1x32xf32>
    %423 = vector.broadcast %422 : vector<1x32xf32> to vector<24x32xf32>
    %424 = arith.mulf %373, %423 : vector<24x32xf32>
    %425 = arith.addf %420, %424 : vector<24x32xf32>
    %c6_280 = arith.constant 6 : index
    %c0_281 = arith.constant 0 : index
    %c0_282 = arith.constant 0 : index
    %426 = vector.load %arg14[%c6_280, %c0_281, %c0_282] : memref<8x1x32xf32, #tpu.memory_space<vmem>>, vector<1x1x32xf32>
    %427 = vector.shape_cast %426 : vector<1x1x32xf32> to vector<1x32xf32>
    %428 = vector.broadcast %427 : vector<1x32xf32> to vector<24x32xf32>
    %429 = arith.addf %425, %428 : vector<24x32xf32>
    %430 = vector.extract_strided_slice %429 {offsets = [0, 0], sizes = [8, 32], strides = [1, 1]} : vector<24x32xf32> to vector<8x32xf32>
    %431 = vector.extract_strided_slice %429 {offsets = [16, 0], sizes = [8, 32], strides = [1, 1]} : vector<24x32xf32> to vector<8x32xf32>
    %c7 = arith.constant 7 : index
    %c0_283 = arith.constant 0 : index
    %c0_284 = arith.constant 0 : index
    %432 = vector.load %arg6[%c7, %c0_283, %c0_284] : memref<8x32x64xf32, #tpu.memory_space<vmem>>, vector<1x32x64xf32>
    %433 = vector.shape_cast %432 : vector<1x32x64xf32> to vector<32x64xf32>
    %cst_285 = arith.constant dense<0.000000e+00> : vector<8x64xf32>
    %434 = tpu.matmul %430, %433, %cst_285 {dimension_numbers = #tpu.dot_dimension_numbers<[1], [0], [0], [1], [0, 0, 1, 1], [], []>} : vector<8x32xf32>, vector<32x64xf32>, vector<8x64xf32> -> vector<8x64xf32>
    %c7_286 = arith.constant 7 : index
    %c0_287 = arith.constant 0 : index
    %c0_288 = arith.constant 0 : index
    %435 = vector.load %arg7[%c7_286, %c0_287, %c0_288] : memref<8x32x64xf32, #tpu.memory_space<vmem>>, vector<1x32x64xf32>
    %436 = vector.shape_cast %435 : vector<1x32x64xf32> to vector<32x64xf32>
    %cst_289 = arith.constant dense<0.000000e+00> : vector<8x64xf32>
    %437 = tpu.matmul %431, %436, %cst_289 {dimension_numbers = #tpu.dot_dimension_numbers<[1], [0], [0], [1], [0, 0, 1, 1], [], []>} : vector<8x32xf32>, vector<32x64xf32>, vector<8x64xf32> -> vector<8x64xf32>
    %438 = arith.addf %434, %437 : vector<8x64xf32>
    %c7_290 = arith.constant 7 : index
    %c0_291 = arith.constant 0 : index
    %c0_292 = arith.constant 0 : index
    %439 = vector.load %arg8[%c7_290, %c0_291, %c0_292] : memref<8x1x64xf32, #tpu.memory_space<vmem>>, vector<1x1x64xf32>
    %440 = vector.shape_cast %439 : vector<1x1x64xf32> to vector<1x64xf32>
    %441 = vector.broadcast %440 : vector<1x64xf32> to vector<8x64xf32>
    %442 = arith.addf %438, %441 : vector<8x64xf32>
    %443 = vector.extract_strided_slice %442 {offsets = [0, 0], sizes = [8, 32], strides = [1, 1]} : vector<8x64xf32> to vector<8x32xf32>
    %444 = math.tanh %443 : vector<8x32xf32>
    %445 = vector.extract_strided_slice %442 {offsets = [0, 32], sizes = [8, 32], strides = [1, 1]} : vector<8x64xf32> to vector<8x32xf32>
    %446 = arith.negf %445 : vector<8x32xf32>
    %447 = math.exp %446 : vector<8x32xf32>
    %cst_293 = arith.constant 1.000000e+00 : f32
    %448 = vector.broadcast %cst_293 : f32 to vector<8x32xf32>
    %449 = arith.addf %448, %447 : vector<8x32xf32>
    %450 = arith.divf %448, %449 : vector<8x32xf32>
    %451 = arith.mulf %444, %450 : vector<8x32xf32>
    %c7_294 = arith.constant 7 : index
    %c0_295 = arith.constant 0 : index
    %c0_296 = arith.constant 0 : index
    %452 = vector.load %arg9[%c7_294, %c0_295, %c0_296] : memref<8x32x256xf32, #tpu.memory_space<vmem>>, vector<1x32x256xf32>
    %453 = vector.shape_cast %452 : vector<1x32x256xf32> to vector<32x256xf32>
    %cst_297 = arith.constant dense<0.000000e+00> : vector<8x256xf32>
    %454 = tpu.matmul %451, %453, %cst_297 {dimension_numbers = #tpu.dot_dimension_numbers<[1], [0], [0], [1], [0, 0, 1, 1], [], []>} : vector<8x32xf32>, vector<32x256xf32>, vector<8x256xf32> -> vector<8x256xf32>
    %455 = arith.addf %402, %454 : vector<8x256xf32>
    %c7_298 = arith.constant 7 : index
    %c0_299 = arith.constant 0 : index
    %c0_300 = arith.constant 0 : index
    %456 = vector.load %arg10[%c7_298, %c0_299, %c0_300] : memref<8x1x256xf32, #tpu.memory_space<vmem>>, vector<1x1x256xf32>
    %457 = vector.shape_cast %456 : vector<1x1x256xf32> to vector<1x256xf32>
    %458 = vector.broadcast %457 : vector<1x256xf32> to vector<8x256xf32>
    %459 = arith.addf %455, %458 : vector<8x256xf32>
    %cst_301 = arith.constant 0.000000e+00 : f32
    %460 = vector.broadcast %cst_301 : f32 to vector<8x256xf32>
    %461 = arith.maximumf %459, %460 : vector<8x256xf32>
    %c0_302 = arith.constant 0 : index
    %c0_303 = arith.constant 0 : index
    %462 = vector.load %arg16[%c0_302, %c0_303] : memref<256x512xf32, #tpu.memory_space<vmem>>, vector<256x512xf32>
    %cst_304 = arith.constant dense<0.000000e+00> : vector<8x512xf32>
    %463 = tpu.matmul %461, %462, %cst_304 {dimension_numbers = #tpu.dot_dimension_numbers<[1], [0], [0], [1], [0, 0, 1, 1], [], []>} : vector<8x256xf32>, vector<256x512xf32>, vector<8x512xf32> -> vector<8x512xf32>
    %c0_305 = arith.constant 0 : index
    %c0_306 = arith.constant 0 : index
    %464 = vector.load %arg17[%c0_305, %c0_306] : memref<1x512xf32, #tpu.memory_space<vmem>>, vector<1x512xf32>
    %465 = vector.broadcast %464 : vector<1x512xf32> to vector<8x512xf32>
    %466 = arith.addf %463, %465 : vector<8x512xf32>
    %cst_307 = arith.constant 0.000000e+00 : f32
    %467 = vector.broadcast %cst_307 : f32 to vector<8x512xf32>
    %468 = arith.maximumf %466, %467 : vector<8x512xf32>
    %c0_308 = arith.constant 0 : index
    %c0_309 = arith.constant 0 : index
    %469 = vector.load %arg18[%c0_308, %c0_309] : memref<512x12xf32, #tpu.memory_space<vmem>>, vector<512x12xf32>
    %cst_310 = arith.constant dense<0.000000e+00> : vector<8x12xf32>
    %470 = tpu.matmul %468, %469, %cst_310 {dimension_numbers = #tpu.dot_dimension_numbers<[1], [0], [0], [1], [0, 0, 1, 1], [], []>} : vector<8x512xf32>, vector<512x12xf32>, vector<8x12xf32> -> vector<8x12xf32>
    %c0_311 = arith.constant 0 : index
    %c0_312 = arith.constant 0 : index
    %471 = vector.load %arg19[%c0_311, %c0_312] : memref<1x12xf32, #tpu.memory_space<vmem>>, vector<1x12xf32>
    %472 = vector.broadcast %471 : vector<1x12xf32> to vector<8x12xf32>
    %473 = arith.addf %470, %472 : vector<8x12xf32>
    %c0_313 = arith.constant 0 : index
    %c0_314 = arith.constant 0 : index
    %c0_315 = arith.constant 0 : index
    %474 = vector.load %arg20[%c0_313, %c0_314, %c0_315] : memref<1x8x12xf32, #tpu.memory_space<vmem>>, vector<1x8x12xf32>
    %475 = vector.shape_cast %474 : vector<1x8x12xf32> to vector<8x12xf32>
    %476 = vector.shape_cast %473 : vector<8x12xf32> to vector<1x8x12xf32>
    tpu.vector_store %arg20[%c0_313, %c0_314, %c0_315], %476 {strides = array<i32>} : memref<1x8x12xf32, #tpu.memory_space<vmem>>, vector<1x8x12xf32>,
    return
  }
  func.func @transform_0(%arg0: i32) -> (i32, i32, i32, i32) {
    %c0_i32 = arith.constant 0 : i32
    %c0_i32_0 = arith.constant 0 : i32
    %c0_i32_1 = arith.constant 0 : i32
    %c0_i32_2 = arith.constant 0 : i32
    return %arg0, %c0_i32, %c0_i32_0, %c0_i32_1 : i32, i32, i32, i32
  }
  func.func @transform_1(%arg0: i32) -> (i32, i32) {
    %c0_i32 = arith.constant 0 : i32
    %c0_i32_0 = arith.constant 0 : i32
    %c0_i32_1 = arith.constant 0 : i32
    return %c0_i32, %c0_i32_0 : i32, i32
  }
  func.func @transform_2(%arg0: i32) -> (i32, i32) {
    %c0_i32 = arith.constant 0 : i32
    %c0_i32_0 = arith.constant 0 : i32
    %c0_i32_1 = arith.constant 0 : i32
    return %c0_i32, %c0_i32_0 : i32, i32
  }
  func.func @transform_3(%arg0: i32) -> (i32, i32) {
    %c0_i32 = arith.constant 0 : i32
    %c0_i32_0 = arith.constant 0 : i32
    %c0_i32_1 = arith.constant 0 : i32
    return %c0_i32, %c0_i32_0 : i32, i32
  }
  func.func @transform_4(%arg0: i32) -> (i32, i32) {
    %c0_i32 = arith.constant 0 : i32
    %c0_i32_0 = arith.constant 0 : i32
    %c0_i32_1 = arith.constant 0 : i32
    return %c0_i32, %c0_i32_0 : i32, i32
  }
  func.func @transform_5(%arg0: i32) -> (i32, i32, i32) {
    %c0_i32 = arith.constant 0 : i32
    %c0_i32_0 = arith.constant 0 : i32
    %c0_i32_1 = arith.constant 0 : i32
    %c0_i32_2 = arith.constant 0 : i32
    return %c0_i32, %c0_i32_0, %c0_i32_1 : i32, i32, i32
  }
  func.func @transform_6(%arg0: i32) -> (i32, i32, i32) {
    %c0_i32 = arith.constant 0 : i32
    %c0_i32_0 = arith.constant 0 : i32
    %c0_i32_1 = arith.constant 0 : i32
    %c0_i32_2 = arith.constant 0 : i32
    return %c0_i32, %c0_i32_0, %c0_i32_1 : i32, i32, i32
  }
  func.func @transform_7(%arg0: i32) -> (i32, i32, i32) {
    %c0_i32 = arith.constant 0 : i32
    %c0_i32_0 = arith.constant 0 : i32
    %c0_i32_1 = arith.constant 0 : i32
    %c0_i32_2 = arith.constant 0 : i32
    return %c0_i32, %c0_i32_0, %c0_i32_1 : i32, i32, i32
  }
  func.func @transform_8(%arg0: i32) -> (i32, i32, i32) {
    %c0_i32 = arith.constant 0 : i32
    %c0_i32_0 = arith.constant 0 : i32
    %c0_i32_1 = arith.constant 0 : i32
    %c0_i32_2 = arith.constant 0 : i32
    return %c0_i32, %c0_i32_0, %c0_i32_1 : i32, i32, i32
  }
  func.func @transform_9(%arg0: i32) -> (i32, i32, i32) {
    %c0_i32 = arith.constant 0 : i32
    %c0_i32_0 = arith.constant 0 : i32
    %c0_i32_1 = arith.constant 0 : i32
    %c0_i32_2 = arith.constant 0 : i32
    return %c0_i32, %c0_i32_0, %c0_i32_1 : i32, i32, i32
  }
  func.func @transform_10(%arg0: i32) -> (i32, i32, i32) {
    %c0_i32 = arith.constant 0 : i32
    %c0_i32_0 = arith.constant 0 : i32
    %c0_i32_1 = arith.constant 0 : i32
    %c0_i32_2 = arith.constant 0 : i32
    return %c0_i32, %c0_i32_0, %c0_i32_1 : i32, i32, i32
  }
  func.func @transform_11(%arg0: i32) -> (i32, i32, i32) {
    %c0_i32 = arith.constant 0 : i32
    %c0_i32_0 = arith.constant 0 : i32
    %c0_i32_1 = arith.constant 0 : i32
    %c0_i32_2 = arith.constant 0 : i32
    return %c0_i32, %c0_i32_0, %c0_i32_1 : i32, i32, i32
  }
  func.func @transform_12(%arg0: i32) -> (i32, i32, i32) {
    %c0_i32 = arith.constant 0 : i32
    %c0_i32_0 = arith.constant 0 : i32
    %c0_i32_1 = arith.constant 0 : i32
    %c0_i32_2 = arith.constant 0 : i32
    return %c0_i32, %c0_i32_0, %c0_i32_1 : i32, i32, i32
  }
  func.func @transform_13(%arg0: i32) -> (i32, i32, i32) {
    %c0_i32 = arith.constant 0 : i32
    %c0_i32_0 = arith.constant 0 : i32
    %c0_i32_1 = arith.constant 0 : i32
    %c0_i32_2 = arith.constant 0 : i32
    return %c0_i32, %c0_i32_0, %c0_i32_1 : i32, i32, i32
  }
  func.func @transform_14(%arg0: i32) -> (i32, i32, i32) {
    %c0_i32 = arith.constant 0 : i32
    %c0_i32_0 = arith.constant 0 : i32
    %c0_i32_1 = arith.constant 0 : i32
    %c0_i32_2 = arith.constant 0 : i32
    return %c0_i32, %c0_i32_0, %c0_i32_1 : i32, i32, i32
  }
  func.func @transform_15(%arg0: i32) -> (i32, i32) {
    %c0_i32 = arith.constant 0 : i32
    %c0_i32_0 = arith.constant 0 : i32
    %c0_i32_1 = arith.constant 0 : i32
    return %c0_i32, %c0_i32_0 : i32, i32
  }
  func.func @transform_16(%arg0: i32) -> (i32, i32) {
    %c0_i32 = arith.constant 0 : i32
    %c0_i32_0 = arith.constant 0 : i32
    %c0_i32_1 = arith.constant 0 : i32
    return %c0_i32, %c0_i32_0 : i32, i32
  }
  func.func @transform_17(%arg0: i32) -> (i32, i32) {
    %c0_i32 = arith.constant 0 : i32
    %c0_i32_0 = arith.constant 0 : i32
    %c0_i32_1 = arith.constant 0 : i32
    return %c0_i32, %c0_i32_0 : i32, i32
  }
  func.func @transform_18(%arg0: i32) -> (i32, i32) {
    %c0_i32 = arith.constant 0 : i32
    %c0_i32_0 = arith.constant 0 : i32
    %c0_i32_1 = arith.constant 0 : i32
    return %c0_i32, %c0_i32_0 : i32, i32
  }
  func.func @transform_19(%arg0: i32) -> (i32, i32, i32) {
    %c0_i32 = arith.constant 0 : i32
    %c0_i32_0 = arith.constant 0 : i32
    %c0_i32_1 = arith.constant 0 : i32
    return %arg0, %c0_i32, %c0_i32_0 : i32, i32, i32
  }
}

</mosaic_0001>

<bundles_post_ra>
// kernel: grasp_forward.1
= control target key start
LH: loop header
LB: loop body
LE: loop exit
PB: predicated region body
PF: predicated region fallthrough
CT: control target
= control target key end

     0   :  { %s21830_s0 = inlined_call_operand.vmem [shape: f32[2,13,8,6], index: 0, kind: input, shape index: {}]   ;;  %s21831_s1 = inlined_call_operand.vmem [shape: f32[8,10], index: 1, kind: input, shape index: {}]   ;;  %s21832_s2 = inlined_call_operand.vmem [shape: f32[10,8], index: 2, kind: input, shape index: {}]   ;;  %s21833_s3 = inlined_call_operand.vmem [shape: f32[6,32], index: 3, kind: input, shape index: {}]   ;;  %s21834_s4 = inlined_call_operand.vmem [shape: f32[1,32], index: 4, kind: input, shape index: {}]   ;;  %s21835_s5 = inlined_call_operand.vmem [shape: f32[8,32,64], index: 5, kind: input, shape index: {}]   ;;  %s21836_s6 = inlined_call_operand.vmem [shape: f32[8,32,64], index: 6, kind: input, shape index: {}]   ;;  %s21837_s7 = inlined_call_operand.vmem [shape: f32[8,1,64], index: 7, kind: input, shape index: {}]   ;;  %s21838_s8 = inlined_call_operand.vmem [shape: f32[8,32,256], index: 8, kind: input, shape index: {}]   ;;  %s21839_s9 = inlined_call_operand.vmem [shape: f32[8,1,256], index: 9, kind: input, shape index: {}]   ;;  %s21840_s10 = inlined_call_operand.vmem [shape: f32[8,32,32], index: 10, kind: input, shape index: {}]   ;;  %s21841_s11 = inlined_call_operand.vmem [shape: f32[8,32,32], index: 11, kind: input, shape index: {}]   ;;  %s21842_s12 = inlined_call_operand.vmem [shape: f32[8,32,32], index: 12, kind: input, shape index: {}]   ;;  %s21843_s13 = inlined_call_operand.vmem [shape: f32[8,1,32], index: 13, kind: input, shape index: {}]   ;;  %s21844_s14 = inlined_call_operand.vmem [shape: f32[8,1,32], index: 14, kind: input, shape index: {}]   ;;  %s21845_s15 = inlined_call_operand.vmem [shape: f32[256,512], index: 15, kind: input, shape index: {}]   ;;  %s21846_s16 = inlined_call_operand.vmem [shape: f32[1,512], index: 16, kind: input, shape index: {}]   ;;  %s21847_s17 = inlined_call_operand.vmem [shape: f32[512,12], index: 17, kind: input, shape index: {}]   ;;  %s21848_s18 = inlined_call_operand.vmem [shape: f32[1,12], index: 18, kind: input, shape index: {}]   ;;  %s21849_s19 = inlined_call_operand.hbm [shape: f32[2,8,12], index: 19, kind: output, shape index: {}]  }
   0x1   :  { %21858 = sst [smem:[#allocation9_spill]] %s21830_s0 }
   0x2   :  { %21859 = sst [smem:[#allocation10_spill]] %s21831_s1 }
   0x3   :  { %21860 = sst [smem:[#allocation11_spill]] %s21832_s2 }
   0x4   :  { %21861 = sst [smem:[#allocation12_spill]] %s21833_s3 }
   0x5   :  { %21862 = sst [smem:[#allocation13_spill]] %s21834_s4 }
   0x6   :  { %21863 = sst [smem:[#allocation14_spill]] %s21835_s5 }
   0x7   :  { %24 = vsyncpa [#allocation3], 0 }
   0x8   :  { %26 = vsyncpa [#allocation3 + $0x1], 0  ;;  %s18275_s0 = smov 0   ;;  %s18277_s30 = smov 0  }
   0x9   :  { %s18279_s20 = smov 0   ;;  %s18281_s21 = smov 0  }
   0xa LB: > { %21864 = sst [smem:[#allocation5_spill]] %s18165_s20  ;;  %s18296_s1 = sadd.s32 4294967295, %s18169_s21   ;;  %s18169_s21 = sphi %s18281_s21, %s21878_s21   ;;  %s18165_s20 = sphi %s18279_s20, %s21880_s20   ;;  %s18161_s30 = sphi %s18277_s30, %s21882_s30   ;;  %s18157_s0 = sphi %s18275_s0, %s21881_s0  }
   0xb   : > { %s14987_s22 = sadd.s32 4294967294, %s18169_s21   ;;  %s18300_s2 = sadd.s32 1, %s18169_s21  }
   0xc   : > { %21865 = sst [smem:[#allocation6_spill]] %s18300_s2  ;;  %s443_s23 = sadd.s32 1, %s18165_s20 }
   0xd   : > { %s440_s24 = ssub.s32 %s18169_s21, %s18300_s2  ;;  %p453_p0 = scmp.ne.s32.totalorder %s18165_s20, %s18161_s30 }
   0xe   : > { %p441_p1 = scmp.eq.s32.totalorder %s440_s24, 0  ;;  %p454_p2 = scmp.eq.s32.totalorder %s18296_s1, 1 }
   0xf   : > { %p459_p3 = scmp.ne.s32.totalorder %s18161_s30, %s18157_s0  ;;  %p460_p4 = scmp.eq.s32.totalorder %s14987_s22, 1 }
  0x10   : > { %s18311_s25 = scalar_select %p441_p1, %s18165_s20, %s443_s23  }
  0x11   : > { %p18313_p5 = por %p454_p2, %p453_p0  ;;  %p18317_p6 = por %p460_p4, %p459_p3 }
  0x12   : > { %21866 = sst [smem:[#allocation7_spill]] %s18311_s25  ;;  %p14990_p7 = scmp.ge.s32.totalorder %s18169_s21, 1 }
  0x13   : > { %s21868_s26 = scalar_select %p18317_p6, 1, 0 }
  0x14   : > { %p540_p8 = scmp.lt.s32.totalorder %s18169_s21, 3 }
  0x15   : > { %21869 = sst [smem:[#allocation8_spill]] %s21868_s26 }
  0x16   : > { %p541_p9 = pnand %p14990_p7, %p540_p8 }
  0x17   : > { %s21870_s29 = sld [smem:[#allocation11_spill]] (!%p541_p9)  ;;  %p596_p10 = scmp.lt.s32.totalorder (!%p541_p9), %s18296_s1, 1 }
  0x18   : > { %544 = sbr.rel (%p541_p9) target bundleno = 8108 (0x1fac), region = 96  ;;  %s21871_s20 = sld [smem:[#allocation12_spill]] (!%p541_p9) }
  0x19   : > { %s21872_s2 = sld [smem:[#allocation10_spill]] (!%p541_p9)  ;;  %s21855_s28 = smov (!%p541_p9), 96  }
  0x1a   : > { %s21873_s24 = sld [smem:[#allocation9_spill]] (!%p541_p9)  ;;  %s21876_s23 = smov (!%p541_p9), 96  }
  0x1b   : > { %s21874_s5 = sld [smem:[#allocation14_spill]] (!%p541_p9) }
  0x1c   : > { %s21875_s4 = sld [smem:[#allocation13_spill]] (!%p541_p9) }
  0x1d   : > { %v603_v0 = vld [vmem:[%s21870_s29 + $0x8] sm:$0x3]  ;;  %vm608_vm0 = vcmask 1041408   ;;  %v18171_v1 = vmov 0.0   ;;  %v602_v2 = vld [vmem:[%s21870_s29] sm:$0xff]  ;;  %vm18172_vm1 = vmmov 0  }
  0x1e   : > { %16362 = vmatprep.subr.mxu0 %v18171_v1  ;;  %16366 = vmatprep.mubr.msk.f32.mxu0 %vm18172_vm1, %v18171_v1  ;;  %v740_v3 = vld [vmem:[%s21871_s20] sm:$0x3f]  ;;  %vm788_vm2 = vcmask 1045504   ;;  %vm604_vm3 = vcmask 80896   ;;  %s597_s22 = scalar_select %p596_p10, %s18296_s1, 1  ;;  %vm748_vm4 = vcmask 48128  }
  0x1f   : > { %16363 = vmatpush3.msk.msra.mxu0 %vm608_vm0, %v603_v0  ;;  %v601_v4 = vld [vmem:[%s21872_s2] sm:$0xff]  ;;  %16369 = vmatprep.subr.mxu1 %v18171_v1  ;;  %v929_v18 = vld [vmem:[%s21836_s6 + $0x18] sm:$0xff]  ;;  %v928_v19 = vld [vmem:[%s21836_s6 + $0x10] sm:$0xff]  ;;  %vm683_vm5 = vcmask 64512   ;;  %vm930_vm6 = vcmask 261120   ;;  %vm14912_vm7 = vcmask 97280  }
  0x20   : > { %16364 = vmatprep.subr.mxu0 %v18171_v1  ;;  %16370 = vmatpush3.msk.msra.mxu1 %vm788_vm2, %v740_v3  ;;  %s17747_s20 = smul.u32 104, %s597_s22  ;;  %v927_v20 = vld [vmem:[%s21836_s6 + $0x8] sm:$0xff]  ;;  %v926_v21 = vld [vmem:[%s21836_s6] sm:$0xff] }
  0x21   : > { %16365 = vmatpush3.msra.mxu0 %v602_v2  ;;  %16371 = vmatprep.mubr.msk.f32.mxu1 %vm18172_vm1, %v18171_v1  ;;  %v925_v22 = vld [vmem:[%s21874_s5 + $0x18] sm:$0xff]  ;;  %v924_v36 = vld [vmem:[%s21874_s5 + $0x10] sm:$0xff]  ;;  %v923_v38 = vld [vmem:[%s21874_s5 + $0x8] sm:$0xff] }
  0x22   : > { %16367 = vmatmul.mubr.msk.f32.vlgmr.msra.gmra.mxu0 %vm604_vm3, %v601_v4  ;;  %s18347_s29 = scalar_lea.vmem %s21873_s24, %s17747_s20  ;;  %16410 = vmatprep.subr.mxu0 %v929_v18  ;;  %v14995_v29 = vld [vmem:[%s21875_s4] ss:$0 sm:$0xff]  ;;  %s593_s24 = sand.u32 1, %s18161_s30  }
  0x23   : > { %v727_v5 = vld [vmem:[%s18347_s29] sm:$0xff]  ;;  %v728_v6 = vld [vmem:[%s18347_s29 + $0x8] sm:$0xff]  ;;  %v729_v7 = vld [vmem:[%s18347_s29 + $0x10] sm:$0xff]  ;;  %16411 = vmatpush3.msra.mxu0 %v929_v18  ;;  %s14991_s26 = sshll.u32 %s593_s24, 3  ;;  %s18174_s4 = smov [#allocation2]  }
  0x24   : > { %16372 = vmatmul.mubr.msk.f32.vlgmr.msra.gmra.mxu1 %vm748_vm4, %v727_v5  ;;  %v730_v8 = vld [vmem:[%s18347_s29 + $0x18] sm:$0xff]  ;;  %v731_v9 = vld [vmem:[%s18347_s29 + $0x20] sm:$0xff]  ;;  %v732_v10 = vld [vmem:[%s18347_s29 + $0x28] sm:$0xff]  ;;  %16412 = vmatprep.subr.mxu0 %v928_v19  ;;  %s595_s27 = scalar_lea.vmem [#allocation2], %s14991_s26 }
  0x25   : > { %16374 = vmatprep.mubr.msk.f32.mxu1 %vm18172_vm1, %v18171_v1  ;;  %v733_v11 = vld [vmem:[%s18347_s29 + $0x30] sm:$0xff]  ;;  %v734_v12 = vld [vmem:[%s18347_s29 + $0x38] sm:$0xff]  ;;  %v735_v13 = vld [vmem:[%s18347_s29 + $0x40] sm:$0xff]  ;;  %16413 = vmatpush3.msra.mxu0 %v928_v19  ;;  %s14928_s22 = sshll.u32 %s595_s27, 4  ;;  %s14929_s22 = int_to_ptr.vmem [resolvable:$true] %s14928_s22 }
  0x26   : > { %v736_v14 = vld [vmem:[%s18347_s29 + $0x48] sm:$0xff]  ;;  %v737_v15 = vld [vmem:[%s18347_s29 + $0x50] sm:$0xff]  ;;  %v738_v16 = vld [vmem:[%s18347_s29 + $0x58] sm:$0xff]  ;;  %16414 = vmatprep.subr.mxu0 %v927_v20  ;;  %s18109_s2 = scalar_lea.vmem %s14929_s22, 128 }
  0x27   : > { %v739_v17 = vld [vmem:[%s18347_s29 + $0x60] sm:$0xff]  ;;  %16415 = vmatpush3.msra.mxu0 %v927_v20  ;;  %s14915_s29 = scalar_lea.sflag [#allocation3], %s593_s24  ;;  %p18110_p11 = scmp.ne.s32.totalorder %s14929_s22, %s18109_s2 }
  0x28   : > { %16375 = vmatmul.mubr.msk.f32.gmra.mxu1 %vm748_vm4, %v728_v6  ;;  %16416 = vmatprep.subr.mxu0 %v926_v21  ;;  %v922_v41 = vld [vmem:[%s21874_s5] sm:$0xff] }
  0x29   : > { %16377 = vmatprep.mubr.msk.f32.mxu1 %vm18172_vm1, %v18171_v1  ;;  %16417 = vmatpush3.msra.mxu0 %v926_v21  ;;  %p18111_p12 = pnand %p18110_p11, %p18313_p5 }
  0x2a   : > { %16436 = vmatprep.subr.mxu0 %v925_v22 }
  0x2b   : > { %p18112_p13 = pneg %p18111_p12 }
  0x2c   : > { %16378 = vmatmul.mubr.msk.f32.gmra.mxu1 %vm748_vm4, %v729_v7 }
  0x2d   : > { %16380 = vmatprep.mubr.msk.f32.mxu1 %vm18172_vm1, %v18171_v1 }
  0x30   : > { %16381 = vmatmul.mubr.msk.f32.gmra.mxu1 %vm748_vm4, %v730_v8 }
  0x31   : > { %16383 = vmatprep.mubr.msk.f32.mxu1 %vm18172_vm1, %v18171_v1 }
  0x34   : > { %16384 = vmatmul.mubr.msk.f32.gmra.mxu1 %vm748_vm4, %v731_v9 }
  0x35   : > { %16386 = vmatprep.mubr.msk.f32.mxu1 %vm18172_vm1, %v18171_v1 }
  0x38   : > { %16387 = vmatmul.mubr.msk.f32.gmra.mxu1 %vm748_vm4, %v732_v10 }
  0x39   : > { %16389 = vmatprep.mubr.msk.f32.mxu1 %vm18172_vm1, %v18171_v1 }
  0x3c   : > { %16390 = vmatmul.mubr.msk.f32.gmra.mxu1 %vm748_vm4, %v733_v11 }
  0x3d   : > { %16392 = vmatprep.mubr.msk.f32.mxu1 %vm18172_vm1, %v18171_v1 }
  0x40   : > { %16393 = vmatmul.mubr.msk.f32.gmra.mxu1 %vm748_vm4, %v734_v12 }
  0x41   : > { %16395 = vmatprep.mubr.msk.f32.mxu1 %vm18172_vm1, %v18171_v1 }
  0x44   : > { %16396 = vmatmul.mubr.msk.f32.gmra.mxu1 %vm748_vm4, %v735_v13 }
  0x45   : > { %16398 = vmatprep.mubr.msk.f32.mxu1 %vm18172_vm1, %v18171_v1 }
  0x48   : > { %16399 = vmatmul.mubr.msk.f32.gmra.mxu1 %vm748_vm4, %v736_v14 }
  0x49   : > { %16401 = vmatprep.mubr.msk.f32.mxu1 %vm18172_vm1, %v18171_v1 }
  0x4c   : > { %16402 = vmatmul.mubr.msk.f32.gmra.mxu1 %vm748_vm4, %v737_v15 }
  0x4d   : > { %16404 = vmatprep.mubr.msk.f32.mxu1 %vm18172_vm1, %v18171_v1 }
  0x50   : > { %16405 = vmatmul.mubr.msk.f32.gmra.mxu1 %vm748_vm4, %v738_v16 }
  0x51   : > { %16407 = vmatprep.mubr.msk.f32.mxu1 %vm18172_vm1, %v18171_v1 }
  0x54   : > { %16408 = vmatmul.mubr.msk.f32.gmra.mxu1 %vm748_vm4, %v739_v17 }
  0x55   : > { %1470 = vmatprep.mubr.f32.mxu1 %v18171_v1 }
  0xe2   : > { %v18415_v23 = vpop.f32.mrf.mxu0 }
  0xe3   : > { %v682_v24 = vmax.f32 %v18415_v23, 0.0 }
  0xe4   : > { %v16368_v25 = vpop.f32.mrf.mxu0  ;;  %v858_v27 = vpop.f32.mrf.mxu1 }
  0xe5   : > { %v684_v26 = vsel %vm683_vm5, %v682_v24, -inf  ;;  %v859_v5 = vadd.f32 %v14995_v29, %v858_v27  ;;  %v18516_v25 = vld [vmem:[%s21837_s7] ss:$0 sm:$0xff] }
  0xe6   : > { %685 = vmax.xlane.f32.xlu0 %v684_v26  ;;  %v16373_v28 = vpop.f32.mrf.mxu1 }
  0xe8   : > { %v863_v30 = vpop.f32.mrf.mxu1 }
  0xe9   : > { %v18424_v31 = vadd.f32 %v14995_v29, %v863_v30 }
  0xea   : > { %v16376_v32 = vpop.f32.mrf.mxu1 }
  0xeb   : > { %16418 = vmatprep.mubr.msk.f32.mxu0 %vm930_vm6, %v18424_v31 }
  0xec   : > { %v868_v33 = vpop.f32.mrf.mxu1 }
  0xed   : > { %v18428_v34 = vadd.f32 %v14995_v29, %v868_v33 }
  0xee   : > { %v16379_v35 = vpop.f32.mrf.mxu1 }
  0xef   : > { %16419 = vmatmul.mubr.msk.f32.vlgmr.msra.gmra.mxu0 %vm930_vm6, %v18428_v34 }
  0xf0   : > { %v873_v37 = vpop.f32.mrf.mxu1  ;;  %16437 = vmatpush3.msra.mxu0 %v925_v22 }
  0xf1   : > { %v18438_v39 = vadd.f32 %v14995_v29, %v873_v37  ;;  %16438 = vmatprep.subr.mxu0 %v924_v36 }
  0xf2   : > { %v16382_v40 = vpop.f32.mrf.mxu1  ;;  %16439 = vmatpush3.msra.mxu0 %v924_v36 }
  0xf3   : > { %16421 = vmatprep.mubr.msk.f32.mxu0 %vm930_vm6, %v18438_v39  ;;  %16440 = vmatprep.subr.mxu0 %v923_v38 }
  0xf4   : > { %v878_v42 = vpop.f32.mrf.mxu1  ;;  %16441 = vmatpush3.msra.mxu0 %v923_v38 }
  0xf5   : > { %v18445_v43 = vadd.f32 %v14995_v29, %v878_v42  ;;  %16442 = vmatprep.subr.mxu0 %v922_v41 }
  0xf6   : > { %v16385_v44 = vpop.f32.mrf.mxu1  ;;  %16443 = vmatpush3.msra.mxu0 %v922_v41 }
  0xf7   : > { %16422 = vmatmul.mubr.msk.f32.gmra.mxu0 %vm930_vm6, %v18445_v43  ;;  %16467 = vmatprep.subr.mxu0 %v18171_v1 }
  0xf8   : > { %v883_v45 = vpop.f32.mrf.mxu1 }
  0xf9   : > { %v18450_v46 = vadd.f32 %v14995_v29, %v883_v45 }
  0xfa   : > { %v16388_v47 = vpop.f32.mrf.mxu1 }
  0xfb   : > { %16424 = vmatprep.mubr.msk.f32.mxu0 %vm930_vm6, %v18450_v46 }
  0xfc   : > { %v888_v48 = vpop.f32.mrf.mxu1 }
  0xfd   : > { %v18454_v49 = vadd.f32 %v14995_v29, %v888_v48 }
  0xfe   : > { %v16391_v50 = vpop.f32.mrf.mxu1 }
  0xff   : > { %16425 = vmatmul.mubr.msk.f32.gmra.mxu0 %vm930_vm6, %v18454_v49 }
 0x100   : > { %v893_v51 = vpop.f32.mrf.mxu1 }
 0x101   : > { %v18458_v52 = vadd.f32 %v14995_v29, %v893_v51 }
 0x102   : > { %v16394_v53 = vpop.f32.mrf.mxu1 }
 0x103   : > { %16427 = vmatprep.mubr.msk.f32.mxu0 %vm930_vm6, %v18458_v52 }
 0x104   : > { %v898_v54 = vpop.f32.mrf.mxu1 }
 0x105   : > { %v18462_v55 = vadd.f32 %v14995_v29, %v898_v54 }
 0x106   : > { %v16397_v56 = vpop.f32.mrf.mxu1 }
 0x107   : > { %16428 = vmatmul.mubr.msk.f32.gmra.mxu0 %vm930_vm6, %v18462_v55 }
 0x108   : > { %v903_v57 = vpop.f32.mrf.mxu1 }
 0x109   : > { %v18466_v58 = vadd.f32 %v14995_v29, %v903_v57 }
 0x10a   : > { %v16400_v59 = vpop.f32.mrf.mxu1 }
 0x10b   : > { %16430 = vmatprep.mubr.msk.f32.mxu0 %vm930_vm6, %v18466_v58 }
 0x10c   : > { %v908_v60 = vpop.f32.mrf.mxu1 }
 0x10d   : > { %v18470_v61 = vadd.f32 %v14995_v29, %v908_v60 }
 0x10e   : > { %v16403_v62 = vpop.f32.mrf.mxu1 }
 0x10f   : > { %16431 = vmatmul.mubr.msk.f32.gmra.mxu0 %vm930_vm6, %v18470_v61 }
 0x110   : > { %v913_v63 = vpop.f32.mrf.mxu1 }
 0x111   : > { %v18474_v0 = vadd.f32 %v14995_v29, %v913_v63 }
 0x112   : > { %v16406_v2 = vpop.f32.mrf.mxu1 }
 0x113   : > { %16433 = vmatprep.mubr.msk.f32.mxu0 %vm930_vm6, %v18474_v0 }
 0x114   : > { %v918_v3 = vpop.f32.mrf.mxu1 }
 0x115   : > { %v18478_v4 = vadd.f32 %v14995_v29, %v918_v3 }
 0x116   : > { %v16409_v6 = vpop.f32.mrf.mxu1 }
 0x117   : > { %16434 = vmatmul.mubr.msk.f32.gmra.mxu0 %vm930_vm6, %v18478_v4 }
 0x118   : > { %16444 = vmatprep.mubr.msk.f32.mxu0 %vm930_vm6, %v859_v5 }
 0x11b   : > { %16445 = vmatmul.mubr.msk.f32.vlgmr.msra.gmra.mxu0 %vm930_vm6, %v18424_v31 }
 0x11c   : > { %16447 = vmatprep.mubr.msk.f32.mxu0 %vm930_vm6, %v18428_v34 }
 0x11f   : > { %16448 = vmatmul.mubr.msk.f32.gmra.mxu0 %vm930_vm6, %v18438_v39 }
 0x120   : > { %16450 = vmatprep.mubr.msk.f32.mxu0 %vm930_vm6, %v18445_v43 }
 0x123   : > { %16451 = vmatmul.mubr.msk.f32.gmra.mxu0 %vm930_vm6, %v18450_v46 }
 0x124   : > { %16453 = vmatprep.mubr.msk.f32.mxu0 %vm930_vm6, %v18454_v49 }
 0x127   : > { %16454 = vmatmul.mubr.msk.f32.gmra.mxu0 %vm930_vm6, %v18458_v52 }
 0x128   : > { %16456 = vmatprep.mubr.msk.f32.mxu0 %vm930_vm6, %v18462_v55 }
 0x12b   : > { %16457 = vmatmul.mubr.msk.f32.gmra.mxu0 %vm930_vm6, %v18466_v58 }
 0x12c   : > { %16459 = vmatprep.mubr.msk.f32.mxu0 %vm930_vm6, %v18470_v61 }
 0x12f   : > { %16460 = vmatmul.mubr.msk.f32.gmra.mxu0 %vm930_vm6, %v18474_v0 }
 0x130   : > { %16469 = vmatprep.mubr.msk.f32.mxu0 %vm18172_vm1, %v18171_v1 }
 0x16f   : > { %v686_v7 = vpop.xlane.xlu0 %685 }
 0x170   : > { %v687_v8 = vsub.f32 %v682_v24, %v686_v7 }
 0x172   : > { %v688_v9 = vmul.f32 1.442695, %v687_v8 }
 0x174   : > { %17790 = vpow2.f32 %v688_v9 }
 0x181   : > { %v18509_v10 = vpop.eup %17790 }
 0x182   : > { %v690_v11 = vsel %vm683_vm5, %v18509_v10, 0.0 }
 0x183   : > { %691 = vadd.xlane.f32.xlu0 %v690_v11 }
 0x1af   : > { %v16420_v12 = vpop.f32.mrf.mxu0 }
 0x1b1   : > { %v1033_v13 = vpop.f32.mrf.mxu0 }
 0x1b7   : > { %v16423_v14 = vpop.f32.mrf.mxu0 }
 0x1b9   : > { %v1043_v15 = vpop.f32.mrf.mxu0 }
 0x1bf   : > { %v16426_v16 = vpop.f32.mrf.mxu0 }
 0x1c1   : > { %v1053_v17 = vpop.f32.mrf.mxu0 }
 0x1c7   : > { %v16429_v18 = vpop.f32.mrf.mxu0 }
 0x1c9   : > { %v1063_v19 = vpop.f32.mrf.mxu0 }
 0x1cf   : > { %v16432_v20 = vpop.f32.mrf.mxu0 }
 0x1d1   : > { %v1073_v21 = vpop.f32.mrf.mxu0 }
 0x1d7   : > { %v16435_v22 = vpop.f32.mrf.mxu0 }
 0x1d9   : > { %v1083_v23 = vpop.f32.mrf.mxu0 }
 0x1db   : > { %v16446_v24 = vpop.f32.mrf.mxu0 }
 0x1dc   : > { %v1167_v26 = vadd.f32 %v16446_v24, %v16420_v12 }
 0x1dd   : > { %v1161_v27 = vpop.f32.mrf.mxu0 }
 0x1de   : > { %v18519_v28 = vadd.f32 %v18516_v25, %v1167_v26  ;;  %v1162_v29 = vadd.f32 %v1161_v27, %v1033_v13 }
 0x1df   : > { %v16449_v30 = vpop.f32.mrf.mxu0 }
 0x1e0   : > { %v15036_v32 = vmul.f32 -1.442695, %v18519_v28  ;;  %v18523_v33 = vadd.f32 %v18516_v25, %v1162_v29  ;;  %v1177_v35 = vadd.f32 %v16449_v30, %v16423_v14 }
 0x1e1   : > { %v1171_v36 = vpop.f32.mrf.mxu0 }
 0x1e2   : > { %17792 = vpow2.f32 %v15036_v32  ;;  %v15035_v37 = vmul.f32 -1.442695, %v18523_v33  ;;  %v18527_v38 = vadd.f32 %v18516_v25, %v1177_v35  ;;  %v1172_v40 = vadd.f32 %v1171_v36, %v1043_v15 }
 0x1e3   : > { %v16452_v41 = vpop.f32.mrf.mxu0 }
 0x1e4   : > { %17794 = vpow2.f32 %v15035_v37  ;;  %v15038_v42 = vmul.f32 -1.442695, %v18527_v38  ;;  %v18531_v44 = vadd.f32 %v18516_v25, %v1172_v40  ;;  %v1187_v45 = vadd.f32 %v16452_v41, %v16426_v16 }
 0x1e5   : > { %v1181_v47 = vpop.f32.mrf.mxu0 }
 0x1e6   : > { %17796 = vpow2.f32 %v15038_v42  ;;  %v15037_v48 = vmul.f32 -1.442695, %v18531_v44  ;;  %v18535_v50 = vadd.f32 %v18516_v25, %v1187_v45  ;;  %v1182_v51 = vadd.f32 %v1181_v47, %v1053_v17 }
 0x1e7   : > { %v16455_v53 = vpop.f32.mrf.mxu0 }
 0x1e8   : > { %17798 = vpow2.f32 %v15037_v48  ;;  %v15040_v54 = vmul.f32 -1.442695, %v18535_v50  ;;  %v18539_v56 = vadd.f32 %v18516_v25, %v1182_v51  ;;  %v1197_v57 = vadd.f32 %v16455_v53, %v16429_v18 }
 0x1e9   : > { %v1191_v59 = vpop.f32.mrf.mxu0 }
 0x1ea   : > { %17800 = vpow2.f32 %v15040_v54  ;;  %v1192_v60 = vadd.f32 %v1191_v59, %v1063_v19  ;;  %v18542_v62 = vadd.f32 %v18516_v25, %v1197_v57  ;;  %v15039_v2 = vmul.f32 -1.442695, %v18539_v56 }
 0x1eb   : > { %v16458_v63 = vpop.f32.mrf.mxu0 }
 0x1ec   : > { %v18546_v5 = vadd.f32 %v18516_v25, %v1192_v60  ;;  %v15042_v8 = vmul.f32 -1.442695, %v18542_v62  ;;  %v1207_v9 = vadd.f32 %v16458_v63, %v16432_v20  ;;  %17802 = vpow2.f32 %v15039_v2 }
 0x1ed   : > { %v1201_v3 = vpop.f32.mrf.mxu0 }
 0x1ee   : > { %v1202_v6 = vadd.f32 %v1201_v3, %v1073_v21  ;;  %v15041_v17 = vmul.f32 -1.442695, %v18546_v5  ;;  %v18554_v19 = vadd.f32 %v18516_v25, %v1207_v9  ;;  %v1390_v9 = vld [vmem:[%s21838_s8 + $0x38] sm:$0xff] }
 0x1ef   : > { %v17793_v7 = vpop.eup %17792  ;;  %v16461_v11 = vpop.f32.mrf.mxu0  ;;  %1430 = vmatprep.subr.mxu1 %v1390_v9 }
 0x1f0   : > { %v1288_v12 = vadd.f32 1.0, %v17793_v7  ;;  %v18550_v13 = vadd.f32 %v18516_v25, %v1202_v6  ;;  %v1217_v26 = vadd.f32 %v16461_v11, %v16435_v22  ;;  %v15044_v30 = vmul.f32 -1.442695, %v18554_v19  ;;  %v1389_v11 = vld [vmem:[%s21838_s8 + $0x30] sm:$0xff] }
 0x1f1   : > { %v17795_v14 = vpop.eup %17794  ;;  %v1211_v15 = vpop.f32.mrf.mxu0  ;;  %1431 = vmatpush1.msra.mxu1 %v1389_v11 }
 0x1f2   : > { %17804 = vrcp.f32 %v1288_v12  ;;  %v1287_v16 = vadd.f32 1.0, %v17795_v14  ;;  %v15043_v21 = vmul.f32 -1.442695, %v18550_v13  ;;  %v1212_v20 = vadd.f32 %v1211_v15, %v1083_v23  ;;  %v1388_v12 = vld [vmem:[%s21838_s8 + $0x28] sm:$0xff]  ;;  %v1387_v15 = vld [vmem:[%s21838_s8 + $0x20] sm:$0xff] }
 0x1f3   : > { %v17797_v18 = vpop.eup %17796  ;;  %17806 = vpow2.f32 %v15042_v8  ;;  %v18562_v36 = vadd.f32 %v18516_v25, %v1217_v26  ;;  %1432 = vmatprep.subr.mxu1 %v1388_v12 }
 0x1f4   : > { %17808 = vrcp.f32 %v1287_v16  ;;  %v1290_v24 = vadd.f32 1.0, %v17797_v18  ;;  %v18559_v32 = vadd.f32 %v18516_v25, %v1212_v20  ;;  %v1386_v16 = vld [vmem:[%s21838_s8 + $0x18] sm:$0xff]  ;;  %1433 = vmatpush1.msra.mxu1 %v1387_v15 }
 0x1f5   : > { %v17799_v27 = vpop.eup %17798  ;;  %17810 = vpow2.f32 %v15041_v17  ;;  %v15046_v22 = vmul.f32 -1.442695, %v18562_v36  ;;  %v1385_v17 = vld [vmem:[%s21838_s8 + $0x10] sm:$0xff]  ;;  %1434 = vmatprep.subr.mxu1 %v1386_v16 }
 0x1f6   : > { %17812 = vpow2.f32 %v15043_v21  ;;  %v1289_v35 = vadd.f32 1.0, %v17799_v27  ;;  %v15045_v23 = vmul.f32 -1.442695, %v18559_v32  ;;  %v1384_v21 = vld [vmem:[%s21838_s8 + $0x8] sm:$0xff]  ;;  %1435 = vmatpush1.msra.mxu1 %v1385_v17 }
 0x1f7   : > { %v17801_v29 = vpop.eup %17800  ;;  %17814 = vrcp.f32 %v1290_v24  ;;  %v1383_v24 = vld [vmem:[%s21838_s8] sm:$0xff]  ;;  %1436 = vmatprep.subr.mxu1 %v1384_v21 }
 0x1f8   : > { %v1292_v37 = vadd.f32 1.0, %v17801_v29  ;;  %17816 = vpow2.f32 %v15044_v30  ;;  %1437 = vmatpush1.msra.mxu1 %v1383_v24 }
 0x1f9   : > { %17818 = vrcp.f32 %v1289_v35  ;;  %v17803_v40 = vpop.eup %17802  ;;  %16462 = vmatprep.subr.mxu1 %v18171_v1 }
 0x1fa   : > { %17820 = vrcp.f32 %v1292_v37  ;;  %v1291_v45 = vadd.f32 1.0, %v17803_v40 }
 0x1fb   : > { %17822 = vpow2.f32 %v15045_v23 }
 0x1fc   : > { %17824 = vpow2.f32 %v15046_v22 }
 0x1fd   : > { %17826 = vrcp.f32 %v1291_v45 }
 0x1ff   : > { %v17805_v41 = vpop.eup %17804 }
 0x200   : > { %v17807_v42 = vpop.eup %17806  ;;  %1337 = vrot.lane.b32.xlu0 %v17805_v41, %s21855_s28 }
 0x201   : > { %v17809_v47 = vpop.eup %17808  ;;  %v1294_v51 = vadd.f32 1.0, %v17807_v42 }
 0x202   : > { %1335 = vrot.lane.b32.xlu1 %v17809_v47, %s21855_s28  ;;  %v17811_v25 = vpop.eup %17810 }
 0x203   : > { %v17813_v48 = vpop.eup %17812  ;;  %v1293_v59 = vadd.f32 1.0, %v17811_v25 }
 0x204   : > { %v17815_v53 = vpop.eup %17814  ;;  %v1295_v54 = vadd.f32 1.0, %v17813_v48 }
 0x205   : > { %v17817_v57 = vpop.eup %17816 }
 0x206   : > { %1341 = vrot.lane.b32.xlu1 %v17815_v53, %s21855_s28  ;;  %17828 = vrcp.f32 %v1295_v54  ;;  %v17819_v60 = vpop.eup %17818  ;;  %v1296_v3 = vadd.f32 1.0, %v17817_v57 }
 0x207   : > { %17830 = vrcp.f32 %v1294_v51  ;;  %v17821_v63 = vpop.eup %17820 }
 0x208   : > { %v17823_v2 = vpop.eup %17822  ;;  %17832 = vrcp.f32 %v1293_v59 }
 0x209   : > { %v17825_v6 = vpop.eup %17824  ;;  %v1297_v7 = vadd.f32 1.0, %v17823_v2 }
 0x20a   : > { %1339 = vrot.lane.b32.xlu1 %v17819_v60, %s21855_s28  ;;  %v1298_v8 = vadd.f32 1.0, %v17825_v6  ;;  %v17827_v14 = vpop.eup %17826 }
 0x20b   : > { %17834 = vrcp.f32 %v1297_v7 }
 0x20c   : > { %17836 = vrcp.f32 %v1296_v3  ;;  %v692_v35 = vpop.xlane.xlu0 %691 }
 0x20d   : > { %17838 = vrcp.f32 %v1298_v8 }
 0x20e   : > { %1345 = vrot.lane.b32.xlu1 %v17821_v63, %s21855_s28  ;;  %17840 = vrcp.f32 %v692_v35 }
 0x20f   : > { %17842 = vtanh.f32 %v18519_v28 }
 0x210   : > { %17844 = vtanh.f32 %v18527_v38 }
 0x211   : > { %17846 = vtanh.f32 %v18531_v44 }
 0x212   : > { %1343 = vrot.lane.b32.xlu1 %v17827_v14, %s21855_s28  ;;  %17848 = vtanh.f32 %v18535_v50 }
 0x213   : > { %v17829_v18 = vpop.eup %17828  ;;  %17850 = vtanh.f32 %v18539_v56 }
 0x214   : > { %v17831_v20 = vpop.eup %17830  ;;  %1351 = vrot.lane.b32.xlu0 %v17829_v18, %s21855_s28  ;;  %17852 = vtanh.f32 %v18542_v62 }
 0x215   : > { %v17833_v26 = vpop.eup %17832  ;;  %17854 = vtanh.f32 %v18546_v5 }
 0x216   : > { %1349 = vrot.lane.b32.xlu1 %v17831_v20, %s21855_s28  ;;  %17856 = vtanh.f32 %v18554_v19 }
 0x217   : > { %17858 = vtanh.f32 %v18562_v36 }
 0x218   : > { %v17835_v27 = vpop.eup %17834  ;;  %17860 = vtanh.f32 %v18523_v33 }
 0x219   : > { %v17837_v29 = vpop.eup %17836  ;;  %1355 = vrot.lane.b32.xlu0 %v17835_v27, %s21855_s28  ;;  %17862 = vtanh.f32 %v18550_v13 }
 0x21a   : > { %1347 = vrot.lane.b32.xlu1 %v17833_v26, %s21855_s28  ;;  %v17839_v30 = vpop.eup %17838  ;;  %17864 = vtanh.f32 %v18559_v32 }
 0x21b   : > { %v17841_v37 = vpop.eup %17840 }
 0x21c   : > { %v694_v23 = vmul.f32 %v17841_v37, %v18509_v10  ;;  %v17843_v22 = vpop.eup %17842 }
 0x21d   : > { %v17845_v10 = vpop.eup %17844 }
 0x21e   : > { %1353 = vrot.lane.b32.xlu1 %v17837_v29, %s21855_s28  ;;  %v17847_v38 = vpop.eup %17846 }
 0x21f   : > { %v17849_v50 = vpop.eup %17848 }
 0x220   : > { %v17851_v51 = vpop.eup %17850 }
 0x221   : > { %v17853_v54 = vpop.eup %17852 }
 0x222   : > { %1357 = vrot.lane.b32.xlu1 %v17839_v30, %s21855_s28  ;;  %v17855_v59 = vpop.eup %17854  ;;  %s15663_s28 = sshll.u32 %s18296_s1, 7  ;;  %s18113_s1 = sshll.u32 %s18174_s4, 4  ;;  %s18114_s1 = int_to_ptr.vmem [resolvable:$false] %s18113_s1 }
 0x223   : > { %v17857_v63 = vpop.eup %17856  ;;  %s14926_s25 = scalar_lea.hbm %s21849_s19, %s15663_s28  ;;  %s18115_s26 = scalar_lea.vmem %s18114_s1, 256 }
 0x224   : > { %v17859_v19 = vpop.eup %17858  ;;  %p18116_p0 = scmp.lt.s32.totalorder %s14929_s22, %s18114_s1  ;;  %p18117_p1 = scmp.lt.s32.totalorder %s18115_s26, %s18109_s2 }
 0x225   : > { %v17861_v7 = vpop.eup %17860 }
 0x226   : > { %v17863_v32 = vpop.eup %17862  ;;  %p18118_p2 = por %p18117_p1, %p18116_p0 }
 0x227   : > { %v17865_v12 = vpop.eup %17864 }
 0x228   : > { %p18119_p3 = pnand %p18118_p2, %p18112_p13 }
 0x24b   : > { %695 = vxpose.xlu1.b32.start.end [1/1] (short) (narrow) %v694_v23, 8 }
 0x272   : > { %v1338_v40 = vpop.permute.xlu0 %1337 }
 0x273   : > { %v18608_v41 = vmul.f32 %v17843_v22, %v1338_v40 }
 0x274   : > { %v1336_v42 = vpop.permute.xlu1 %1335 }
 0x275   : > { %16468 = vmatpush3.msra.mxu0 %v18608_v41  ;;  %v18634_v36 = vmul.f32 %v17861_v7, %v1336_v42  ;;  %v3160_v7 = vld [vmem:[%s21840_s10] sm:$0xff] }
 0x276   : > { %16477 = vmatprep.subr.mxu0 %v18171_v1 }
 0x278   : > { %v1342_v45 = vpop.permute.xlu1 %1341 }
 0x279   : > { %v18613_v28 = vmul.f32 %v17845_v10, %v1342_v45 }
 0x27c   : > { %v1340_v44 = vpop.permute.xlu1 %1339 }
 0x27d   : > { %v18616_v47 = vmul.f32 %v17847_v38, %v1340_v44 }
 0x280   : > { %v1346_v25 = vpop.permute.xlu1 %1345 }
 0x281   : > { %v18619_v48 = vmul.f32 %v17849_v50, %v1346_v25 }
 0x284   : > { %v1344_v56 = vpop.permute.xlu1 %1343 }
 0x285   : > { %v18622_v53 = vmul.f32 %v17851_v51, %v1344_v56  ;;  %v3167_v56 = vld [vmem:[%s21841_s11 + $0x18] sm:$0xff] }
 0x286   : > { %v1352_v13 = vpop.permute.xlu0 %1351 }
 0x287   : > { %v18680_v9 = vmul.f32 %v17863_v32, %v1352_v13  ;;  %v3489_v13 = vld [vmem:[%s21842_s12 + $0x10] sm:$0xff] }
 0x288   : > { %v1350_v62 = vpop.permute.xlu1 %1349 }
 0x289   : > { %v18626_v57 = vmul.f32 %v17853_v54, %v1350_v62  ;;  %v3163_v54 = vld [vmem:[%s21840_s10 + $0x18] sm:$0xff] }
 0x28b   : > { %v1356_v11 = vpop.permute.xlu0 %1355 }
 0x28c   : > { %v1348_v5 = vpop.permute.xlu1 %1347  ;;  %v18694_v14 = vmul.f32 %v17865_v12, %v1356_v11 }
 0x28d   : > { %v18628_v60 = vmul.f32 %v17855_v59, %v1348_v5  ;;  %v3166_v5 = vld [vmem:[%s21841_s11 + $0x10] sm:$0xff] }
 0x290   : > { %v1354_v2 = vpop.permute.xlu1 %1353 }
 0x291   : > { %v18630_v3 = vmul.f32 %v17857_v63, %v1354_v2  ;;  %v3162_v63 = vld [vmem:[%s21840_s10 + $0x10] sm:$0xff]  ;;  %v3165_v2 = vld [vmem:[%s21841_s11 + $0x8] sm:$0xff] }
 0x294   : > { %v1358_v6 = vpop.permute.xlu1 %1357 }
 0x295   : > { %v18632_v8 = vmul.f32 %v17859_v19, %v1358_v6  ;;  %v3161_v19 = vld [vmem:[%s21840_s10 + $0x8] sm:$0xff]  ;;  %v3164_v6 = vld [vmem:[%s21841_s11] sm:$0xff] }
 0x297   : > { %15047 = vmatmul.mubr.msk.f32.vlgmr.msra.gmra.mxu1 %vm930_vm6, %v18632_v8 }
 0x298   : > { %16463 = vmatpush3.msra.mxu1 %v18634_v36  ;;  %16464 = vmatprep.mubr.msk.f32.mxu1 %vm18172_vm1, %v18171_v1 }
 0x299   : > { %16472 = vmatprep.subr.mxu1 %v18171_v1 }
 0x2c7   : > { %v18643_v33 = vpop.trf.xlu1 }
 0x2c8   : > { %16465 = vmatmul.mubr.msk.f32.vlgmr.msra.gmra.mxu1 %vm683_vm5, %v18643_v33  ;;  %16470 = vmatmul.mubr.msk.f32.vlgmr.msra.gmra.mxu0 %vm683_vm5, %v18643_v33 }
 0x2c9   : > { %16473 = vmatpush3.msra.mxu1 %v18616_v47  ;;  %16478 = vmatpush3.msra.mxu0 %v18613_v28 }
 0x2ca   : > { %16474 = vmatprep.mubr.msk.f32.mxu1 %vm18172_vm1, %v18171_v1  ;;  %16479 = vmatprep.mubr.msk.f32.mxu0 %vm18172_vm1, %v18171_v1 }
 0x2cb   : > { %16482 = vmatprep.subr.mxu1 %v18171_v1  ;;  %16487 = vmatprep.subr.mxu0 %v18171_v1 }
 0x2cc   : > { %16475 = vmatmul.mubr.msk.f32.vlgmr.msra.gmra.mxu1 %vm683_vm5, %v18643_v33  ;;  %16480 = vmatmul.mubr.msk.f32.vlgmr.msra.gmra.mxu0 %vm683_vm5, %v18643_v33 }
 0x2cd   : > { %16483 = vmatpush3.msra.mxu1 %v18622_v53  ;;  %16488 = vmatpush3.msra.mxu0 %v18619_v48 }
 0x2ce   : > { %16484 = vmatprep.mubr.msk.f32.mxu1 %vm18172_vm1, %v18171_v1  ;;  %16489 = vmatprep.mubr.msk.f32.mxu0 %vm18172_vm1, %v18171_v1 }
 0x2cf   : > { %16492 = vmatprep.subr.mxu1 %v18171_v1  ;;  %16497 = vmatprep.subr.mxu0 %v18171_v1 }
 0x2d0   : > { %16485 = vmatmul.mubr.msk.f32.vlgmr.msra.gmra.mxu1 %vm683_vm5, %v18643_v33  ;;  %16490 = vmatmul.mubr.msk.f32.vlgmr.msra.gmra.mxu0 %vm683_vm5, %v18643_v33 }
 0x2d1   : > { %16493 = vmatpush3.msra.mxu1 %v18628_v60  ;;  %16498 = vmatpush3.msra.mxu0 %v18626_v57 }
 0x2d2   : > { %16494 = vmatprep.mubr.msk.f32.mxu1 %vm18172_vm1, %v18171_v1  ;;  %16499 = vmatprep.mubr.msk.f32.mxu0 %vm18172_vm1, %v18171_v1 }
 0x2d3   : > { %16502 = vmatprep.subr.mxu1 %v18171_v1  ;;  %16507 = vmatprep.subr.mxu0 %v18171_v1 }
 0x2d4   : > { %16495 = vmatmul.mubr.msk.f32.vlgmr.msra.gmra.mxu1 %vm683_vm5, %v18643_v33  ;;  %16500 = vmatmul.mubr.msk.f32.vlgmr.msra.gmra.mxu0 %vm683_vm5, %v18643_v33 }
 0x2d5   : > { %16503 = vmatpush3.msra.mxu1 %v18680_v9  ;;  %16508 = vmatpush3.msra.mxu0 %v18630_v3 }
 0x2d6   : > { %16504 = vmatprep.mubr.msk.f32.mxu1 %vm18172_vm1, %v18171_v1  ;;  %16509 = vmatprep.mubr.msk.f32.mxu0 %vm18172_vm1, %v18171_v1 }
 0x2d7   : > { %16512 = vmatprep.subr.mxu1 %v18171_v1  ;;  %16517 = vmatprep.subr.mxu0 %v18171_v1 }
 0x2d8   : > { %16505 = vmatmul.mubr.msk.f32.vlgmr.msra.gmra.mxu1 %vm683_vm5, %v18643_v33  ;;  %16510 = vmatmul.mubr.msk.f32.vlgmr.msra.gmra.mxu0 %vm683_vm5, %v18643_v33 }
 0x2d9   : > { %16513 = vmatpush3.msra.mxu1 %v18694_v14  ;;  %16518 = vmatpush3.msra.mxu0 %v18632_v8 }
 0x2da   : > { %16514 = vmatprep.mubr.msk.f32.mxu1 %vm18172_vm1, %v18171_v1  ;;  %16519 = vmatprep.mubr.msk.f32.mxu0 %vm18172_vm1, %v18171_v1 }
 0x2db   : > { %16522 = vmatprep.subr.mxu1 %v18171_v1  ;;  %16527 = vmatprep.subr.mxu0 %v18171_v1 }
 0x2dc   : > { %16515 = vmatmul.mubr.msk.f32.vlgmr.msra.gmra.mxu1 %vm683_vm5, %v18643_v33  ;;  %16520 = vmatmul.mubr.msk.f32.vlgmr.msra.gmra.mxu0 %vm683_vm5, %v18643_v33 }
 0x2dd   : > { %16524 = vmatprep.mubr.msk.f32.mxu1 %vm18172_vm1, %v18171_v1  ;;  %16529 = vmatprep.mubr.msk.f32.mxu0 %vm18172_vm1, %v18171_v1 }
 0x357   : > { %v18718_v15 = vpop.f32.mrf.mxu1 }
 0x359   : > { %v18720_v16 = vpop.f32.mrf.mxu1 }
 0x388   : > { %v18722_v17 = vpop.f32.mrf.mxu1  ;;  %v18724_v18 = vpop.f32.mrf.mxu0 }
 0x389   : > { %16523 = vmatpush3.msra.mxu1 %v18722_v17  ;;  %16528 = vmatpush3.msra.mxu0 %v18724_v18 }
 0x38a   : > { %v16466_v21 = vpop.f32.mrf.mxu1  ;;  %v16471_v20 = vpop.f32.mrf.mxu0  ;;  %16525 = vmatmul.mubr.msk.f32.vlgmr.msra.gmra.mxu1 %vm683_vm5, %v18643_v33  ;;  %16530 = vmatmul.mubr.msk.f32.vlgmr.msra.gmra.mxu0 %vm683_vm5, %v18643_v33 }
 0x38b   : > { %16532 = vmatprep.subr.mxu1 %v18171_v1  ;;  %16537 = vmatprep.subr.mxu0 %v18171_v1 }
 0x38c   : > { %v18734_v24 = vpop.f32.mrf.mxu1  ;;  %v18736_v26 = vpop.f32.mrf.mxu0  ;;  %16534 = vmatprep.mubr.msk.f32.mxu1 %vm18172_vm1, %v18171_v1  ;;  %16539 = vmatprep.mubr.msk.f32.mxu0 %vm18172_vm1, %v18171_v1 }
 0x38d   : > { %16533 = vmatpush3.msra.mxu1 %v18734_v24  ;;  %16538 = vmatpush3.msra.mxu0 %v18736_v26 }
 0x38e   : > { %v16476_v27 = vpop.f32.mrf.mxu1  ;;  %v16481_v29 = vpop.f32.mrf.mxu0  ;;  %16535 = vmatmul.mubr.msk.f32.vlgmr.msra.gmra.mxu1 %vm683_vm5, %v18643_v33  ;;  %16540 = vmatmul.mubr.msk.f32.vlgmr.msra.gmra.mxu0 %vm683_vm5, %v18643_v33 }
 0x38f   : > { %16542 = vmatprep.subr.mxu1 %v18171_v1  ;;  %16547 = vmatprep.subr.mxu0 %v18171_v1 }
 0x390   : > { %v18750_v30 = vpop.f32.mrf.mxu1  ;;  %v18752_v35 = vpop.f32.mrf.mxu0  ;;  %16544 = vmatprep.mubr.msk.f32.mxu1 %vm18172_vm1, %v18171_v1  ;;  %16549 = vmatprep.mubr.msk.f32.mxu0 %vm18172_vm1, %v18171_v1 }
 0x391   : > { %16543 = vmatpush3.msra.mxu1 %v18750_v30  ;;  %16548 = vmatpush3.msra.mxu0 %v18752_v35 }
 0x392   : > { %v16486_v37 = vpop.f32.mrf.mxu1  ;;  %v16491_v23 = vpop.f32.mrf.mxu0  ;;  %16545 = vmatmul.mubr.msk.f32.vlgmr.msra.gmra.mxu1 %vm683_vm5, %v18643_v33  ;;  %16550 = vmatmul.mubr.msk.f32.vlgmr.msra.gmra.mxu0 %vm683_vm5, %v18643_v33 }
 0x393   : > { %16552 = vmatprep.subr.mxu1 %v18171_v1  ;;  %16557 = vmatprep.subr.mxu0 %v18171_v1 }
 0x394   : > { %v18766_v22 = vpop.f32.mrf.mxu1  ;;  %v18768_v40 = vpop.f32.mrf.mxu0  ;;  %16554 = vmatprep.mubr.msk.f32.mxu1 %vm18172_vm1, %v18171_v1  ;;  %16559 = vmatprep.mubr.msk.f32.mxu0 %vm18172_vm1, %v18171_v1 }
 0x395   : > { %16553 = vmatpush3.msra.mxu1 %v18766_v22  ;;  %16558 = vmatpush3.msra.mxu0 %v18768_v40 }
 0x396   : > { %v16496_v42 = vpop.f32.mrf.mxu1  ;;  %v16501_v10 = vpop.f32.mrf.mxu0  ;;  %16555 = vmatmul.mubr.msk.f32.vlgmr.msra.gmra.mxu1 %vm683_vm5, %v18643_v33  ;;  %16560 = vmatmul.mubr.msk.f32.vlgmr.msra.gmra.mxu0 %vm683_vm5, %v18643_v33 }
 0x397   : > { %16562 = vmatprep.subr.mxu1 %v18171_v1  ;;  %16567 = vmatprep.subr.mxu0 %v18171_v1  ;;  %v15115_v42 = vld [vmem:[%s21836_s6 + $0x28] sm:$0xff]  ;;  %v15114_v10 = vld [vmem:[%s21836_s6 + $0x20] sm:$0xff] }
 0x398   : > { %v18782_v45 = vpop.f32.mrf.mxu1  ;;  %v18784_v38 = vpop.f32.mrf.mxu0  ;;  %16564 = vmatprep.mubr.msk.f32.mxu1 %vm18172_vm1, %v18171_v1  ;;  %16569 = vmatprep.mubr.msk.f32.mxu0 %vm18172_vm1, %v18171_v1 }
 0x399   : > { %16563 = vmatpush3.msra.mxu1 %v18782_v45  ;;  %16568 = vmatpush3.msra.mxu0 %v18784_v38 }
 0x39a   : > { %v16506_v44 = vpop.f32.mrf.mxu1  ;;  %v16511_v50 = vpop.f32.mrf.mxu0  ;;  %16565 = vmatmul.mubr.msk.f32.vlgmr.msra.gmra.mxu1 %vm683_vm5, %v18643_v33  ;;  %16570 = vmatmul.mubr.msk.f32.vlgmr.msra.gmra.mxu0 %vm683_vm5, %v18643_v33 }
 0x39b   : > { %16572 = vmatprep.subr.mxu1 %v18171_v1  ;;  %16577 = vmatprep.subr.mxu0 %v18171_v1 }
 0x39c   : > { %v18798_v25 = vpop.f32.mrf.mxu1  ;;  %v18800_v51 = vpop.f32.mrf.mxu0  ;;  %16574 = vmatprep.mubr.msk.f32.mxu1 %vm18172_vm1, %v18171_v1  ;;  %16579 = vmatprep.mubr.msk.f32.mxu0 %vm18172_vm1, %v18171_v1 }
 0x39d   : > { %16573 = vmatpush3.msra.mxu1 %v18798_v25  ;;  %16578 = vmatpush3.msra.mxu0 %v18800_v51 }
 0x39e   : > { %v16516_v62 = vpop.f32.mrf.mxu1  ;;  %v16521_v59 = vpop.f32.mrf.mxu0  ;;  %16575 = vmatmul.mubr.msk.f32.vlgmr.msra.gmra.mxu1 %vm683_vm5, %v18643_v33  ;;  %16580 = vmatmul.mubr.msk.f32.vlgmr.msra.gmra.mxu0 %vm683_vm5, %v18643_v33 }
 0x39f   : > { %16582 = vmatprep.subr.mxu1 %v3167_v56  ;;  %16608 = vmatprep.subr.mxu0 %v3163_v54 }
 0x3a0   : > { %16583 = vmatpush3.msra.mxu1 %v3167_v56  ;;  %16590 = vmatprep.mubr.msk.f32.mxu1 %vm930_vm6, %v18722_v17 }
 0x3a1   : > { %16609 = vmatpush3.msra.mxu0 %v3163_v54  ;;  %16616 = vmatprep.mubr.msk.f32.mxu0 %vm930_vm6, %v18634_v36  ;;  %v3490_v36 = vld [vmem:[%s21842_s12 + $0x18] sm:$0xff] }
 0x3a2   : > { %16584 = vmatprep.subr.mxu1 %v3166_v5  ;;  %16610 = vmatprep.subr.mxu0 %v3162_v63 }
 0x3a3   : > { %16585 = vmatpush3.msra.mxu1 %v3166_v5  ;;  %16611 = vmatpush3.msra.mxu0 %v3162_v63 }
 0x3a4   : > { %16586 = vmatprep.subr.mxu1 %v3165_v2  ;;  %16612 = vmatprep.subr.mxu0 %v3161_v19 }
 0x3a5   : > { %16587 = vmatpush3.msra.mxu1 %v3165_v2  ;;  %16613 = vmatpush3.msra.mxu0 %v3161_v19 }
 0x3a6   : > { %16588 = vmatprep.subr.mxu1 %v3164_v6  ;;  %16614 = vmatprep.subr.mxu0 %v3160_v7 }
 0x3a7   : > { %16589 = vmatpush3.msra.mxu1 %v3164_v6  ;;  %16615 = vmatpush3.msra.mxu0 %v3160_v7 }
 0x3a8   : > { %16591 = vmatmul.mubr.msk.f32.vlgmr.msra.gmra.mxu1 %vm930_vm6, %v18724_v18  ;;  %16617 = vmatmul.mubr.msk.f32.vlgmr.msra.gmra.mxu0 %vm930_vm6, %v18608_v41  ;;  %v3488_v41 = vld [vmem:[%s21842_s12 + $0x8] sm:$0xff] }
 0x3a9   : > { %16593 = vmatprep.mubr.msk.f32.mxu1 %vm930_vm6, %v18734_v24  ;;  %16619 = vmatprep.mubr.msk.f32.mxu0 %vm930_vm6, %v18616_v47 }
 0x3aa   : > { %16634 = vmatprep.subr.mxu1 %v3490_v36 }
 0x3ab   : > { %16635 = vmatpush3.msra.mxu1 %v3490_v36 }
 0x3ac   : > { %16594 = vmatmul.mubr.msk.f32.gmra.mxu1 %vm930_vm6, %v18736_v26  ;;  %16620 = vmatmul.mubr.msk.f32.gmra.mxu0 %vm930_vm6, %v18613_v28  ;;  %v3487_v28 = vld [vmem:[%s21842_s12] sm:$0xff] }
 0x3ad   : > { %16596 = vmatprep.mubr.msk.f32.mxu1 %vm930_vm6, %v18750_v30  ;;  %16622 = vmatprep.mubr.msk.f32.mxu0 %vm930_vm6, %v18622_v53 }
 0x3ae   : > { %16636 = vmatprep.subr.mxu1 %v3489_v13 }
 0x3af   : > { %16637 = vmatpush3.msra.mxu1 %v3489_v13 }
 0x3b0   : > { %16597 = vmatmul.mubr.msk.f32.gmra.mxu1 %vm930_vm6, %v18752_v35  ;;  %16623 = vmatmul.mubr.msk.f32.gmra.mxu0 %vm930_vm6, %v18619_v48 }
 0x3b1   : > { %16599 = vmatprep.mubr.msk.f32.mxu1 %vm930_vm6, %v18766_v22  ;;  %16625 = vmatprep.mubr.msk.f32.mxu0 %vm930_vm6, %v18628_v60  ;;  %v15117_v22 = vld [vmem:[%s21836_s6 + $0x38] sm:$0xff] }
 0x3b2   : > { %16638 = vmatprep.subr.mxu1 %v3488_v41  ;;  %16660 = vmatprep.subr.mxu0 %v15117_v22 }
 0x3b3   : > { %16639 = vmatpush3.msra.mxu1 %v3488_v41  ;;  %16661 = vmatpush3.msra.mxu0 %v15117_v22 }
 0x3b4   : > { %16600 = vmatmul.mubr.msk.f32.gmra.mxu1 %vm930_vm6, %v18768_v40  ;;  %16626 = vmatmul.mubr.msk.f32.gmra.mxu0 %vm930_vm6, %v18626_v57  ;;  %v15116_v40 = vld [vmem:[%s21836_s6 + $0x30] sm:$0xff] }
 0x3b5   : > { %16602 = vmatprep.mubr.msk.f32.mxu1 %vm930_vm6, %v18782_v45  ;;  %16628 = vmatprep.mubr.msk.f32.mxu0 %vm930_vm6, %v18680_v9  ;;  %v18924_v45 = vld [vmem:[%s21874_s5 + $0x38] sm:$0xff] }
 0x3b6   : > { %16640 = vmatprep.subr.mxu1 %v3487_v28  ;;  %16662 = vmatprep.subr.mxu0 %v15116_v40 }
 0x3b7   : > { %16641 = vmatpush3.msra.mxu1 %v3487_v28  ;;  %16663 = vmatpush3.msra.mxu0 %v15116_v40 }
 0x3b8   : > { %16603 = vmatmul.mubr.msk.f32.gmra.mxu1 %vm930_vm6, %v18784_v38  ;;  %16629 = vmatmul.mubr.msk.f32.gmra.mxu0 %vm930_vm6, %v18630_v3 }
 0x3b9   : > { %16605 = vmatprep.mubr.msk.f32.mxu1 %vm930_vm6, %v18798_v25  ;;  %16631 = vmatprep.mubr.msk.f32.mxu0 %vm930_vm6, %v18694_v14 }
 0x3ba   : > { %16664 = vmatprep.subr.mxu0 %v15115_v42 }
 0x3bb   : > { %16665 = vmatpush3.msra.mxu0 %v15115_v42 }
 0x3bc   : > { %16606 = vmatmul.mubr.msk.f32.gmra.mxu1 %vm930_vm6, %v18800_v51  ;;  %16632 = vmatmul.mubr.msk.f32.gmra.mxu0 %vm930_vm6, %v18632_v8 }
 0x3bd   : > { %16666 = vmatprep.subr.mxu0 %v15114_v10 }
 0x3be   : > { %16667 = vmatpush3.msra.mxu0 %v15114_v10 }
 0x3bf   : > { %16683 = vmatprep.subr.mxu0 %v18924_v45 }
 0x44a   : > { %v2386_v47 = vpop.f32.mrf.mxu1  ;;  %v2456_v48 = vpop.f32.mrf.mxu0 }
 0x44b   : > { %16642 = vmatprep.mubr.msk.f32.mxu1 %vm930_vm6, %v2386_v47 }
 0x44c   : > { %v16526_v53 = vpop.f32.mrf.mxu1  ;;  %v16531_v57 = vpop.f32.mrf.mxu0  ;;  %16643 = vmatmul.mubr.msk.f32.vlgmr.msra.gmra.mxu1 %vm930_vm6, %v2456_v48 }
 0x44e   : > { %v2526_v60 = vpop.f32.mrf.mxu1  ;;  %v2596_v3 = vpop.f32.mrf.mxu0 }
 0x44f   : > { %16645 = vmatprep.mubr.msk.f32.mxu1 %vm930_vm6, %v2526_v60 }
 0x450   : > { %v16536_v32 = vpop.f32.mrf.mxu1  ;;  %v16541_v8 = vpop.f32.mrf.mxu0  ;;  %16646 = vmatmul.mubr.msk.f32.gmra.mxu1 %vm930_vm6, %v2596_v3  ;;  %v18946_v3 = vld [vmem:[%s21844_s14] ss:$0 sm:$0xff] }
 0x452   : > { %v2666_v9 = vpop.f32.mrf.mxu1  ;;  %v2736_v11 = vpop.f32.mrf.mxu0 }
 0x453   : > { %16648 = vmatprep.mubr.msk.f32.mxu1 %vm930_vm6, %v2666_v9 }
 0x454   : > { %v16546_v12 = vpop.f32.mrf.mxu1  ;;  %v16551_v14 = vpop.f32.mrf.mxu0  ;;  %16649 = vmatmul.mubr.msk.f32.gmra.mxu1 %vm930_vm6, %v2736_v11  ;;  %v3674_v11 = vmul.f32 %v18946_v3, %v18445_v43  ;;  %v3676_v43 = vmul.f32 %v18946_v3, %v18454_v49  ;;  %v3678_v49 = vmul.f32 %v18946_v3, %v18462_v55 }
 0x455   : > { %v3673_v14 = vmul.f32 %v18946_v3, %v18438_v39  ;;  %v3675_v39 = vmul.f32 %v18946_v3, %v18450_v46  ;;  %v15112_v46 = vld [vmem:[%s21874_s5 + $0x30] sm:$0xff] }
 0x456   : > { %v2806_v17 = vpop.f32.mrf.mxu1  ;;  %v2876_v18 = vpop.f32.mrf.mxu0 }
 0x457   : > { %16651 = vmatprep.mubr.msk.f32.mxu1 %vm930_vm6, %v2806_v17 }
 0x458   : > { %v16556_v21 = vpop.f32.mrf.mxu1  ;;  %v16561_v20 = vpop.f32.mrf.mxu0  ;;  %16652 = vmatmul.mubr.msk.f32.gmra.mxu1 %vm930_vm6, %v2876_v18 }
 0x45a   : > { %v2946_v24 = vpop.f32.mrf.mxu1  ;;  %v3016_v26 = vpop.f32.mrf.mxu0 }
 0x45b   : > { %16654 = vmatprep.mubr.msk.f32.mxu1 %vm930_vm6, %v2946_v24 }
 0x45c   : > { %v16566_v27 = vpop.f32.mrf.mxu1  ;;  %v16571_v29 = vpop.f32.mrf.mxu0  ;;  %16655 = vmatmul.mubr.msk.f32.gmra.mxu1 %vm930_vm6, %v3016_v26 }
 0x45e   : > { %v3086_v30 = vpop.f32.mrf.mxu1  ;;  %v3156_v35 = vpop.f32.mrf.mxu0 }
 0x45f   : > { %16657 = vmatprep.mubr.msk.f32.mxu1 %vm930_vm6, %v3086_v30  ;;  %v18955_v30 = vld [vmem:[%s21843_s13] ss:$0 sm:$0xff] }
 0x460   : > { %v16576_v37 = vpop.f32.mrf.mxu1  ;;  %v16581_v23 = vpop.f32.mrf.mxu0  ;;  %16658 = vmatmul.mubr.msk.f32.gmra.mxu1 %vm930_vm6, %v3156_v35 }
 0x461   : > { %4204 = vmatprep.mubr.f32.mxu1 %v18171_v1 }
 0x468   : > { %v18927_v38 = vpop.f32.mrf.mxu1  ;;  %v18931_v56 = vpop.f32.mrf.mxu0 }
 0x46a   : > { %v18929_v44 = vpop.f32.mrf.mxu1  ;;  %v18933_v62 = vpop.f32.mrf.mxu0 }
 0x46c   : > { %v16595_v50 = vpop.f32.mrf.mxu1  ;;  %v16621_v5 = vpop.f32.mrf.mxu0 }
 0x46d   : > { %v3444_v57 = vadd.f32 %v16621_v5, %v16595_v50  ;;  %v3677_v5 = vmul.f32 %v18946_v3, %v18458_v52 }
 0x46e   : > { %v3280_v25 = vpop.f32.mrf.mxu1  ;;  %v3438_v2 = vpop.f32.mrf.mxu0 }
 0x46f   : > { %v3439_v32 = vadd.f32 %v3438_v2, %v3280_v25 }
 0x470   : > { %v16598_v51 = vpop.f32.mrf.mxu1  ;;  %v16624_v6 = vpop.f32.mrf.mxu0 }
 0x471   : > { %v3454_v17 = vadd.f32 %v16624_v6, %v16598_v51 }
 0x472   : > { %v3290_v54 = vpop.f32.mrf.mxu1  ;;  %v3448_v36 = vpop.f32.mrf.mxu0 }
 0x473   : > { %v3449_v24 = vadd.f32 %v3448_v36, %v3290_v54  ;;  %v15111_v36 = vld [vmem:[%s21874_s5 + $0x28] sm:$0xff] }
 0x474   : > { %v16601_v59 = vpop.f32.mrf.mxu1  ;;  %v16627_v41 = vpop.f32.mrf.mxu0 }
 0x475   : > { %v3464_v37 = vadd.f32 %v16627_v41, %v16601_v59 }
 0x476   : > { %v3300_v63 = vpop.f32.mrf.mxu1  ;;  %v3458_v48 = vpop.f32.mrf.mxu0 }
 0x477   : > { %v3459_v50 = vadd.f32 %v3458_v48, %v3300_v63 }
 0x478   : > { %v16604_v19 = vpop.f32.mrf.mxu1  ;;  %v16630_v8 = vpop.f32.mrf.mxu0 }
 0x479   : > { %v3474_v63 = vadd.f32 %v16630_v8, %v16604_v19  ;;  %v3680_v8 = vmul.f32 %v18946_v3, %v18470_v61 }
 0x47a   : > { %v3310_v7 = vpop.f32.mrf.mxu1  ;;  %v3468_v26 = vpop.f32.mrf.mxu0 }
 0x47c   : > { %v18935_v13 = vpop.f32.mrf.mxu1  ;;  %v16633_v25 = vpop.f32.mrf.mxu0 }
 0x47e   : > { %v18937_v28 = vpop.f32.mrf.mxu1 }
 0x50c   : > { %v18939_v47 = vpop.f32.mrf.mxu1 }
 0x50e   : > { %v18941_v53 = vpop.f32.mrf.mxu1 }
 0x510   : > { %v16647_v60 = vpop.f32.mrf.mxu1 }
 0x511   : > { %v3655_v9 = vadd.f32 %v16647_v60, %v3444_v57  ;;  %v3469_v57 = vadd.f32 %v3468_v26, %v3310_v7  ;;  %v3478_v60 = vpop.f32.mrf.mxu0  ;;  %v3429_v7 = vadd.f32 %v18933_v62, %v18929_v44  ;;  %v3682_v44 = vmul.f32 %v18946_v3, %v18478_v4 }
 0x512   : > { %v3603_v12 = vpop.f32.mrf.mxu1  ;;  %v3434_v62 = vadd.f32 %v18931_v56, %v18927_v38 }
 0x513   : > { %v3654_v18 = vadd.f32 %v3603_v12, %v3439_v32  ;;  %v3686_v21 = vadd.f32 %v3674_v11, %v3655_v9  ;;  %v3679_v32 = vmul.f32 %v18946_v3, %v18466_v58  ;;  %v3484_v11 = vadd.f32 %v16633_v25, %v18935_v13 }
 0x514   : > { %v16650_v20 = vpop.f32.mrf.mxu1  ;;  %v3479_v58 = vadd.f32 %v3478_v60, %v18937_v28  ;;  %v3671_v28 = vmul.f32 %v18946_v3, %v18424_v31  ;;  %v3653_v4 = vadd.f32 %v18939_v47, %v3434_v62  ;;  %v3672_v31 = vmul.f32 %v18946_v3, %v18428_v34 }
 0x515   : > { %v3685_v27 = vadd.f32 %v3673_v14, %v3654_v18  ;;  %v3657_v29 = vadd.f32 %v16650_v20, %v3454_v17  ;;  %v18965_v40 = vadd.f32 %v18955_v30, %v3686_v21  ;;  %v3652_v21 = vadd.f32 %v18941_v53, %v3429_v7 }
 0x516   : > { %v3613_v35 = vpop.f32.mrf.mxu1  ;;  %v3681_v53 = vmul.f32 %v18946_v3, %v18474_v0  ;;  %v15157_v3 = vld [vmem:[%s21838_s8 + $0x78] sm:$0xff] }
 0x517   : > { %v18962_v23 = vadd.f32 %v18955_v30, %v3685_v27  ;;  %v3656_v22 = vadd.f32 %v3613_v35, %v3449_v24  ;;  %v3688_v42 = vadd.f32 %v3676_v43, %v3657_v29  ;;  %v3683_v29 = vadd.f32 %v3671_v28, %v3652_v21  ;;  %4164 = vmatprep.subr.mxu1 %v15157_v3 }
 0x518   : > { %v16653_v10 = vpop.f32.mrf.mxu1  ;;  %v3684_v35 = vadd.f32 %v3672_v31, %v3653_v4 }
 0x519   : > { %v3687_v51 = vadd.f32 %v3675_v39, %v3656_v22  ;;  %v3659_v54 = vadd.f32 %v16653_v10, %v3464_v37  ;;  %16668 = vmatprep.mubr.msk.f32.mxu0 %vm930_vm6, %v18962_v23  ;;  %v18986_v55 = vadd.f32 %v18955_v30, %v3688_v42  ;;  %v3702_v39 = vadd.f32 %v18955_v30, %v3683_v29  ;;  %v15155_v37 = vld [vmem:[%s21838_s8 + $0x68] sm:$0xff]  ;;  %v15154_v22 = vld [vmem:[%s21838_s8 + $0x60] sm:$0xff]  ;;  %v15153_v42 = vld [vmem:[%s21838_s8 + $0x58] sm:$0xff] }
 0x51a   : > { %v3623_v59 = vpop.f32.mrf.mxu1  ;;  %16669 = vmatmul.mubr.msk.f32.vlgmr.msra.gmra.mxu0 %vm930_vm6, %v18965_v40  ;;  %v3703_v34 = vadd.f32 %v18955_v30, %v3684_v35  ;;  %v15152_v10 = vld [vmem:[%s21838_s8 + $0x50] sm:$0xff] }
 0x51b   : > { %v18979_v2 = vadd.f32 %v18955_v30, %v3687_v51  ;;  %v3658_v6 = vadd.f32 %v3623_v59, %v3459_v50  ;;  %16684 = vmatpush3.msra.mxu0 %v18924_v45  ;;  %v3690_v41 = vadd.f32 %v3678_v49, %v3659_v54  ;;  %v15110_v45 = vld [vmem:[%s21874_s5 + $0x20] sm:$0xff] }
 0x51c   : > { %v16656_v48 = vpop.f32.mrf.mxu1  ;;  %16685 = vmatprep.subr.mxu0 %v15112_v46 }
 0x51d   : > { %v3689_v52 = vadd.f32 %v3677_v5, %v3658_v6  ;;  %v3661_v19 = vadd.f32 %v16656_v48, %v3474_v63  ;;  %16671 = vmatprep.mubr.msk.f32.mxu0 %vm930_vm6, %v18979_v2  ;;  %16686 = vmatpush3.msra.mxu0 %v15112_v46  ;;  %v19007_v17 = vadd.f32 %v18955_v30, %v3690_v41 }
 0x51e   : > { %v3633_v9 = vpop.f32.mrf.mxu1  ;;  %16672 = vmatmul.mubr.msk.f32.gmra.mxu0 %vm930_vm6, %v18986_v55  ;;  %16687 = vmatprep.subr.mxu0 %v15111_v36 }
 0x51f   : > { %v19003_v12 = vadd.f32 %v18955_v30, %v3689_v52  ;;  %v3660_v14 = vadd.f32 %v3633_v9, %v3469_v57  ;;  %16688 = vmatpush3.msra.mxu0 %v15111_v36  ;;  %v3692_v61 = vadd.f32 %v3680_v8, %v3661_v19 }
 0x520   : > { %v16659_v18 = vpop.f32.mrf.mxu1  ;;  %16689 = vmatprep.subr.mxu0 %v15110_v45 }
 0x521   : > { %v3691_v20 = vadd.f32 %v3679_v32, %v3660_v14  ;;  %v3663_v24 = vadd.f32 %v16659_v18, %v3484_v11  ;;  %16674 = vmatprep.mubr.msk.f32.mxu0 %vm930_vm6, %v19003_v12  ;;  %16690 = vmatpush3.msra.mxu0 %v15110_v45  ;;  %v19028_v38 = vadd.f32 %v18955_v30, %v3692_v61  ;;  %v15139_v32 = vld [vmem:[%s21837_s7 + $0x1] ss:$0 sm:$0xff] }
 0x522   : > { %v3643_v13 = vpop.f32.mrf.mxu1  ;;  %16675 = vmatmul.mubr.msk.f32.gmra.mxu0 %vm930_vm6, %v19007_v17  ;;  %16726 = vmatprep.subr.mxu0 %v18171_v1 }
 0x523   : > { %v19024_v26 = vadd.f32 %v18955_v30, %v3691_v20  ;;  %v3662_v27 = vadd.f32 %v3643_v13, %v3479_v58  ;;  %v3694_v56 = vadd.f32 %v3682_v44, %v3663_v24 }
 0x525   : > { %v3693_v43 = vadd.f32 %v3681_v53, %v3662_v27  ;;  %16677 = vmatprep.mubr.msk.f32.mxu0 %vm930_vm6, %v19024_v26  ;;  %v19040_v47 = vadd.f32 %v18955_v30, %v3694_v56 }
 0x526   : > { %16678 = vmatmul.mubr.msk.f32.gmra.mxu0 %vm930_vm6, %v19028_v38 }
 0x527   : > { %v19037_v0 = vadd.f32 %v18955_v30, %v3693_v43  ;;  %v15156_v30 = vld [vmem:[%s21838_s8 + $0x70] sm:$0xff] }
 0x528   : > { %4165 = vmatpush1.msra.mxu1 %v15156_v30 }
 0x529   : > { %16680 = vmatprep.mubr.msk.f32.mxu0 %vm930_vm6, %v19037_v0  ;;  %4166 = vmatprep.subr.mxu1 %v15155_v37 }
 0x52a   : > { %16681 = vmatmul.mubr.msk.f32.gmra.mxu0 %vm930_vm6, %v19040_v47  ;;  %4167 = vmatpush1.msra.mxu1 %v15154_v22 }
 0x52b   : > { %16691 = vmatprep.mubr.msk.f32.mxu0 %vm930_vm6, %v3702_v39  ;;  %4168 = vmatprep.subr.mxu1 %v15153_v42 }
 0x52c   : > { %4169 = vmatpush1.msra.mxu1 %v15152_v10 }
 0x52e   : > { %16692 = vmatmul.mubr.msk.f32.vlgmr.msra.gmra.mxu0 %vm930_vm6, %v3703_v34 }
 0x52f   : > { %16694 = vmatprep.mubr.msk.f32.mxu0 %vm930_vm6, %v18962_v23 }
 0x532   : > { %16695 = vmatmul.mubr.msk.f32.gmra.mxu0 %vm930_vm6, %v18965_v40 }
 0x533   : > { %16697 = vmatprep.mubr.msk.f32.mxu0 %vm930_vm6, %v18979_v2 }
 0x536   : > { %16698 = vmatmul.mubr.msk.f32.gmra.mxu0 %vm930_vm6, %v18986_v55 }
 0x537   : > { %16700 = vmatprep.mubr.msk.f32.mxu0 %vm930_vm6, %v19003_v12 }
 0x53a   : > { %16701 = vmatmul.mubr.msk.f32.gmra.mxu0 %vm930_vm6, %v19007_v17 }
 0x53b   : > { %16703 = vmatprep.mubr.msk.f32.mxu0 %vm930_vm6, %v19024_v26 }
 0x53e   : > { %16704 = vmatmul.mubr.msk.f32.gmra.mxu0 %vm930_vm6, %v19028_v38 }
 0x53f   : > { %16728 = vmatprep.mubr.msk.f32.mxu0 %vm18172_vm1, %v18171_v1 }
 0x5da   : > { %v16670_v50 = vpop.f32.mrf.mxu0 }
 0x5dc   : > { %v3820_v25 = vpop.f32.mrf.mxu0 }
 0x5de   : > { %v16673_v51 = vpop.f32.mrf.mxu0 }
 0x5e0   : > { %v3830_v54 = vpop.f32.mrf.mxu0 }
 0x5e2   : > { %v16676_v46 = vpop.f32.mrf.mxu0 }
 0x5e4   : > { %v3840_v49 = vpop.f32.mrf.mxu0 }
 0x5e6   : > { %v16679_v59 = vpop.f32.mrf.mxu0 }
 0x5e8   : > { %v3850_v5 = vpop.f32.mrf.mxu0 }
 0x5ea   : > { %v16682_v63 = vpop.f32.mrf.mxu0 }
 0x5ec   : > { %v3860_v6 = vpop.f32.mrf.mxu0 }
 0x5ee   : > { %v16693_v36 = vpop.f32.mrf.mxu0 }
 0x5ef   : > { %v3947_v7 = vadd.f32 %v16693_v36, %v16670_v50  ;;  %v15151_v50 = vld [vmem:[%s21838_s8 + $0x48] sm:$0xff] }
 0x5f0   : > { %v3941_v41 = vpop.f32.mrf.mxu0  ;;  %4170 = vmatprep.subr.mxu1 %v15151_v50 }
 0x5f1   : > { %v3942_v19 = vadd.f32 %v3941_v41, %v3820_v25  ;;  %v19094_v18 = vadd.f32 %v15139_v32, %v3947_v7  ;;  %v15150_v25 = vld [vmem:[%s21838_s8 + $0x40] sm:$0xff] }
 0x5f2   : > { %v16696_v48 = vpop.f32.mrf.mxu0  ;;  %4171 = vmatpush1.msra.mxu1 %v15150_v25 }
 0x5f3   : > { %v19089_v9 = vadd.f32 %v15139_v32, %v3942_v19  ;;  %v3957_v24 = vadd.f32 %v16696_v48, %v16673_v51  ;;  %v15141_v44 = vmul.f32 -1.442695, %v19094_v18  ;;  %16706 = vmatprep.subr.mxu1 %v18171_v1 }
 0x5f4   : > { %v3951_v57 = vpop.f32.mrf.mxu0 }
 0x5f5   : > { %v15140_v58 = vmul.f32 -1.442695, %v19089_v9  ;;  %v3952_v21 = vadd.f32 %v3951_v57, %v3830_v54  ;;  %v19100_v13 = vadd.f32 %v15139_v32, %v3957_v24 }
 0x5f6   : > { %v16699_v60 = vpop.f32.mrf.mxu0 }
 0x5f7   : > { %17866 = vpow2.f32 %v15140_v58  ;;  %v19098_v62 = vadd.f32 %v15139_v32, %v3952_v21  ;;  %v15143_v27 = vmul.f32 -1.442695, %v19100_v13  ;;  %v3967_v4 = vadd.f32 %v16699_v60, %v16676_v46 }
 0x5f8   : > { %v3961_v52 = vpop.f32.mrf.mxu0 }
 0x5f9   : > { %v3962_v28 = vadd.f32 %v3961_v52, %v3840_v49  ;;  %v15142_v53 = vmul.f32 -1.442695, %v19098_v62  ;;  %v19106_v29 = vadd.f32 %v15139_v32, %v3967_v4 }
 0x5fa   : > { %v16702_v45 = vpop.f32.mrf.mxu0 }
 0x5fb   : > { %v19104_v56 = vadd.f32 %v15139_v32, %v3962_v28  ;;  %v15145_v3 = vmul.f32 -1.442695, %v19106_v29  ;;  %v3977_v30 = vadd.f32 %v16702_v45, %v16679_v59 }
 0x5fc   : > { %v3971_v8 = vpop.f32.mrf.mxu0 }
 0x5fd   : > { %v15144_v43 = vmul.f32 -1.442695, %v19104_v56  ;;  %v3972_v31 = vadd.f32 %v3971_v8, %v3850_v5  ;;  %v19118_v51 = vadd.f32 %v15139_v32, %v3977_v30 }
 0x5fe   : > { %v16705_v11 = vpop.f32.mrf.mxu0 }
 0x5ff   : > { %v3987_v14 = vadd.f32 %v16705_v11, %v16682_v63  ;;  %v19110_v37 = vadd.f32 %v15139_v32, %v3972_v31  ;;  %v15147_v5 = vmul.f32 -1.442695, %v19118_v51 }
 0x600   : > { %v3981_v10 = vpop.f32.mrf.mxu0 }
 0x601   : > { %v19092_v61 = vadd.f32 %v15139_v32, %v3987_v14  ;;  %v15146_v54 = vmul.f32 -1.442695, %v19110_v37  ;;  %v3982_v49 = vadd.f32 %v3981_v10, %v3860_v6 }
 0x603   : > { %v15149_v20 = vmul.f32 -1.442695, %v19092_v61  ;;  %v19123_v41 = vadd.f32 %v15139_v32, %v3982_v49 }
 0x604   : > { %v17867_v35 = vpop.eup %17866 }
 0x605   : > { %17868 = vpow2.f32 %v15149_v20  ;;  %v4048_v22 = vadd.f32 1.0, %v17867_v35  ;;  %v15148_v60 = vmul.f32 -1.442695, %v19123_v41 }
 0x606   : > { %17870 = vpow2.f32 %v15141_v44 }
 0x607   : > { %17872 = vpow2.f32 %v15142_v53 }
 0x608   : > { %17874 = vpow2.f32 %v15143_v27 }
 0x609   : > { %17876 = vpow2.f32 %v15144_v43 }
 0x612   : > { %v17869_v39 = vpop.eup %17868 }
 0x613   : > { %v4057_v34 = vadd.f32 1.0, %v17869_v39  ;;  %v17871_v42 = vpop.eup %17870 }
 0x614   : > { %v4049_v46 = vadd.f32 1.0, %v17871_v42  ;;  %v17873_v59 = vpop.eup %17872 }
 0x615   : > { %17878 = vrcp.f32 %v4057_v34  ;;  %v17875_v63 = vpop.eup %17874  ;;  %v4050_v36 = vadd.f32 1.0, %v17873_v59 }
 0x616   : > { %17880 = vpow2.f32 %v15145_v3  ;;  %v4051_v48 = vadd.f32 1.0, %v17875_v63  ;;  %v17877_v57 = vpop.eup %17876 }
 0x617   : > { %17882 = vrcp.f32 %v4048_v22  ;;  %v4052_v19 = vadd.f32 1.0, %v17877_v57 }
 0x618   : > { %17884 = vpow2.f32 %v15146_v54 }
 0x619   : > { %17886 = vrcp.f32 %v4049_v46 }
 0x61a   : > { %17888 = vpow2.f32 %v15147_v5 }
 0x61b   : > { %17890 = vrcp.f32 %v4050_v36 }
 0x61c   : > { %17892 = vrcp.f32 %v4051_v48 }
 0x61d   : > { %17894 = vpow2.f32 %v15148_v60  ;;  %v1393_v60 = vlaneseq }
 0x61e   : > { %17896 = vrcp.f32 %v4052_v19  ;;  %v1391_v19 = vld [vmem:[%s21839_s9] sm:$0x3] }
 0x622   : > { %v17879_v52 = vpop.eup %17878 }
 0x623   : > { %4106 = vrot.lane.b32.xlu0 %v17879_v52, %s21876_s23  ;;  %v17881_v6 = vpop.eup %17880  ;;  %v19230_v52 = vshrl.u32 %v1393_v60, 7 }
 0x624   : > { %v17883_v45 = vpop.eup %17882  ;;  %v4053_v7 = vadd.f32 1.0, %v17881_v6 }
 0x625   : > { %v17885_v8 = vpop.eup %17884  ;;  %v19233_v6 = vsub.s32 0, %v19230_v52 }
 0x626   : > { %v17887_v32 = vpop.eup %17886  ;;  %17898 = vrcp.f32 %v4053_v7  ;;  %v4054_v14 = vadd.f32 1.0, %v17885_v8 }
 0x627   : > { %4088 = vrot.lane.b32.xlu0 %v17883_v45, %s21876_s23  ;;  %v17889_v11 = vpop.eup %17888  ;;  %v1396_v45 = vrot.slane %v1391_v19, %v19233_v6 }
 0x628   : > { %v17891_v58 = vpop.eup %17890  ;;  %v4055_v20 = vadd.f32 1.0, %v17889_v11  ;;  %17900 = vrcp.f32 %v4054_v14 }
 0x629   : > { %v17893_v21 = vpop.eup %17892  ;;  %v1473_v8 = vadd.f32 %v18718_v15, %v1396_v45 }
 0x62a   : > { %v17895_v24 = vpop.eup %17894  ;;  %17902 = vrcp.f32 %v4055_v20 }
 0x62b   : > { %4090 = vrot.lane.b32.xlu0 %v17887_v32, %s21876_s23  ;;  %v4056_v44 = vadd.f32 1.0, %v17895_v24  ;;  %v17897_v28 = vpop.eup %17896 }
 0x62d   : > { %17904 = vrcp.f32 %v4056_v44 }
 0x62e   : > { %17906 = vtanh.f32 %v19092_v61 }
 0x62f   : > { %4092 = vrot.lane.b32.xlu0 %v17891_v58, %s21876_s23  ;;  %17908 = vtanh.f32 %v19089_v9 }
 0x630   : > { %17910 = vtanh.f32 %v19094_v18 }
 0x631   : > { %17912 = vtanh.f32 %v19098_v62 }
 0x632   : > { %17914 = vtanh.f32 %v19100_v13 }
 0x633   : > { %4094 = vrot.lane.b32.xlu0 %v17893_v21, %s21876_s23  ;;  %v17899_v53 = vpop.eup %17898  ;;  %17916 = vtanh.f32 %v19104_v56 }
 0x634   : > { %17918 = vtanh.f32 %v19106_v29 }
 0x635   : > { %v17901_v27 = vpop.eup %17900  ;;  %17920 = vtanh.f32 %v19110_v37 }
 0x636   : > { %17922 = vtanh.f32 %v19118_v51 }
 0x637   : > { %4096 = vrot.lane.b32.xlu0 %v17897_v28, %s21876_s23  ;;  %v17903_v4 = vpop.eup %17902  ;;  %17924 = vtanh.f32 %v19123_v41 }
 0x63a   : > { %v17905_v43 = vpop.eup %17904 }
 0x63b   : > { %4098 = vrot.lane.b32.xlu0 %v17899_v53, %s21876_s23  ;;  %v17907_v31 = vpop.eup %17906 }
 0x63c   : > { %v17909_v34 = vpop.eup %17908 }
 0x63d   : > { %v17911_v9 = vpop.eup %17910 }
 0x63e   : > { %v17913_v13 = vpop.eup %17912 }
 0x63f   : > { %4100 = vrot.lane.b32.xlu0 %v17901_v27, %s21876_s23  ;;  %v17915_v22 = vpop.eup %17914 }
 0x640   : > { %v17917_v10 = vpop.eup %17916 }
 0x641   : > { %v17919_v25 = vpop.eup %17918 }
 0x642   : > { %v17921_v46 = vpop.eup %17920 }
 0x643   : > { %4102 = vrot.lane.b32.xlu0 %v17903_v4, %s21876_s23  ;;  %v17923_v5 = vpop.eup %17922 }
 0x644   : > { %v17925_v41 = vpop.eup %17924 }
 0x647   : > { %4104 = vrot.lane.b32.xlu0 %v17905_v43, %s21876_s23 }
 0x695   : > { %v4107_v35 = vpop.permute.xlu0 %4106 }
 0x696   : > { %v19140_v39 = vmul.f32 %v17907_v31, %v4107_v35 }
 0x698   : > { %15158 = vmatmul.mubr.msk.f32.vlgmr.msra.gmra.mxu1 %vm930_vm6, %v19140_v39 }
 0x699   : > { %v4089_v3 = vpop.permute.xlu0 %4088  ;;  %16708 = vmatprep.mubr.msk.f32.mxu1 %vm18172_vm1, %v18171_v1 }
 0x69a   : > { %v19147_v61 = vmul.f32 %v17909_v34, %v4089_v3 }
 0x69c   : > { %16707 = vmatpush3.msra.mxu1 %v19147_v61 }
 0x69d   : > { %v4091_v18 = vpop.permute.xlu0 %4090  ;;  %16709 = vmatmul.mubr.msk.f32.vlgmr.msra.gmra.mxu1 %vm683_vm5, %v18643_v33  ;;  %16711 = vmatprep.subr.mxu1 %v18171_v1 }
 0x69e   : > { %v19154_v62 = vmul.f32 %v17911_v9, %v4091_v18  ;;  %16713 = vmatprep.mubr.msk.f32.mxu1 %vm18172_vm1, %v18171_v1 }
 0x6a0   : > { %16712 = vmatpush3.msra.mxu1 %v19154_v62 }
 0x6a1   : > { %v4093_v56 = vpop.permute.xlu0 %4092  ;;  %16714 = vmatmul.mubr.msk.f32.vlgmr.msra.gmra.mxu1 %vm683_vm5, %v18643_v33  ;;  %16716 = vmatprep.subr.mxu1 %v18171_v1 }
 0x6a2   : > { %v19163_v30 = vmul.f32 %v17913_v13, %v4093_v56  ;;  %16718 = vmatprep.mubr.msk.f32.mxu1 %vm18172_vm1, %v18171_v1  ;;  %v15187_v13 = vld [vmem:[%s21841_s11 + $0x38] sm:$0xff] }
 0x6a3   : > { %v15183_v56 = vld [vmem:[%s21840_s10 + $0x38] sm:$0xff] }
 0x6a4   : > { %16717 = vmatpush3.msra.mxu1 %v19163_v30 }
 0x6a5   : > { %v4095_v29 = vpop.permute.xlu0 %4094  ;;  %16719 = vmatmul.mubr.msk.f32.vlgmr.msra.gmra.mxu1 %vm683_vm5, %v18643_v33  ;;  %16721 = vmatprep.subr.mxu1 %v18171_v1 }
 0x6a6   : > { %v19172_v42 = vmul.f32 %v17915_v22, %v4095_v29  ;;  %16723 = vmatprep.mubr.msk.f32.mxu1 %vm18172_vm1, %v18171_v1 }
 0x6a8   : > { %16722 = vmatpush3.msra.mxu1 %v19172_v42 }
 0x6a9   : > { %v4097_v37 = vpop.permute.xlu0 %4096  ;;  %16724 = vmatmul.mubr.msk.f32.vlgmr.msra.gmra.mxu1 %vm683_vm5, %v18643_v33  ;;  %16731 = vmatprep.subr.mxu1 %v18171_v1 }
 0x6aa   : > { %v19181_v50 = vmul.f32 %v17917_v10, %v4097_v37  ;;  %16733 = vmatprep.mubr.msk.f32.mxu1 %vm18172_vm1, %v18171_v1  ;;  %v15186_v10 = vld [vmem:[%s21841_s11 + $0x30] sm:$0xff] }
 0x6ab   : > { %v15182_v37 = vld [vmem:[%s21840_s10 + $0x30] sm:$0xff] }
 0x6ac   : > { %16727 = vmatpush3.msra.mxu0 %v19181_v50 }
 0x6ad   : > { %16729 = vmatmul.mubr.msk.f32.vlgmr.msra.gmra.mxu0 %vm683_vm5, %v18643_v33  ;;  %v4099_v51 = vpop.permute.xlu0 %4098  ;;  %16736 = vmatprep.subr.mxu0 %v18171_v1 }
 0x6ae   : > { %v19190_v54 = vmul.f32 %v17919_v25, %v4099_v51  ;;  %16738 = vmatprep.mubr.msk.f32.mxu0 %vm18172_vm1, %v18171_v1  ;;  %v15185_v25 = vld [vmem:[%s21841_s11 + $0x28] sm:$0xff] }
 0x6af   : > { %v15181_v51 = vld [vmem:[%s21840_s10 + $0x28] sm:$0xff] }
 0x6b0   : > { %16732 = vmatpush3.msra.mxu1 %v19190_v54 }
 0x6b1   : > { %v4101_v49 = vpop.permute.xlu0 %4100  ;;  %16734 = vmatmul.mubr.msk.f32.vlgmr.msra.gmra.mxu1 %vm683_vm5, %v18643_v33  ;;  %16741 = vmatprep.subr.mxu1 %v18171_v1 }
 0x6b2   : > { %v19198_v59 = vmul.f32 %v17921_v46, %v4101_v49  ;;  %16743 = vmatprep.mubr.msk.f32.mxu1 %vm18172_vm1, %v18171_v1  ;;  %v15184_v46 = vld [vmem:[%s21841_s11 + $0x20] sm:$0xff]  ;;  %v15211_v49 = vld [vmem:[%s21842_s12 + $0x38] sm:$0xff] }
 0x6b4   : > { %16737 = vmatpush3.msra.mxu0 %v19198_v59 }
 0x6b5   : > { %16739 = vmatmul.mubr.msk.f32.vlgmr.msra.gmra.mxu0 %vm683_vm5, %v18643_v33  ;;  %v4103_v63 = vpop.permute.xlu0 %4102  ;;  %16746 = vmatprep.subr.mxu0 %v18171_v1 }
 0x6b6   : > { %v19206_v36 = vmul.f32 %v17923_v5, %v4103_v63  ;;  %16748 = vmatprep.mubr.msk.f32.mxu0 %vm18172_vm1, %v18171_v1  ;;  %v15210_v5 = vld [vmem:[%s21842_s12 + $0x30] sm:$0xff] }
 0x6b8   : > { %16742 = vmatpush3.msra.mxu1 %v19206_v36 }
 0x6b9   : > { %v4105_v48 = vpop.permute.xlu0 %4104  ;;  %16744 = vmatmul.mubr.msk.f32.vlgmr.msra.gmra.mxu1 %vm683_vm5, %v18643_v33  ;;  %16751 = vmatprep.subr.mxu1 %v18171_v1 }
 0x6ba   : > { %v19214_v57 = vmul.f32 %v17925_v41, %v4105_v48  ;;  %16752 = vmatpush3.msra.mxu1 %v19140_v39  ;;  %16753 = vmatprep.mubr.msk.f32.mxu1 %vm18172_vm1, %v18171_v1 }
 0x6bb   : > { %16761 = vmatprep.subr.mxu1 %v18171_v1 }
 0x6bc   : > { %16747 = vmatpush3.msra.mxu0 %v19214_v57 }
 0x6bd   : > { %16749 = vmatmul.mubr.msk.f32.vlgmr.msra.gmra.mxu0 %vm683_vm5, %v18643_v33  ;;  %16754 = vmatmul.mubr.msk.f32.vlgmr.msra.gmra.mxu1 %vm683_vm5, %v18643_v33 }
 0x6be   : > { %16756 = vmatprep.subr.mxu0 %v18171_v1  ;;  %16758 = vmatprep.mubr.msk.f32.mxu0 %vm18172_vm1, %v18171_v1 }
 0x6bf   : > { %16763 = vmatprep.mubr.msk.f32.mxu1 %vm18172_vm1, %v18171_v1 }
 0x758   : > { %v4206_v7 = vpop.f32.mrf.mxu1 }
 0x759   : > { %v19240_v32 = vadd.f32 %v4206_v7, %v1473_v8 }
 0x75a   : > { %v19242_v11 = vpop.f32.mrf.mxu1 }
 0x75d   : > { %v19244_v14 = vpop.f32.mrf.mxu1 }
 0x75e   : > { %16757 = vmatpush3.msra.mxu0 %v19244_v14 }
 0x75f   : > { %v16710_v58 = vpop.f32.mrf.mxu1  ;;  %16759 = vmatmul.mubr.msk.f32.vlgmr.msra.gmra.mxu0 %vm683_vm5, %v18643_v33  ;;  %16766 = vmatprep.subr.mxu0 %v18171_v1 }
 0x760   : > { %16768 = vmatprep.mubr.msk.f32.mxu0 %vm18172_vm1, %v18171_v1 }
 0x761   : > { %v19252_v21 = vpop.f32.mrf.mxu1 }
 0x762   : > { %16762 = vmatpush3.msra.mxu1 %v19252_v21 }
 0x763   : > { %v16715_v15 = vpop.f32.mrf.mxu1  ;;  %16764 = vmatmul.mubr.msk.f32.vlgmr.msra.gmra.mxu1 %vm683_vm5, %v18643_v33  ;;  %16771 = vmatprep.subr.mxu1 %v18171_v1 }
 0x764   : > { %16773 = vmatprep.mubr.msk.f32.mxu1 %vm18172_vm1, %v18171_v1 }
 0x765   : > { %v19260_v20 = vpop.f32.mrf.mxu1 }
 0x766   : > { %16767 = vmatpush3.msra.mxu0 %v19260_v20 }
 0x767   : > { %v16720_v24 = vpop.f32.mrf.mxu1  ;;  %16769 = vmatmul.mubr.msk.f32.vlgmr.msra.gmra.mxu0 %vm683_vm5, %v18643_v33  ;;  %16776 = vmatprep.subr.mxu0 %v18171_v1 }
 0x768   : > { %16778 = vmatprep.mubr.msk.f32.mxu0 %vm18172_vm1, %v18171_v1  ;;  %v15233_v24 = vld [vmem:[%s21836_s6 + $0x58] sm:$0xff] }
 0x769   : > { %v19268_v44 = vpop.f32.mrf.mxu1 }
 0x76a   : > { %16772 = vmatpush3.msra.mxu1 %v19268_v44 }
 0x76b   : > { %v16725_v28 = vpop.f32.mrf.mxu1  ;;  %16774 = vmatmul.mubr.msk.f32.vlgmr.msra.gmra.mxu1 %vm683_vm5, %v18643_v33  ;;  %16781 = vmatprep.subr.mxu1 %v18171_v1 }
 0x76c   : > { %16783 = vmatprep.mubr.msk.f32.mxu1 %vm18172_vm1, %v18171_v1  ;;  %v15229_v28 = vld [vmem:[%s21874_s5 + $0x58] sm:$0xff] }
 0x76d   : > { %v19276_v53 = vpop.f32.mrf.mxu0 }
 0x76e   : > { %16777 = vmatpush3.msra.mxu0 %v19276_v53 }
 0x76f   : > { %v16730_v27 = vpop.f32.mrf.mxu0  ;;  %16779 = vmatmul.mubr.msk.f32.vlgmr.msra.gmra.mxu0 %vm683_vm5, %v18643_v33  ;;  %16786 = vmatprep.subr.mxu0 %v18171_v1 }
 0x770   : > { %16788 = vmatprep.mubr.msk.f32.mxu0 %vm18172_vm1, %v18171_v1  ;;  %v15228_v27 = vld [vmem:[%s21874_s5 + $0x50] sm:$0xff] }
 0x771   : > { %v19284_v4 = vpop.f32.mrf.mxu1 }
 0x772   : > { %16782 = vmatpush3.msra.mxu1 %v19284_v4 }
 0x773   : > { %v16735_v43 = vpop.f32.mrf.mxu1  ;;  %16784 = vmatmul.mubr.msk.f32.vlgmr.msra.gmra.mxu1 %vm683_vm5, %v18643_v33  ;;  %16791 = vmatprep.subr.mxu1 %v18171_v1 }
 0x774   : > { %16793 = vmatprep.mubr.msk.f32.mxu1 %vm18172_vm1, %v18171_v1  ;;  %v15227_v43 = vld [vmem:[%s21874_s5 + $0x48] sm:$0xff] }
 0x775   : > { %v19292_v31 = vpop.f32.mrf.mxu0 }
 0x776   : > { %16787 = vmatpush3.msra.mxu0 %v19292_v31 }
 0x777   : > { %v16740_v35 = vpop.f32.mrf.mxu0  ;;  %16789 = vmatmul.mubr.msk.f32.vlgmr.msra.gmra.mxu0 %vm683_vm5, %v18643_v33  ;;  %16796 = vmatprep.subr.mxu0 %v18171_v1 }
 0x778   : > { %16798 = vmatprep.mubr.msk.f32.mxu0 %vm18172_vm1, %v18171_v1 }
 0x779   : > { %v4784_v34 = vpop.f32.mrf.mxu1 }
 0x77a   : > { %16792 = vmatpush3.msra.mxu1 %v4784_v34 }
 0x77b   : > { %v16745_v3 = vpop.f32.mrf.mxu1  ;;  %16794 = vmatmul.mubr.msk.f32.vlgmr.msra.gmra.mxu1 %vm683_vm5, %v18643_v33  ;;  %16801 = vmatprep.subr.mxu1 %v18171_v1 }
 0x77c   : > { %16803 = vmatprep.mubr.msk.f32.mxu1 %vm18172_vm1, %v18171_v1 }
 0x77d   : > { %v4854_v9 = vpop.f32.mrf.mxu0  ;;  %v4924_v18 = vpop.f32.mrf.mxu1 }
 0x77e   : > { %16797 = vmatpush3.msra.mxu0 %v4854_v9  ;;  %16802 = vmatpush3.msra.mxu1 %v4924_v18 }
 0x77f   : > { %v16750_v22 = vpop.f32.mrf.mxu0  ;;  %v16755_v29 = vpop.f32.mrf.mxu1  ;;  %16799 = vmatmul.mubr.msk.f32.vlgmr.msra.gmra.mxu0 %vm683_vm5, %v18643_v33  ;;  %16804 = vmatmul.mubr.msk.f32.vlgmr.msra.gmra.mxu1 %vm683_vm5, %v18643_v33 }
 0x780   : > { %16806 = vmatprep.subr.mxu0 %v15187_v13  ;;  %16829 = vmatprep.subr.mxu1 %v15183_v56 }
 0x781   : > { %16807 = vmatpush3.msra.mxu0 %v15187_v13  ;;  %16814 = vmatprep.mubr.msk.f32.mxu0 %vm930_vm6, %v19244_v14 }
 0x782   : > { %16830 = vmatpush3.msra.mxu1 %v15183_v56  ;;  %16837 = vmatprep.mubr.msk.f32.mxu1 %vm930_vm6, %v19147_v61  ;;  %v15180_v61 = vld [vmem:[%s21840_s10 + $0x20] sm:$0xff] }
 0x783   : > { %16808 = vmatprep.subr.mxu0 %v15186_v10  ;;  %16831 = vmatprep.subr.mxu1 %v15182_v37 }
 0x784   : > { %16809 = vmatpush3.msra.mxu0 %v15186_v10  ;;  %16832 = vmatpush3.msra.mxu1 %v15182_v37 }
 0x785   : > { %16810 = vmatprep.subr.mxu0 %v15185_v25  ;;  %16833 = vmatprep.subr.mxu1 %v15181_v51 }
 0x786   : > { %16811 = vmatpush3.msra.mxu0 %v15185_v25  ;;  %16834 = vmatpush3.msra.mxu1 %v15181_v51  ;;  %v19440_v51 = vld [vmem:[%s21844_s14 + $0x1] ss:$0 sm:$0xff] }
 0x787   : > { %16812 = vmatprep.subr.mxu0 %v15184_v46  ;;  %16835 = vmatprep.subr.mxu1 %v15180_v61 }
 0x788   : > { %16813 = vmatpush3.msra.mxu0 %v15184_v46  ;;  %16836 = vmatpush3.msra.mxu1 %v15180_v61 }
 0x789   : > { %16815 = vmatmul.mubr.msk.f32.vlgmr.msra.gmra.mxu0 %vm930_vm6, %v19252_v21  ;;  %16838 = vmatmul.mubr.msk.f32.vlgmr.msra.gmra.mxu1 %vm930_vm6, %v19154_v62  ;;  %v15209_v62 = vld [vmem:[%s21842_s12 + $0x28] sm:$0xff] }
 0x78a   : > { %16817 = vmatprep.mubr.msk.f32.mxu0 %vm930_vm6, %v19260_v20  ;;  %16840 = vmatprep.mubr.msk.f32.mxu1 %vm930_vm6, %v19163_v30  ;;  %v15208_v30 = vld [vmem:[%s21842_s12 + $0x20] sm:$0xff] }
 0x78b   : > { %16852 = vmatprep.subr.mxu0 %v15211_v49  ;;  %16875 = vmatprep.subr.mxu1 %v18171_v1 }
 0x78c   : > { %16853 = vmatpush3.msra.mxu0 %v15211_v49  ;;  %16876 = vmatpush3.msra.mxu1 %v15233_v24 }
 0x78d   : > { %16818 = vmatmul.mubr.msk.f32.gmra.mxu0 %vm930_vm6, %v19268_v44  ;;  %16841 = vmatmul.mubr.msk.f32.gmra.mxu1 %vm930_vm6, %v19172_v42  ;;  %v15232_v44 = vld [vmem:[%s21836_s6 + $0x50] sm:$0xff] }
 0x78e   : > { %16820 = vmatprep.mubr.msk.f32.mxu0 %vm930_vm6, %v19276_v53  ;;  %16843 = vmatprep.mubr.msk.f32.mxu1 %vm930_vm6, %v19181_v50  ;;  %v15231_v53 = vld [vmem:[%s21836_s6 + $0x48] sm:$0xff] }
 0x78f   : > { %16854 = vmatprep.subr.mxu0 %v15210_v5  ;;  %16877 = vmatprep.subr.mxu1 %v18171_v1 }
 0x790   : > { %16855 = vmatpush3.msra.mxu0 %v15210_v5  ;;  %16878 = vmatpush3.msra.mxu1 %v15232_v44 }
 0x791   : > { %16821 = vmatmul.mubr.msk.f32.gmra.mxu0 %vm930_vm6, %v19284_v4  ;;  %16844 = vmatmul.mubr.msk.f32.gmra.mxu1 %vm930_vm6, %v19190_v54  ;;  %v15230_v4 = vld [vmem:[%s21836_s6 + $0x40] sm:$0xff] }
 0x792   : > { %16823 = vmatprep.mubr.msk.f32.mxu0 %vm930_vm6, %v19292_v31  ;;  %16846 = vmatprep.mubr.msk.f32.mxu1 %vm930_vm6, %v19198_v59  ;;  %v15226_v31 = vld [vmem:[%s21874_s5 + $0x40] sm:$0xff] }
 0x793   : > { %16856 = vmatprep.subr.mxu0 %v15209_v62  ;;  %16879 = vmatprep.subr.mxu1 %v18171_v1 }
 0x794   : > { %16857 = vmatpush3.msra.mxu0 %v15209_v62  ;;  %16880 = vmatpush3.msra.mxu1 %v15231_v53 }
 0x795   : > { %16824 = vmatmul.mubr.msk.f32.gmra.mxu0 %vm930_vm6, %v4784_v34  ;;  %16847 = vmatmul.mubr.msk.f32.gmra.mxu1 %vm930_vm6, %v19206_v36 }
 0x796   : > { %16826 = vmatprep.mubr.msk.f32.mxu0 %vm930_vm6, %v4854_v9  ;;  %16849 = vmatprep.mubr.msk.f32.mxu1 %vm930_vm6, %v19214_v57 }
 0x797   : > { %16858 = vmatprep.subr.mxu0 %v15208_v30  ;;  %16881 = vmatprep.subr.mxu1 %v18171_v1 }
 0x798   : > { %16859 = vmatpush3.msra.mxu0 %v15208_v30  ;;  %16882 = vmatpush3.msra.mxu1 %v15230_v4  ;;  %v6094_v30 = vmul.f32 %v19440_v51, %v18965_v40 }
 0x799   : > { %16827 = vmatmul.mubr.msk.f32.gmra.mxu0 %vm930_vm6, %v4924_v18  ;;  %16850 = vmatmul.mubr.msk.f32.gmra.mxu1 %vm930_vm6, %v19140_v39 }
 0x79a   : > { %16883 = vmatprep.mubr.msk.f32.mxu1 %vm18172_vm1, %v18171_v1  ;;  %16910 = vmatprep.subr.mxu0 %v18171_v1 }
 0x81f   : > { %v4994_v42 = vpop.f32.mrf.mxu0 }
 0x820   : > { %16860 = vmatprep.mubr.msk.f32.mxu0 %vm930_vm6, %v4994_v42  ;;  %v19447_v42 = vld [vmem:[%s21843_s13 + $0x1] ss:$0 sm:$0xff] }
 0x821   : > { %v16760_v39 = vpop.f32.mrf.mxu0 }
 0x823   : > { %v5064_v50 = vpop.f32.mrf.mxu1 }
 0x824   : > { %16861 = vmatmul.mubr.msk.f32.vlgmr.msra.gmra.mxu0 %vm930_vm6, %v5064_v50 }
 0x825   : > { %v16765_v54 = vpop.f32.mrf.mxu1  ;;  %16911 = vmatpush3.msra.mxu0 %v15229_v28 }
 0x826   : > { %16912 = vmatprep.subr.mxu0 %v18171_v1 }
 0x827   : > { %v5134_v59 = vpop.f32.mrf.mxu0  ;;  %16913 = vmatpush3.msra.mxu0 %v15228_v27 }
 0x828   : > { %16863 = vmatprep.mubr.msk.f32.mxu0 %vm930_vm6, %v5134_v59  ;;  %16914 = vmatprep.subr.mxu0 %v18171_v1 }
 0x829   : > { %v16770_v63 = vpop.f32.mrf.mxu0  ;;  %16915 = vmatpush3.msra.mxu0 %v15227_v43 }
 0x82a   : > { %16916 = vmatprep.subr.mxu0 %v18171_v1  ;;  %v6093_v63 = vmul.f32 %v19440_v51, %v18962_v23 }
 0x82b   : > { %v5204_v36 = vpop.f32.mrf.mxu1  ;;  %16917 = vmatpush3.msra.mxu0 %v15226_v31  ;;  %v6097_v31 = vmul.f32 %v19440_v51, %v19003_v12 }
 0x82c   : > { %16864 = vmatmul.mubr.msk.f32.gmra.mxu0 %vm930_vm6, %v5204_v36  ;;  %16965 = vmatprep.subr.mxu0 %v18171_v1 }
 0x82d   : > { %v16775_v41 = vpop.f32.mrf.mxu1 }
 0x82f   : > { %v5274_v48 = vpop.f32.mrf.mxu0 }
 0x830   : > { %16866 = vmatprep.mubr.msk.f32.mxu0 %vm930_vm6, %v5274_v48 }
 0x831   : > { %v16780_v57 = vpop.f32.mrf.mxu0 }
 0x833   : > { %v5344_v60 = vpop.f32.mrf.mxu1 }
 0x834   : > { %16867 = vmatmul.mubr.msk.f32.gmra.mxu0 %vm930_vm6, %v5344_v60 }
 0x835   : > { %v16785_v19 = vpop.f32.mrf.mxu1 }
 0x837   : > { %v5414_v45 = vpop.f32.mrf.mxu0 }
 0x838   : > { %16869 = vmatprep.mubr.msk.f32.mxu0 %vm930_vm6, %v5414_v45 }
 0x839   : > { %v16790_v8 = vpop.f32.mrf.mxu0 }
 0x83b   : > { %v5484_v7 = vpop.f32.mrf.mxu1 }
 0x83c   : > { %16870 = vmatmul.mubr.msk.f32.gmra.mxu0 %vm930_vm6, %v5484_v7 }
 0x83d   : > { %v16795_v14 = vpop.f32.mrf.mxu1 }
 0x83e   : > { %v6095_v14 = vmul.f32 %v19440_v51, %v18979_v2 }
 0x83f   : > { %v5554_v58 = vpop.f32.mrf.mxu0  ;;  %v5624_v21 = vpop.f32.mrf.mxu1 }
 0x840   : > { %16872 = vmatprep.mubr.msk.f32.mxu0 %vm930_vm6, %v5554_v58  ;;  %v6096_v58 = vmul.f32 %v19440_v51, %v18986_v55 }
 0x841   : > { %v16800_v15 = vpop.f32.mrf.mxu0  ;;  %v16805_v20 = vpop.f32.mrf.mxu1  ;;  %16873 = vmatmul.mubr.msk.f32.gmra.mxu0 %vm930_vm6, %v5624_v21 }
 0x842   : > { %16918 = vmatprep.mubr.msk.f32.mxu0 %vm18172_vm1, %v18171_v1 }
 0x849   : > { %v16816_v35 = vpop.f32.mrf.mxu0  ;;  %v16839_v29 = vpop.f32.mrf.mxu1 }
 0x84a   : > { %v5882_v46 = vadd.f32 %v16839_v29, %v16816_v35  ;;  %v6098_v35 = vmul.f32 %v19440_v51, %v19007_v17 }
 0x84b   : > { %v5734_v34 = vpop.f32.mrf.mxu0  ;;  %v5876_v37 = vpop.f32.mrf.mxu1 }
 0x84c   : > { %v5877_v5 = vadd.f32 %v5876_v37, %v5734_v34 }
 0x84d   : > { %v16819_v3 = vpop.f32.mrf.mxu0  ;;  %v16842_v61 = vpop.f32.mrf.mxu1 }
 0x84e   : > { %v5892_v60 = vadd.f32 %v16842_v61, %v16819_v3 }
 0x84f   : > { %v5744_v9 = vpop.f32.mrf.mxu0  ;;  %v5886_v50 = vpop.f32.mrf.mxu1 }
 0x850   : > { %v5887_v19 = vadd.f32 %v5886_v50, %v5744_v9 }
 0x851   : > { %v16822_v18 = vpop.f32.mrf.mxu0  ;;  %v16845_v48 = vpop.f32.mrf.mxu1 }
 0x852   : > { %v5902_v28 = vadd.f32 %v16845_v48, %v16822_v18 }
 0x853   : > { %v5754_v13 = vpop.f32.mrf.mxu0  ;;  %v5896_v23 = vpop.f32.mrf.mxu1 }
 0x854   : > { %v5897_v53 = vadd.f32 %v5896_v23, %v5754_v13 }
 0x855   : > { %v19429_v56 = vpop.f32.mrf.mxu0  ;;  %v16848_v15 = vpop.f32.mrf.mxu1 }
 0x856   : > { %v5912_v17 = vadd.f32 %v16848_v15, %v19429_v56 }
 0x857   : > { %v19431_v22 = vpop.f32.mrf.mxu0  ;;  %v5906_v55 = vpop.f32.mrf.mxu1 }
 0x858   : > { %v5907_v13 = vadd.f32 %v5906_v55, %v19431_v22  ;;  %v6099_v22 = vmul.f32 %v19440_v51, %v19024_v26 }
 0x859   : > { %v19433_v10 = vpop.f32.mrf.mxu0  ;;  %v16851_v3 = vpop.f32.mrf.mxu1 }
 0x85b   : > { %v19435_v25 = vpop.f32.mrf.mxu0  ;;  %v5916_v37 = vpop.f32.mrf.mxu1 }
 0x8e4   : > { %v16862_v49 = vpop.f32.mrf.mxu0 }
 0x8e5   : > { %v6076_v62 = vadd.f32 %v16862_v49, %v5882_v46  ;;  %v6100_v49 = vmul.f32 %v19440_v51, %v19028_v38 }
 0x8e6   : > { %v6026_v39 = vpop.f32.mrf.mxu0 }
 0x8e7   : > { %v6104_v54 = vadd.f32 %v6094_v30, %v6076_v62  ;;  %v6075_v59 = vadd.f32 %v6026_v39, %v5877_v5  ;;  %v5917_v30 = vadd.f32 %v5916_v37, %v19435_v25 }
 0x8e9   : > { %v19452_v36 = vadd.f32 %v19447_v42, %v6104_v54  ;;  %v6103_v41 = vadd.f32 %v6093_v63, %v6075_v59  ;;  %v5922_v54 = vadd.f32 %v16851_v3, %v19433_v10  ;;  %v6101_v59 = vmul.f32 %v19440_v51, %v19037_v0 }
 0x8ea   : > { %v6102_v0 = vmul.f32 %v19440_v51, %v19040_v47 }
 0x8eb   : > { %v6121_v57 = vadd.f32 %v19447_v42, %v6103_v41  ;;  %16884 = vmatmul.mubr.msk.f32.vlgmr.msra.gmra.mxu1 %vm930_vm6, %v19452_v36 }
 0x8ec   : > { %v16865_v40 = vpop.f32.mrf.mxu0  ;;  %16886 = vmatprep.mubr.msk.f32.mxu1 %vm18172_vm1, %v18171_v1 }
 0x8ed   : > { %16919 = vmatmul.mubr.msk.f32.vlgmr.msra.gmra.mxu0 %vm930_vm6, %v6121_v57  ;;  %v6078_v8 = vadd.f32 %v16865_v40, %v5892_v60  ;;  %v19572_v60 = vld [vmem:[%s21837_s7 + $0x2] ss:$0 sm:$0xff] }
 0x8ee   : > { %v6036_v45 = vpop.f32.mrf.mxu0  ;;  %16921 = vmatprep.mubr.msk.f32.mxu0 %vm18172_vm1, %v18171_v1 }
 0x8ef   : > { %v6077_v7 = vadd.f32 %v6036_v45, %v5887_v19  ;;  %v6106_v20 = vadd.f32 %v6096_v58, %v6078_v8 }
 0x8f1   : > { %v6105_v21 = vadd.f32 %v6095_v14, %v6077_v7  ;;  %16922 = vmatmul.mubr.msk.f32.gmra.mxu0 %vm930_vm6, %v19452_v36  ;;  %v19482_v27 = vadd.f32 %v19447_v42, %v6106_v20 }
 0x8f2   : > { %16924 = vmatprep.mubr.msk.f32.mxu0 %vm18172_vm1, %v18171_v1 }
 0x8f3   : > { %v19471_v24 = vadd.f32 %v19447_v42, %v6105_v21 }
 0x8f4   : > { %v16868_v44 = vpop.f32.mrf.mxu0 }
 0x8f5   : > { %16887 = vmatmul.mubr.msk.f32.gmra.mxu1 %vm930_vm6, %v19471_v24  ;;  %16925 = vmatmul.mubr.msk.f32.gmra.mxu0 %vm930_vm6, %v19471_v24  ;;  %v6080_v4 = vadd.f32 %v16868_v44, %v5902_v28 }
 0x8f6   : > { %v6046_v2 = vpop.f32.mrf.mxu0  ;;  %16889 = vmatprep.mubr.msk.f32.mxu1 %vm18172_vm1, %v18171_v1  ;;  %16927 = vmatprep.mubr.msk.f32.mxu0 %vm18172_vm1, %v18171_v1 }
 0x8f7   : > { %v6079_v43 = vadd.f32 %v6046_v2, %v5897_v53  ;;  %v6108_v9 = vadd.f32 %v6098_v35, %v6080_v4 }
 0x8f9   : > { %v6107_v34 = vadd.f32 %v6097_v31, %v6079_v43  ;;  %16890 = vmatmul.mubr.msk.f32.gmra.mxu1 %vm930_vm6, %v19482_v27  ;;  %16928 = vmatmul.mubr.msk.f32.gmra.mxu0 %vm930_vm6, %v19482_v27  ;;  %v19510_v46 = vadd.f32 %v19447_v42, %v6108_v9 }
 0x8fa   : > { %16892 = vmatprep.mubr.msk.f32.mxu1 %vm18172_vm1, %v18171_v1  ;;  %16930 = vmatprep.mubr.msk.f32.mxu0 %vm18172_vm1, %v18171_v1 }
 0x8fb   : > { %v19497_v12 = vadd.f32 %v19447_v42, %v6107_v34 }
 0x8fc   : > { %v16871_v18 = vpop.f32.mrf.mxu0 }
 0x8fd   : > { %16893 = vmatmul.mubr.msk.f32.gmra.mxu1 %vm930_vm6, %v19497_v12  ;;  %16931 = vmatmul.mubr.msk.f32.gmra.mxu0 %vm930_vm6, %v19497_v12  ;;  %v6082_v56 = vadd.f32 %v16871_v18, %v5912_v17 }
 0x8fe   : > { %v6056_v29 = vpop.f32.mrf.mxu0  ;;  %16895 = vmatprep.mubr.msk.f32.mxu1 %vm18172_vm1, %v18171_v1  ;;  %16933 = vmatprep.mubr.msk.f32.mxu0 %vm18172_vm1, %v18171_v1 }
 0x8ff   : > { %v6081_v61 = vadd.f32 %v6056_v29, %v5907_v13  ;;  %v6110_v26 = vadd.f32 %v6100_v49, %v6082_v56 }
 0x901   : > { %v6109_v5 = vadd.f32 %v6099_v22, %v6081_v61  ;;  %v16874_v62 = vpop.f32.mrf.mxu0  ;;  %16896 = vmatmul.mubr.msk.f32.gmra.mxu1 %vm930_vm6, %v19510_v46  ;;  %16934 = vmatmul.mubr.msk.f32.gmra.mxu0 %vm930_vm6, %v19510_v46  ;;  %v19540_v25 = vadd.f32 %v19447_v42, %v6110_v26 }
 0x902   : > { %16898 = vmatprep.mubr.msk.f32.mxu1 %vm18172_vm1, %v18171_v1  ;;  %16936 = vmatprep.mubr.msk.f32.mxu0 %vm18172_vm1, %v18171_v1  ;;  %v6084_v63 = vadd.f32 %v16874_v62, %v5922_v54 }
 0x903   : > { %v19526_v39 = vadd.f32 %v19447_v42, %v6109_v5  ;;  %v6066_v38 = vpop.f32.mrf.mxu0 }
 0x904   : > { %v6083_v50 = vadd.f32 %v6066_v38, %v5917_v30  ;;  %v6112_v41 = vadd.f32 %v6102_v0, %v6084_v63 }
 0x905   : > { %16899 = vmatmul.mubr.msk.f32.gmra.mxu1 %vm930_vm6, %v19526_v39  ;;  %16937 = vmatmul.mubr.msk.f32.gmra.mxu0 %vm930_vm6, %v19526_v39 }
 0x906   : > { %16901 = vmatprep.mubr.msk.f32.mxu1 %vm18172_vm1, %v18171_v1  ;;  %16939 = vmatprep.mubr.msk.f32.mxu0 %vm18172_vm1, %v18171_v1  ;;  %v6111_v10 = vadd.f32 %v6101_v59, %v6083_v50  ;;  %v19564_v47 = vadd.f32 %v19447_v42, %v6112_v41 }
 0x908   : > { %v19553_v48 = vadd.f32 %v19447_v42, %v6111_v10 }
 0x909   : > { %16902 = vmatmul.mubr.msk.f32.gmra.mxu1 %vm930_vm6, %v19540_v25  ;;  %16940 = vmatmul.mubr.msk.f32.gmra.mxu0 %vm930_vm6, %v19540_v25 }
 0x90a   : > { %16904 = vmatprep.mubr.msk.f32.mxu1 %vm18172_vm1, %v18171_v1  ;;  %16942 = vmatprep.mubr.msk.f32.mxu0 %vm18172_vm1, %v18171_v1 }
 0x90d   : > { %16905 = vmatmul.mubr.msk.f32.gmra.mxu1 %vm930_vm6, %v19553_v48  ;;  %16943 = vmatmul.mubr.msk.f32.gmra.mxu0 %vm930_vm6, %v19553_v48 }
 0x90e   : > { %16907 = vmatprep.mubr.msk.f32.mxu1 %vm18172_vm1, %v18171_v1  ;;  %16967 = vmatprep.mubr.msk.f32.mxu0 %vm18172_vm1, %v18171_v1 }
 0x911   : > { %16908 = vmatmul.mubr.msk.f32.gmra.mxu1 %vm930_vm6, %v19564_v47 }
 0x912   : > { %6592 = vmatprep.mubr.f32.mxu1 %v18171_v1 }
 0x9ab   : > { %v6234_v51 = vpop.f32.mrf.mxu1 }
 0x9ad   : > { %v16885_v57 = vpop.f32.mrf.mxu1  ;;  %v6347_v40 = vpop.f32.mrf.mxu0 }
 0x9ae   : > { %v6348_v19 = vadd.f32 %v6347_v40, %v6234_v51 }
 0x9af   : > { %v16920_v45 = vpop.f32.mrf.mxu0 }
 0x9b0   : > { %v19575_v23 = vadd.f32 %v19572_v60, %v6348_v19 }
 0x9b1   : > { %v6352_v42 = vpop.f32.mrf.mxu0 }
 0x9b2   : > { %v15254_v8 = vmul.f32 -1.442695, %v19575_v23 }
 0x9b3   : > { %v16923_v7 = vpop.f32.mrf.mxu0 }
 0x9b4   : > { %17926 = vpow2.f32 %v15254_v8 }
 0x9b5   : > { %v6239_v14 = vpop.f32.mrf.mxu1  ;;  %v6357_v58 = vpop.f32.mrf.mxu0 }
 0x9b6   : > { %v6353_v21 = vadd.f32 %v6352_v42, %v6239_v14 }
 0x9b7   : > { %v16888_v15 = vpop.f32.mrf.mxu1  ;;  %v16926_v20 = vpop.f32.mrf.mxu0 }
 0x9b8   : > { %v19579_v44 = vadd.f32 %v19572_v60, %v6353_v21 }
 0x9b9   : > { %v6244_v28 = vpop.f32.mrf.mxu1  ;;  %v6362_v53 = vpop.f32.mrf.mxu0 }
 0x9ba   : > { %v15255_v2 = vmul.f32 -1.442695, %v19579_v44  ;;  %v6358_v55 = vadd.f32 %v6357_v58, %v6244_v28 }
 0x9bb   : > { %v16891_v4 = vpop.f32.mrf.mxu1  ;;  %v16929_v43 = vpop.f32.mrf.mxu0 }
 0x9bc   : > { %17928 = vpow2.f32 %v15255_v2  ;;  %v19583_v31 = vadd.f32 %v19572_v60, %v6358_v55 }
 0x9bd   : > { %v6249_v35 = vpop.f32.mrf.mxu1  ;;  %v6367_v34 = vpop.f32.mrf.mxu0 }
 0x9be   : > { %v15256_v3 = vmul.f32 -1.442695, %v19583_v31  ;;  %v6363_v9 = vadd.f32 %v6362_v53, %v6249_v35 }
 0x9bf   : > { %v16894_v18 = vpop.f32.mrf.mxu1  ;;  %v16932_v17 = vpop.f32.mrf.mxu0 }
 0x9c0   : > { %17930 = vpow2.f32 %v15256_v3  ;;  %v19587_v13 = vadd.f32 %v19572_v60, %v6363_v9 }
 0x9c1   : > { %v17927_v29 = vpop.eup %17926  ;;  %v6254_v37 = vpop.f32.mrf.mxu1 }
 0x9c2   : > { %v6372_v56 = vpop.f32.mrf.mxu0  ;;  %v6444_v61 = vadd.f32 1.0, %v17927_v29  ;;  %v15257_v22 = vmul.f32 -1.442695, %v19587_v13  ;;  %v6368_v49 = vadd.f32 %v6367_v34, %v6254_v37 }
 0x9c3   : > { %v16897_v5 = vpop.f32.mrf.mxu1 }
 0x9c4   : > { %v16935_v62 = vpop.f32.mrf.mxu0  ;;  %17932 = vrcp.f32 %v6444_v61  ;;  %v19591_v30 = vadd.f32 %v19572_v60, %v6368_v49  ;;  %v15269_v49 = vld [vmem:[%s21838_s8 + $0xb0] sm:$0xff] }
 0x9c5   : > { %17934 = vpow2.f32 %v15257_v22  ;;  %v6259_v26 = vpop.f32.mrf.mxu1 }
 0x9c6   : > { %v6377_v38 = vpop.f32.mrf.mxu0  ;;  %v15258_v50 = vmul.f32 -1.442695, %v19591_v30  ;;  %v6373_v54 = vadd.f32 %v6372_v56, %v6259_v26  ;;  %v15270_v56 = vld [vmem:[%s21838_s8 + $0xb8] sm:$0xff] }
 0x9c7   : > { %v16900_v59 = vpop.f32.mrf.mxu1  ;;  %6552 = vmatprep.subr.mxu1 %v15270_v56 }
 0x9c8   : > { %v16938_v63 = vpop.f32.mrf.mxu0  ;;  %17936 = vpow2.f32 %v15258_v50  ;;  %v19595_v10 = vadd.f32 %v19572_v60, %v6373_v54  ;;  %6553 = vmatpush1.msra.mxu1 %v15269_v49  ;;  %v15268_v59 = vld [vmem:[%s21838_s8 + $0xa8] sm:$0xff] }
 0x9c9   : > { %v17929_v0 = vpop.eup %17928  ;;  %v6264_v41 = vpop.f32.mrf.mxu1  ;;  %v15267_v63 = vld [vmem:[%s21838_s8 + $0xa0] sm:$0xff]  ;;  %6554 = vmatprep.subr.mxu1 %v15268_v59 }
 0x9ca   : > { %v6382_v51 = vpop.f32.mrf.mxu0  ;;  %v6445_v57 = vadd.f32 1.0, %v17929_v0  ;;  %v15259_v40 = vmul.f32 -1.442695, %v19595_v10  ;;  %v6378_v19 = vadd.f32 %v6377_v38, %v6264_v41  ;;  %6555 = vmatpush1.msra.mxu1 %v15267_v63 }
 0x9cb   : > { %v16903_v45 = vpop.f32.mrf.mxu1 }
 0x9cc   : > { %v16941_v42 = vpop.f32.mrf.mxu0  ;;  %17938 = vrcp.f32 %v6445_v57  ;;  %v19599_v8 = vadd.f32 %v19572_v60, %v6378_v19  ;;  %v15265_v57 = vld [vmem:[%s21838_s8 + $0x90] sm:$0xff] }
 0x9cd   : > { %v17931_v7 = vpop.eup %17930  ;;  %17940 = vpow2.f32 %v15259_v40  ;;  %v6269_v14 = vpop.f32.mrf.mxu1  ;;  %v15264_v40 = vld [vmem:[%s21838_s8 + $0x88] sm:$0xff]  ;;  %v15263_v42 = vld [vmem:[%s21838_s8 + $0x80] sm:$0xff] }
 0x9ce   : > { %v6387_v58 = vpop.f32.mrf.mxu0  ;;  %v6446_v21 = vadd.f32 1.0, %v17931_v7  ;;  %v15260_v15 = vmul.f32 -1.442695, %v19599_v8  ;;  %v6383_v20 = vadd.f32 %v6382_v51, %v6269_v14  ;;  %v15266_v51 = vld [vmem:[%s21838_s8 + $0x98] sm:$0xff] }
 0x9cf   : > { %v16906_v28 = vpop.f32.mrf.mxu1  ;;  %6556 = vmatprep.subr.mxu1 %v15266_v51 }
 0x9d0   : > { %v16944_v53 = vpop.f32.mrf.mxu0  ;;  %17942 = vrcp.f32 %v6446_v21  ;;  %v19603_v2 = vadd.f32 %v19572_v60, %v6383_v20  ;;  %6557 = vmatpush1.msra.mxu1 %v15265_v57 }
 0x9d1   : > { %v17933_v55 = vpop.eup %17932  ;;  %17944 = vpow2.f32 %v15260_v15  ;;  %v6274_v4 = vpop.f32.mrf.mxu1  ;;  %6558 = vmatprep.subr.mxu1 %v15264_v40 }
 0x9d2   : > { %v17935_v43 = vpop.eup %17934  ;;  %v15261_v35 = vmul.f32 -1.442695, %v19603_v2  ;;  %v6388_v34 = vadd.f32 %v6387_v58, %v6274_v4  ;;  %6480 = vrot.lane.b32.xlu0 %v17933_v55, %s21876_s23  ;;  %6559 = vmatpush1.msra.mxu1 %v15263_v42 }
 0x9d3   : > { %v6447_v3 = vadd.f32 1.0, %v17935_v43  ;;  %v16909_v9 = vpop.f32.mrf.mxu1  ;;  %16945 = vmatprep.subr.mxu1 %v18171_v1 }
 0x9d4   : > { %17946 = vpow2.f32 %v15261_v35  ;;  %v6407_v18 = vadd.f32 %v19572_v60, %v6388_v34 }
 0x9d5   : > { %v17937_v17 = vpop.eup %17936  ;;  %17948 = vrcp.f32 %v6447_v3 }
 0x9d6   : > { %v6448_v29 = vadd.f32 1.0, %v17937_v17  ;;  %v15262_v37 = vmul.f32 -1.442695, %v6407_v18 }
 0x9d8   : > { %17950 = vrcp.f32 %v6448_v29 }
 0x9d9   : > { %v17939_v61 = vpop.eup %17938  ;;  %17952 = vpow2.f32 %v15262_v37 }
 0x9da   : > { %v17941_v22 = vpop.eup %17940  ;;  %6482 = vrot.lane.b32.xlu0 %v17939_v61, %s21876_s23 }
 0x9db   : > { %v6449_v60 = vadd.f32 1.0, %v17941_v22 }
 0x9dd   : > { %v17943_v5 = vpop.eup %17942  ;;  %17954 = vrcp.f32 %v6449_v60 }
 0x9de   : > { %v17945_v62 = vpop.eup %17944  ;;  %6484 = vrot.lane.b32.xlu0 %v17943_v5, %s21876_s23  ;;  %v15159_v5 = vld [vmem:[%s21839_s9 + $0x2] sm:$0x3] }
 0x9df   : > { %v6450_v26 = vadd.f32 1.0, %v17945_v62 }
 0x9e1   : > { %v17947_v38 = vpop.eup %17946  ;;  %17956 = vrcp.f32 %v6450_v26 }
 0x9e2   : > { %v17949_v50 = vpop.eup %17948  ;;  %v6451_v54 = vadd.f32 1.0, %v17947_v38  ;;  %v4219_v38 = vrot.slane %v15159_v5, %v19233_v6 }
 0x9e3   : > { %6486 = vrot.lane.b32.xlu0 %v17949_v50, %s21876_s23 }
 0x9e4   : > { %17958 = vrcp.f32 %v6451_v54  ;;  %v4226_v50 = vadd.f32 %v4219_v38, %v19240_v32 }
 0x9e5   : > { %v17951_v0 = vpop.eup %17950 }
 0x9e6   : > { %v17953_v41 = vpop.eup %17952 }
 0x9e7   : > { %v6452_v19 = vadd.f32 1.0, %v17953_v41  ;;  %6488 = vrot.lane.b32.xlu0 %v17951_v0, %s21876_s23 }
 0x9e9   : > { %17960 = vrcp.f32 %v6452_v19 }
 0x9ea   : > { %v17955_v45 = vpop.eup %17954  ;;  %17962 = vtanh.f32 %v19591_v30 }
 0x9eb   : > { %6490 = vrot.lane.b32.xlu0 %v17955_v45, %s21876_s23  ;;  %17964 = vtanh.f32 %v19599_v8 }
 0x9ec   : > { %17966 = vtanh.f32 %v6407_v18 }
 0x9ed   : > { %17968 = vtanh.f32 %v19575_v23 }
 0x9ee   : > { %v17957_v7 = vpop.eup %17956  ;;  %17970 = vtanh.f32 %v19579_v44 }
 0x9ef   : > { %6492 = vrot.lane.b32.xlu0 %v17957_v7, %s21876_s23  ;;  %17972 = vtanh.f32 %v19583_v31 }
 0x9f0   : > { %17974 = vtanh.f32 %v19587_v13 }
 0x9f1   : > { %v17959_v14 = vpop.eup %17958  ;;  %17976 = vtanh.f32 %v19595_v10 }
 0x9f2   : > { %17978 = vtanh.f32 %v19603_v2 }
 0x9f3   : > { %6494 = vrot.lane.b32.xlu0 %v17959_v14, %s21876_s23 }
 0x9f6   : > { %v17961_v58 = vpop.eup %17960 }
 0x9f7   : > { %6496 = vrot.lane.b32.xlu1 %v17961_v58, %s21876_s23  ;;  %v17963_v53 = vpop.eup %17962 }
 0x9f8   : > { %v17965_v30 = vpop.eup %17964 }
 0x9f9   : > { %v17967_v23 = vpop.eup %17966 }
 0x9fa   : > { %v17969_v44 = vpop.eup %17968 }
 0x9fb   : > { %v17971_v31 = vpop.eup %17970 }
 0x9fc   : > { %v17973_v10 = vpop.eup %17972 }
 0x9fd   : > { %v17975_v17 = vpop.eup %17974 }
 0x9fe   : > { %v17977_v29 = vpop.eup %17976 }
 0x9ff   : > { %v17979_v61 = vpop.eup %17978 }
 0xa44   : > { %v6481_v21 = vpop.permute.xlu0 %6480 }
 0xa45   : > { %v19665_v9 = vmul.f32 %v17969_v44, %v6481_v21  ;;  %v15319_v44 = vld [vmem:[%s21842_s12 + $0x50] sm:$0xff] }
 0xa4c   : > { %v6483_v15 = vpop.permute.xlu0 %6482 }
 0xa4d   : > { %v19677_v13 = vmul.f32 %v17971_v31, %v6483_v15  ;;  %v15294_v15 = vld [vmem:[%s21840_s10 + $0x58] sm:$0xff] }
 0xa50   : > { %v6485_v20 = vpop.permute.xlu0 %6484 }
 0xa51   : > { %v19689_v18 = vmul.f32 %v17973_v10, %v6485_v20  ;;  %v15298_v20 = vld [vmem:[%s21841_s11 + $0x58] sm:$0xff] }
 0xa55   : > { %v6487_v28 = vpop.permute.xlu0 %6486 }
 0xa56   : > { %v19697_v2 = vmul.f32 %v17975_v17, %v6487_v28 }
 0xa59   : > { %v6489_v55 = vpop.permute.xlu0 %6488 }
 0xa5a   : > { %v19643_v4 = vmul.f32 %v17963_v53, %v6489_v55  ;;  %v15293_v53 = vld [vmem:[%s21840_s10 + $0x50] sm:$0xff] }
 0xa5b   : > { %v15297_v55 = vld [vmem:[%s21841_s11 + $0x50] sm:$0xff] }
 0xa5c   : > { %16966 = vmatpush3.msra.mxu0 %v19643_v4 }
 0xa5d   : > { %16968 = vmatmul.mubr.msk.f32.vlgmr.msra.gmra.mxu0 %vm683_vm5, %v18643_v33  ;;  %v6491_v43 = vpop.permute.xlu0 %6490  ;;  %16975 = vmatprep.subr.mxu0 %v18171_v1 }
 0xa5e   : > { %16977 = vmatprep.mubr.msk.f32.mxu0 %vm18172_vm1, %v18171_v1  ;;  %v19705_v37 = vmul.f32 %v17977_v29, %v6491_v43  ;;  %v15292_v43 = vld [vmem:[%s21840_s10 + $0x48] sm:$0xff] }
 0xa61   : > { %v6493_v8 = vpop.permute.xlu0 %6492 }
 0xa62   : > { %v19653_v35 = vmul.f32 %v17965_v30, %v6493_v8  ;;  %v15296_v30 = vld [vmem:[%s21841_s11 + $0x48] sm:$0xff]  ;;  %v15291_v8 = vld [vmem:[%s21840_s10 + $0x40] sm:$0xff] }
 0xa64   : > { %16976 = vmatpush3.msra.mxu0 %v19653_v35 }
 0xa65   : > { %16978 = vmatmul.mubr.msk.f32.vlgmr.msra.gmra.mxu0 %vm683_vm5, %v18643_v33  ;;  %16985 = vmatprep.subr.mxu0 %v18171_v1  ;;  %v6495_v56 = vpop.permute.xlu0 %6494 }
 0xa66   : > { %16987 = vmatprep.mubr.msk.f32.mxu0 %vm18172_vm1, %v18171_v1  ;;  %v19713_v22 = vmul.f32 %v17979_v61, %v6495_v56 }
 0xa69   : > { %v6497_v34 = vpop.permute.xlu1 %6496 }
 0xa6a   : > { %v19663_v3 = vmul.f32 %v17967_v23, %v6497_v34  ;;  %v15295_v23 = vld [vmem:[%s21841_s11 + $0x40] sm:$0xff]  ;;  %v15320_v34 = vld [vmem:[%s21842_s12 + $0x58] sm:$0xff] }
 0xa6c   : > { %15271 = vmatmul.mubr.msk.f32.vlgmr.msra.gmra.mxu1 %vm930_vm6, %v19663_v3  ;;  %16986 = vmatpush3.msra.mxu0 %v19663_v3 }
 0xa6d   : > { %16946 = vmatpush3.msra.mxu1 %v19665_v9  ;;  %16988 = vmatmul.mubr.msk.f32.vlgmr.msra.gmra.mxu0 %vm683_vm5, %v18643_v33 }
 0xa6e   : > { %16947 = vmatprep.mubr.msk.f32.mxu1 %vm18172_vm1, %v18171_v1  ;;  %16950 = vmatprep.subr.mxu1 %v18171_v1 }
 0xa6f   : > { %16995 = vmatprep.subr.mxu0 %v18171_v1  ;;  %16997 = vmatprep.mubr.msk.f32.mxu0 %vm18172_vm1, %v18171_v1 }
 0xa70   : > { %16948 = vmatmul.mubr.msk.f32.vlgmr.msra.gmra.mxu1 %vm683_vm5, %v18643_v33 }
 0xa71   : > { %16951 = vmatpush3.msra.mxu1 %v19677_v13  ;;  %16952 = vmatprep.mubr.msk.f32.mxu1 %vm18172_vm1, %v18171_v1 }
 0xa72   : > { %16955 = vmatprep.subr.mxu1 %v18171_v1 }
 0xa74   : > { %16953 = vmatmul.mubr.msk.f32.vlgmr.msra.gmra.mxu1 %vm683_vm5, %v18643_v33 }
 0xa75   : > { %16956 = vmatpush3.msra.mxu1 %v19689_v18  ;;  %16957 = vmatprep.mubr.msk.f32.mxu1 %vm18172_vm1, %v18171_v1 }
 0xa76   : > { %16960 = vmatprep.subr.mxu1 %v18171_v1 }
 0xa78   : > { %16958 = vmatmul.mubr.msk.f32.vlgmr.msra.gmra.mxu1 %vm683_vm5, %v18643_v33 }
 0xa79   : > { %16961 = vmatpush3.msra.mxu1 %v19697_v2  ;;  %16962 = vmatprep.mubr.msk.f32.mxu1 %vm18172_vm1, %v18171_v1 }
 0xa7a   : > { %16970 = vmatprep.subr.mxu1 %v18171_v1 }
 0xa7c   : > { %16963 = vmatmul.mubr.msk.f32.vlgmr.msra.gmra.mxu1 %vm683_vm5, %v18643_v33 }
 0xa7d   : > { %16971 = vmatpush3.msra.mxu1 %v19705_v37  ;;  %16972 = vmatprep.mubr.msk.f32.mxu1 %vm18172_vm1, %v18171_v1 }
 0xa7e   : > { %16980 = vmatprep.subr.mxu1 %v18171_v1 }
 0xa80   : > { %16973 = vmatmul.mubr.msk.f32.vlgmr.msra.gmra.mxu1 %vm683_vm5, %v18643_v33 }
 0xa81   : > { %16981 = vmatpush3.msra.mxu1 %v19713_v22  ;;  %16982 = vmatprep.mubr.msk.f32.mxu1 %vm18172_vm1, %v18171_v1 }
 0xa82   : > { %16990 = vmatprep.subr.mxu1 %v18171_v1 }
 0xa84   : > { %16983 = vmatmul.mubr.msk.f32.vlgmr.msra.gmra.mxu1 %vm683_vm5, %v18643_v33 }
 0xa85   : > { %16992 = vmatprep.mubr.msk.f32.mxu1 %vm18172_vm1, %v18171_v1 }
 0xb1d   : > { %v19725_v49 = vpop.f32.mrf.mxu0 }
 0xb1f   : > { %v16969_v60 = vpop.f32.mrf.mxu0 }
 0xb25   : > { %v19730_v62 = vpop.f32.mrf.mxu0 }
 0xb27   : > { %v16979_v26 = vpop.f32.mrf.mxu0 }
 0xb2c   : > { %v6594_v54 = vpop.f32.mrf.mxu1 }
 0xb2d   : > { %v19734_v59 = vadd.f32 %v6594_v54, %v4226_v50  ;;  %v19736_v63 = vpop.f32.mrf.mxu0 }
 0xb2e   : > { %v19738_v0 = vpop.f32.mrf.mxu1 }
 0xb2f   : > { %v16989_v41 = vpop.f32.mrf.mxu0 }
 0xb30   : > { %v19740_v51 = vpop.f32.mrf.mxu1 }
 0xb31   : > { %16991 = vmatpush3.msra.mxu1 %v19740_v51 }
 0xb32   : > { %v16949_v57 = vpop.f32.mrf.mxu1  ;;  %16993 = vmatmul.mubr.msk.f32.vlgmr.msra.gmra.mxu1 %vm683_vm5, %v18643_v33  ;;  %17000 = vmatprep.subr.mxu1 %v18171_v1 }
 0xb33   : > { %17002 = vmatprep.mubr.msk.f32.mxu1 %vm18172_vm1, %v18171_v1 }
 0xb34   : > { %v19748_v32 = vpop.f32.mrf.mxu1 }
 0xb35   : > { %16996 = vmatpush3.msra.mxu0 %v19748_v32 }
 0xb36   : > { %v16954_v40 = vpop.f32.mrf.mxu1  ;;  %16998 = vmatmul.mubr.msk.f32.vlgmr.msra.gmra.mxu0 %vm683_vm5, %v18643_v33  ;;  %17005 = vmatprep.subr.mxu0 %v18171_v1 }
 0xb37   : > { %17007 = vmatprep.mubr.msk.f32.mxu0 %vm18172_vm1, %v18171_v1 }
 0xb38   : > { %v19756_v19 = vpop.f32.mrf.mxu1 }
 0xb39   : > { %17001 = vmatpush3.msra.mxu1 %v19756_v19 }
 0xb3a   : > { %v16959_v45 = vpop.f32.mrf.mxu1  ;;  %17003 = vmatmul.mubr.msk.f32.vlgmr.msra.gmra.mxu1 %vm683_vm5, %v18643_v33  ;;  %17010 = vmatprep.subr.mxu1 %v18171_v1 }
 0xb3b   : > { %17011 = vmatpush3.msra.mxu1 %v19725_v49  ;;  %17012 = vmatprep.mubr.msk.f32.mxu1 %vm18172_vm1, %v18171_v1 }
 0xb3c   : > { %v19765_v42 = vpop.f32.mrf.mxu1  ;;  %17020 = vmatprep.subr.mxu1 %v18171_v1 }
 0xb3d   : > { %17006 = vmatpush3.msra.mxu0 %v19765_v42 }
 0xb3e   : > { %v16964_v7 = vpop.f32.mrf.mxu1  ;;  %17008 = vmatmul.mubr.msk.f32.vlgmr.msra.gmra.mxu0 %vm683_vm5, %v18643_v33  ;;  %17013 = vmatmul.mubr.msk.f32.vlgmr.msra.gmra.mxu1 %vm683_vm5, %v18643_v33 }
 0xb3f   : > { %17021 = vmatpush3.msra.mxu1 %v19730_v62  ;;  %17015 = vmatprep.subr.mxu0 %v18171_v1 }
 0xb40   : > { %v19775_v14 = vpop.f32.mrf.mxu1  ;;  %17017 = vmatprep.mubr.msk.f32.mxu0 %vm18172_vm1, %v18171_v1  ;;  %17022 = vmatprep.mubr.msk.f32.mxu1 %vm18172_vm1, %v18171_v1 }
 0xb41   : > { %17016 = vmatpush3.msra.mxu0 %v19775_v14  ;;  %17030 = vmatprep.subr.mxu1 %v18171_v1 }
 0xb42   : > { %v16974_v58 = vpop.f32.mrf.mxu1  ;;  %17018 = vmatmul.mubr.msk.f32.vlgmr.msra.gmra.mxu0 %vm683_vm5, %v18643_v33  ;;  %17023 = vmatmul.mubr.msk.f32.vlgmr.msra.gmra.mxu1 %vm683_vm5, %v18643_v33 }
 0xb43   : > { %17031 = vmatpush3.msra.mxu1 %v19736_v63  ;;  %17025 = vmatprep.subr.mxu0 %v18171_v1 }
 0xb44   : > { %v19789_v21 = vpop.f32.mrf.mxu1  ;;  %17027 = vmatprep.mubr.msk.f32.mxu0 %vm18172_vm1, %v18171_v1  ;;  %17032 = vmatprep.mubr.msk.f32.mxu1 %vm18172_vm1, %v18171_v1 }
 0xb45   : > { %17026 = vmatpush3.msra.mxu0 %v19789_v21  ;;  %17070 = vmatprep.subr.mxu1 %v18171_v1 }
 0xb46   : > { %v16984_v28 = vpop.f32.mrf.mxu1  ;;  %17028 = vmatmul.mubr.msk.f32.vlgmr.msra.gmra.mxu0 %vm683_vm5, %v18643_v33  ;;  %17033 = vmatmul.mubr.msk.f32.vlgmr.msra.gmra.mxu1 %vm683_vm5, %v18643_v33 }
 0xb47   : > { %17035 = vmatprep.subr.mxu0 %v18171_v1  ;;  %17071 = vmatpush3.msra.mxu1 %v15294_v15 }
 0xb48   : > { %17036 = vmatpush3.msra.mxu0 %v15298_v20  ;;  %17072 = vmatprep.subr.mxu1 %v18171_v1 }
 0xb49   : > { %17037 = vmatprep.subr.mxu0 %v18171_v1  ;;  %17073 = vmatpush3.msra.mxu1 %v15293_v53 }
 0xb4a   : > { %17038 = vmatpush3.msra.mxu0 %v15297_v55  ;;  %17074 = vmatprep.subr.mxu1 %v18171_v1 }
 0xb4b   : > { %17039 = vmatprep.subr.mxu0 %v18171_v1  ;;  %17075 = vmatpush3.msra.mxu1 %v15292_v43 }
 0xb4c   : > { %17040 = vmatpush3.msra.mxu0 %v15296_v30  ;;  %17076 = vmatprep.subr.mxu1 %v18171_v1 }
 0xb4d   : > { %17041 = vmatprep.subr.mxu0 %v18171_v1  ;;  %17077 = vmatpush3.msra.mxu1 %v15291_v8 }
 0xb4e   : > { %17078 = vmatprep.mubr.msk.f32.mxu1 %vm18172_vm1, %v18171_v1  ;;  %17042 = vmatpush3.msra.mxu0 %v15295_v23 }
 0xb4f   : > { %17043 = vmatprep.mubr.msk.f32.mxu0 %vm18172_vm1, %v18171_v1  ;;  %17079 = vmatmul.mubr.msk.f32.vlgmr.msra.gmra.mxu1 %vm930_vm6, %v19665_v9  ;;  %v15318_v9 = vld [vmem:[%s21842_s12 + $0x48] sm:$0xff] }
 0xb50   : > { %17044 = vmatmul.mubr.msk.f32.vlgmr.msra.gmra.mxu0 %vm930_vm6, %v19740_v51  ;;  %17081 = vmatprep.mubr.msk.f32.mxu1 %vm18172_vm1, %v18171_v1 }
 0xb51   : > { %17046 = vmatprep.mubr.msk.f32.mxu0 %vm18172_vm1, %v18171_v1  ;;  %17105 = vmatprep.subr.mxu0 %v18171_v1 }
 0xb52   : > { %17106 = vmatpush3.msra.mxu0 %v15320_v34  ;;  %17140 = vmatprep.subr.mxu1 %v18171_v1 }
 0xb53   : > { %17082 = vmatmul.mubr.msk.f32.gmra.mxu1 %vm930_vm6, %v19677_v13  ;;  %17107 = vmatprep.subr.mxu0 %v18171_v1 }
 0xb54   : > { %17047 = vmatmul.mubr.msk.f32.gmra.mxu0 %vm930_vm6, %v19748_v32  ;;  %17084 = vmatprep.mubr.msk.f32.mxu1 %vm18172_vm1, %v18171_v1 }
 0xb55   : > { %17049 = vmatprep.mubr.msk.f32.mxu0 %vm18172_vm1, %v18171_v1  ;;  %17108 = vmatpush3.msra.mxu0 %v15319_v44 }
 0xb56   : > { %17109 = vmatprep.subr.mxu0 %v18171_v1 }
 0xb57   : > { %17085 = vmatmul.mubr.msk.f32.gmra.mxu1 %vm930_vm6, %v19689_v18  ;;  %17110 = vmatpush3.msra.mxu0 %v15318_v9 }
 0xb58   : > { %17050 = vmatmul.mubr.msk.f32.gmra.mxu0 %vm930_vm6, %v19756_v19  ;;  %17087 = vmatprep.mubr.msk.f32.mxu1 %vm18172_vm1, %v18171_v1 }
 0xb59   : > { %17052 = vmatprep.mubr.msk.f32.mxu0 %vm18172_vm1, %v18171_v1  ;;  %17111 = vmatprep.subr.mxu0 %v18171_v1 }
 0xb5b   : > { %17088 = vmatmul.mubr.msk.f32.gmra.mxu1 %vm930_vm6, %v19697_v2 }
 0xb5c   : > { %17053 = vmatmul.mubr.msk.f32.gmra.mxu0 %vm930_vm6, %v19765_v42  ;;  %17090 = vmatprep.mubr.msk.f32.mxu1 %vm18172_vm1, %v18171_v1 }
 0xb5d   : > { %17055 = vmatprep.mubr.msk.f32.mxu0 %vm18172_vm1, %v18171_v1 }
 0xb5f   : > { %17091 = vmatmul.mubr.msk.f32.gmra.mxu1 %vm930_vm6, %v19643_v4  ;;  %v15317_v4 = vld [vmem:[%s21842_s12 + $0x40] sm:$0xff] }
 0xb60   : > { %17056 = vmatmul.mubr.msk.f32.gmra.mxu0 %vm930_vm6, %v19725_v49  ;;  %17093 = vmatprep.mubr.msk.f32.mxu1 %vm18172_vm1, %v18171_v1 }
 0xb61   : > { %17058 = vmatprep.mubr.msk.f32.mxu0 %vm18172_vm1, %v18171_v1  ;;  %17112 = vmatpush3.msra.mxu0 %v15317_v4 }
 0xb63   : > { %17094 = vmatmul.mubr.msk.f32.gmra.mxu1 %vm930_vm6, %v19705_v37 }
 0xb64   : > { %17059 = vmatmul.mubr.msk.f32.gmra.mxu0 %vm930_vm6, %v19775_v14  ;;  %17096 = vmatprep.mubr.msk.f32.mxu1 %vm18172_vm1, %v18171_v1 }
 0xb65   : > { %17061 = vmatprep.mubr.msk.f32.mxu0 %vm18172_vm1, %v18171_v1 }
 0xb67   : > { %17097 = vmatmul.mubr.msk.f32.gmra.mxu1 %vm930_vm6, %v19653_v35  ;;  %v15341_v35 = vld [vmem:[%s21836_s6 + $0x78] sm:$0xff] }
 0xb68   : > { %17062 = vmatmul.mubr.msk.f32.gmra.mxu0 %vm930_vm6, %v19730_v62  ;;  %17099 = vmatprep.mubr.msk.f32.mxu1 %vm18172_vm1, %v18171_v1 }
 0xb69   : > { %17064 = vmatprep.mubr.msk.f32.mxu0 %vm18172_vm1, %v18171_v1  ;;  %17141 = vmatpush3.msra.mxu1 %v15341_v35 }
 0xb6a   : > { %17142 = vmatprep.subr.mxu1 %v18171_v1 }
 0xb6b   : > { %17100 = vmatmul.mubr.msk.f32.gmra.mxu1 %vm930_vm6, %v19713_v22 }
 0xb6c   : > { %17065 = vmatmul.mubr.msk.f32.gmra.mxu0 %vm930_vm6, %v19789_v21  ;;  %17102 = vmatprep.mubr.msk.f32.mxu1 %vm18172_vm1, %v18171_v1 }
 0xb6d   : > { %17067 = vmatprep.mubr.msk.f32.mxu0 %vm18172_vm1, %v18171_v1 }
 0xb6f   : > { %17103 = vmatmul.mubr.msk.f32.gmra.mxu1 %vm930_vm6, %v19663_v3 }
 0xb70   : > { %17068 = vmatmul.mubr.msk.f32.gmra.mxu0 %vm930_vm6, %v19736_v63  ;;  %17148 = vmatprep.mubr.msk.f32.mxu1 %vm18172_vm1, %v18171_v1 }
 0xb71   : > { %17113 = vmatprep.mubr.msk.f32.mxu0 %vm18172_vm1, %v18171_v1 }
 0xbf2   : > { %v7312_v3 = vpop.f32.mrf.mxu1 }
 0xbf3   : > { %17114 = vmatmul.mubr.msk.f32.vlgmr.msra.gmra.mxu0 %vm930_vm6, %v7312_v3 }
 0xbf4   : > { %v16994_v31 = vpop.f32.mrf.mxu1  ;;  %17116 = vmatprep.mubr.msk.f32.mxu0 %vm18172_vm1, %v18171_v1 }
 0xbf6   : > { %v7382_v13 = vpop.f32.mrf.mxu0 }
 0xbf7   : > { %17117 = vmatmul.mubr.msk.f32.gmra.mxu0 %vm930_vm6, %v7382_v13 }
 0xbf8   : > { %v16999_v10 = vpop.f32.mrf.mxu0  ;;  %17119 = vmatprep.mubr.msk.f32.mxu0 %vm18172_vm1, %v18171_v1 }
 0xbfa   : > { %v7452_v18 = vpop.f32.mrf.mxu1 }
 0xbfb   : > { %17120 = vmatmul.mubr.msk.f32.gmra.mxu0 %vm930_vm6, %v7452_v18 }
 0xbfc   : > { %v17004_v17 = vpop.f32.mrf.mxu1  ;;  %17122 = vmatprep.mubr.msk.f32.mxu0 %vm18172_vm1, %v18171_v1 }
 0xbfe   : > { %v7522_v2 = vpop.f32.mrf.mxu0  ;;  %v7592_v29 = vpop.f32.mrf.mxu1 }
 0xbff   : > { %17123 = vmatmul.mubr.msk.f32.gmra.mxu0 %vm930_vm6, %v7522_v2 }
 0xc00   : > { %v17009_v37 = vpop.f32.mrf.mxu0  ;;  %v17014_v56 = vpop.f32.mrf.mxu1  ;;  %17125 = vmatprep.mubr.msk.f32.mxu0 %vm18172_vm1, %v18171_v1 }
 0xc02   : > { %v7662_v61 = vpop.f32.mrf.mxu0  ;;  %v7732_v22 = vpop.f32.mrf.mxu1 }
 0xc03   : > { %17126 = vmatmul.mubr.msk.f32.gmra.mxu0 %vm930_vm6, %v7592_v29 }
 0xc04   : > { %v17019_v49 = vpop.f32.mrf.mxu0  ;;  %v17024_v60 = vpop.f32.mrf.mxu1  ;;  %17128 = vmatprep.mubr.msk.f32.mxu0 %vm18172_vm1, %v18171_v1 }
 0xc06   : > { %v7802_v5 = vpop.f32.mrf.mxu0  ;;  %v7872_v62 = vpop.f32.mrf.mxu1 }
 0xc07   : > { %17129 = vmatmul.mubr.msk.f32.gmra.mxu0 %vm930_vm6, %v7662_v61 }
 0xc08   : > { %v17029_v26 = vpop.f32.mrf.mxu0  ;;  %v17034_v38 = vpop.f32.mrf.mxu1  ;;  %17131 = vmatprep.mubr.msk.f32.mxu0 %vm18172_vm1, %v18171_v1 }
 0xc09   : > { %v15340_v26 = vld [vmem:[%s21836_s6 + $0x70] sm:$0xff]  ;;  %v15339_v38 = vld [vmem:[%s21836_s6 + $0x68] sm:$0xff] }
 0xc0a   : > { %17143 = vmatpush3.msra.mxu1 %v15340_v26 }
 0xc0b   : > { %17132 = vmatmul.mubr.msk.f32.gmra.mxu0 %vm930_vm6, %v7732_v22  ;;  %17144 = vmatprep.subr.mxu1 %v18171_v1 }
 0xc0c   : > { %17134 = vmatprep.mubr.msk.f32.mxu0 %vm18172_vm1, %v18171_v1  ;;  %17145 = vmatpush3.msra.mxu1 %v15339_v38 }
 0xc0d   : > { %17146 = vmatprep.subr.mxu1 %v18171_v1 }
 0xc0f   : > { %v8113_v50 = vpop.f32.mrf.mxu1  ;;  %17135 = vmatmul.mubr.msk.f32.gmra.mxu0 %vm930_vm6, %v7802_v5 }
 0xc10   : > { %v7979_v54 = vpop.f32.mrf.mxu0  ;;  %17137 = vmatprep.mubr.msk.f32.mxu0 %vm18172_vm1, %v18171_v1 }
 0xc11   : > { %v8114_v63 = vadd.f32 %v8113_v50, %v7979_v54  ;;  %v17080_v41 = vpop.f32.mrf.mxu1  ;;  %v15338_v50 = vld [vmem:[%s21836_s6 + $0x60] sm:$0xff] }
 0xc12   : > { %v17045_v51 = vpop.f32.mrf.mxu0  ;;  %17147 = vmatpush3.msra.mxu1 %v15338_v50  ;;  %v19978_v54 = vld [vmem:[%s21844_s14 + $0x2] ss:$0 sm:$0xff] }
 0xc13   : > { %v8118_v57 = vpop.f32.mrf.mxu1  ;;  %17138 = vmatmul.mubr.msk.f32.gmra.mxu0 %vm930_vm6, %v7872_v62  ;;  %17169 = vmatprep.subr.mxu1 %v18171_v1 }
 0xc14   : > { %v7984_v32 = vpop.f32.mrf.mxu0  ;;  %8763 = vmatprep.mubr.f32.mxu0 %v18171_v1 }
 0xc15   : > { %v8119_v40 = vadd.f32 %v8118_v57, %v7984_v32  ;;  %v17083_v19 = vpop.f32.mrf.mxu1  ;;  %v8316_v57 = vmul.f32 %v19978_v54, %v19452_v36  ;;  %v19993_v36 = vld [vmem:[%s21843_s13 + $0x2] ss:$0 sm:$0xff] }
 0xc16   : > { %v17048_v45 = vpop.f32.mrf.mxu0 }
 0xc17   : > { %v8123_v42 = vpop.f32.mrf.mxu1 }
 0xc18   : > { %v7989_v7 = vpop.f32.mrf.mxu0 }
 0xc19   : > { %v8124_v14 = vadd.f32 %v8123_v42, %v7989_v7  ;;  %v17086_v58 = vpop.f32.mrf.mxu1  ;;  %v8317_v7 = vmul.f32 %v19978_v54, %v19471_v24 }
 0xc1a   : > { %v17051_v21 = vpop.f32.mrf.mxu0 }
 0xc1b   : > { %v8128_v15 = vpop.f32.mrf.mxu1 }
 0xc1c   : > { %v7994_v20 = vpop.f32.mrf.mxu0 }
 0xc1d   : > { %v8129_v28 = vadd.f32 %v8128_v15, %v7994_v20  ;;  %v17089_v53 = vpop.f32.mrf.mxu1 }
 0xc1e   : > { %v17054_v55 = vpop.f32.mrf.mxu0  ;;  %v8318_v53 = vmul.f32 %v19978_v54, %v19482_v27 }
 0xc1f   : > { %v8133_v43 = vpop.f32.mrf.mxu1 }
 0xc20   : > { %v7999_v30 = vpop.f32.mrf.mxu0 }
 0xc21   : > { %v8134_v8 = vadd.f32 %v8133_v43, %v7999_v30  ;;  %v17092_v23 = vpop.f32.mrf.mxu1  ;;  %v8319_v30 = vmul.f32 %v19978_v54, %v19497_v12 }
 0xc22   : > { %v17057_v34 = vpop.f32.mrf.mxu0 }
 0xc23   : > { %v8138_v44 = vpop.f32.mrf.mxu1  ;;  %v15336_v34 = vld [vmem:[%s21874_s5 + $0x70] sm:$0xff] }
 0xc24   : > { %v8004_v9 = vpop.f32.mrf.mxu0 }
 0xc25   : > { %v19955_v4 = vadd.f32 %v8138_v44, %v8004_v9  ;;  %v17095_v35 = vpop.f32.mrf.mxu1  ;;  %v8320_v9 = vmul.f32 %v19978_v54, %v19510_v46 }
 0xc26   : > { %v17060_v3 = vpop.f32.mrf.mxu0  ;;  %v15335_v35 = vld [vmem:[%s21874_s5 + $0x68] sm:$0xff] }
 0xc27   : > { %v8143_v31 = vpop.f32.mrf.mxu1 }
 0xc28   : > { %v8009_v13 = vpop.f32.mrf.mxu0 }
 0xc29   : > { %v19957_v10 = vadd.f32 %v8143_v31, %v8009_v13  ;;  %v17098_v18 = vpop.f32.mrf.mxu1 }
 0xc2a   : > { %v17063_v17 = vpop.f32.mrf.mxu0 }
 0xc2b   : > { %v8148_v2 = vpop.f32.mrf.mxu1  ;;  %v8321_v17 = vmul.f32 %v19978_v54, %v19526_v39  ;;  %v8322_v39 = vmul.f32 %v19978_v54, %v19540_v25 }
 0xc2c   : > { %v8014_v29 = vpop.f32.mrf.mxu0 }
 0xc2d   : > { %v19959_v37 = vadd.f32 %v8148_v2, %v8014_v29  ;;  %v17101_v56 = vpop.f32.mrf.mxu1 }
 0xc2e   : > { %v17066_v61 = vpop.f32.mrf.mxu0 }
 0xc2f   : > { %v8153_v22 = vpop.f32.mrf.mxu1 }
 0xc30   : > { %v8019_v49 = vpop.f32.mrf.mxu0 }
 0xc31   : > { %v19961_v60 = vadd.f32 %v8153_v22, %v8019_v49  ;;  %v17104_v5 = vpop.f32.mrf.mxu1 }
 0xc32   : > { %v17069_v62 = vpop.f32.mrf.mxu0 }
 0xcb3   : > { %v8255_v41 = vpop.f32.mrf.mxu0 }
 0xcb4   : > { %v8299_v51 = vadd.f32 %v8255_v41, %v8114_v63 }
 0xcb5   : > { %v17115_v32 = vpop.f32.mrf.mxu0 }
 0xcb6   : > { %v19982_v19 = vadd.f32 %v8316_v57, %v8299_v51 }
 0xcb7   : > { %v8260_v45 = vpop.f32.mrf.mxu0 }
 0xcb8   : > { %v8300_v42 = vadd.f32 %v8260_v45, %v8119_v40 }
 0xcb9   : > { %v17118_v58 = vpop.f32.mrf.mxu0 }
 0xcba   : > { %v19986_v21 = vadd.f32 %v8317_v7, %v8300_v42 }
 0xcbb   : > { %v8265_v15 = vpop.f32.mrf.mxu0 }
 0xcbc   : > { %v8301_v20 = vadd.f32 %v8265_v15, %v8124_v14  ;;  %v15337_v14 = vld [vmem:[%s21874_s5 + $0x78] sm:$0xff] }
 0xcbd   : > { %v17121_v63 = vpop.f32.mrf.mxu0 }
 0xcbe   : > { %v8327_v55 = vadd.f32 %v8318_v53, %v8301_v20 }
 0xcbf   : > { %v8270_v43 = vpop.f32.mrf.mxu0 }
 0xcc0   : > { %v19996_v40 = vadd.f32 %v19993_v36, %v8327_v55  ;;  %v8302_v24 = vadd.f32 %v8270_v43, %v8129_v28 }
 0xcc1   : > { %v17124_v27 = vpop.f32.mrf.mxu0 }
 0xcc2   : > { %v8328_v23 = vadd.f32 %v8319_v30, %v8302_v24  ;;  %17149 = vmatmul.mubr.msk.f32.vlgmr.msra.gmra.mxu1 %vm930_vm6, %v19996_v40  ;;  %v15357_v30 = vld [vmem:[%s21837_s7 + $0x3] ss:$0 sm:$0xff] }
 0xcc3   : > { %v8275_v44 = vpop.f32.mrf.mxu0  ;;  %17151 = vmatprep.mubr.msk.f32.mxu1 %vm18172_vm1, %v18171_v1  ;;  %17170 = vmatpush3.msra.mxu1 %v15337_v14 }
 0xcc4   : > { %v20011_v12 = vadd.f32 %v19993_v36, %v8328_v23  ;;  %v8303_v28 = vadd.f32 %v8275_v44, %v8134_v8  ;;  %17171 = vmatprep.subr.mxu1 %v18171_v1  ;;  %v15334_v8 = vld [vmem:[%s21874_s5 + $0x60] sm:$0xff] }
 0xcc5   : > { %v17127_v3 = vpop.f32.mrf.mxu0  ;;  %17172 = vmatpush3.msra.mxu1 %v15336_v34 }
 0xcc6   : > { %v8329_v31 = vadd.f32 %v8320_v9, %v8303_v28  ;;  %17152 = vmatmul.mubr.msk.f32.gmra.mxu1 %vm930_vm6, %v20011_v12  ;;  %17173 = vmatprep.subr.mxu1 %v18171_v1 }
 0xcc7   : > { %v8280_v13 = vpop.f32.mrf.mxu0  ;;  %17154 = vmatprep.mubr.msk.f32.mxu1 %vm18172_vm1, %v18171_v1  ;;  %17174 = vmatpush3.msra.mxu1 %v15335_v35 }
 0xcc8   : > { %v20028_v46 = vadd.f32 %v19993_v36, %v8329_v31  ;;  %v8304_v18 = vadd.f32 %v8280_v13, %v19955_v4  ;;  %17175 = vmatprep.subr.mxu1 %v18171_v1 }
 0xcc9   : > { %v17130_v2 = vpop.f32.mrf.mxu0  ;;  %17176 = vmatpush3.msra.mxu1 %v15334_v8 }
 0xcca   : > { %v8330_v29 = vadd.f32 %v8321_v17, %v8304_v18  ;;  %17155 = vmatmul.mubr.msk.f32.gmra.mxu1 %vm930_vm6, %v20028_v46  ;;  %17223 = vmatprep.subr.mxu1 %v18171_v1 }
 0xccb   : > { %v8285_v56 = vpop.f32.mrf.mxu0  ;;  %17157 = vmatprep.mubr.msk.f32.mxu1 %vm18172_vm1, %v18171_v1 }
 0xccc   : > { %v20040_v61 = vadd.f32 %v19993_v36, %v8330_v29  ;;  %v8305_v4 = vadd.f32 %v8285_v56, %v19957_v10  ;;  %v8323_v10 = vmul.f32 %v19978_v54, %v19553_v48 }
 0xccd   : > { %v17133_v22 = vpop.f32.mrf.mxu0 }
 0xcce   : > { %v8331_v49 = vadd.f32 %v8322_v39, %v8305_v4  ;;  %17158 = vmatmul.mubr.msk.f32.gmra.mxu1 %vm930_vm6, %v20040_v61 }
 0xccf   : > { %v8290_v5 = vpop.f32.mrf.mxu0  ;;  %17160 = vmatprep.mubr.msk.f32.mxu1 %vm18172_vm1, %v18171_v1 }
 0xcd0   : > { %v20050_v62 = vadd.f32 %v19993_v36, %v8331_v49  ;;  %v8306_v26 = vadd.f32 %v8290_v5, %v19959_v37  ;;  %v8324_v37 = vmul.f32 %v19978_v54, %v19564_v47  ;;  %v8342_v47 = vadd.f32 %v19993_v36, %v19982_v19 }
 0xcd1   : > { %v17136_v38 = vpop.f32.mrf.mxu0 }
 0xcd2   : > { %v8332_v50 = vadd.f32 %v8323_v10, %v8306_v26  ;;  %17161 = vmatmul.mubr.msk.f32.gmra.mxu1 %vm930_vm6, %v20050_v62 }
 0xcd3   : > { %v8295_v25 = vpop.f32.mrf.mxu0  ;;  %17163 = vmatprep.mubr.msk.f32.mxu1 %vm18172_vm1, %v18171_v1 }
 0xcd4   : > { %v20060_v41 = vadd.f32 %v19993_v36, %v8332_v50  ;;  %v8307_v51 = vadd.f32 %v8295_v25, %v19961_v60  ;;  %v8343_v60 = vadd.f32 %v19993_v36, %v19986_v21  ;;  %v15372_v25 = vld [vmem:[%s21838_s8 + $0xf8] sm:$0xff] }
 0xcd5   : > { %v17139_v57 = vpop.f32.mrf.mxu0  ;;  %8723 = vmatprep.subr.mxu0 %v15372_v25 }
 0xcd6   : > { %v8333_v32 = vadd.f32 %v8324_v37, %v8307_v51  ;;  %17164 = vmatmul.mubr.msk.f32.gmra.mxu1 %vm930_vm6, %v20060_v41 }
 0xcd7   : > { %17166 = vmatprep.mubr.msk.f32.mxu1 %vm18172_vm1, %v18171_v1 }
 0xcd8   : > { %v20070_v48 = vadd.f32 %v19993_v36, %v8333_v32 }
 0xcda   : > { %17167 = vmatmul.mubr.msk.f32.gmra.mxu1 %vm930_vm6, %v20070_v48 }
 0xcdb   : > { %17177 = vmatprep.mubr.msk.f32.mxu1 %vm18172_vm1, %v18171_v1 }
 0xcde   : > { %17178 = vmatmul.mubr.msk.f32.vlgmr.msra.gmra.mxu1 %vm930_vm6, %v8342_v47 }
 0xcdf   : > { %17180 = vmatprep.mubr.msk.f32.mxu1 %vm18172_vm1, %v18171_v1 }
 0xce2   : > { %17181 = vmatmul.mubr.msk.f32.gmra.mxu1 %vm930_vm6, %v8343_v60 }
 0xce3   : > { %17183 = vmatprep.mubr.msk.f32.mxu1 %vm18172_vm1, %v18171_v1 }
 0xce6   : > { %17184 = vmatmul.mubr.msk.f32.gmra.mxu1 %vm930_vm6, %v19996_v40 }
 0xce7   : > { %17186 = vmatprep.mubr.msk.f32.mxu1 %vm18172_vm1, %v18171_v1 }
 0xcea   : > { %17187 = vmatmul.mubr.msk.f32.gmra.mxu1 %vm930_vm6, %v20011_v12 }
 0xceb   : > { %17189 = vmatprep.mubr.msk.f32.mxu1 %vm18172_vm1, %v18171_v1 }
 0xcee   : > { %17190 = vmatmul.mubr.msk.f32.gmra.mxu1 %vm930_vm6, %v20028_v46 }
 0xcef   : > { %17192 = vmatprep.mubr.msk.f32.mxu1 %vm18172_vm1, %v18171_v1 }
 0xcf2   : > { %17193 = vmatmul.mubr.msk.f32.gmra.mxu1 %vm930_vm6, %v20040_v61 }
 0xcf3   : > { %17195 = vmatprep.mubr.msk.f32.mxu1 %vm18172_vm1, %v18171_v1 }
 0xcf6   : > { %17196 = vmatmul.mubr.msk.f32.gmra.mxu1 %vm930_vm6, %v20050_v62 }
 0xcf7   : > { %17225 = vmatprep.mubr.msk.f32.mxu1 %vm18172_vm1, %v18171_v1 }
 0xd82   : > { %v8448_v54 = vpop.f32.mrf.mxu1 }
 0xd84   : > { %v17150_v19 = vpop.f32.mrf.mxu1 }
 0xd86   : > { %v8453_v45 = vpop.f32.mrf.mxu1 }
 0xd88   : > { %v17153_v42 = vpop.f32.mrf.mxu1 }
 0xd8a   : > { %v8458_v7 = vpop.f32.mrf.mxu1 }
 0xd8c   : > { %v17156_v58 = vpop.f32.mrf.mxu1 }
 0xd8d   : > { %v15371_v58 = vld [vmem:[%s21838_s8 + $0xf0] sm:$0xff] }
 0xd8e   : > { %v8463_v21 = vpop.f32.mrf.mxu1  ;;  %8724 = vmatpush1.msra.mxu0 %v15371_v58 }
 0xd90   : > { %v17159_v15 = vpop.f32.mrf.mxu1 }
 0xd92   : > { %v8468_v20 = vpop.f32.mrf.mxu1 }
 0xd94   : > { %v17162_v53 = vpop.f32.mrf.mxu1 }
 0xd96   : > { %v8473_v63 = vpop.f32.mrf.mxu1 }
 0xd98   : > { %v17165_v55 = vpop.f32.mrf.mxu1 }
 0xd99   : > { %v15369_v55 = vld [vmem:[%s21838_s8 + $0xe0] sm:$0xff] }
 0xd9a   : > { %v8478_v36 = vpop.f32.mrf.mxu1 }
 0xd9c   : > { %v17168_v43 = vpop.f32.mrf.mxu1 }
 0xd9d   : > { %v15367_v43 = vld [vmem:[%s21838_s8 + $0xd0] sm:$0xff] }
 0xd9e   : > { %v8554_v24 = vpop.f32.mrf.mxu1 }
 0xd9f   : > { %v8555_v14 = vadd.f32 %v8554_v24, %v8448_v54 }
 0xda0   : > { %v17179_v27 = vpop.f32.mrf.mxu1 }
 0xda1   : > { %v20109_v23 = vadd.f32 %v15357_v30, %v8555_v14 }
 0xda2   : > { %v8559_v34 = vpop.f32.mrf.mxu1 }
 0xda3   : > { %v15358_v44 = vmul.f32 -1.442695, %v20109_v23  ;;  %v8560_v29 = vadd.f32 %v8559_v34, %v8453_v45 }
 0xda4   : > { %v17182_v28 = vpop.f32.mrf.mxu1 }
 0xda5   : > { %17980 = vpow2.f32 %v15358_v44  ;;  %v20118_v26 = vadd.f32 %v15357_v30, %v8560_v29 }
 0xda6   : > { %v8564_v9 = vpop.f32.mrf.mxu1 }
 0xda7   : > { %v8565_v35 = vadd.f32 %v8564_v9, %v8458_v7  ;;  %v15359_v37 = vmul.f32 -1.442695, %v20118_v26  ;;  %v15365_v9 = vld [vmem:[%s21838_s8 + $0xc0] sm:$0xff] }
 0xda8   : > { %v17185_v3 = vpop.f32.mrf.mxu1 }
 0xda9   : > { %v20112_v31 = vadd.f32 %v15357_v30, %v8565_v35 }
 0xdaa   : > { %v8569_v8 = vpop.f32.mrf.mxu1 }
 0xdab   : > { %v15360_v13 = vmul.f32 -1.442695, %v20112_v31  ;;  %v8570_v38 = vadd.f32 %v8569_v8, %v8463_v21 }
 0xdac   : > { %v17188_v18 = vpop.f32.mrf.mxu1 }
 0xdad   : > { %17982 = vpow2.f32 %v15360_v13  ;;  %v8599_v54 = vadd.f32 %v15357_v30, %v8570_v38 }
 0xdae   : > { %v8574_v17 = vpop.f32.mrf.mxu1 }
 0xdaf   : > { %v8575_v2 = vadd.f32 %v8574_v17, %v8468_v20  ;;  %v15361_v7 = vmul.f32 -1.442695, %v8599_v54 }
 0xdb0   : > { %v17191_v56 = vpop.f32.mrf.mxu1 }
 0xdb1   : > { %v20115_v4 = vadd.f32 %v15357_v30, %v8575_v2 }
 0xdb2   : > { %v17981_v39 = vpop.eup %17980  ;;  %v8579_v22 = vpop.f32.mrf.mxu1 }
 0xdb3   : > { %v8631_v49 = vadd.f32 1.0, %v17981_v39  ;;  %v15362_v5 = vmul.f32 -1.442695, %v20115_v4  ;;  %v8580_v32 = vadd.f32 %v8579_v22, %v8473_v63  ;;  %v15370_v63 = vld [vmem:[%s21838_s8 + $0xe8] sm:$0xff] }
 0xdb4   : > { %v17194_v10 = vpop.f32.mrf.mxu1  ;;  %8725 = vmatprep.subr.mxu0 %v15370_v63 }
 0xdb5   : > { %17984 = vrcp.f32 %v8631_v49  ;;  %v8601_v42 = vadd.f32 %v15357_v30, %v8580_v32  ;;  %8726 = vmatpush1.msra.mxu0 %v15369_v55 }
 0xdb6   : > { %17986 = vpow2.f32 %v15362_v5  ;;  %v8584_v50 = vpop.f32.mrf.mxu1 }
 0xdb7   : > { %v8585_v51 = vadd.f32 %v8584_v50, %v8478_v36  ;;  %17988 = vpow2.f32 %v15359_v37  ;;  %v15363_v21 = vmul.f32 -1.442695, %v8601_v42  ;;  %v15368_v36 = vld [vmem:[%s21838_s8 + $0xd8] sm:$0xff] }
 0xdb8   : > { %v17197_v57 = vpop.f32.mrf.mxu1  ;;  %8727 = vmatprep.subr.mxu0 %v15368_v36 }
 0xdb9   : > { %v8602_v47 = vadd.f32 %v15357_v30, %v8585_v51  ;;  %v15366_v30 = vld [vmem:[%s21838_s8 + $0xc8] sm:$0xff]  ;;  %8728 = vmatpush1.msra.mxu0 %v15367_v43 }
 0xdba   : > { %v17983_v60 = vpop.eup %17982  ;;  %8729 = vmatprep.subr.mxu0 %v15366_v30 }
 0xdbb   : > { %v8633_v19 = vadd.f32 1.0, %v17983_v60  ;;  %v15364_v45 = vmul.f32 -1.442695, %v8602_v47  ;;  %8730 = vmatpush1.msra.mxu0 %v15365_v9 }
 0xdbc   : > { %17198 = vmatprep.subr.mxu0 %v18171_v1 }
 0xdbd   : > { %17990 = vrcp.f32 %v8633_v19 }
 0xdbe   : > { %17992 = vpow2.f32 %v15364_v45  ;;  %v15272_v45 = vld [vmem:[%s21839_s9 + $0x4] sm:$0x3] }
 0xdbf   : > { %17994 = vpow2.f32 %v15361_v7 }
 0xdc0   : > { %17996 = vpow2.f32 %v15363_v21 }
 0xdc2   : > { %v17985_v15 = vpop.eup %17984 }
 0xdc3   : > { %v17987_v20 = vpop.eup %17986  ;;  %8659 = vrot.lane.b32.xlu0 %v17985_v15, %s21876_s23 }
 0xdc4   : > { %v8635_v53 = vadd.f32 1.0, %v17987_v20  ;;  %v17989_v24 = vpop.eup %17988 }
 0xdc5   : > { %v8632_v44 = vadd.f32 1.0, %v17989_v24 }
 0xdc6   : > { %17998 = vrcp.f32 %v8635_v53 }
 0xdca   : > { %v17991_v14 = vpop.eup %17990 }
 0xdcb   : > { %v17993_v27 = vpop.eup %17992  ;;  %8663 = vrot.lane.b32.xlu0 %v17991_v14, %s21876_s23 }
 0xdcc   : > { %v8637_v34 = vadd.f32 1.0, %v17993_v27  ;;  %v17995_v28 = vpop.eup %17994 }
 0xdcd   : > { %v17997_v35 = vpop.eup %17996  ;;  %v8634_v3 = vadd.f32 1.0, %v17995_v28  ;;  %v15395_v28 = vld [vmem:[%s21841_s11 + $0x70] sm:$0xff] }
 0xdce   : > { %18000 = vrcp.f32 %v8637_v34  ;;  %v8636_v13 = vadd.f32 1.0, %v17997_v35  ;;  %v15396_v34 = vld [vmem:[%s21841_s11 + $0x78] sm:$0xff]  ;;  %v15394_v35 = vld [vmem:[%s21841_s11 + $0x68] sm:$0xff] }
 0xdcf   : > { %18002 = vrcp.f32 %v8632_v44 }
 0xdd0   : > { %18004 = vrcp.f32 %v8634_v3  ;;  %v15392_v3 = vld [vmem:[%s21840_s10 + $0x78] sm:$0xff] }
 0xdd1   : > { %18006 = vrcp.f32 %v8636_v13  ;;  %v15393_v13 = vld [vmem:[%s21841_s11 + $0x60] sm:$0xff] }
 0xdd2   : > { %18008 = vtanh.f32 %v8602_v47 }
 0xdd3   : > { %v17999_v8 = vpop.eup %17998  ;;  %18010 = vtanh.f32 %v20109_v23 }
 0xdd4   : > { %8667 = vrot.lane.b32.xlu0 %v17999_v8, %s21876_s23  ;;  %18012 = vtanh.f32 %v20118_v26 }
 0xdd5   : > { %18014 = vtanh.f32 %v20112_v31 }
 0xdd6   : > { %18016 = vtanh.f32 %v8601_v42  ;;  %v6607_v42 = vrot.slane %v15272_v45, %v19233_v6 }
 0xdd7   : > { %18018 = vtanh.f32 %v8599_v54 }
 0xdd8   : > { %18020 = vtanh.f32 %v20115_v4  ;;  %v6614_v7 = vadd.f32 %v6607_v42, %v19734_v59 }
 0xddb   : > { %v18001_v18 = vpop.eup %18000 }
 0xddc   : > { %8671 = vrot.lane.b32.xlu1 %v18001_v18, %s21876_s23  ;;  %v18003_v17 = vpop.eup %18002  ;;  %v15391_v18 = vld [vmem:[%s21840_s10 + $0x70] sm:$0xff] }
 0xddd   : > { %v18005_v2 = vpop.eup %18004 }
 0xdde   : > { %v18007_v29 = vpop.eup %18006 }
 0xddf   : > { %v18009_v39 = vpop.eup %18008 }
 0xde0   : > { %8661 = vrot.lane.b32.xlu1 %v18003_v17, %s21876_s23  ;;  %v18011_v49 = vpop.eup %18010  ;;  %v15390_v17 = vld [vmem:[%s21840_s10 + $0x68] sm:$0xff] }
 0xde1   : > { %v18013_v38 = vpop.eup %18012 }
 0xde2   : > { %v18015_v4 = vpop.eup %18014 }
 0xde3   : > { %v18017_v51 = vpop.eup %18016 }
 0xde4   : > { %8665 = vrot.lane.b32.xlu1 %v18005_v2, %s21876_s23  ;;  %v18019_v57 = vpop.eup %18018  ;;  %v15389_v2 = vld [vmem:[%s21840_s10 + $0x60] sm:$0xff] }
 0xde5   : > { %v18021_v54 = vpop.eup %18020 }
 0xde8   : > { %8669 = vrot.lane.b32.xlu1 %v18007_v29, %s21876_s23  ;;  %v15414_v29 = vld [vmem:[%s21842_s12 + $0x78] sm:$0xff] }
 0xe35   : > { %v8660_v56 = vpop.permute.xlu0 %8659 }
 0xe36   : > { %v20158_v10 = vmul.f32 %v18011_v49, %v8660_v56  ;;  %v15413_v56 = vld [vmem:[%s21842_s12 + $0x70] sm:$0xff] }
 0xe3d   : > { %v8664_v26 = vpop.permute.xlu0 %8663 }
 0xe3e   : > { %v20175_v25 = vmul.f32 %v18015_v4, %v8664_v26 }
 0xe46   : > { %v8668_v60 = vpop.permute.xlu0 %8667 }
 0xe47   : > { %v20196_v19 = vmul.f32 %v18021_v54, %v8668_v60 }
 0xe4e   : > { %v8672_v22 = vpop.permute.xlu1 %8671 }
 0xe4f   : > { %v20156_v5 = vmul.f32 %v18009_v39, %v8672_v22  ;;  %v15412_v39 = vld [vmem:[%s21842_s12 + $0x68] sm:$0xff]  ;;  %v15411_v22 = vld [vmem:[%s21842_s12 + $0x60] sm:$0xff] }
 0xe51   : > { %15373 = vmatmul.mubr.msk.f32.vlgmr.msra.gmra.mxu0 %vm930_vm6, %v20156_v5 }
 0xe52   : > { %17199 = vmatpush3.msra.mxu0 %v20158_v10  ;;  %v8662_v23 = vpop.permute.xlu1 %8661  ;;  %17200 = vmatprep.mubr.msk.f32.mxu0 %vm18172_vm1, %v18171_v1 }
 0xe53   : > { %v20166_v31 = vmul.f32 %v18013_v38, %v8662_v23  ;;  %17203 = vmatprep.subr.mxu0 %v18171_v1 }
 0xe55   : > { %17201 = vmatmul.mubr.msk.f32.vlgmr.msra.gmra.mxu0 %vm683_vm5, %v18643_v33 }
 0xe56   : > { %17204 = vmatpush3.msra.mxu0 %v20166_v31  ;;  %v8666_v50 = vpop.permute.xlu1 %8665  ;;  %17205 = vmatprep.mubr.msk.f32.mxu0 %vm18172_vm1, %v18171_v1 }
 0xe57   : > { %17208 = vmatprep.subr.mxu0 %v18171_v1  ;;  %v20185_v47 = vmul.f32 %v18019_v57, %v8666_v50 }
 0xe59   : > { %17206 = vmatmul.mubr.msk.f32.vlgmr.msra.gmra.mxu0 %vm683_vm5, %v18643_v33 }
 0xe5a   : > { %17209 = vmatpush3.msra.mxu0 %v20175_v25  ;;  %v8670_v37 = vpop.permute.xlu1 %8669  ;;  %17210 = vmatprep.mubr.msk.f32.mxu0 %vm18172_vm1, %v18171_v1 }
 0xe5b   : > { %v20182_v32 = vmul.f32 %v18017_v51, %v8670_v37  ;;  %17213 = vmatprep.subr.mxu0 %v18171_v1 }
 0xe5d   : > { %17211 = vmatmul.mubr.msk.f32.vlgmr.msra.gmra.mxu0 %vm683_vm5, %v18643_v33  ;;  %17224 = vmatpush3.msra.mxu1 %v20182_v32 }
 0xe5e   : > { %17214 = vmatpush3.msra.mxu0 %v20185_v47  ;;  %17226 = vmatmul.mubr.msk.f32.vlgmr.msra.gmra.mxu1 %vm683_vm5, %v18643_v33 }
 0xe5f   : > { %17215 = vmatprep.mubr.msk.f32.mxu0 %vm18172_vm1, %v18171_v1  ;;  %17218 = vmatprep.subr.mxu0 %v18171_v1 }
 0xe60   : > { %17233 = vmatprep.subr.mxu1 %v18171_v1  ;;  %17235 = vmatprep.mubr.msk.f32.mxu1 %vm18172_vm1, %v18171_v1 }
 0xe61   : > { %17216 = vmatmul.mubr.msk.f32.vlgmr.msra.gmra.mxu0 %vm683_vm5, %v18643_v33 }
 0xe62   : > { %17219 = vmatpush3.msra.mxu0 %v20196_v19  ;;  %17220 = vmatprep.mubr.msk.f32.mxu0 %vm18172_vm1, %v18171_v1 }
 0xe63   : > { %17228 = vmatprep.subr.mxu0 %v18171_v1 }
 0xe65   : > { %17221 = vmatmul.mubr.msk.f32.vlgmr.msra.gmra.mxu0 %vm683_vm5, %v18643_v33 }
 0xe66   : > { %17229 = vmatpush3.msra.mxu0 %v20156_v5  ;;  %17230 = vmatprep.mubr.msk.f32.mxu0 %vm18172_vm1, %v18171_v1 }
 0xe67   : > { %17238 = vmatprep.subr.mxu0 %v18171_v1 }
 0xe69   : > { %17231 = vmatmul.mubr.msk.f32.vlgmr.msra.gmra.mxu0 %vm683_vm5, %v18643_v33 }
 0xe6a   : > { %17240 = vmatprep.mubr.msk.f32.mxu0 %vm18172_vm1, %v18171_v1 }
 0xf11   : > { %v8765_v58 = vpop.f32.mrf.mxu0 }
 0xf12   : > { %v20222_v21 = vadd.f32 %v8765_v58, %v6614_v7 }
 0xf13   : > { %v20224_v15 = vpop.f32.mrf.mxu0 }
 0xf15   : > { %v8853_v20 = vpop.f32.mrf.mxu0 }
 0xf16   : > { %17234 = vmatpush3.msra.mxu1 %v8853_v20 }
 0xf17   : > { %v17202_v53 = vpop.f32.mrf.mxu0  ;;  %17236 = vmatmul.mubr.msk.f32.vlgmr.msra.gmra.mxu1 %vm683_vm5, %v18643_v33  ;;  %17243 = vmatprep.subr.mxu1 %v18171_v1 }
 0xf18   : > { %17245 = vmatprep.mubr.msk.f32.mxu1 %vm18172_vm1, %v18171_v1 }
 0xf19   : > { %v8923_v63 = vpop.f32.mrf.mxu0 }
 0xf1a   : > { %17239 = vmatpush3.msra.mxu0 %v8923_v63 }
 0xf1b   : > { %v17207_v55 = vpop.f32.mrf.mxu0  ;;  %17241 = vmatmul.mubr.msk.f32.vlgmr.msra.gmra.mxu0 %vm683_vm5, %v18643_v33  ;;  %17248 = vmatprep.subr.mxu0 %v18171_v1 }
 0xf1c   : > { %17250 = vmatprep.mubr.msk.f32.mxu0 %vm18172_vm1, %v18171_v1 }
 0xf1d   : > { %v20236_v59 = vpop.f32.mrf.mxu0 }
 0xf1e   : > { %v20238_v36 = vpop.f32.mrf.mxu1  ;;  %17244 = vmatpush3.msra.mxu1 %v20236_v59 }
 0xf1f   : > { %v17212_v43 = vpop.f32.mrf.mxu0  ;;  %17246 = vmatmul.mubr.msk.f32.vlgmr.msra.gmra.mxu1 %vm683_vm5, %v18643_v33  ;;  %17253 = vmatprep.subr.mxu1 %v18171_v1 }
 0xf20   : > { %v17227_v24 = vpop.f32.mrf.mxu1  ;;  %17255 = vmatprep.mubr.msk.f32.mxu1 %vm18172_vm1, %v18171_v1 }
 0xf21   : > { %v20246_v30 = vpop.f32.mrf.mxu0 }
 0xf22   : > { %17249 = vmatpush3.msra.mxu0 %v20246_v30 }
 0xf23   : > { %v17217_v14 = vpop.f32.mrf.mxu0  ;;  %17251 = vmatmul.mubr.msk.f32.vlgmr.msra.gmra.mxu0 %vm683_vm5, %v18643_v33  ;;  %17258 = vmatprep.subr.mxu0 %v18171_v1 }
 0xf24   : > { %17259 = vmatpush3.msra.mxu0 %v20238_v36  ;;  %17260 = vmatprep.mubr.msk.f32.mxu0 %vm18172_vm1, %v18171_v1 }
 0xf25   : > { %v9133_v27 = vpop.f32.mrf.mxu0  ;;  %17268 = vmatprep.subr.mxu0 %v18171_v1 }
 0xf26   : > { %17254 = vmatpush3.msra.mxu1 %v9133_v27 }
 0xf27   : > { %v17222_v44 = vpop.f32.mrf.mxu0  ;;  %17256 = vmatmul.mubr.msk.f32.vlgmr.msra.gmra.mxu1 %vm683_vm5, %v18643_v33  ;;  %17261 = vmatmul.mubr.msk.f32.vlgmr.msra.gmra.mxu0 %vm683_vm5, %v18643_v33 }
 0xf28   : > { %17269 = vmatpush3.msra.mxu0 %v15396_v34  ;;  %17263 = vmatprep.subr.mxu1 %v18171_v1 }
 0xf29   : > { %17270 = vmatprep.subr.mxu0 %v18171_v1  ;;  %v9273_v9 = vpop.f32.mrf.mxu0  ;;  %17265 = vmatprep.mubr.msk.f32.mxu1 %vm18172_vm1, %v18171_v1 }
 0xf2a   : > { %17271 = vmatpush3.msra.mxu0 %v15395_v28  ;;  %17264 = vmatpush3.msra.mxu1 %v9273_v9 }
 0xf2b   : > { %17272 = vmatprep.subr.mxu0 %v18171_v1  ;;  %v17232_v8 = vpop.f32.mrf.mxu0  ;;  %17266 = vmatmul.mubr.msk.f32.vlgmr.msra.gmra.mxu1 %vm683_vm5, %v18643_v33 }
 0xf2c   : > { %17273 = vmatpush3.msra.mxu0 %v15394_v35  ;;  %17297 = vmatprep.subr.mxu1 %v18171_v1 }
 0xf2d   : > { %17274 = vmatprep.subr.mxu0 %v18171_v1  ;;  %17298 = vmatpush3.msra.mxu1 %v15392_v3 }
 0xf2e   : > { %17275 = vmatpush3.msra.mxu0 %v15393_v13  ;;  %17276 = vmatprep.mubr.msk.f32.mxu0 %vm18172_vm1, %v18171_v1 }
 0xf2f   : > { %17299 = vmatprep.subr.mxu1 %v18171_v1  ;;  %17277 = vmatmul.mubr.msk.f32.vlgmr.msra.gmra.mxu0 %vm930_vm6, %v8853_v20 }
 0xf30   : > { %17300 = vmatpush3.msra.mxu1 %v15391_v18  ;;  %17279 = vmatprep.mubr.msk.f32.mxu0 %vm18172_vm1, %v18171_v1 }
 0xf31   : > { %17301 = vmatprep.subr.mxu1 %v18171_v1  ;;  %17305 = vmatprep.mubr.msk.f32.mxu1 %vm18172_vm1, %v18171_v1 }
 0xf32   : > { %17302 = vmatpush3.msra.mxu1 %v15390_v17  ;;  %17326 = vmatprep.subr.mxu0 %v18171_v1 }
 0xf33   : > { %17303 = vmatprep.subr.mxu1 %v18171_v1  ;;  %17280 = vmatmul.mubr.msk.f32.gmra.mxu0 %vm930_vm6, %v8923_v63 }
 0xf34   : > { %17304 = vmatpush3.msra.mxu1 %v15389_v2  ;;  %17282 = vmatprep.mubr.msk.f32.mxu0 %vm18172_vm1, %v18171_v1 }
 0xf35   : > { %17306 = vmatmul.mubr.msk.f32.vlgmr.msra.gmra.mxu1 %vm930_vm6, %v20158_v10  ;;  %17327 = vmatpush3.msra.mxu0 %v15414_v29 }
 0xf36   : > { %17308 = vmatprep.mubr.msk.f32.mxu1 %vm18172_vm1, %v18171_v1  ;;  %17328 = vmatprep.subr.mxu0 %v18171_v1 }
 0xf37   : > { %17283 = vmatmul.mubr.msk.f32.gmra.mxu0 %vm930_vm6, %v20236_v59 }
 0xf38   : > { %17285 = vmatprep.mubr.msk.f32.mxu0 %vm18172_vm1, %v18171_v1  ;;  %17329 = vmatpush3.msra.mxu0 %v15413_v56 }
 0xf39   : > { %17309 = vmatmul.mubr.msk.f32.gmra.mxu1 %vm930_vm6, %v20166_v31  ;;  %17330 = vmatprep.subr.mxu0 %v18171_v1 }
 0xf3a   : > { %17311 = vmatprep.mubr.msk.f32.mxu1 %vm18172_vm1, %v18171_v1  ;;  %17331 = vmatpush3.msra.mxu0 %v15412_v39 }
 0xf3b   : > { %17286 = vmatmul.mubr.msk.f32.gmra.mxu0 %vm930_vm6, %v20246_v30  ;;  %17332 = vmatprep.subr.mxu0 %v18171_v1 }
 0xf3c   : > { %17288 = vmatprep.mubr.msk.f32.mxu0 %vm18172_vm1, %v18171_v1  ;;  %17333 = vmatpush3.msra.mxu0 %v15411_v22 }
 0xf3d   : > { %17312 = vmatmul.mubr.msk.f32.gmra.mxu1 %vm930_vm6, %v20175_v25  ;;  %17389 = vmatprep.subr.mxu0 %v18171_v1 }
 0xf3e   : > { %17314 = vmatprep.mubr.msk.f32.mxu1 %vm18172_vm1, %v18171_v1 }
 0xf3f   : > { %17289 = vmatmul.mubr.msk.f32.gmra.mxu0 %vm930_vm6, %v9133_v27 }
 0xf40   : > { %17291 = vmatprep.mubr.msk.f32.mxu0 %vm18172_vm1, %v18171_v1 }
 0xf41   : > { %17315 = vmatmul.mubr.msk.f32.gmra.mxu1 %vm930_vm6, %v20185_v47 }
 0xf42   : > { %17317 = vmatprep.mubr.msk.f32.mxu1 %vm18172_vm1, %v18171_v1 }
 0xf43   : > { %17292 = vmatmul.mubr.msk.f32.gmra.mxu0 %vm930_vm6, %v20238_v36 }
 0xf44   : > { %17294 = vmatprep.mubr.msk.f32.mxu0 %vm18172_vm1, %v18171_v1 }
 0xf45   : > { %17318 = vmatmul.mubr.msk.f32.gmra.mxu1 %vm930_vm6, %v20196_v19 }
 0xf46   : > { %17320 = vmatprep.mubr.msk.f32.mxu1 %vm18172_vm1, %v18171_v1 }
 0xf47   : > { %17295 = vmatmul.mubr.msk.f32.gmra.mxu0 %vm930_vm6, %v9273_v9 }
 0xf48   : > { %17334 = vmatprep.mubr.msk.f32.mxu0 %vm18172_vm1, %v18171_v1 }
 0xf49   : > { %17321 = vmatmul.mubr.msk.f32.gmra.mxu1 %vm930_vm6, %v20182_v32 }
 0xf4a   : > { %17323 = vmatprep.mubr.msk.f32.mxu1 %vm18172_vm1, %v18171_v1 }
 0xf4d   : > { %17324 = vmatmul.mubr.msk.f32.gmra.mxu1 %vm930_vm6, %v20156_v5 }
 0xfd7   : > { %v9343_v49 = vpop.f32.mrf.mxu1 }
 0xfd8   : > { %17335 = vmatmul.mubr.msk.f32.vlgmr.msra.gmra.mxu0 %vm930_vm6, %v9343_v49 }
 0xfd9   : > { %v17237_v10 = vpop.f32.mrf.mxu1  ;;  %17337 = vmatprep.mubr.msk.f32.mxu0 %vm18172_vm1, %v18171_v1 }
 0xfda   : > { %v15433_v10 = vld [vmem:[%s21836_s6 + $0x98] sm:$0xff] }
 0xfdb   : > { %v9413_v38 = vpop.f32.mrf.mxu0  ;;  %17355 = vmatprep.subr.mxu1 %v15433_v10 }
 0xfdc   : > { %17338 = vmatmul.mubr.msk.f32.gmra.mxu0 %vm930_vm6, %v9413_v38  ;;  %17356 = vmatpush3.msra.mxu1 %v15433_v10  ;;  %v15432_v38 = vld [vmem:[%s21836_s6 + $0x90] sm:$0xff] }
 0xfdd   : > { %v17242_v23 = vpop.f32.mrf.mxu0  ;;  %17340 = vmatprep.mubr.msk.f32.mxu0 %vm18172_vm1, %v18171_v1  ;;  %17357 = vmatprep.subr.mxu1 %v15432_v38 }
 0xfde   : > { %v15431_v23 = vld [vmem:[%s21836_s6 + $0x88] sm:$0xff]  ;;  %17358 = vmatpush3.msra.mxu1 %v15432_v38 }
 0xfdf   : > { %v9483_v5 = vpop.f32.mrf.mxu1  ;;  %17359 = vmatprep.subr.mxu1 %v15431_v23 }
 0xfe0   : > { %17341 = vmatmul.mubr.msk.f32.gmra.mxu0 %vm930_vm6, %v9483_v5  ;;  %17360 = vmatpush3.msra.mxu1 %v15431_v23  ;;  %v15430_v5 = vld [vmem:[%s21836_s6 + $0x80] sm:$0xff] }
 0xfe1   : > { %v17247_v31 = vpop.f32.mrf.mxu1  ;;  %17343 = vmatprep.mubr.msk.f32.mxu0 %vm18172_vm1, %v18171_v1  ;;  %17361 = vmatprep.subr.mxu1 %v15430_v5 }
 0xfe2   : > { %17362 = vmatpush3.msra.mxu1 %v15430_v5  ;;  %v15429_v31 = vld [vmem:[%s21874_s5 + $0x98] sm:$0xff] }
 0xfe3   : > { %v9553_v26 = vpop.f32.mrf.mxu0  ;;  %17372 = vmatprep.subr.mxu1 %v15429_v31 }
 0xfe4   : > { %17344 = vmatmul.mubr.msk.f32.gmra.mxu0 %vm930_vm6, %v9553_v26  ;;  %v15423_v26 = vld [vmem:[%s21844_s14 + $0x3] ss:$0 sm:$0xff] }
 0xfe5   : > { %v17252_v50 = vpop.f32.mrf.mxu0  ;;  %17346 = vmatprep.mubr.msk.f32.mxu0 %vm18172_vm1, %v18171_v1 }
 0xfe7   : > { %v9623_v4 = vpop.f32.mrf.mxu1  ;;  %v9693_v25 = vpop.f32.mrf.mxu0 }
 0xfe8   : > { %17347 = vmatmul.mubr.msk.f32.gmra.mxu0 %vm930_vm6, %v9623_v4 }
 0xfe9   : > { %v17257_v51 = vpop.f32.mrf.mxu1  ;;  %v17262_v37 = vpop.f32.mrf.mxu0  ;;  %17349 = vmatprep.mubr.msk.f32.mxu0 %vm18172_vm1, %v18171_v1 }
 0xfeb   : > { %v9763_v57 = vpop.f32.mrf.mxu1 }
 0xfec   : > { %17350 = vmatmul.mubr.msk.f32.gmra.mxu0 %vm930_vm6, %v9693_v25  ;;  %v10157_v25 = vmul.f32 %v15423_v26, %v19996_v40 }
 0xfed   : > { %v17267_v32 = vpop.f32.mrf.mxu1  ;;  %17352 = vmatprep.mubr.msk.f32.mxu0 %vm18172_vm1, %v18171_v1 }
 0xfef   : > { %v9864_v47 = vpop.f32.mrf.mxu0 }
 0xff0   : > { %17353 = vmatmul.mubr.msk.f32.gmra.mxu0 %vm930_vm6, %v9763_v57 }
 0xff1   : > { %v17278_v60 = vpop.f32.mrf.mxu0  ;;  %17391 = vmatprep.mubr.msk.f32.mxu0 %vm18172_vm1, %v18171_v1 }
 0xff3   : > { %v9869_v54 = vpop.f32.mrf.mxu0 }
 0xff5   : > { %v9982_v19 = vpop.f32.mrf.mxu1  ;;  %v17281_v45 = vpop.f32.mrf.mxu0 }
 0xff6   : > { %v9983_v42 = vadd.f32 %v9982_v19, %v9864_v47  ;;  %v10158_v47 = vmul.f32 %v15423_v26, %v20011_v12  ;;  %v15425_v19 = vld [vmem:[%s21843_s13 + $0x3] ss:$0 sm:$0xff] }
 0xff7   : > { %v17307_v7 = vpop.f32.mrf.mxu1  ;;  %v9874_v58 = vpop.f32.mrf.mxu0 }
 0xff9   : > { %v9987_v20 = vpop.f32.mrf.mxu1  ;;  %v17284_v53 = vpop.f32.mrf.mxu0 }
 0xffa   : > { %v9988_v63 = vadd.f32 %v9987_v20, %v9869_v54 }
 0xffb   : > { %v17310_v55 = vpop.f32.mrf.mxu1  ;;  %v9879_v59 = vpop.f32.mrf.mxu0 }
 0xffc   : > { %v10160_v55 = vmul.f32 %v15423_v26, %v20040_v61  ;;  %v10161_v61 = vmul.f32 %v15423_v26, %v20050_v62 }
 0xffd   : > { %v9992_v36 = vpop.f32.mrf.mxu1  ;;  %v17287_v43 = vpop.f32.mrf.mxu0 }
 0xffe   : > { %v9993_v24 = vadd.f32 %v9992_v36, %v9874_v58  ;;  %v15428_v36 = vld [vmem:[%s21874_s5 + $0x90] sm:$0xff] }
 0xfff   : > { %v17313_v30 = vpop.f32.mrf.mxu1  ;;  %v9884_v14 = vpop.f32.mrf.mxu0 }
0x1001   : > { %v9997_v27 = vpop.f32.mrf.mxu1  ;;  %v17290_v34 = vpop.f32.mrf.mxu0 }
0x1002   : > { %v9998_v44 = vadd.f32 %v9997_v27, %v9879_v59  ;;  %v15426_v34 = vld [vmem:[%s21874_s5 + $0x80] sm:$0xff] }
0x1003   : > { %v17316_v28 = vpop.f32.mrf.mxu1  ;;  %v9889_v9 = vpop.f32.mrf.mxu0 }
0x1005   : > { %v10002_v35 = vpop.f32.mrf.mxu1  ;;  %v17293_v3 = vpop.f32.mrf.mxu0 }
0x1006   : > { %v10003_v8 = vadd.f32 %v10002_v35, %v9884_v14  ;;  %v10162_v3 = vmul.f32 %v15423_v26, %v20060_v41 }
0x1007   : > { %v17319_v13 = vpop.f32.mrf.mxu1  ;;  %v9894_v18 = vpop.f32.mrf.mxu0 }
0x1009   : > { %v10007_v17 = vpop.f32.mrf.mxu1  ;;  %v17296_v2 = vpop.f32.mrf.mxu0 }
0x100a   : > { %v10008_v29 = vadd.f32 %v10007_v17, %v9889_v9  ;;  %v10163_v2 = vmul.f32 %v15423_v26, %v20070_v48 }
0x100b   : > { %v17322_v56 = vpop.f32.mrf.mxu1 }
0x100d   : > { %v10012_v39 = vpop.f32.mrf.mxu1 }
0x100e   : > { %v20388_v22 = vadd.f32 %v10012_v39, %v9894_v18 }
0x100f   : > { %v17325_v49 = vpop.f32.mrf.mxu1 }
0x1098   : > { %v10108_v50 = vpop.f32.mrf.mxu0 }
0x1099   : > { %v10142_v4 = vadd.f32 %v10108_v50, %v9983_v42  ;;  %v10159_v42 = vmul.f32 %v15423_v26, %v20028_v46  ;;  %v15447_v50 = vld [vmem:[%s21837_s7 + $0x4] ss:$0 sm:$0xff] }
0x109a   : > { %v17336_v51 = vpop.f32.mrf.mxu0 }
0x109b   : > { %v10164_v37 = vadd.f32 %v10157_v25, %v10142_v4 }
0x109c   : > { %v10113_v57 = vpop.f32.mrf.mxu0 }
0x109d   : > { %v10143_v32 = vadd.f32 %v10113_v57, %v9988_v63 }
0x109e   : > { %v17339_v60 = vpop.f32.mrf.mxu0 }
0x109f   : > { %v10165_v54 = vadd.f32 %v10158_v47, %v10143_v32 }
0x10a0   : > { %v10118_v45 = vpop.f32.mrf.mxu0 }
0x10a1   : > { %v20413_v7 = vadd.f32 %v15425_v19, %v10165_v54  ;;  %v10144_v58 = vadd.f32 %v10118_v45, %v9993_v24  ;;  %v15427_v24 = vld [vmem:[%s21874_s5 + $0x88] sm:$0xff] }
0x10a2   : > { %v17342_v20 = vpop.f32.mrf.mxu0 }
0x10a3   : > { %v10166_v40 = vadd.f32 %v10159_v42, %v10144_v58  ;;  %17363 = vmatprep.mubr.msk.f32.mxu1 %vm930_vm6, %v20413_v7 }
0x10a4   : > { %v10123_v53 = vpop.f32.mrf.mxu0 }
0x10a5   : > { %v20418_v63 = vadd.f32 %v15425_v19, %v10166_v40  ;;  %v10145_v12 = vadd.f32 %v10123_v53, %v9998_v44 }
0x10a6   : > { %v17345_v59 = vpop.f32.mrf.mxu0 }
0x10a7   : > { %v10167_v43 = vadd.f32 %v10160_v55, %v10145_v12  ;;  %17364 = vmatmul.mubr.msk.f32.vlgmr.msra.gmra.mxu1 %vm930_vm6, %v20418_v63 }
0x10a8   : > { %v10128_v46 = vpop.f32.mrf.mxu0  ;;  %17373 = vmatpush3.msra.mxu1 %v15429_v31 }
0x10a9   : > { %v20429_v30 = vadd.f32 %v15425_v19, %v10167_v43  ;;  %v10146_v14 = vadd.f32 %v10128_v46, %v10003_v8  ;;  %17374 = vmatprep.subr.mxu1 %v15428_v36 }
0x10aa   : > { %v17348_v27 = vpop.f32.mrf.mxu0  ;;  %17375 = vmatpush3.msra.mxu1 %v15428_v36 }
0x10ab   : > { %v10168_v44 = vadd.f32 %v10161_v61, %v10146_v14  ;;  %17366 = vmatprep.mubr.msk.f32.mxu1 %vm930_vm6, %v20429_v30  ;;  %17376 = vmatprep.subr.mxu1 %v15427_v24  ;;  %v15461_v61 = vld [vmem:[%s21838_s8 + $0x138] sm:$0xff]  ;;  %v15460_v27 = vld [vmem:[%s21838_s8 + $0x130] sm:$0xff] }
0x10ac   : > { %v10133_v28 = vpop.f32.mrf.mxu0  ;;  %17377 = vmatpush3.msra.mxu1 %v15427_v24 }
0x10ad   : > { %v20437_v9 = vadd.f32 %v15425_v19, %v10168_v44  ;;  %v10147_v35 = vadd.f32 %v10133_v28, %v10008_v29  ;;  %17378 = vmatprep.subr.mxu1 %v15426_v34  ;;  %v10179_v29 = vadd.f32 %v15425_v19, %v10164_v37 }
0x10ae   : > { %v17351_v62 = vpop.f32.mrf.mxu0  ;;  %17379 = vmatpush3.msra.mxu1 %v15426_v34  ;;  %v15459_v34 = vld [vmem:[%s21838_s8 + $0x128] sm:$0xff] }
0x10af   : > { %v10169_v8 = vadd.f32 %v10162_v3, %v10147_v35  ;;  %17367 = vmatmul.mubr.msk.f32.gmra.mxu1 %vm930_vm6, %v20437_v9  ;;  %10529 = vmatprep.subr.mxu1 %v15461_v61  ;;  %v15458_v3 = vld [vmem:[%s21838_s8 + $0x120] sm:$0xff] }
0x10b0   : > { %v10138_v13 = vpop.f32.mrf.mxu0 }
0x10b1   : > { %v20442_v18 = vadd.f32 %v15425_v19, %v10169_v8  ;;  %v10148_v17 = vadd.f32 %v10138_v13, %v20388_v22  ;;  %v15457_v13 = vld [vmem:[%s21838_s8 + $0x118] sm:$0xff] }
0x10b2   : > { %v17354_v56 = vpop.f32.mrf.mxu0 }
0x10b3   : > { %v10170_v39 = vadd.f32 %v10163_v2, %v10148_v17  ;;  %17369 = vmatprep.mubr.msk.f32.mxu1 %vm930_vm6, %v20442_v18  ;;  %v15456_v17 = vld [vmem:[%s21838_s8 + $0x110] sm:$0xff] }
0x10b5   : > { %v20448_v41 = vadd.f32 %v15425_v19, %v10170_v39 }
0x10b7   : > { %17370 = vmatmul.mubr.msk.f32.gmra.mxu1 %vm930_vm6, %v20448_v41 }
0x10b8   : > { %17380 = vmatprep.mubr.msk.f32.mxu1 %vm930_vm6, %v10179_v29  ;;  %v15455_v29 = vld [vmem:[%s21838_s8 + $0x108] sm:$0xff] }
0x10bb   : > { %17381 = vmatmul.mubr.msk.f32.vlgmr.msra.gmra.mxu1 %vm930_vm6, %v20413_v7 }
0x10bc   : > { %17383 = vmatprep.mubr.msk.f32.mxu1 %vm930_vm6, %v20418_v63  ;;  %10530 = vmatpush1.msra.mxu1 %v15460_v27 }
0x10bd   : > { %10531 = vmatprep.subr.mxu1 %v15459_v34  ;;  %v15483_v34 = vld [vmem:[%s21841_s11 + $0x98] sm:$0xff] }
0x10be   : > { %10532 = vmatpush1.msra.mxu1 %v15458_v3 }
0x10bf   : > { %17384 = vmatmul.mubr.msk.f32.gmra.mxu1 %vm930_vm6, %v20429_v30  ;;  %10533 = vmatprep.subr.mxu1 %v15457_v13  ;;  %v15480_v13 = vld [vmem:[%s21841_s11 + $0x80] sm:$0xff] }
0x10c0   : > { %17386 = vmatprep.mubr.msk.f32.mxu1 %vm930_vm6, %v20437_v9  ;;  %10534 = vmatpush1.msra.mxu1 %v15456_v17 }
0x10c1   : > { %10535 = vmatprep.subr.mxu1 %v15455_v29  ;;  %v15478_v29 = vld [vmem:[%s21840_s10 + $0x90] sm:$0xff] }
0x10c3   : > { %17387 = vmatmul.mubr.msk.f32.gmra.mxu1 %vm930_vm6, %v20442_v18 }
0x10c4   : > { %10569 = vmatprep.mubr.f32.mxu1 %v18171_v1 }
0x1167   : > { %v17365_v48 = vpop.f32.mrf.mxu1 }
0x1169   : > { %v10280_v22 = vpop.f32.mrf.mxu1 }
0x116f   : > { %v17368_v49 = vpop.f32.mrf.mxu1 }
0x1171   : > { %v10290_v10 = vpop.f32.mrf.mxu1 }
0x1177   : > { %v17371_v38 = vpop.f32.mrf.mxu1 }
0x1179   : > { %v10300_v23 = vpop.f32.mrf.mxu1 }
0x117b   : > { %v17382_v5 = vpop.f32.mrf.mxu1 }
0x117c   : > { %v10384_v31 = vadd.f32 %v17382_v5, %v17365_v48  ;;  %v15454_v48 = vld [vmem:[%s21838_s8 + $0x100] sm:$0xff] }
0x117d   : > { %v10378_v26 = vpop.f32.mrf.mxu1  ;;  %10536 = vmatpush1.msra.mxu1 %v15454_v48  ;;  %v15477_v48 = vld [vmem:[%s21840_s10 + $0x88] sm:$0xff] }
0x117e   : > { %v10379_v4 = vadd.f32 %v10378_v26, %v10280_v22  ;;  %v20469_v37 = vadd.f32 %v15447_v50, %v10384_v31  ;;  %17394 = vmatprep.subr.mxu1 %v18171_v1 }
0x117f   : > { %v17385_v25 = vpop.f32.mrf.mxu1 }
0x1180   : > { %v20467_v51 = vadd.f32 %v15447_v50, %v10379_v4  ;;  %v10394_v47 = vadd.f32 %v17385_v25, %v17368_v49  ;;  %v15449_v58 = vmul.f32 -1.442695, %v20469_v37 }
0x1181   : > { %v10388_v57 = vpop.f32.mrf.mxu1 }
0x1182   : > { %v15448_v32 = vmul.f32 -1.442695, %v20467_v51  ;;  %v10389_v60 = vadd.f32 %v10388_v57, %v10290_v10  ;;  %v20475_v20 = vadd.f32 %v15447_v50, %v10394_v47 }
0x1183   : > { %v17388_v54 = vpop.f32.mrf.mxu1 }
0x1184   : > { %18022 = vpow2.f32 %v15448_v32  ;;  %v20472_v19 = vadd.f32 %v15447_v50, %v10389_v60  ;;  %v10404_v45 = vadd.f32 %v17388_v54, %v17371_v38  ;;  %v15451_v36 = vmul.f32 -1.442695, %v20475_v20 }
0x1185   : > { %v10398_v42 = vpop.f32.mrf.mxu1 }
0x1186   : > { %v15450_v40 = vmul.f32 -1.442695, %v20472_v19  ;;  %v10420_v53 = vadd.f32 %v15447_v50, %v10404_v45  ;;  %v10399_v12 = vadd.f32 %v10398_v42, %v10300_v23 }
0x1188   : > { %18024 = vpow2.f32 %v15450_v40  ;;  %v15453_v55 = vmul.f32 -1.442695, %v10420_v53  ;;  %v10419_v59 = vadd.f32 %v15447_v50, %v10399_v12  ;;  %v20569_v12 = vld [vmem:[%s21839_s9 + $0x6] sm:$0x3] }
0x1189   : > { %18026 = vpow2.f32 %v15449_v58 }
0x118a   : > { %18028 = vpow2.f32 %v15453_v55  ;;  %v15452_v43 = vmul.f32 -1.442695, %v10419_v59 }
0x118c   : > { %18030 = vpow2.f32 %v15452_v43 }
0x118d   : > { %18032 = vpow2.f32 %v15451_v36 }
0x1191   : > { %v18023_v46 = vpop.eup %18022 }
0x1192   : > { %v10445_v24 = vadd.f32 1.0, %v18023_v46 }
0x1194   : > { %18034 = vrcp.f32 %v10445_v24 }
0x1195   : > { %v18025_v14 = vpop.eup %18024 }
0x1196   : > { %v18027_v44 = vpop.eup %18026  ;;  %v10447_v28 = vadd.f32 1.0, %v18025_v14 }
0x1197   : > { %v18029_v35 = vpop.eup %18028  ;;  %v10446_v2 = vadd.f32 1.0, %v18027_v44 }
0x1198   : > { %18036 = vrcp.f32 %v10447_v28  ;;  %v10450_v62 = vadd.f32 1.0, %v18029_v35  ;;  %v15482_v35 = vld [vmem:[%s21841_s11 + $0x90] sm:$0xff] }
0x1199   : > { %v18031_v8 = vpop.eup %18030 }
0x119a   : > { %18038 = vrcp.f32 %v10450_v62  ;;  %v10449_v56 = vadd.f32 1.0, %v18031_v8  ;;  %v18033_v39 = vpop.eup %18032  ;;  %v15481_v62 = vld [vmem:[%s21841_s11 + $0x88] sm:$0xff] }
0x119b   : > { %v10448_v22 = vadd.f32 1.0, %v18033_v39 }
0x119c   : > { %18040 = vrcp.f32 %v10449_v56  ;;  %v15479_v56 = vld [vmem:[%s21840_s10 + $0x98] sm:$0xff] }
0x119d   : > { %18042 = vrcp.f32 %v10446_v2 }
0x119e   : > { %18044 = vrcp.f32 %v10448_v22  ;;  %v15476_v22 = vld [vmem:[%s21840_s10 + $0x80] sm:$0xff] }
0x119f   : > { %18046 = vtanh.f32 %v20467_v51 }
0x11a0   : > { %18048 = vtanh.f32 %v20472_v19 }
0x11a1   : > { %v18035_v49 = vpop.eup %18034  ;;  %18050 = vtanh.f32 %v10420_v53 }
0x11a2   : > { %10469 = vrot.lane.b32.xlu1 %v18035_v49, %s21876_s23  ;;  %18052 = vtanh.f32 %v10419_v59  ;;  %v8778_v59 = vrot.slane %v20569_v12, %v19233_v6  ;;  %v15499_v49 = vld [vmem:[%s21842_s12 + $0x98] sm:$0xff] }
0x11a3   : > { %18054 = vtanh.f32 %v20469_v37 }
0x11a4   : > { %18056 = vtanh.f32 %v20475_v20  ;;  %v8785_v46 = vadd.f32 %v8778_v59, %v20222_v21 }
0x11a5   : > { %v18037_v10 = vpop.eup %18036 }
0x11a6   : > { %10473 = vrot.lane.b32.xlu1 %v18037_v10, %s21876_s23  ;;  %v15498_v10 = vld [vmem:[%s21842_s12 + $0x90] sm:$0xff] }
0x11a7   : > { %v18039_v38 = vpop.eup %18038 }
0x11a8   : > { %10479 = vrot.lane.b32.xlu0 %v18039_v38, %s21876_s23  ;;  %v15497_v38 = vld [vmem:[%s21842_s12 + $0x88] sm:$0xff] }
0x11a9   : > { %v18041_v23 = vpop.eup %18040 }
0x11aa   : > { %10477 = vrot.lane.b32.xlu1 %v18041_v23, %s21876_s23  ;;  %v18043_v5 = vpop.eup %18042  ;;  %v15496_v23 = vld [vmem:[%s21842_s12 + $0x80] sm:$0xff] }
0x11ab   : > { %v18045_v31 = vpop.eup %18044 }
0x11ac   : > { %10471 = vrot.lane.b32.xlu0 %v18043_v5, %s21876_s23  ;;  %v18047_v26 = vpop.eup %18046 }
0x11ad   : > { %v18049_v25 = vpop.eup %18048 }
0x11ae   : > { %v18051_v37 = vpop.eup %18050 }
0x11af   : > { %v18053_v60 = vpop.eup %18052 }
0x11b0   : > { %10475 = vrot.lane.b32.xlu0 %v18045_v31, %s21876_s23  ;;  %v18055_v45 = vpop.eup %18054 }
0x11b1   : > { %v18057_v20 = vpop.eup %18056 }
0x1214   : > { %v10470_v50 = vpop.permute.xlu1 %10469 }
0x1215   : > { %v20514_v4 = vmul.f32 %v18047_v26, %v10470_v50 }
0x1217   : > { %17390 = vmatpush3.msra.mxu0 %v20514_v4 }
0x1218   : > { %v10474_v57 = vpop.permute.xlu1 %10473  ;;  %17392 = vmatmul.mubr.msk.f32.vlgmr.msra.gmra.mxu0 %vm683_vm5, %v18643_v33  ;;  %17399 = vmatprep.subr.mxu0 %v18171_v1 }
0x1219   : > { %v20520_v51 = vmul.f32 %v18049_v25, %v10474_v57  ;;  %17401 = vmatprep.mubr.msk.f32.mxu0 %vm18172_vm1, %v18171_v1 }
0x121a   : > { %v10480_v32 = vpop.permute.xlu0 %10479 }
0x121b   : > { %v20524_v47 = vmul.f32 %v18051_v37, %v10480_v32  ;;  %17400 = vmatpush3.msra.mxu0 %v20520_v51 }
0x121c   : > { %v10478_v54 = vpop.permute.xlu1 %10477  ;;  %17402 = vmatmul.mubr.msk.f32.vlgmr.msra.gmra.mxu0 %vm683_vm5, %v18643_v33  ;;  %17409 = vmatprep.subr.mxu0 %v18171_v1 }
0x121d   : > { %v20530_v19 = vmul.f32 %v18053_v60, %v10478_v54  ;;  %15462 = vmatmul.mubr.msk.f32.vlgmr.msra.gmra.mxu1 %vm930_vm6, %v20524_v47  ;;  %17411 = vmatprep.mubr.msk.f32.mxu0 %vm18172_vm1, %v18171_v1  ;;  %v15517_v54 = vld [vmem:[%s21836_s6 + $0xb8] sm:$0xff] }
0x121e   : > { %v10472_v58 = vpop.permute.xlu0 %10471  ;;  %17396 = vmatprep.mubr.msk.f32.mxu1 %vm18172_vm1, %v18171_v1 }
0x121f   : > { %v20538_v42 = vmul.f32 %v18055_v45, %v10472_v58  ;;  %17410 = vmatpush3.msra.mxu0 %v20530_v19  ;;  %v15515_v45 = vld [vmem:[%s21836_s6 + $0xa8] sm:$0xff]  ;;  %v15514_v58 = vld [vmem:[%s21836_s6 + $0xa0] sm:$0xff] }
0x1220   : > { %17412 = vmatmul.mubr.msk.f32.vlgmr.msra.gmra.mxu0 %vm683_vm5, %v18643_v33  ;;  %17419 = vmatprep.subr.mxu0 %v18171_v1 }
0x1221   : > { %17395 = vmatpush3.msra.mxu1 %v20538_v42  ;;  %17421 = vmatprep.mubr.msk.f32.mxu0 %vm18172_vm1, %v18171_v1 }
0x1222   : > { %v10476_v40 = vpop.permute.xlu0 %10475  ;;  %17397 = vmatmul.mubr.msk.f32.vlgmr.msra.gmra.mxu1 %vm683_vm5, %v18643_v33  ;;  %17404 = vmatprep.subr.mxu1 %v18171_v1 }
0x1223   : > { %v20550_v53 = vmul.f32 %v18057_v20, %v10476_v40  ;;  %17406 = vmatprep.mubr.msk.f32.mxu1 %vm18172_vm1, %v18171_v1 }
0x1225   : > { %17405 = vmatpush3.msra.mxu1 %v20550_v53 }
0x1226   : > { %17407 = vmatmul.mubr.msk.f32.vlgmr.msra.gmra.mxu1 %vm683_vm5, %v18643_v33  ;;  %17414 = vmatprep.subr.mxu1 %v18171_v1 }
0x1227   : > { %17415 = vmatpush3.msra.mxu1 %v20524_v47  ;;  %17416 = vmatprep.mubr.msk.f32.mxu1 %vm18172_vm1, %v18171_v1 }
0x1228   : > { %17424 = vmatprep.subr.mxu1 %v18171_v1 }
0x122a   : > { %17417 = vmatmul.mubr.msk.f32.vlgmr.msra.gmra.mxu1 %vm683_vm5, %v18643_v33 }
0x122b   : > { %17426 = vmatprep.mubr.msk.f32.mxu1 %vm18172_vm1, %v18171_v1 }
0x12d8   : > { %v10659_v55 = vpop.f32.mrf.mxu0 }
0x12d9   : > { %17420 = vmatpush3.msra.mxu0 %v10659_v55 }
0x12da   : > { %v17393_v36 = vpop.f32.mrf.mxu0  ;;  %17422 = vmatmul.mubr.msk.f32.vlgmr.msra.gmra.mxu0 %vm683_vm5, %v18643_v33  ;;  %17429 = vmatprep.subr.mxu0 %v18171_v1 }
0x12db   : > { %17431 = vmatprep.mubr.msk.f32.mxu0 %vm18172_vm1, %v18171_v1 }
0x12dc   : > { %v10799_v43 = vpop.f32.mrf.mxu0 }
0x12dd   : > { %v10571_v24 = vpop.f32.mrf.mxu1  ;;  %17430 = vmatpush3.msra.mxu0 %v10799_v43 }
0x12de   : > { %v20579_v14 = vadd.f32 %v10571_v24, %v8785_v46  ;;  %v17403_v61 = vpop.f32.mrf.mxu0  ;;  %17432 = vmatmul.mubr.msk.f32.vlgmr.msra.gmra.mxu0 %vm683_vm5, %v18643_v33  ;;  %17439 = vmatprep.subr.mxu0 %v18171_v1 }
0x12df   : > { %v20584_v27 = vpop.f32.mrf.mxu1  ;;  %17441 = vmatprep.mubr.msk.f32.mxu0 %vm18172_vm1, %v18171_v1 }
0x12e0   : > { %v10939_v21 = vpop.f32.mrf.mxu0 }
0x12e1   : > { %17440 = vmatpush3.msra.mxu0 %v10939_v21 }
0x12e2   : > { %v10729_v44 = vpop.f32.mrf.mxu1  ;;  %v17413_v28 = vpop.f32.mrf.mxu0  ;;  %17442 = vmatmul.mubr.msk.f32.vlgmr.msra.gmra.mxu0 %vm683_vm5, %v18643_v33  ;;  %17449 = vmatprep.subr.mxu0 %v15483_v34 }
0x12e3   : > { %17425 = vmatpush3.msra.mxu1 %v10729_v44  ;;  %17450 = vmatpush3.msra.mxu0 %v15483_v34 }
0x12e4   : > { %17457 = vmatprep.mubr.msk.f32.mxu0 %vm930_vm6, %v10659_v55  ;;  %v17398_v3 = vpop.f32.mrf.mxu1  ;;  %17427 = vmatmul.mubr.msk.f32.vlgmr.msra.gmra.mxu1 %vm683_vm5, %v18643_v33 }
0x12e5   : > { %17451 = vmatprep.subr.mxu0 %v15482_v35  ;;  %17434 = vmatprep.subr.mxu1 %v18171_v1 }
0x12e6   : > { %17452 = vmatpush3.msra.mxu0 %v15482_v35  ;;  %v10869_v8 = vpop.f32.mrf.mxu1  ;;  %17436 = vmatprep.mubr.msk.f32.mxu1 %vm18172_vm1, %v18171_v1 }
0x12e7   : > { %17453 = vmatprep.subr.mxu0 %v15481_v62  ;;  %17435 = vmatpush3.msra.mxu1 %v10869_v8 }
0x12e8   : > { %17454 = vmatpush3.msra.mxu0 %v15481_v62  ;;  %v17408_v17 = vpop.f32.mrf.mxu1  ;;  %17437 = vmatmul.mubr.msk.f32.vlgmr.msra.gmra.mxu1 %vm683_vm5, %v18643_v33  ;;  %v15507_v62 = vld [vmem:[%s21844_s14 + $0x4] ss:$0 sm:$0xff] }
0x12e9   : > { %17455 = vmatprep.subr.mxu0 %v15480_v13  ;;  %17444 = vmatprep.subr.mxu1 %v18171_v1  ;;  %v11801_v17 = vmul.f32 %v15507_v62, %v20437_v9 }
0x12ea   : > { %17456 = vmatpush3.msra.mxu0 %v15480_v13  ;;  %v11009_v2 = vpop.f32.mrf.mxu1  ;;  %17446 = vmatprep.mubr.msk.f32.mxu1 %vm18172_vm1, %v18171_v1 }
0x12eb   : > { %17458 = vmatmul.mubr.msk.f32.vlgmr.msra.gmra.mxu0 %vm930_vm6, %v10729_v44  ;;  %17445 = vmatpush3.msra.mxu1 %v11009_v2 }
0x12ec   : > { %17460 = vmatprep.mubr.msk.f32.mxu0 %vm930_vm6, %v10799_v43  ;;  %v17418_v39 = vpop.f32.mrf.mxu1  ;;  %17447 = vmatmul.mubr.msk.f32.vlgmr.msra.gmra.mxu1 %vm683_vm5, %v18643_v33 }
0x12ed   : > { %17466 = vmatprep.subr.mxu1 %v15479_v56  ;;  %17474 = vmatprep.mubr.msk.f32.mxu1 %vm930_vm6, %v20514_v4 }
0x12ee   : > { %17467 = vmatpush3.msra.mxu1 %v15479_v56  ;;  %17483 = vmatprep.subr.mxu0 %v15499_v49 }
0x12ef   : > { %17461 = vmatmul.mubr.msk.f32.gmra.mxu0 %vm930_vm6, %v10869_v8  ;;  %17468 = vmatprep.subr.mxu1 %v15478_v29 }
0x12f0   : > { %17463 = vmatprep.mubr.msk.f32.mxu0 %vm930_vm6, %v10939_v21  ;;  %17469 = vmatpush3.msra.mxu1 %v15478_v29 }
0x12f1   : > { %17470 = vmatprep.subr.mxu1 %v15477_v48  ;;  %17484 = vmatpush3.msra.mxu0 %v15499_v49 }
0x12f2   : > { %17471 = vmatpush3.msra.mxu1 %v15477_v48  ;;  %17485 = vmatprep.subr.mxu0 %v15498_v10  ;;  %v11800_v48 = vmul.f32 %v15507_v62, %v20429_v30  ;;  %v11802_v30 = vmul.f32 %v15507_v62, %v20442_v18  ;;  %v15511_v18 = vld [vmem:[%s21874_s5 + $0xa8] sm:$0xff] }
0x12f3   : > { %17464 = vmatmul.mubr.msk.f32.gmra.mxu0 %vm930_vm6, %v11009_v2  ;;  %17472 = vmatprep.subr.mxu1 %v15476_v22 }
0x12f4   : > { %17473 = vmatpush3.msra.mxu1 %v15476_v22  ;;  %17486 = vmatpush3.msra.mxu0 %v15498_v10 }
0x12f5   : > { %17475 = vmatmul.mubr.msk.f32.vlgmr.msra.gmra.mxu1 %vm930_vm6, %v20538_v42  ;;  %17487 = vmatprep.subr.mxu0 %v15497_v38  ;;  %v15513_v42 = vld [vmem:[%s21874_s5 + $0xb8] sm:$0xff] }
0x12f6   : > { %17477 = vmatprep.mubr.msk.f32.mxu1 %vm930_vm6, %v20520_v51  ;;  %17488 = vmatpush3.msra.mxu0 %v15497_v38 }
0x12f7   : > { %17489 = vmatprep.subr.mxu0 %v15496_v23  ;;  %17500 = vmatprep.subr.mxu1 %v15517_v54 }
0x12f8   : > { %17490 = vmatpush3.msra.mxu0 %v15496_v23  ;;  %17501 = vmatpush3.msra.mxu1 %v15517_v54 }
0x12f9   : > { %17478 = vmatmul.mubr.msk.f32.gmra.mxu1 %vm930_vm6, %v20550_v53 }
0x12fa   : > { %17480 = vmatprep.mubr.msk.f32.mxu1 %vm930_vm6, %v20530_v19  ;;  %v15516_v19 = vld [vmem:[%s21836_s6 + $0xb0] sm:$0xff] }
0x12fb   : > { %17502 = vmatprep.subr.mxu1 %v15516_v19 }
0x12fc   : > { %17503 = vmatpush3.msra.mxu1 %v15516_v19 }
0x12fd   : > { %17481 = vmatmul.mubr.msk.f32.gmra.mxu1 %vm930_vm6, %v20524_v47  ;;  %17504 = vmatprep.subr.mxu1 %v15515_v45 }
0x12fe   : > { %17505 = vmatpush3.msra.mxu1 %v15515_v45 }
0x12ff   : > { %17506 = vmatprep.subr.mxu1 %v15514_v58 }
0x1300   : > { %17507 = vmatpush3.msra.mxu1 %v15514_v58 }
0x1301   : > { %17514 = vmatprep.subr.mxu1 %v15513_v42 }
0x139a   : > { %v11079_v5 = vpop.f32.mrf.mxu0 }
0x139b   : > { %17491 = vmatprep.mubr.msk.f32.mxu0 %vm930_vm6, %v11079_v5 }
0x139c   : > { %v17423_v31 = vpop.f32.mrf.mxu0 }
0x139e   : > { %v11219_v26 = vpop.f32.mrf.mxu0 }
0x13a0   : > { %v17433_v50 = vpop.f32.mrf.mxu0 }
0x13a1   : > { %v11803_v50 = vmul.f32 %v15507_v62, %v20448_v41  ;;  %v15512_v41 = vld [vmem:[%s21874_s5 + $0xb0] sm:$0xff] }
0x13a2   : > { %v11359_v4 = vpop.f32.mrf.mxu0 }
0x13a4   : > { %v11149_v25 = vpop.f32.mrf.mxu1  ;;  %v17443_v57 = vpop.f32.mrf.mxu0 }
0x13a5   : > { %17492 = vmatmul.mubr.msk.f32.vlgmr.msra.gmra.mxu0 %vm930_vm6, %v11149_v25 }
0x13a6   : > { %v17428_v51 = vpop.f32.mrf.mxu1  ;;  %17494 = vmatprep.mubr.msk.f32.mxu0 %vm930_vm6, %v11219_v26  ;;  %v15509_v26 = vld [vmem:[%s21843_s13 + $0x4] ss:$0 sm:$0xff] }
0x13a8   : > { %v11289_v37 = vpop.f32.mrf.mxu1 }
0x13a9   : > { %17495 = vmatmul.mubr.msk.f32.gmra.mxu0 %vm930_vm6, %v11289_v37 }
0x13aa   : > { %v17438_v32 = vpop.f32.mrf.mxu1  ;;  %17497 = vmatprep.mubr.msk.f32.mxu0 %vm930_vm6, %v11359_v4  ;;  %v11798_v4 = vmul.f32 %v15507_v62, %v20413_v7  ;;  %v11799_v7 = vmul.f32 %v15507_v62, %v20418_v63  ;;  %v15510_v63 = vld [vmem:[%s21874_s5 + $0xa0] sm:$0xff] }
0x13ab   : > { %v17459_v20 = vpop.f32.mrf.mxu0 }
0x13ac   : > { %v11429_v47 = vpop.f32.mrf.mxu1 }
0x13ad   : > { %17498 = vmatmul.mubr.msk.f32.gmra.mxu0 %vm930_vm6, %v11429_v47  ;;  %v11527_v40 = vpop.f32.mrf.mxu0 }
0x13ae   : > { %v17448_v60 = vpop.f32.mrf.mxu1  ;;  %12158 = vmatprep.mubr.f32.mxu0 %v18171_v1 }
0x13af   : > { %v17462_v53 = vpop.f32.mrf.mxu0 }
0x13b1   : > { %v11537_v59 = vpop.f32.mrf.mxu0 }
0x13b3   : > { %v17465_v43 = vpop.f32.mrf.mxu0 }
0x13b5   : > { %v17476_v55 = vpop.f32.mrf.mxu1  ;;  %v11547_v24 = vpop.f32.mrf.mxu0 }
0x13b6   : > { %v11643_v31 = vadd.f32 %v17476_v55, %v17459_v20  ;;  %v15539_v20 = vld [vmem:[%s21838_s8 + $0x178] sm:$0xff]  ;;  %v15536_v55 = vld [vmem:[%s21838_s8 + $0x160] sm:$0xff] }
0x13b7   : > { %v11637_v36 = vpop.f32.mrf.mxu1  ;;  %12118 = vmatprep.subr.mxu0 %v15539_v20 }
0x13b8   : > { %v11638_v56 = vadd.f32 %v11637_v36, %v11527_v40  ;;  %v15538_v40 = vld [vmem:[%s21838_s8 + $0x170] sm:$0xff] }
0x13b9   : > { %v17479_v46 = vpop.f32.mrf.mxu1  ;;  %12119 = vmatpush1.msra.mxu0 %v15538_v40 }
0x13ba   : > { %v11653_v28 = vadd.f32 %v17479_v46, %v17462_v53  ;;  %v15537_v53 = vld [vmem:[%s21838_s8 + $0x168] sm:$0xff] }
0x13bb   : > { %v11647_v61 = vpop.f32.mrf.mxu1  ;;  %12120 = vmatprep.subr.mxu0 %v15537_v53 }
0x13bc   : > { %v11648_v3 = vadd.f32 %v11647_v61, %v11537_v59  ;;  %v15535_v59 = vld [vmem:[%s21838_s8 + $0x158] sm:$0xff]  ;;  %12121 = vmatpush1.msra.mxu0 %v15536_v55 }
0x13bd   : > { %v17482_v21 = vpop.f32.mrf.mxu1  ;;  %12122 = vmatprep.subr.mxu0 %v15535_v59  ;;  %v20793_v59 = vsub.s32 1, %v19230_v52 }
0x13be   : > { %v11663_v39 = vadd.f32 %v17482_v21, %v17465_v43 }
0x13bf   : > { %v11657_v13 = vpop.f32.mrf.mxu1 }
0x13c0   : > { %v11658_v10 = vadd.f32 %v11657_v13, %v11547_v24 }
0x1465   : > { %v17493_v34 = vpop.f32.mrf.mxu0 }
0x1466   : > { %v11785_v51 = vadd.f32 %v17493_v34, %v11643_v31  ;;  %v15527_v34 = vld [vmem:[%s21837_s7 + $0x5] ss:$0 sm:$0xff] }
0x1467   : > { %v11755_v44 = vpop.f32.mrf.mxu0 }
0x1468   : > { %v11784_v38 = vadd.f32 %v11755_v44, %v11638_v56  ;;  %v11805_v19 = vadd.f32 %v11799_v7, %v11785_v51 }
0x1469   : > { %v17496_v35 = vpop.f32.mrf.mxu0 }
0x146a   : > { %v11787_v8 = vadd.f32 %v17496_v35, %v11653_v28  ;;  %v11804_v47 = vadd.f32 %v11798_v4, %v11784_v38 }
0x146b   : > { %v11765_v2 = vpop.f32.mrf.mxu0 }
0x146c   : > { %v11786_v29 = vadd.f32 %v11765_v2, %v11648_v3  ;;  %v11807_v22 = vadd.f32 %v11801_v17, %v11787_v8  ;;  %v11818_v58 = vadd.f32 %v15509_v26, %v11804_v47 }
0x146d   : > { %v17499_v49 = vpop.f32.mrf.mxu0 }
0x146e   : > { %v11806_v23 = vadd.f32 %v11800_v48, %v11786_v29  ;;  %v11789_v5 = vadd.f32 %v17499_v49, %v11663_v39  ;;  %v20691_v37 = vadd.f32 %v15509_v26, %v11807_v22 }
0x146f   : > { %v11775_v9 = vpop.f32.mrf.mxu0 }
0x1470   : > { %v20688_v25 = vadd.f32 %v15509_v26, %v11806_v23  ;;  %v11788_v57 = vadd.f32 %v11775_v9, %v11658_v10  ;;  %v11809_v32 = vadd.f32 %v11803_v50, %v11789_v5  ;;  %v15533_v50 = vld [vmem:[%s21838_s8 + $0x148] sm:$0xff] }
0x1472   : > { %v11808_v60 = vadd.f32 %v11802_v30, %v11788_v57  ;;  %17508 = vmatprep.mubr.msk.f32.mxu1 %vm930_vm6, %v20688_v25  ;;  %v20706_v45 = vadd.f32 %v15509_v26, %v11809_v32  ;;  %v15532_v57 = vld [vmem:[%s21838_s8 + $0x140] sm:$0xff] }
0x1473   : > { %17509 = vmatmul.mubr.msk.f32.vlgmr.msra.gmra.mxu1 %vm930_vm6, %v20691_v37 }
0x1474   : > { %v20701_v54 = vadd.f32 %v15509_v26, %v11808_v60  ;;  %17515 = vmatpush3.msra.mxu1 %v15513_v42  ;;  %v11819_v42 = vadd.f32 %v15509_v26, %v11805_v19  ;;  %v15534_v26 = vld [vmem:[%s21838_s8 + $0x150] sm:$0xff] }
0x1475   : > { %17516 = vmatprep.subr.mxu1 %v15512_v41  ;;  %12123 = vmatpush1.msra.mxu0 %v15534_v26 }
0x1476   : > { %17511 = vmatprep.mubr.msk.f32.mxu1 %vm930_vm6, %v20701_v54  ;;  %17517 = vmatpush3.msra.mxu1 %v15512_v41 }
0x1477   : > { %17512 = vmatmul.mubr.msk.f32.gmra.mxu1 %vm930_vm6, %v20706_v45  ;;  %17518 = vmatprep.subr.mxu1 %v15511_v18 }
0x1478   : > { %17519 = vmatpush3.msra.mxu1 %v15511_v18  ;;  %17522 = vmatprep.mubr.msk.f32.mxu1 %vm930_vm6, %v11818_v58 }
0x1479   : > { %17520 = vmatprep.subr.mxu1 %v15510_v63  ;;  %12124 = vmatprep.subr.mxu0 %v15533_v50  ;;  %v15552_v50 = vld [vmem:[%s21840_s10 + $0xb0] sm:$0xff] }
0x147a   : > { %17521 = vmatpush3.msra.mxu1 %v15510_v63  ;;  %12125 = vmatpush1.msra.mxu0 %v15532_v57  ;;  %v15554_v57 = vld [vmem:[%s21841_s11 + $0xa0] sm:$0xff] }
0x147b   : > { %17523 = vmatmul.mubr.msk.f32.vlgmr.msra.gmra.mxu1 %vm930_vm6, %v11819_v42  ;;  %17533 = vmatprep.subr.mxu1 %v18171_v1 }
0x147c   : > { %17525 = vmatprep.mubr.msk.f32.mxu1 %vm930_vm6, %v20688_v25  ;;  %17528 = vmatprep.subr.mxu0 %v18171_v1 }
0x147f   : > { %17526 = vmatmul.mubr.msk.f32.gmra.mxu1 %vm930_vm6, %v20691_v37 }
0x1480   : > { %17535 = vmatprep.mubr.msk.f32.mxu1 %vm18172_vm1, %v18171_v1 }
0x1533   : > { %v17510_v36 = vpop.f32.mrf.mxu1 }
0x1535   : > { %v11912_v43 = vpop.f32.mrf.mxu1 }
0x1537   : > { %v17513_v46 = vpop.f32.mrf.mxu1 }
0x1539   : > { %v11922_v24 = vpop.f32.mrf.mxu1 }
0x153b   : > { %v17524_v61 = vpop.f32.mrf.mxu1 }
0x153c   : > { %v12009_v21 = vadd.f32 %v17524_v61, %v17510_v36  ;;  %v18106_v36 = vld [vmem:[%s21839_s9] sm:$0x3]  ;;  %v18107_v61 = vld [vmem:[%s21839_s9 + $0x2] sm:$0x3] }
0x153d   : > { %v12003_v44 = vpop.f32.mrf.mxu1 }
0x153e   : > { %v12031_v28 = vadd.f32 %v15527_v34, %v12009_v21  ;;  %v12004_v35 = vadd.f32 %v12003_v44, %v11912_v43  ;;  %v1400_v43 = vrot.slane %v18106_v36, %v20793_v59  ;;  %v15583_v36 = vld [vmem:[%s21836_s6 + $0xc8] sm:$0xff] }
0x153f   : > { %v17527_v3 = vpop.f32.mrf.mxu1 }
0x1540   : > { %v12030_v62 = vadd.f32 %v15527_v34, %v12004_v35  ;;  %v12019_v8 = vadd.f32 %v17527_v3, %v17513_v46  ;;  %v15529_v13 = vmul.f32 -1.442695, %v12031_v28  ;;  %v1475_v46 = vadd.f32 %v18720_v16, %v1400_v43  ;;  %v15580_v43 = vld [vmem:[%s21874_s5 + $0xd0] sm:$0xff] }
0x1541   : > { %v12013_v17 = vpop.f32.mrf.mxu1 }
0x1542   : > { %v15528_v2 = vmul.f32 -1.442695, %v12030_v62  ;;  %v12033_v56 = vadd.f32 %v15527_v34, %v12019_v8  ;;  %v12014_v39 = vadd.f32 %v12013_v17, %v11922_v24  ;;  %v4212_v24 = vadd.f32 %v19242_v11, %v1475_v46  ;;  %v15582_v46 = vld [vmem:[%s21836_s6 + $0xc0] sm:$0xff] }
0x1543   : > { %v8782_v11 = vrot.slane %v20569_v12, %v20793_v59 }
0x1544   : > { %18058 = vpow2.f32 %v15528_v2  ;;  %v15531_v29 = vmul.f32 -1.442695, %v12033_v56  ;;  %v12032_v48 = vadd.f32 %v15527_v34, %v12014_v39  ;;  %v4223_v34 = vrot.slane %v18107_v61, %v20793_v59  ;;  %v15578_v61 = vld [vmem:[%s21874_s5 + $0xc0] sm:$0xff] }
0x1545   : > { %18060 = vpow2.f32 %v15529_v13 }
0x1546   : > { %18062 = vpow2.f32 %v15531_v29  ;;  %v15530_v22 = vmul.f32 -1.442695, %v12032_v48  ;;  %v4227_v21 = vadd.f32 %v4223_v34, %v4212_v24  ;;  %v15579_v24 = vld [vmem:[%s21874_s5 + $0xc8] sm:$0xff] }
0x1548   : > { %18064 = vpow2.f32 %v15530_v22  ;;  %v6600_v44 = vadd.f32 %v19738_v0, %v4227_v21 }
0x1551   : > { %v18059_v49 = vpop.eup %18058 }
0x1552   : > { %v18061_v10 = vpop.eup %18060  ;;  %v12050_v38 = vadd.f32 1.0, %v18059_v49 }
0x1553   : > { %v18063_v23 = vpop.eup %18062  ;;  %v12051_v9 = vadd.f32 1.0, %v18061_v10  ;;  %v15557_v10 = vld [vmem:[%s21841_s11 + $0xb8] sm:$0xff] }
0x1554   : > { %18066 = vrcp.f32 %v12050_v38  ;;  %v12053_v5 = vadd.f32 1.0, %v18063_v23 }
0x1555   : > { %v18065_v31 = vpop.eup %18064 }
0x1556   : > { %18068 = vrcp.f32 %v12053_v5  ;;  %v12052_v4 = vadd.f32 1.0, %v18065_v31  ;;  %v15553_v5 = vld [vmem:[%s21840_s10 + $0xb8] sm:$0xff]  ;;  %v15556_v31 = vld [vmem:[%s21841_s11 + $0xb0] sm:$0xff] }
0x1558   : > { %18070 = vrcp.f32 %v12052_v4  ;;  %v15551_v4 = vld [vmem:[%s21840_s10 + $0xa8] sm:$0xff] }
0x1559   : > { %18072 = vrcp.f32 %v12051_v9  ;;  %v15555_v9 = vld [vmem:[%s21841_s11 + $0xa8] sm:$0xff] }
0x155a   : > { %18074 = vtanh.f32 %v12033_v56 }
0x155b   : > { %18076 = vtanh.f32 %v12030_v62  ;;  %v15463_v62 = vld [vmem:[%s21839_s9 + $0x8] sm:$0x3] }
0x155c   : > { %18078 = vtanh.f32 %v12031_v28  ;;  %v18108_v28 = vld [vmem:[%s21839_s9 + $0x4] sm:$0x3]  ;;  %v10584_v13 = vrot.slane %v15463_v62, %v19233_v6  ;;  %v10588_v17 = vrot.slane %v15463_v62, %v20793_v59 }
0x155d   : > { %18080 = vtanh.f32 %v12032_v48  ;;  %v6611_v35 = vrot.slane %v18108_v28, %v20793_v59 }
0x155e   : > { %v10591_v2 = vadd.f32 %v10584_v13, %v20579_v14 }
0x155f   : > { %v6615_v3 = vadd.f32 %v6611_v35, %v6600_v44 }
0x1561   : > { %v18067_v30 = vpop.eup %18066  ;;  %v8771_v16 = vadd.f32 %v20224_v15, %v6615_v3 }
0x1562   : > { %12066 = vrot.lane.b32.xlu1 %v18067_v30, %s21876_s23  ;;  %v15550_v30 = vld [vmem:[%s21840_s10 + $0xa0] sm:$0xff] }
0x1563   : > { %v18069_v51 = vpop.eup %18068  ;;  %v8786_v8 = vadd.f32 %v8782_v11, %v8771_v16  ;;  %v15575_v11 = vld [vmem:[%s21844_s14 + $0x5] ss:$0 sm:$0xff] }
0x1564   : > { %12072 = vrot.lane.b32.xlu0 %v18069_v51, %s21876_s23  ;;  %v15569_v51 = vld [vmem:[%s21842_s12 + $0xb8] sm:$0xff] }
0x1565   : > { %v18071_v32 = vpop.eup %18070  ;;  %v10577_v0 = vadd.f32 %v20584_v27, %v8786_v8 }
0x1566   : > { %12070 = vrot.lane.b32.xlu1 %v18071_v32, %s21876_s23  ;;  %v18073_v47 = vpop.eup %18072  ;;  %v15568_v32 = vld [vmem:[%s21842_s12 + $0xb0] sm:$0xff] }
0x1567   : > { %v18075_v41 = vpop.eup %18074  ;;  %v10592_v15 = vadd.f32 %v10588_v17, %v10577_v0  ;;  %v13058_v17 = vmul.f32 %v15575_v11, %v20691_v37 }
0x1568   : > { %12068 = vrot.lane.b32.xlu0 %v18073_v47, %s21876_s23  ;;  %v18077_v18 = vpop.eup %18076  ;;  %v15567_v47 = vld [vmem:[%s21842_s12 + $0xa8] sm:$0xff] }
0x1569   : > { %v18079_v42 = vpop.eup %18078 }
0x156a   : > { %v18081_v40 = vpop.eup %18080 }
0x15d4   : > { %v12067_v60 = vpop.permute.xlu1 %12066 }
0x15d5   : > { %v20758_v58 = vmul.f32 %v18077_v18, %v12067_v60  ;;  %v15566_v60 = vld [vmem:[%s21842_s12 + $0xa0] sm:$0xff] }
0x15d6   : > { %v12073_v7 = vpop.permute.xlu0 %12072 }
0x15d7   : > { %v20756_v19 = vmul.f32 %v18075_v41, %v12073_v7 }
0x15d8   : > { %v12071_v63 = vpop.permute.xlu1 %12070 }
0x15d9   : > { %15540 = vmatmul.mubr.msk.f32.vlgmr.msra.gmra.mxu0 %vm930_vm6, %v20756_v19  ;;  %v20768_v55 = vmul.f32 %v18081_v40, %v12071_v63  ;;  %v15585_v40 = vld [vmem:[%s21836_s6 + $0xd8] sm:$0xff] }
0x15da   : > { %17529 = vmatpush3.msra.mxu0 %v20758_v58  ;;  %v12069_v20 = vpop.permute.xlu0 %12068  ;;  %17530 = vmatprep.mubr.msk.f32.mxu0 %vm18172_vm1, %v18171_v1 }
0x15db   : > { %v20765_v53 = vmul.f32 %v18079_v42, %v12069_v20  ;;  %17538 = vmatprep.subr.mxu0 %v18171_v1 }
0x15dd   : > { %17531 = vmatmul.mubr.msk.f32.vlgmr.msra.gmra.mxu0 %vm683_vm5, %v18643_v33  ;;  %17534 = vmatpush3.msra.mxu1 %v20765_v53 }
0x15de   : > { %17539 = vmatpush3.msra.mxu0 %v20768_v55  ;;  %17536 = vmatmul.mubr.msk.f32.vlgmr.msra.gmra.mxu1 %vm683_vm5, %v18643_v33 }
0x15df   : > { %17543 = vmatprep.subr.mxu1 %v18171_v1  ;;  %17540 = vmatprep.mubr.msk.f32.mxu0 %vm18172_vm1, %v18171_v1 }
0x15e0   : > { %17544 = vmatpush3.msra.mxu1 %v20756_v19  ;;  %17545 = vmatprep.mubr.msk.f32.mxu1 %vm18172_vm1, %v18171_v1 }
0x15e1   : > { %17541 = vmatmul.mubr.msk.f32.vlgmr.msra.gmra.mxu0 %vm683_vm5, %v18643_v33  ;;  %17548 = vmatprep.subr.mxu0 %v18171_v1 }
0x15e2   : > { %17546 = vmatmul.mubr.msk.f32.vlgmr.msra.gmra.mxu1 %vm683_vm5, %v18643_v33  ;;  %17550 = vmatprep.mubr.msk.f32.mxu0 %vm18172_vm1, %v18171_v1 }
0x15e3   : > { %17553 = vmatprep.subr.mxu1 %v18171_v1  ;;  %17555 = vmatprep.mubr.msk.f32.mxu1 %vm18172_vm1, %v18171_v1 }
0x1699   : > { %v12160_v56 = vpop.f32.mrf.mxu0 }
0x169a   : > { %v20820_v39 = vadd.f32 %v12160_v56, %v10591_v2  ;;  %v15577_v56 = vld [vmem:[%s21843_s13 + $0x5] ss:$0 sm:$0xff] }
0x169b   : > { %v12162_v29 = vpop.f32.mrf.mxu0 }
0x169c   : > { %v20822_v48 = vadd.f32 %v12162_v29, %v10592_v15 }
0x169d   : > { %v12248_v12 = vpop.f32.mrf.mxu0 }
0x169e   : > { %v12318_v22 = vpop.f32.mrf.mxu1  ;;  %17549 = vmatpush3.msra.mxu0 %v12248_v12 }
0x169f   : > { %v17532_v49 = vpop.f32.mrf.mxu0  ;;  %17551 = vmatmul.mubr.msk.f32.vlgmr.msra.gmra.mxu0 %vm683_vm5, %v18643_v33  ;;  %17554 = vmatpush3.msra.mxu1 %v12318_v22 }
0x16a0   : > { %v17537_v27 = vpop.f32.mrf.mxu1  ;;  %17556 = vmatmul.mubr.msk.f32.vlgmr.msra.gmra.mxu1 %vm683_vm5, %v18643_v33  ;;  %17558 = vmatprep.subr.mxu0 %v18171_v1 }
0x16a1   : > { %v12388_v14 = vpop.f32.mrf.mxu0  ;;  %17560 = vmatprep.mubr.msk.f32.mxu0 %vm18172_vm1, %v18171_v1  ;;  %17563 = vmatprep.subr.mxu1 %v18171_v1 }
0x16a2   : > { %v12458_v38 = vpop.f32.mrf.mxu1  ;;  %17559 = vmatpush3.msra.mxu0 %v12388_v14  ;;  %17565 = vmatprep.mubr.msk.f32.mxu1 %vm18172_vm1, %v18171_v1 }
0x16a3   : > { %v17542_v23 = vpop.f32.mrf.mxu0  ;;  %17561 = vmatmul.mubr.msk.f32.vlgmr.msra.gmra.mxu0 %vm683_vm5, %v18643_v33  ;;  %17564 = vmatpush3.msra.mxu1 %v12458_v38 }
0x16a4   : > { %17568 = vmatprep.subr.mxu0 %v15557_v10  ;;  %v17547_v26 = vpop.f32.mrf.mxu1  ;;  %17566 = vmatmul.mubr.msk.f32.vlgmr.msra.gmra.mxu1 %vm683_vm5, %v18643_v33 }
0x16a5   : > { %17569 = vmatpush3.msra.mxu0 %v15557_v10  ;;  %17576 = vmatprep.mubr.msk.f32.mxu0 %vm930_vm6, %v12248_v12  ;;  %v13059_v26 = vmul.f32 %v15575_v11, %v20701_v54 }
0x16a6   : > { %17582 = vmatprep.subr.mxu1 %v15553_v5  ;;  %17570 = vmatprep.subr.mxu0 %v15556_v31 }
0x16a7   : > { %17583 = vmatpush3.msra.mxu1 %v15553_v5  ;;  %17590 = vmatprep.mubr.msk.f32.mxu1 %vm930_vm6, %v20758_v58 }
0x16a8   : > { %17571 = vmatpush3.msra.mxu0 %v15556_v31  ;;  %17584 = vmatprep.subr.mxu1 %v15552_v50 }
0x16a9   : > { %17572 = vmatprep.subr.mxu0 %v15555_v9  ;;  %17585 = vmatpush3.msra.mxu1 %v15552_v50 }
0x16aa   : > { %17573 = vmatpush3.msra.mxu0 %v15555_v9  ;;  %17586 = vmatprep.subr.mxu1 %v15551_v4 }
0x16ab   : > { %17574 = vmatprep.subr.mxu0 %v15554_v57  ;;  %17587 = vmatpush3.msra.mxu1 %v15551_v4 }
0x16ac   : > { %17575 = vmatpush3.msra.mxu0 %v15554_v57  ;;  %17588 = vmatprep.subr.mxu1 %v15550_v30 }
0x16ad   : > { %17577 = vmatmul.mubr.msk.f32.vlgmr.msra.gmra.mxu0 %vm930_vm6, %v12318_v22  ;;  %17589 = vmatpush3.msra.mxu1 %v15550_v30  ;;  %v13057_v22 = vmul.f32 %v15575_v11, %v20688_v25  ;;  %v13060_v25 = vmul.f32 %v15575_v11, %v20706_v45  ;;  %v15599_v11 = vld [vmem:[%s21838_s8 + $0x190] sm:$0xff] }
0x16ae   : > { %17579 = vmatprep.mubr.msk.f32.mxu0 %vm930_vm6, %v12388_v14  ;;  %17591 = vmatmul.mubr.msk.f32.vlgmr.msra.gmra.mxu1 %vm930_vm6, %v20765_v53  ;;  %v15584_v53 = vld [vmem:[%s21836_s6 + $0xd0] sm:$0xff] }
0x16af   : > { %17593 = vmatprep.mubr.msk.f32.mxu1 %vm930_vm6, %v20768_v55  ;;  %17596 = vmatprep.subr.mxu0 %v15569_v51  ;;  %v15581_v55 = vld [vmem:[%s21874_s5 + $0xd8] sm:$0xff] }
0x16b0   : > { %17597 = vmatpush3.msra.mxu0 %v15569_v51  ;;  %17610 = vmatprep.subr.mxu1 %v18171_v1  ;;  %v15593_v51 = vld [vmem:[%s21837_s7 + $0x6] ss:$0 sm:$0xff] }
0x16b1   : > { %17580 = vmatmul.mubr.msk.f32.gmra.mxu0 %vm930_vm6, %v12458_v38  ;;  %17598 = vmatprep.subr.mxu0 %v15568_v32 }
0x16b2   : > { %17594 = vmatmul.mubr.msk.f32.gmra.mxu1 %vm930_vm6, %v20756_v19  ;;  %17599 = vmatpush3.msra.mxu0 %v15568_v32 }
0x16b3   : > { %17600 = vmatprep.subr.mxu0 %v15567_v47  ;;  %17618 = vmatprep.mubr.msk.f32.mxu1 %vm18172_vm1, %v18171_v1 }
0x16b4   : > { %17601 = vmatpush3.msra.mxu0 %v15567_v47  ;;  %17611 = vmatpush3.msra.mxu1 %v15585_v40 }
0x16b5   : > { %17602 = vmatprep.subr.mxu0 %v15566_v60  ;;  %17612 = vmatprep.subr.mxu1 %v18171_v1 }
0x16b6   : > { %17603 = vmatpush3.msra.mxu0 %v15566_v60  ;;  %17613 = vmatpush3.msra.mxu1 %v15584_v53 }
0x16b7   : > { %17627 = vmatprep.subr.mxu0 %v18171_v1  ;;  %17614 = vmatprep.subr.mxu1 %v18171_v1 }
0x16b8   : > { %17615 = vmatpush3.msra.mxu1 %v15583_v36 }
0x16b9   : > { %17616 = vmatprep.subr.mxu1 %v18171_v1 }
0x16ba   : > { %17617 = vmatpush3.msra.mxu1 %v15582_v46 }
0x175f   : > { %v12528_v41 = vpop.f32.mrf.mxu0 }
0x1760   : > { %v12598_v7 = vpop.f32.mrf.mxu1  ;;  %17604 = vmatprep.mubr.msk.f32.mxu0 %vm930_vm6, %v12528_v41 }
0x1761   : > { %v17552_v18 = vpop.f32.mrf.mxu0  ;;  %17605 = vmatmul.mubr.msk.f32.vlgmr.msra.gmra.mxu0 %vm930_vm6, %v12598_v7 }
0x1762   : > { %v17557_v19 = vpop.f32.mrf.mxu1  ;;  %17628 = vmatpush3.msra.mxu0 %v15581_v55 }
0x1763   : > { %v12668_v58 = vpop.f32.mrf.mxu0  ;;  %17629 = vmatprep.subr.mxu0 %v18171_v1 }
0x1764   : > { %v12738_v63 = vpop.f32.mrf.mxu1  ;;  %17607 = vmatprep.mubr.msk.f32.mxu0 %vm930_vm6, %v12668_v58  ;;  %17630 = vmatpush3.msra.mxu0 %v15580_v43 }
0x1765   : > { %v17562_v42 = vpop.f32.mrf.mxu0  ;;  %17608 = vmatmul.mubr.msk.f32.gmra.mxu0 %vm930_vm6, %v12738_v63  ;;  %17631 = vmatprep.subr.mxu0 %v18171_v1 }
0x1766   : > { %v17567_v20 = vpop.f32.mrf.mxu1  ;;  %17635 = vmatprep.mubr.msk.f32.mxu0 %vm18172_vm1, %v18171_v1  ;;  %17632 = vmatpush3.msra.mxu0 %v15579_v24 }
0x1767   : > { %17633 = vmatprep.subr.mxu0 %v18171_v1 }
0x1768   : > { %17634 = vmatpush3.msra.mxu0 %v15578_v61 }
0x1769   : > { %17649 = vmatprep.subr.mxu0 %v18171_v1 }
0x176d   : > { %v17578_v34 = vpop.f32.mrf.mxu0 }
0x176e   : > { %v17592_v21 = vpop.f32.mrf.mxu1 }
0x176f   : > { %v12830_v44 = vpop.f32.mrf.mxu0  ;;  %v12930_v62 = vadd.f32 %v17592_v21, %v17578_v34  ;;  %v15604_v21 = vld [vmem:[%s21838_s8 + $0x1b8] sm:$0xff] }
0x1770   : > { %v12924_v28 = vpop.f32.mrf.mxu1  ;;  %13342 = vmatprep.subr.mxu1 %v15604_v21 }
0x1771   : > { %v17581_v35 = vpop.f32.mrf.mxu0  ;;  %v12925_v13 = vadd.f32 %v12924_v28, %v12830_v44  ;;  %v15603_v44 = vld [vmem:[%s21838_s8 + $0x1b0] sm:$0xff]  ;;  %v15602_v28 = vld [vmem:[%s21838_s8 + $0x1a8] sm:$0xff] }
0x1772   : > { %v17595_v3 = vpop.f32.mrf.mxu1 }
0x1773   : > { %v12840_v16 = vpop.f32.mrf.mxu0  ;;  %v12940_v27 = vadd.f32 %v17595_v3, %v17581_v35  ;;  %v15601_v35 = vld [vmem:[%s21838_s8 + $0x1a0] sm:$0xff]  ;;  %v15600_v3 = vld [vmem:[%s21838_s8 + $0x198] sm:$0xff] }
0x1774   : > { %v12934_v2 = vpop.f32.mrf.mxu1 }
0x1775   : > { %v12935_v14 = vadd.f32 %v12934_v2, %v12840_v16 }
0x1821   : > { %v17606_v8 = vpop.f32.mrf.mxu0 }
0x1822   : > { %v13046_v0 = vadd.f32 %v17606_v8, %v12930_v62  ;;  %v15598_v8 = vld [vmem:[%s21838_s8 + $0x188] sm:$0xff] }
0x1823   : > { %v13026_v15 = vpop.f32.mrf.mxu0 }
0x1824   : > { %v13062_v29 = vadd.f32 %v13058_v17, %v13046_v0  ;;  %v13045_v12 = vadd.f32 %v13026_v15, %v12925_v13  ;;  %v15597_v17 = vld [vmem:[%s21838_s8 + $0x180] sm:$0xff] }
0x1825   : > { %v17609_v49 = vpop.f32.mrf.mxu0 }
0x1826   : > { %v20935_v10 = vadd.f32 %v15577_v56, %v13062_v29  ;;  %v13061_v38 = vadd.f32 %v13057_v22, %v13045_v12  ;;  %v13048_v31 = vadd.f32 %v17609_v49, %v12940_v27 }
0x1827   : > { %v13036_v23 = vpop.f32.mrf.mxu0 }
0x1828   : > { %v13073_v5 = vadd.f32 %v15577_v56, %v13061_v38  ;;  %v13047_v37 = vadd.f32 %v13036_v23, %v12935_v14  ;;  %17619 = vmatmul.mubr.msk.f32.vlgmr.msra.gmra.mxu1 %vm930_vm6, %v20935_v10  ;;  %v13064_v9 = vadd.f32 %v13060_v25, %v13048_v31  ;;  %v15541_v31 = vld [vmem:[%s21839_s9 + $0xa] sm:$0x3] }
0x1829   : > { %17621 = vmatprep.mubr.msk.f32.mxu1 %vm18172_vm1, %v18171_v1  ;;  %13343 = vmatpush1.msra.mxu1 %v15603_v44 }
0x182a   : > { %v13063_v50 = vadd.f32 %v13059_v26, %v13047_v37  ;;  %17636 = vmatmul.mubr.msk.f32.vlgmr.msra.gmra.mxu0 %vm930_vm6, %v13073_v5  ;;  %v20953_v54 = vadd.f32 %v15577_v56, %v13064_v9  ;;  %13344 = vmatprep.subr.mxu1 %v15602_v28  ;;  %v12173_v37 = vrot.slane %v15541_v31, %v19233_v6 }
0x182b   : > { %17638 = vmatprep.mubr.msk.f32.mxu0 %vm18172_vm1, %v18171_v1  ;;  %13345 = vmatpush1.msra.mxu1 %v15601_v35  ;;  %v12177_v26 = vrot.slane %v15541_v31, %v20793_v59 }
0x182c   : > { %v13075_v4 = vadd.f32 %v15577_v56, %v13063_v50  ;;  %13346 = vmatprep.subr.mxu1 %v15600_v3  ;;  %v12180_v25 = vadd.f32 %v12173_v37, %v20820_v39 }
0x182d   : > { %13347 = vmatpush1.msra.mxu1 %v15599_v11 }
0x182e   : > { %17622 = vmatmul.mubr.msk.f32.gmra.mxu1 %vm930_vm6, %v13075_v4  ;;  %17639 = vmatmul.mubr.msk.f32.gmra.mxu0 %vm930_vm6, %v20935_v10 }
0x182f   : > { %17624 = vmatprep.mubr.msk.f32.mxu1 %vm18172_vm1, %v18171_v1  ;;  %17641 = vmatprep.mubr.msk.f32.mxu0 %vm18172_vm1, %v18171_v1 }
0x1830   : > { %13348 = vmatprep.subr.mxu1 %v15598_v8 }
0x1831   : > { %13349 = vmatpush1.msra.mxu1 %v15597_v17 }
0x1832   : > { %17625 = vmatmul.mubr.msk.f32.gmra.mxu1 %vm930_vm6, %v20953_v54  ;;  %17642 = vmatmul.mubr.msk.f32.gmra.mxu0 %vm930_vm6, %v13075_v4  ;;  %v12181_v4 = vadd.f32 %v12177_v26, %v20822_v48 }
0x1833   : > { %13382 = vmatprep.mubr.f32.mxu1 %v18171_v1  ;;  %17651 = vmatprep.mubr.msk.f32.mxu0 %vm18172_vm1, %v18171_v1 }
0x1834   : > { %17644 = vmatprep.subr.mxu1 %v18171_v1 }
0x18e8   : > { %v13162_v45 = vpop.f32.mrf.mxu1 }
0x18ea   : > { %v17620_v57 = vpop.f32.mrf.mxu1  ;;  %v13245_v30 = vpop.f32.mrf.mxu0 }
0x18eb   : > { %v13246_v32 = vadd.f32 %v13245_v30, %v13162_v45 }
0x18ec   : > { %v17637_v47 = vpop.f32.mrf.mxu0 }
0x18ed   : > { %v13267_v60 = vadd.f32 %v15593_v51, %v13246_v32  ;;  %v15620_v32 = vld [vmem:[%s21841_s11 + $0xd8] sm:$0xff] }
0x18ee   : > { %v13167_v41 = vpop.f32.mrf.mxu1  ;;  %v13250_v7 = vpop.f32.mrf.mxu0 }
0x18ef   : > { %v15594_v18 = vmul.f32 -1.442695, %v13267_v60  ;;  %v13251_v19 = vadd.f32 %v13250_v7, %v13167_v41  ;;  %v15616_v41 = vld [vmem:[%s21840_s10 + $0xd8] sm:$0xff] }
0x18f0   : > { %v17623_v58 = vpop.f32.mrf.mxu1  ;;  %v17640_v63 = vpop.f32.mrf.mxu0 }
0x18f1   : > { %18082 = vpow2.f32 %v15594_v18  ;;  %v13268_v42 = vadd.f32 %v15593_v51, %v13251_v19  ;;  %v15618_v18 = vld [vmem:[%s21841_s11 + $0xc8] sm:$0xff]  ;;  %v15615_v19 = vld [vmem:[%s21840_s10 + $0xd0] sm:$0xff]  ;;  %v15617_v58 = vld [vmem:[%s21841_s11 + $0xc0] sm:$0xff] }
0x18f2   : > { %v13172_v20 = vpop.f32.mrf.mxu1  ;;  %v13255_v40 = vpop.f32.mrf.mxu0  ;;  %v15613_v63 = vld [vmem:[%s21840_s10 + $0xc0] sm:$0xff] }
0x18f3   : > { %v13256_v53 = vadd.f32 %v13255_v40, %v13172_v20  ;;  %v15595_v55 = vmul.f32 -1.442695, %v13268_v42  ;;  %v15629_v20 = vld [vmem:[%s21842_s12 + $0xd0] sm:$0xff]  ;;  %v15628_v40 = vld [vmem:[%s21842_s12 + $0xc8] sm:$0xff] }
0x18f4   : > { %v17626_v36 = vpop.f32.mrf.mxu1  ;;  %v17643_v43 = vpop.f32.mrf.mxu0 }
0x18f5   : > { %v13269_v46 = vadd.f32 %v15593_v51, %v13256_v53  ;;  %18084 = vpow2.f32 %v15595_v55  ;;  %v15627_v53 = vld [vmem:[%s21842_s12 + $0xc0] sm:$0xff] }
0x18f7   : > { %v15596_v24 = vmul.f32 -1.442695, %v13269_v46 }
0x18f9   : > { %18086 = vpow2.f32 %v15596_v24 }
0x18fe   : > { %v18083_v61 = vpop.eup %18082 }
0x18ff   : > { %v13282_v34 = vadd.f32 1.0, %v18083_v61 }
0x1901   : > { %18088 = vrcp.f32 %v13282_v34 }
0x1902   : > { %v18085_v16 = vpop.eup %18084 }
0x1903   : > { %v13283_v0 = vadd.f32 1.0, %v18085_v16 }
0x1906   : > { %v18087_v62 = vpop.eup %18086 }
0x1907   : > { %v13284_v13 = vadd.f32 1.0, %v18087_v62 }
0x1909   : > { %18090 = vrcp.f32 %v13284_v13 }
0x190a   : > { %18092 = vrcp.f32 %v13283_v0 }
0x190b   : > { %18094 = vtanh.f32 %v13269_v46 }
0x190c   : > { %18096 = vtanh.f32 %v13267_v60  ;;  %v15619_v60 = vld [vmem:[%s21841_s11 + $0xd0] sm:$0xff] }
0x190d   : > { %18098 = vtanh.f32 %v13268_v42  ;;  %v15630_v42 = vld [vmem:[%s21842_s12 + $0xd8] sm:$0xff] }
0x190e   : > { %v18089_v2 = vpop.eup %18088 }
0x190f   : > { %13294 = vrot.lane.b32.xlu1 %v18089_v2, %s21876_s23 }
0x1916   : > { %v18091_v56 = vpop.eup %18090 }
0x1917   : > { %13298 = vrot.lane.b32.xlu0 %v18091_v56, %s21876_s23  ;;  %v18093_v15 = vpop.eup %18092  ;;  %v15645_v56 = vld [vmem:[%s21836_s6 + $0xf8] sm:$0xff] }
0x1918   : > { %v18095_v12 = vpop.eup %18094 }
0x1919   : > { %v18097_v49 = vpop.eup %18096 }
0x191a   : > { %v18099_v38 = vpop.eup %18098 }
0x191b   : > { %13296 = vrot.lane.b32.xlu0 %v18093_v15, %s21876_s23  ;;  %v15644_v15 = vld [vmem:[%s21836_s6 + $0xf0] sm:$0xff] }
0x1981   : > { %v13295_v29 = vpop.permute.xlu1 %13294 }
0x1982   : > { %v20994_v14 = vmul.f32 %v18097_v49, %v13295_v29  ;;  %v15643_v29 = vld [vmem:[%s21836_s6 + $0xe8] sm:$0xff] }
0x1989   : > { %v13299_v22 = vpop.permute.xlu0 %13298 }
0x198a   : > { %v20992_v27 = vmul.f32 %v18095_v12, %v13299_v22  ;;  %v15642_v12 = vld [vmem:[%s21836_s6 + $0xe0] sm:$0xff] }
0x198b   : > { %v15635_v22 = vld [vmem:[%s21844_s14 + $0x6] ss:$0 sm:$0xff] }
0x198c   : > { %15605 = vmatmul.mubr.msk.f32.vlgmr.msra.gmra.mxu1 %vm930_vm6, %v20992_v27 }
0x198d   : > { %17645 = vmatpush3.msra.mxu1 %v20994_v14  ;;  %v13297_v23 = vpop.permute.xlu0 %13296  ;;  %17646 = vmatprep.mubr.msk.f32.mxu1 %vm18172_vm1, %v18171_v1 }
0x198e   : > { %v21001_v5 = vmul.f32 %v18099_v38, %v13297_v23  ;;  %17654 = vmatprep.subr.mxu1 %v18171_v1 }
0x1990   : > { %17647 = vmatmul.mubr.msk.f32.vlgmr.msra.gmra.mxu1 %vm683_vm5, %v18643_v33  ;;  %17650 = vmatpush3.msra.mxu0 %v21001_v5 }
0x1991   : > { %17655 = vmatpush3.msra.mxu1 %v20992_v27  ;;  %17652 = vmatmul.mubr.msk.f32.vlgmr.msra.gmra.mxu0 %vm683_vm5, %v18643_v33 }
0x1992   : > { %17656 = vmatprep.mubr.msk.f32.mxu1 %vm18172_vm1, %v18171_v1  ;;  %17659 = vmatprep.subr.mxu0 %v18171_v1 }
0x1993   : > { %17661 = vmatprep.mubr.msk.f32.mxu0 %vm18172_vm1, %v18171_v1  ;;  %17664 = vmatprep.subr.mxu1 %v18171_v1 }
0x1994   : > { %17657 = vmatmul.mubr.msk.f32.vlgmr.msra.gmra.mxu1 %vm683_vm5, %v18643_v33 }
0x1995   : > { %17666 = vmatprep.mubr.msk.f32.mxu1 %vm18172_vm1, %v18171_v1 }
0x1a4c   : > { %v13384_v50 = vpop.f32.mrf.mxu1 }
0x1a4d   : > { %v21026_v9 = vadd.f32 %v13384_v50, %v12180_v25  ;;  %v14113_v25 = vmul.f32 %v15635_v22, %v20953_v54  ;;  %v15639_v54 = vld [vmem:[%s21874_s5 + $0xe8] sm:$0xff] }
0x1a4e   : > { %v13386_v45 = vpop.f32.mrf.mxu1 }
0x1a4f   : > { %v21029_v57 = vadd.f32 %v13386_v45, %v12181_v4  ;;  %v15637_v45 = vld [vmem:[%s21843_s13 + $0x6] ss:$0 sm:$0xff] }
0x1a50   : > { %v13472_v30 = vpop.f32.mrf.mxu1 }
0x1a51   : > { %v13542_v51 = vpop.f32.mrf.mxu0  ;;  %17660 = vmatpush3.msra.mxu0 %v13472_v30 }
0x1a52   : > { %v17648_v47 = vpop.f32.mrf.mxu1  ;;  %17662 = vmatmul.mubr.msk.f32.vlgmr.msra.gmra.mxu0 %vm683_vm5, %v18643_v33  ;;  %17665 = vmatpush3.msra.mxu1 %v13542_v51 }
0x1a53   : > { %v17653_v39 = vpop.f32.mrf.mxu0  ;;  %17667 = vmatmul.mubr.msk.f32.vlgmr.msra.gmra.mxu1 %vm683_vm5, %v18643_v33  ;;  %17674 = vmatprep.subr.mxu1 %v18171_v1 }
0x1a54   : > { %v13612_v48 = vpop.f32.mrf.mxu1  ;;  %17669 = vmatprep.subr.mxu0 %v18171_v1  ;;  %17675 = vmatpush3.msra.mxu1 %v15620_v32  ;;  %v15638_v32 = vld [vmem:[%s21874_s5 + $0xe0] sm:$0xff]  ;;  %v15658_v39 = vld [vmem:[%s21838_s8 + $0x1f8] sm:$0xff] }
0x1a55   : > { %17670 = vmatpush3.msra.mxu0 %v13612_v48  ;;  %17671 = vmatprep.mubr.msk.f32.mxu0 %vm18172_vm1, %v18171_v1 }
0x1a56   : > { %17676 = vmatprep.subr.mxu1 %v18171_v1  ;;  %v17658_v7 = vpop.f32.mrf.mxu1  ;;  %17672 = vmatmul.mubr.msk.f32.vlgmr.msra.gmra.mxu0 %vm683_vm5, %v18643_v33  ;;  %v15614_v33 = vld [vmem:[%s21840_s10 + $0xc8] sm:$0xff] }
0x1a57   : > { %17677 = vmatpush3.msra.mxu1 %v15619_v60  ;;  %17691 = vmatprep.subr.mxu0 %v18171_v1  ;;  %v15656_v60 = vld [vmem:[%s21838_s8 + $0x1e8] sm:$0xff]  ;;  %v15653_v7 = vld [vmem:[%s21838_s8 + $0x1d0] sm:$0xff] }
0x1a58   : > { %17678 = vmatprep.subr.mxu1 %v18171_v1  ;;  %17692 = vmatpush3.msra.mxu0 %v15616_v41  ;;  %v15654_v41 = vld [vmem:[%s21838_s8 + $0x1d8] sm:$0xff] }
0x1a59   : > { %17679 = vmatpush3.msra.mxu1 %v15618_v18  ;;  %17693 = vmatprep.subr.mxu0 %v18171_v1 }
0x1a5a   : > { %17680 = vmatprep.subr.mxu1 %v18171_v1  ;;  %17694 = vmatpush3.msra.mxu0 %v15615_v19 }
0x1a5b   : > { %17681 = vmatpush3.msra.mxu1 %v15617_v58  ;;  %17682 = vmatprep.mubr.msk.f32.mxu1 %vm18172_vm1, %v18171_v1 }
0x1a5c   : > { %17695 = vmatprep.subr.mxu0 %v18171_v1  ;;  %17683 = vmatmul.mubr.msk.f32.vlgmr.msra.gmra.mxu1 %vm930_vm6, %v13472_v30 }
0x1a5d   : > { %17696 = vmatpush3.msra.mxu0 %v15614_v33  ;;  %17699 = vmatprep.mubr.msk.f32.mxu0 %vm18172_vm1, %v18171_v1  ;;  %v15649_v33 = vld [vmem:[%s21837_s7 + $0x7] ss:$0 sm:$0xff] }
0x1a5e   : > { %17697 = vmatprep.subr.mxu0 %v18171_v1  ;;  %17685 = vmatprep.mubr.msk.f32.mxu1 %vm18172_vm1, %v18171_v1 }
0x1a5f   : > { %17698 = vmatpush3.msra.mxu0 %v15613_v63  ;;  %17708 = vmatprep.subr.mxu1 %v18171_v1 }
0x1a60   : > { %17700 = vmatmul.mubr.msk.f32.vlgmr.msra.gmra.mxu0 %vm930_vm6, %v20994_v14  ;;  %17686 = vmatmul.mubr.msk.f32.gmra.mxu1 %vm930_vm6, %v13542_v51  ;;  %v14112_v14 = vmul.f32 %v15635_v22, %v20935_v10  ;;  %v15641_v51 = vld [vmem:[%s21874_s5 + $0xf8] sm:$0xff]  ;;  %v15640_v10 = vld [vmem:[%s21874_s5 + $0xf0] sm:$0xff]  ;;  %v14429_v22 = vld [vmem:[%s21845_s15 + $0xc0] sm:$0xff] }
0x1a61   : > { %17702 = vmatprep.mubr.msk.f32.mxu0 %vm18172_vm1, %v18171_v1  ;;  %17688 = vmatprep.mubr.msk.f32.mxu1 %vm18172_vm1, %v18171_v1 }
0x1a62   : > { %17709 = vmatpush3.msra.mxu1 %v15630_v42  ;;  %17725 = vmatprep.subr.mxu0 %v18171_v1 }
0x1a63   : > { %17710 = vmatprep.subr.mxu1 %v18171_v1  ;;  %17726 = vmatpush3.msra.mxu0 %v15645_v56  ;;  %v14437_v56 = vld [vmem:[%s21845_s15 + $0x100] sm:$0xff] }
0x1a64   : > { %17703 = vmatmul.mubr.msk.f32.gmra.mxu0 %vm930_vm6, %v21001_v5  ;;  %17689 = vmatmul.mubr.msk.f32.gmra.mxu1 %vm930_vm6, %v13612_v48  ;;  %v15657_v48 = vld [vmem:[%s21838_s8 + $0x1f0] sm:$0xff] }
0x1a65   : > { %17705 = vmatprep.mubr.msk.f32.mxu0 %vm18172_vm1, %v18171_v1  ;;  %17711 = vmatpush3.msra.mxu1 %v15629_v20 }
0x1a66   : > { %17712 = vmatprep.subr.mxu1 %v18171_v1  ;;  %17716 = vmatprep.mubr.msk.f32.mxu1 %vm18172_vm1, %v18171_v1 }
0x1a67   : > { %17713 = vmatpush3.msra.mxu1 %v15628_v40  ;;  %17727 = vmatprep.subr.mxu0 %v18171_v1 }
0x1a68   : > { %17706 = vmatmul.mubr.msk.f32.gmra.mxu0 %vm930_vm6, %v20992_v27  ;;  %17714 = vmatprep.subr.mxu1 %v18171_v1 }
0x1a69   : > { %17733 = vmatprep.mubr.msk.f32.mxu0 %vm18172_vm1, %v18171_v1  ;;  %17715 = vmatpush3.msra.mxu1 %v15627_v53 }
0x1a6a   : > { %17728 = vmatpush3.msra.mxu0 %v15644_v15  ;;  %14339 = vmatprep.subr.mxu1 %v15658_v39  ;;  %v14434_v15 = vld [vmem:[%s21845_s15 + $0xe8] sm:$0xff]  ;;  %v14517_v39 = vld [vmem:[%s21845_s15 + $0x380] sm:$0xff] }
0x1a6b   : > { %17729 = vmatprep.subr.mxu0 %v18171_v1 }
0x1a6c   : > { %17730 = vmatpush3.msra.mxu0 %v15643_v29  ;;  %v14433_v29 = vld [vmem:[%s21845_s15 + $0xe0] sm:$0xff] }
0x1a6d   : > { %17731 = vmatprep.subr.mxu0 %v18171_v1 }
0x1a6e   : > { %17732 = vmatpush3.msra.mxu0 %v15642_v12  ;;  %v14430_v12 = vld [vmem:[%s21845_s15 + $0xc8] sm:$0xff] }
0x1a6f   : > { %17736 = vmatprep.subr.mxu0 %v18171_v1 }
0x1b12   : > { %v13682_v55 = vpop.f32.mrf.mxu0 }
0x1b13   : > { %v13752_v36 = vpop.f32.mrf.mxu1  ;;  %17717 = vmatmul.mubr.msk.f32.vlgmr.msra.gmra.mxu1 %vm930_vm6, %v13682_v55 }
0x1b14   : > { %v17663_v43 = vpop.f32.mrf.mxu0  ;;  %17719 = vmatprep.mubr.msk.f32.mxu1 %vm18172_vm1, %v18171_v1  ;;  %14340 = vmatpush1.msra.mxu1 %v15657_v48  ;;  %v14514_v48 = vld [vmem:[%s21845_s15 + $0x368] sm:$0xff] }
0x1b15   : > { %v17668_v46 = vpop.f32.mrf.mxu1  ;;  %14341 = vmatprep.subr.mxu1 %v15656_v60  ;;  %v15651_v43 = vld [vmem:[%s21838_s8 + $0x1c0] sm:$0xff] }
0x1b16   : > { %v13822_v24 = vpop.f32.mrf.mxu0  ;;  %v14466_v46 = vld [vmem:[%s21845_s15 + $0x1e8] sm:$0xff]  ;;  %v14513_v60 = vld [vmem:[%s21845_s15 + $0x360] sm:$0xff] }
0x1b17   : > { %17720 = vmatmul.mubr.msk.f32.gmra.mxu1 %vm930_vm6, %v13752_v36  ;;  %v15652_v36 = vld [vmem:[%s21838_s8 + $0x1c8] sm:$0xff] }
0x1b18   : > { %v17673_v61 = vpop.f32.mrf.mxu0  ;;  %17722 = vmatprep.mubr.msk.f32.mxu1 %vm18172_vm1, %v18171_v1 }
0x1b19   : > { %v14465_v61 = vld [vmem:[%s21845_s15 + $0x1e0] sm:$0xff] }
0x1b1b   : > { %17723 = vmatmul.mubr.msk.f32.gmra.mxu1 %vm930_vm6, %v13822_v24  ;;  %v14468_v24 = vld [vmem:[%s21845_s15 + $0x1f8] sm:$0xff] }
0x1b1c   : > { %v13911_v34 = vpop.f32.mrf.mxu1  ;;  %14379 = vmatprep.mubr.f32.mxu1 %v18171_v1 }
0x1b1e   : > { %v17684_v21 = vpop.f32.mrf.mxu1 }
0x1b1f   : > { %v14461_v21 = vld [vmem:[%s21845_s15 + $0x1c0] sm:$0xff] }
0x1b20   : > { %v13996_v44 = vpop.f32.mrf.mxu0  ;;  %v13916_v28 = vpop.f32.mrf.mxu1 }
0x1b21   : > { %v13997_v35 = vadd.f32 %v13996_v44, %v13911_v34  ;;  %v14462_v34 = vld [vmem:[%s21845_s15 + $0x1c8] sm:$0xff]  ;;  %v14457_v28 = vld [vmem:[%s21845_s15 + $0x1a0] sm:$0xff] }
0x1b22   : > { %v17701_v3 = vpop.f32.mrf.mxu0  ;;  %v17687_v16 = vpop.f32.mrf.mxu1  ;;  %v14458_v44 = vld [vmem:[%s21845_s15 + $0x1a8] sm:$0xff] }
0x1b23   : > { %v14453_v3 = vld [vmem:[%s21845_s15 + $0x180] sm:$0xff]  ;;  %v14450_v16 = vld [vmem:[%s21845_s15 + $0x168] sm:$0xff] }
0x1b24   : > { %v14001_v11 = vpop.f32.mrf.mxu0  ;;  %v13920_v62 = vpop.f32.mrf.mxu1 }
0x1b25   : > { %v14449_v11 = vld [vmem:[%s21845_s15 + $0x160] sm:$0xff] }
0x1b26   : > { %v17704_v8 = vpop.f32.mrf.mxu0  ;;  %v17690_v13 = vpop.f32.mrf.mxu1 }
0x1b27   : > { %v14445_v13 = vld [vmem:[%s21845_s15 + $0x140] sm:$0xff] }
0x1b28   : > { %v14005_v0 = vpop.f32.mrf.mxu0 }
0x1b29   : > { %v14006_v17 = vadd.f32 %v14005_v0, %v13920_v62  ;;  %v14446_v62 = vld [vmem:[%s21845_s15 + $0x148] sm:$0xff] }
0x1b2a   : > { %v17707_v2 = vpop.f32.mrf.mxu0  ;;  %v14442_v0 = vld [vmem:[%s21845_s15 + $0x128] sm:$0xff] }
0x1b2b   : > { %v14438_v2 = vld [vmem:[%s21845_s15 + $0x108] sm:$0xff] }
0x1bd3   : > { %v14089_v49 = vpop.f32.mrf.mxu1 }
0x1bd4   : > { %v14102_v27 = vadd.f32 %v14089_v49, %v13997_v35  ;;  %v14454_v35 = vld [vmem:[%s21845_s15 + $0x188] sm:$0xff] }
0x1bd5   : > { %v17718_v38 = vpop.f32.mrf.mxu1  ;;  %v14426_v49 = vld [vmem:[%s21845_s15 + $0xa8] sm:$0xff] }
0x1bd6   : > { %v14114_v23 = vadd.f32 %v14112_v14, %v14102_v27  ;;  %v14425_v27 = vld [vmem:[%s21845_s15 + $0xa0] sm:$0xff]  ;;  %v14422_v14 = vld [vmem:[%s21845_s15 + $0x88] sm:$0xff] }
0x1bd7   : > { %v14094_v5 = vpop.f32.mrf.mxu1  ;;  %v14421_v38 = vld [vmem:[%s21845_s15 + $0x80] sm:$0xff] }
0x1bd8   : > { %v14124_v47 = vadd.f32 %v15637_v45, %v14114_v23  ;;  %v14418_v23 = vld [vmem:[%s21845_s15 + $0x68] sm:$0xff]  ;;  %v14417_v5 = vld [vmem:[%s21845_s15 + $0x60] sm:$0xff] }
0x1bd9   : > { %v17721_v31 = vpop.f32.mrf.mxu1 }
0x1bda   : > { %v14414_v31 = vld [vmem:[%s21845_s15 + $0x48] sm:$0xff] }
0x1bdb   : > { %v14098_v37 = vpop.f32.mrf.mxu1 }
0x1bdc   : > { %v14103_v26 = vadd.f32 %v14098_v37, %v14006_v17  ;;  %v14441_v17 = vld [vmem:[%s21845_s15 + $0x120] sm:$0xff] }
0x1bdd   : > { %v17724_v50 = vpop.f32.mrf.mxu1  ;;  %v14413_v37 = vld [vmem:[%s21845_s15 + $0x40] sm:$0xff] }
0x1bde   : > { %v14115_v4 = vadd.f32 %v14113_v25, %v14103_v26  ;;  %v14410_v26 = vld [vmem:[%s21845_s15 + $0x28] sm:$0xff]  ;;  %v14409_v25 = vld [vmem:[%s21845_s15 + $0x20] sm:$0xff] }
0x1bdf   : > { %v14406_v50 = vld [vmem:[%s21845_s15 + $0x8] sm:$0xff] }
0x1be0   : > { %v14125_v30 = vadd.f32 %v15637_v45, %v14115_v4  ;;  %v14405_v4 = vld [vmem:[%s21845_s15] sm:$0xff]  ;;  %v14530_v45 = vld [vmem:[%s21845_s15 + $0x3e8] sm:$0xff] }
0x1be2   : > { %17734 = vmatmul.mubr.msk.f32.vlgmr.msra.gmra.mxu0 %vm930_vm6, %v14125_v30  ;;  %v14529_v30 = vld [vmem:[%s21845_s15 + $0x3e0] sm:$0xff] }
0x1be3   : > { %17737 = vmatpush3.msra.mxu0 %v15641_v51  ;;  %17744 = vmatprep.mubr.msk.f32.mxu0 %vm18172_vm1, %v18171_v1  ;;  %v14526_v51 = vld [vmem:[%s21845_s15 + $0x3c8] sm:$0xff] }
0x1be4   : > { %17738 = vmatprep.subr.mxu0 %v18171_v1 }
0x1be5   : > { %17739 = vmatpush3.msra.mxu0 %v15640_v10  ;;  %v14525_v10 = vld [vmem:[%s21845_s15 + $0x3c0] sm:$0xff] }
0x1be6   : > { %17740 = vmatprep.subr.mxu0 %v18171_v1 }
0x1be7   : > { %17741 = vmatpush3.msra.mxu0 %v15639_v54  ;;  %v14522_v54 = vld [vmem:[%s21845_s15 + $0x3a8] sm:$0xff] }
0x1be8   : > { %17742 = vmatprep.subr.mxu0 %v18171_v1  ;;  %v15655_v1 = vld [vmem:[%s21838_s8 + $0x1e0] sm:$0xff] }
0x1be9   : > { %17743 = vmatpush3.msra.mxu0 %v15638_v32  ;;  %14342 = vmatpush1.msra.mxu1 %v15655_v1  ;;  %v14521_v32 = vld [vmem:[%s21845_s15 + $0x3a0] sm:$0xff]  ;;  %v14510_v1 = vld [vmem:[%s21845_s15 + $0x348] sm:$0xff] }
0x1bea   : > { %17745 = vmatmul.mubr.msk.f32.vlgmr.msra.gmra.mxu0 %vm930_vm6, %v14124_v47  ;;  %14343 = vmatprep.subr.mxu1 %v15654_v41  ;;  %v14518_v47 = vld [vmem:[%s21845_s15 + $0x388] sm:$0xff]  ;;  %v14509_v41 = vld [vmem:[%s21845_s15 + $0x340] sm:$0xff] }
0x1beb   : > { %14344 = vmatpush1.msra.mxu1 %v15653_v7  ;;  %14555 = vmatprep.subr.mxu0 %v14466_v46  ;;  %v14506_v7 = vld [vmem:[%s21845_s15 + $0x328] sm:$0xff] }
0x1bec   : > { %14345 = vmatprep.subr.mxu1 %v15652_v36  ;;  %14556 = vmatpush1.msra.mxu0 %v14465_v61  ;;  %v14464_v61 = vld [vmem:[%s21845_s15 + $0x1d8] sm:$0xff] }
0x1bed   : > { %14346 = vmatpush1.msra.mxu1 %v15651_v43  ;;  %14557 = vmatprep.subr.mxu0 %v14462_v34  ;;  %v14463_v34 = vld [vmem:[%s21845_s15 + $0x1d0] sm:$0xff] }
0x1bee   : > { %14626 = vmatprep.subr.mxu1 %v14468_v24  ;;  %14558 = vmatpush1.msra.mxu0 %v14461_v21  ;;  %v14467_v24 = vld [vmem:[%s21845_s15 + $0x1f0] sm:$0xff] }
0x1bef   : > { %14559 = vmatprep.subr.mxu0 %v14458_v44  ;;  %v14459_v21 = vld [vmem:[%s21845_s15 + $0x1b0] sm:$0xff]  ;;  %v14456_v44 = vld [vmem:[%s21845_s15 + $0x198] sm:$0xff] }
0x1bf0   : > { %14560 = vmatpush1.msra.mxu0 %v14457_v28  ;;  %v14455_v28 = vld [vmem:[%s21845_s15 + $0x190] sm:$0xff] }
0x1bf1   : > { %14561 = vmatprep.subr.mxu0 %v14454_v35  ;;  %v14452_v35 = vld [vmem:[%s21845_s15 + $0x178] sm:$0xff] }
0x1bf2   : > { %14562 = vmatpush1.msra.mxu0 %v14453_v3  ;;  %v14451_v3 = vld [vmem:[%s21845_s15 + $0x170] sm:$0xff] }
0x1bf3   : > { %14563 = vmatprep.subr.mxu0 %v14450_v16  ;;  %v14448_v16 = vld [vmem:[%s21845_s15 + $0x158] sm:$0xff] }
0x1bf4   : > { %14564 = vmatpush1.msra.mxu0 %v14449_v11  ;;  %v14447_v11 = vld [vmem:[%s21845_s15 + $0x150] sm:$0xff] }
0x1bf5   : > { %14565 = vmatprep.subr.mxu0 %v14446_v62  ;;  %v14444_v62 = vld [vmem:[%s21845_s15 + $0x138] sm:$0xff] }
0x1bf6   : > { %14566 = vmatpush1.msra.mxu0 %v14445_v13  ;;  %v14440_v13 = vld [vmem:[%s21845_s15 + $0x118] sm:$0xff] }
0x1bf7   : > { %14567 = vmatprep.subr.mxu0 %v14442_v0  ;;  %v14439_v0 = vld [vmem:[%s21845_s15 + $0x110] sm:$0xff] }
0x1bf8   : > { %14568 = vmatpush1.msra.mxu0 %v14441_v17  ;;  %v14436_v17 = vld [vmem:[%s21845_s15 + $0xf8] sm:$0xff] }
0x1bf9   : > { %14569 = vmatprep.subr.mxu0 %v14438_v2  ;;  %v14435_v2 = vld [vmem:[%s21845_s15 + $0xf0] sm:$0xff] }
0x1bfa   : > { %14570 = vmatpush1.msra.mxu0 %v14437_v56  ;;  %v14432_v56 = vld [vmem:[%s21845_s15 + $0xd8] sm:$0xff] }
0x1bfb   : > { %14571 = vmatprep.subr.mxu0 %v14434_v15  ;;  %v14431_v15 = vld [vmem:[%s21845_s15 + $0xd0] sm:$0xff] }
0x1bfc   : > { %14572 = vmatpush1.msra.mxu0 %v14433_v29  ;;  %v14428_v29 = vld [vmem:[%s21845_s15 + $0xb8] sm:$0xff] }
0x1bfd   : > { %14573 = vmatprep.subr.mxu0 %v14430_v12  ;;  %v14427_v12 = vld [vmem:[%s21845_s15 + $0xb0] sm:$0xff] }
0x1bfe   : > { %14574 = vmatpush1.msra.mxu0 %v14429_v22  ;;  %v14424_v22 = vld [vmem:[%s21845_s15 + $0x98] sm:$0xff] }
0x1bff   : > { %14575 = vmatprep.subr.mxu0 %v14426_v49  ;;  %v14423_v49 = vld [vmem:[%s21845_s15 + $0x90] sm:$0xff] }
0x1c00   : > { %14576 = vmatpush1.msra.mxu0 %v14425_v27  ;;  %v14420_v27 = vld [vmem:[%s21845_s15 + $0x78] sm:$0xff] }
0x1c01   : > { %14577 = vmatprep.subr.mxu0 %v14422_v14  ;;  %v14419_v14 = vld [vmem:[%s21845_s15 + $0x70] sm:$0xff] }
0x1c02   : > { %14578 = vmatpush1.msra.mxu0 %v14421_v38  ;;  %v14416_v38 = vld [vmem:[%s21845_s15 + $0x58] sm:$0xff] }
0x1c03   : > { %14579 = vmatprep.subr.mxu0 %v14418_v23  ;;  %v14415_v23 = vld [vmem:[%s21845_s15 + $0x50] sm:$0xff] }
0x1c04   : > { %14580 = vmatpush1.msra.mxu0 %v14417_v5  ;;  %v14412_v5 = vld [vmem:[%s21845_s15 + $0x38] sm:$0xff] }
0x1c05   : > { %14581 = vmatprep.subr.mxu0 %v14414_v31  ;;  %v14411_v31 = vld [vmem:[%s21845_s15 + $0x30] sm:$0xff] }
0x1c06   : > { %14582 = vmatpush1.msra.mxu0 %v14413_v37  ;;  %v14408_v37 = vld [vmem:[%s21845_s15 + $0x18] sm:$0xff] }
0x1c07   : > { %14583 = vmatprep.subr.mxu0 %v14410_v26  ;;  %v14407_v26 = vld [vmem:[%s21845_s15 + $0x10] sm:$0xff] }
0x1c08   : > { %14584 = vmatpush1.msra.mxu0 %v14409_v25  ;;  %v14532_v25 = vld [vmem:[%s21845_s15 + $0x3f8] sm:$0xff] }
0x1c09   : > { %14585 = vmatprep.subr.mxu0 %v14406_v50  ;;  %v14531_v50 = vld [vmem:[%s21845_s15 + $0x3f0] sm:$0xff] }
0x1c0a   : > { %14586 = vmatpush1.msra.mxu0 %v14405_v4  ;;  %v14528_v4 = vld [vmem:[%s21845_s15 + $0x3d8] sm:$0xff] }
0x1c0b   : > { %14587 = vmatprep.subr.mxu0 %v14530_v45  ;;  %v14527_v45 = vld [vmem:[%s21845_s15 + $0x3d0] sm:$0xff] }
0x1c0c   : > { %14588 = vmatpush2.msra.mxu0 %v14529_v30  ;;  %v14524_v30 = vld [vmem:[%s21845_s15 + $0x3b8] sm:$0xff] }
0x1c0d   : > { %14589 = vmatprep.subr.mxu0 %v14526_v51  ;;  %v14523_v51 = vld [vmem:[%s21845_s15 + $0x3b0] sm:$0xff] }
0x1c0e   : > { %14590 = vmatpush2.msra.mxu0 %v14525_v10  ;;  %v14520_v10 = vld [vmem:[%s21845_s15 + $0x398] sm:$0xff] }
0x1c0f   : > { %14591 = vmatprep.subr.mxu0 %v14522_v54  ;;  %v14519_v54 = vld [vmem:[%s21845_s15 + $0x390] sm:$0xff] }
0x1c10   : > { %14592 = vmatpush2.msra.mxu0 %v14521_v32  ;;  %v14516_v32 = vld [vmem:[%s21845_s15 + $0x378] sm:$0xff] }
0x1c11   : > { %14593 = vmatprep.subr.mxu0 %v14518_v47  ;;  %v14515_v47 = vld [vmem:[%s21845_s15 + $0x370] sm:$0xff] }
0x1c12   : > { %14594 = vmatpush2.msra.mxu0 %v14517_v39  ;;  %v14512_v39 = vld [vmem:[%s21845_s15 + $0x358] sm:$0xff] }
0x1c13   : > { %14595 = vmatprep.subr.mxu0 %v14514_v48  ;;  %v14511_v48 = vld [vmem:[%s21845_s15 + $0x350] sm:$0xff] }
0x1c14   : > { %14596 = vmatpush2.msra.mxu0 %v14513_v60  ;;  %v14508_v60 = vld [vmem:[%s21845_s15 + $0x338] sm:$0xff] }
0x1c15   : > { %14597 = vmatprep.subr.mxu0 %v14510_v1  ;;  %v14507_v1 = vld [vmem:[%s21845_s15 + $0x330] sm:$0xff] }
0x1c16   : > { %14598 = vmatpush2.msra.mxu0 %v14509_v41  ;;  %v14504_v41 = vld [vmem:[%s21845_s15 + $0x318] sm:$0xff] }
0x1c17   : > { %14599 = vmatprep.subr.mxu0 %v14506_v7  ;;  %v14503_v7 = vld [vmem:[%s21845_s15 + $0x310] sm:$0xff] }
0x1ca2   : > { %v14205_v18 = vpop.f32.mrf.mxu0 }
0x1ca4   : > { %v17735_v19 = vpop.f32.mrf.mxu0 }
0x1ca5   : > { %v14502_v19 = vld [vmem:[%s21845_s15 + $0x308] sm:$0xff] }
0x1caa   : > { %v14278_v58 = vpop.f32.mrf.mxu0 }
0x1cab   : > { %v14279_v63 = vadd.f32 %v14278_v58, %v14205_v18  ;;  %v14505_v18 = vld [vmem:[%s21845_s15 + $0x320] sm:$0xff] }
0x1cac   : > { %v17746_v42 = vpop.f32.mrf.mxu0  ;;  %14600 = vmatpush2.msra.mxu0 %v14505_v18  ;;  %v14501_v58 = vld [vmem:[%s21845_s15 + $0x300] sm:$0xff]  ;;  %v14500_v18 = vld [vmem:[%s21845_s15 + $0x2f8] sm:$0xff] }
0x1cad   : > { %v21186_v20 = vadd.f32 %v15649_v33, %v14279_v63  ;;  %14601 = vmatprep.subr.mxu0 %v14502_v19  ;;  %v14498_v33 = vld [vmem:[%s21845_s15 + $0x2e8] sm:$0xff]  ;;  %v14497_v63 = vld [vmem:[%s21845_s15 + $0x2e0] sm:$0xff]  ;;  %v14499_v19 = vld [vmem:[%s21845_s15 + $0x2f0] sm:$0xff] }
0x1cae   : > { %14602 = vmatpush2.msra.mxu0 %v14501_v58  ;;  %v14494_v42 = vld [vmem:[%s21845_s15 + $0x2c8] sm:$0xff]  ;;  %v14496_v58 = vld [vmem:[%s21845_s15 + $0x2d8] sm:$0xff] }
0x1caf   : > { %v15650_v40 = vmul.f32 -1.442695, %v21186_v20  ;;  %14603 = vmatprep.subr.mxu0 %v14498_v33  ;;  %v14495_v33 = vld [vmem:[%s21845_s15 + $0x2d0] sm:$0xff] }
0x1cb0   : > { %14604 = vmatpush2.msra.mxu0 %v14497_v63  ;;  %v14492_v63 = vld [vmem:[%s21845_s15 + $0x2b8] sm:$0xff] }
0x1cb1   : > { %18100 = vpow2.f32 %v15650_v40  ;;  %v14493_v40 = vld [vmem:[%s21845_s15 + $0x2c0] sm:$0xff]  ;;  %14605 = vmatprep.subr.mxu0 %v14494_v42  ;;  %v14491_v42 = vld [vmem:[%s21845_s15 + $0x2b0] sm:$0xff] }
0x1cb2   : > { %14606 = vmatpush2.msra.mxu0 %v14493_v40  ;;  %v14486_v40 = vld [vmem:[%s21845_s15 + $0x288] sm:$0xff] }
0x1cbe   : > { %v18101_v53 = vpop.eup %18100 }
0x1cbf   : > { %v14295_v55 = vadd.f32 1.0, %v18101_v53  ;;  %v14490_v53 = vld [vmem:[%s21845_s15 + $0x2a8] sm:$0xff] }
0x1cc0   : > { %14607 = vmatprep.subr.mxu0 %v14490_v53  ;;  %v14488_v53 = vld [vmem:[%s21845_s15 + $0x298] sm:$0xff] }
0x1cc1   : > { %18102 = vrcp.f32 %v14295_v55  ;;  %v14489_v55 = vld [vmem:[%s21845_s15 + $0x2a0] sm:$0xff] }
0x1cc2   : > { %14608 = vmatpush2.msra.mxu0 %v14489_v55  ;;  %18104 = vtanh.f32 %v21186_v20  ;;  %v14460_v20 = vld [vmem:[%s21845_s15 + $0x1b8] sm:$0xff]  ;;  %v14485_v55 = vld [vmem:[%s21845_s15 + $0x280] sm:$0xff] }
0x1cc3   : > { %14609 = vmatprep.subr.mxu0 %v14486_v40  ;;  %v14758_v40 = vld [vmem:[%s21847_s17 + $0x1c8] sm:$0xff] }
0x1cc4   : > { %14610 = vmatpush2.msra.mxu0 %v14485_v55  ;;  %v14742_v55 = vld [vmem:[%s21847_s17 + $0x148] sm:$0xff] }
0x1cce   : > { %v18103_v8 = vpop.eup %18102 }
0x1ccf   : > { %14299 = vrot.lane.b32.xlu1 %v18103_v8, %s21876_s23  ;;  %v18105_v36 = vpop.eup %18104  ;;  %v14443_v8 = vld [vmem:[%s21845_s15 + $0x130] sm:$0xff] }
0x1d41   : > { %v14300_v43 = vpop.permute.xlu1 %14299 }
0x1d42   : > { %v14302_v46 = vmul.f32 %v18105_v36, %v14300_v43  ;;  %v14487_v36 = vld [vmem:[%s21845_s15 + $0x290] sm:$0xff]  ;;  %v14482_v43 = vld [vmem:[%s21845_s15 + $0x268] sm:$0xff] }
0x1d43   : > { %14611 = vmatprep.subr.mxu0 %v14482_v43  ;;  %v14757_v43 = vld [vmem:[%s21847_s17 + $0x1c0] sm:$0xff] }
0x1d44   : > { %15659 = vmatmul.mubr.msk.f32.vlgmr.msra.gmra.mxu1 %vm930_vm6, %v14302_v46  ;;  %v14484_v46 = vld [vmem:[%s21845_s15 + $0x278] sm:$0xff] }
0x1d45   : > { %14627 = vmatpush1.msra.mxu1 %v14467_v24  ;;  %v14481_v24 = vld [vmem:[%s21845_s15 + $0x260] sm:$0xff] }
0x1d46   : > { %14628 = vmatprep.subr.mxu1 %v14464_v61  ;;  %v14483_v61 = vld [vmem:[%s21845_s15 + $0x270] sm:$0xff]  ;;  %14612 = vmatpush2.msra.mxu0 %v14481_v24  ;;  %v14741_v24 = vld [vmem:[%s21847_s17 + $0x140] sm:$0xff] }
0x1d47   : > { %14629 = vmatpush1.msra.mxu1 %v14463_v34  ;;  %v14478_v34 = vld [vmem:[%s21845_s15 + $0x248] sm:$0xff] }
0x1d48   : > { %14630 = vmatprep.subr.mxu1 %v14460_v20  ;;  %v14480_v20 = vld [vmem:[%s21845_s15 + $0x258] sm:$0xff]  ;;  %14613 = vmatprep.subr.mxu0 %v14478_v34 }
0x1d49   : > { %14631 = vmatpush1.msra.mxu1 %v14459_v21  ;;  %v14477_v21 = vld [vmem:[%s21845_s15 + $0x240] sm:$0xff]  ;;  %v14756_v34 = vld [vmem:[%s21847_s17 + $0x1b8] sm:$0xff] }
0x1d4a   : > { %14632 = vmatprep.subr.mxu1 %v14456_v44  ;;  %v14479_v44 = vld [vmem:[%s21845_s15 + $0x250] sm:$0xff]  ;;  %14614 = vmatpush2.msra.mxu0 %v14477_v21  ;;  %v14740_v21 = vld [vmem:[%s21847_s17 + $0x138] sm:$0xff] }
0x1d4b   : > { %14633 = vmatpush1.msra.mxu1 %v14455_v28  ;;  %v14474_v28 = vld [vmem:[%s21845_s15 + $0x228] sm:$0xff] }
0x1d4c   : > { %14634 = vmatprep.subr.mxu1 %v14452_v35  ;;  %v14476_v35 = vld [vmem:[%s21845_s15 + $0x238] sm:$0xff]  ;;  %14615 = vmatprep.subr.mxu0 %v14474_v28  ;;  %v14755_v28 = vld [vmem:[%s21847_s17 + $0x1b0] sm:$0xff] }
0x1d4d   : > { %14635 = vmatpush1.msra.mxu1 %v14451_v3  ;;  %v14473_v3 = vld [vmem:[%s21845_s15 + $0x220] sm:$0xff] }
0x1d4e   : > { %14636 = vmatprep.subr.mxu1 %v14448_v16  ;;  %v14475_v16 = vld [vmem:[%s21845_s15 + $0x230] sm:$0xff]  ;;  %14616 = vmatpush2.msra.mxu0 %v14473_v3 }
0x1d4f   : > { %14637 = vmatpush1.msra.mxu1 %v14447_v11  ;;  %v14470_v11 = vld [vmem:[%s21845_s15 + $0x208] sm:$0xff]  ;;  %v14739_v3 = vld [vmem:[%s21847_s17 + $0x130] sm:$0xff] }
0x1d50   : > { %14638 = vmatprep.subr.mxu1 %v14444_v62  ;;  %v14472_v62 = vld [vmem:[%s21845_s15 + $0x218] sm:$0xff]  ;;  %14617 = vmatprep.subr.mxu0 %v14470_v11  ;;  %v14754_v11 = vld [vmem:[%s21847_s17 + $0x1a8] sm:$0xff] }
0x1d51   : > { %14639 = vmatpush1.msra.mxu1 %v14443_v8  ;;  %v14469_v8 = vld [vmem:[%s21845_s15 + $0x200] sm:$0xff] }
0x1d52   : > { %14640 = vmatprep.subr.mxu1 %v14440_v13  ;;  %v14471_v13 = vld [vmem:[%s21845_s15 + $0x210] sm:$0xff]  ;;  %14618 = vmatpush2.msra.mxu0 %v14469_v8  ;;  %v14738_v8 = vld [vmem:[%s21847_s17 + $0x128] sm:$0xff] }
0x1d53   : > { %14641 = vmatpush1.msra.mxu1 %v14439_v0  ;;  %v14732_v0 = vld [vmem:[%s21847_s17 + $0xf8] sm:$0xff] }
0x1d54   : > { %14642 = vmatprep.subr.mxu1 %v14436_v17  ;;  %v14764_v17 = vld [vmem:[%s21847_s17 + $0x1f8] sm:$0xff]  ;;  %16292 = vmatprep.subr.mxu0 %v14732_v0  ;;  %v14753_v0 = vld [vmem:[%s21847_s17 + $0x1a0] sm:$0xff] }
0x1d55   : > { %14643 = vmatpush1.msra.mxu1 %v14435_v2  ;;  %v15606_v2 = vld [vmem:[%s21839_s9 + $0xc] sm:$0x3] }
0x1d56   : > { %14644 = vmatprep.subr.mxu1 %v14432_v56  ;;  %v13397_v56 = vrot.slane %v15606_v2, %v19233_v6 }
0x1d57   : > { %14645 = vmatpush1.msra.mxu1 %v14431_v15  ;;  %v15660_v15 = vld [vmem:[%s21839_s9 + $0xe] sm:$0x3] }
0x1d58   : > { %14646 = vmatprep.subr.mxu1 %v14428_v29  ;;  %v13401_v29 = vrot.slane %v15606_v2, %v20793_v59  ;;  %v14737_v2 = vld [vmem:[%s21847_s17 + $0x120] sm:$0xff] }
0x1d59   : > { %14647 = vmatpush1.msra.mxu1 %v14427_v12  ;;  %v13404_v12 = vadd.f32 %v13397_v56, %v21026_v9  ;;  %v14748_v9 = vld [vmem:[%s21847_s17 + $0x178] sm:$0xff] }
0x1d5a   : > { %14648 = vmatprep.subr.mxu1 %v14424_v22  ;;  %v14720_v56 = vld [vmem:[%s21847_s17 + $0x98] sm:$0xff] }
0x1d5b   : > { %14649 = vmatpush1.msra.mxu1 %v14423_v49  ;;  %v14394_v49 = vrot.slane %v15660_v15, %v19233_v6 }
0x1d5c   : > { %14650 = vmatprep.subr.mxu1 %v14420_v27 }
0x1d5d   : > { %14651 = vmatpush1.msra.mxu1 %v14419_v14  ;;  %v13405_v14 = vadd.f32 %v13401_v29, %v21029_v57  ;;  %v14731_v57 = vld [vmem:[%s21847_s17 + $0xf0] sm:$0xff]  ;;  %v14704_v29 = vld [vmem:[%s21847_s17 + $0x18] sm:$0xff] }
0x1d5e   : > { %14652 = vmatprep.subr.mxu1 %v14416_v38  ;;  %v14398_v38 = vrot.slane %v15660_v15, %v20793_v59  ;;  %v14752_v15 = vld [vmem:[%s21847_s17 + $0x198] sm:$0xff] }
0x1d5f   : > { %14653 = vmatpush1.msra.mxu1 %v14415_v23 }
0x1d60   : > { %14654 = vmatprep.subr.mxu1 %v14412_v5 }
0x1d61   : > { %14655 = vmatpush1.msra.mxu1 %v14411_v31 }
0x1d62   : > { %14656 = vmatprep.subr.mxu1 %v14408_v37 }
0x1d63   : > { %14657 = vmatpush1.msra.mxu1 %v14407_v26 }
0x1d64   : > { %14658 = vmatprep.subr.mxu1 %v14532_v25 }
0x1d65   : > { %14659 = vmatpush2.msra.mxu1 %v14531_v50  ;;  %v14716_v50 = vld [vmem:[%s21847_s17 + $0x78] sm:$0xff] }
0x1d66   : > { %14660 = vmatprep.subr.mxu1 %v14528_v4  ;;  %v14763_v4 = vld [vmem:[%s21847_s17 + $0x1f0] sm:$0xff] }
0x1d67   : > { %14661 = vmatpush2.msra.mxu1 %v14527_v45  ;;  %v14715_v45 = vld [vmem:[%s21847_s17 + $0x70] sm:$0xff] }
0x1d68   : > { %14662 = vmatprep.subr.mxu1 %v14524_v30  ;;  %v14747_v30 = vld [vmem:[%s21847_s17 + $0x170] sm:$0xff] }
0x1d69   : > { %14663 = vmatpush2.msra.mxu1 %v14523_v51  ;;  %v14730_v51 = vld [vmem:[%s21847_s17 + $0xe8] sm:$0xff] }
0x1d6a   : > { %14664 = vmatprep.subr.mxu1 %v14520_v10  ;;  %v14762_v10 = vld [vmem:[%s21847_s17 + $0x1e8] sm:$0xff] }
0x1d6b   : > { %14665 = vmatpush2.msra.mxu1 %v14519_v54  ;;  %v14714_v54 = vld [vmem:[%s21847_s17 + $0x68] sm:$0xff] }
0x1d6c   : > { %14666 = vmatprep.subr.mxu1 %v14516_v32  ;;  %v14746_v32 = vld [vmem:[%s21847_s17 + $0x168] sm:$0xff] }
0x1d6d   : > { %14667 = vmatpush2.msra.mxu1 %v14515_v47  ;;  %v14729_v47 = vld [vmem:[%s21847_s17 + $0xe0] sm:$0xff] }
0x1d6e   : > { %14668 = vmatprep.subr.mxu1 %v14512_v39  ;;  %v14761_v39 = vld [vmem:[%s21847_s17 + $0x1e0] sm:$0xff] }
0x1d6f   : > { %14669 = vmatpush2.msra.mxu1 %v14511_v48  ;;  %v14713_v48 = vld [vmem:[%s21847_s17 + $0x60] sm:$0xff] }
0x1d70   : > { %14670 = vmatprep.subr.mxu1 %v14508_v60  ;;  %v14745_v60 = vld [vmem:[%s21847_s17 + $0x160] sm:$0xff] }
0x1d71   : > { %14671 = vmatpush2.msra.mxu1 %v14507_v1  ;;  %v14728_v1 = vld [vmem:[%s21847_s17 + $0xd8] sm:$0xff] }
0x1d72   : > { %14672 = vmatprep.subr.mxu1 %v14504_v41  ;;  %v14760_v41 = vld [vmem:[%s21847_s17 + $0x1d8] sm:$0xff] }
0x1d73   : > { %14673 = vmatpush2.msra.mxu1 %v14503_v7  ;;  %v14712_v7 = vld [vmem:[%s21847_s17 + $0x58] sm:$0xff] }
0x1d74   : > { %14674 = vmatprep.subr.mxu1 %v14500_v18  ;;  %v14744_v18 = vld [vmem:[%s21847_s17 + $0x158] sm:$0xff] }
0x1d75   : > { %14675 = vmatpush2.msra.mxu1 %v14499_v19  ;;  %v14727_v19 = vld [vmem:[%s21847_s17 + $0xd0] sm:$0xff] }
0x1d76   : > { %14676 = vmatprep.subr.mxu1 %v14496_v58  ;;  %v14759_v58 = vld [vmem:[%s21847_s17 + $0x1d0] sm:$0xff] }
0x1d77   : > { %14677 = vmatpush2.msra.mxu1 %v14495_v33  ;;  %v14711_v33 = vld [vmem:[%s21847_s17 + $0x50] sm:$0xff] }
0x1d78   : > { %14678 = vmatprep.subr.mxu1 %v14492_v63  ;;  %v14743_v63 = vld [vmem:[%s21847_s17 + $0x150] sm:$0xff] }
0x1d79   : > { %14679 = vmatpush2.msra.mxu1 %v14491_v42  ;;  %v14726_v42 = vld [vmem:[%s21847_s17 + $0xc8] sm:$0xff] }
0x1d7a   : > { %14680 = vmatprep.subr.mxu1 %v14488_v53  ;;  %v14710_v53 = vld [vmem:[%s21847_s17 + $0x48] sm:$0xff] }
0x1d7b   : > { %14681 = vmatpush2.msra.mxu1 %v14487_v36  ;;  %v14725_v36 = vld [vmem:[%s21847_s17 + $0xc0] sm:$0xff] }
0x1d7c   : > { %14682 = vmatprep.subr.mxu1 %v14484_v46  ;;  %v14709_v46 = vld [vmem:[%s21847_s17 + $0x40] sm:$0xff] }
0x1d7d   : > { %14683 = vmatpush2.msra.mxu1 %v14483_v61  ;;  %v14724_v61 = vld [vmem:[%s21847_s17 + $0xb8] sm:$0xff] }
0x1d7e   : > { %14684 = vmatprep.subr.mxu1 %v14480_v20  ;;  %v14708_v20 = vld [vmem:[%s21847_s17 + $0x38] sm:$0xff] }
0x1d7f   : > { %14685 = vmatpush2.msra.mxu1 %v14479_v44  ;;  %v14723_v44 = vld [vmem:[%s21847_s17 + $0xb0] sm:$0xff] }
0x1d80   : > { %14686 = vmatprep.subr.mxu1 %v14476_v35  ;;  %v14707_v35 = vld [vmem:[%s21847_s17 + $0x30] sm:$0xff] }
0x1d81   : > { %14687 = vmatpush2.msra.mxu1 %v14475_v16  ;;  %v14722_v16 = vld [vmem:[%s21847_s17 + $0xa8] sm:$0xff] }
0x1d82   : > { %14688 = vmatprep.subr.mxu1 %v14472_v62  ;;  %v14706_v62 = vld [vmem:[%s21847_s17 + $0x28] sm:$0xff] }
0x1d83   : > { %14689 = vmatpush2.msra.mxu1 %v14471_v13  ;;  %v14721_v13 = vld [vmem:[%s21847_s17 + $0xa0] sm:$0xff] }
0x1d84   : > { %16327 = vmatprep.subr.mxu1 %v14764_v17  ;;  %v14705_v17 = vld [vmem:[%s21847_s17 + $0x20] sm:$0xff] }
0x1e04   : > { %v14381_v22 = vpop.f32.mrf.mxu1 }
0x1e05   : > { %v14386_v27 = vadd.f32 %v14381_v22, %v13404_v12  ;;  %v14736_v12 = vld [vmem:[%s21847_s17 + $0x118] sm:$0xff]  ;;  %v14719_v22 = vld [vmem:[%s21847_s17 + $0x90] sm:$0xff] }
0x1e06   : > { %v14383_v23 = vpop.f32.mrf.mxu1 }
0x1e07   : > { %v14387_v5 = vadd.f32 %v14383_v23, %v13405_v14  ;;  %v14401_v31 = vadd.f32 %v14394_v49, %v14386_v27  ;;  %v14751_v49 = vld [vmem:[%s21847_s17 + $0x190] sm:$0xff]  ;;  %v14750_v23 = vld [vmem:[%s21847_s17 + $0x188] sm:$0xff] }
0x1e08   : > { %v14703_v27 = vld [vmem:[%s21847_s17 + $0x10] sm:$0xff] }
0x1e09   : > { %v14402_v37 = vadd.f32 %v14398_v38, %v14387_v5  ;;  %v14403_v25 = vmax.f32 %v14401_v31, 0.0  ;;  %v14735_v14 = vld [vmem:[%s21847_s17 + $0x110] sm:$0xff]  ;;  %v14718_v38 = vld [vmem:[%s21847_s17 + $0x88] sm:$0xff] }
0x1e0a   : > { %v14702_v5 = vld [vmem:[%s21847_s17 + $0x8] sm:$0xff] }
0x1e0b   : > { %v14404_v26 = vmax.f32 %v14402_v37, 0.0  ;;  %v14734_v31 = vld [vmem:[%s21847_s17 + $0x108] sm:$0xff]  ;;  %v14717_v37 = vld [vmem:[%s21847_s17 + $0x80] sm:$0xff] }
0x1e0d   : > { %14619 = vmatprep.mubr.f32.mxu0 %v14404_v26  ;;  %14690 = vmatprep.mubr.f32.mxu1 %v14404_v26  ;;  %v14749_v26 = vld [vmem:[%s21847_s17 + $0x180] sm:$0xff] }
0x1e0e   : > { %14620 = vmatmul.mubr.f32.vlgmr.msra.gmra.mxu0 %v14403_v25  ;;  %14691 = vmatmul.mubr.f32.vlgmr.msra.gmra.mxu1 %v14403_v25  ;;  %v14701_v25 = vld [vmem:[%s21847_s17] sm:$0xff] }
0x1e0f   : > { %16293 = vmatpush3.msra.mxu0 %v14716_v50  ;;  %16328 = vmatpush3.msra.mxu1 %v14748_v9  ;;  %v14733_v50 = vld [vmem:[%s21847_s17 + $0x100] sm:$0xff]  ;;  %v14545_v9 = vsub.s32 2, %v19230_v52 }
0x1e10   : > { %16294 = vmatprep.subr.mxu0 %v14731_v57  ;;  %16329 = vmatprep.subr.mxu1 %v14763_v4  ;;  %v14533_v57 = vld [vmem:[%s21846_s16] sm:$0xf]  ;;  %v14549_v4 = vsub.s32 3, %v19230_v52 }
0x1e11   : > { %16295 = vmatpush3.msra.mxu0 %v14715_v45  ;;  %16330 = vmatpush3.msra.mxu1 %v14747_v30  ;;  %v14538_v45 = vrot.slane %v14533_v57, %v19233_v6  ;;  %v14546_v30 = vrot.slane %v14533_v57, %v14545_v9 }
0x1e12   : > { %16296 = vmatprep.subr.mxu0 %v14730_v51  ;;  %16331 = vmatprep.subr.mxu1 %v14762_v10  ;;  %v14542_v51 = vrot.slane %v14533_v57, %v20793_v59  ;;  %v14550_v10 = vrot.slane %v14533_v57, %v14549_v4 }
0x1e13   : > { %16297 = vmatpush3.msra.mxu0 %v14714_v54  ;;  %16332 = vmatpush3.msra.mxu1 %v14746_v32 }
0x1e14   : > { %16298 = vmatprep.subr.mxu0 %v14729_v47  ;;  %16333 = vmatprep.subr.mxu1 %v14761_v39 }
0x1e15   : > { %16299 = vmatpush3.msra.mxu0 %v14713_v48  ;;  %16334 = vmatpush3.msra.mxu1 %v14745_v60 }
0x1e16   : > { %16300 = vmatprep.subr.mxu0 %v14728_v1  ;;  %16335 = vmatprep.subr.mxu1 %v14760_v41 }
0x1e17   : > { %16301 = vmatpush3.msra.mxu0 %v14712_v7  ;;  %16336 = vmatpush3.msra.mxu1 %v14744_v18 }
0x1e18   : > { %16302 = vmatprep.subr.mxu0 %v14727_v19  ;;  %16337 = vmatprep.subr.mxu1 %v14759_v58  ;;  %v15661_v58 = vld [vmem:[%s21848_s18] ss:$0 sm:$0xff] }
0x1e19   : > { %16303 = vmatpush3.msra.mxu0 %v14711_v33  ;;  %16338 = vmatpush3.msra.mxu1 %v14743_v63 }
0x1e1a   : > { %16304 = vmatprep.subr.mxu0 %v14726_v42  ;;  %16339 = vmatprep.subr.mxu1 %v14758_v40 }
0x1e1b   : > { %16305 = vmatpush3.msra.mxu0 %v14710_v53  ;;  %16340 = vmatpush3.msra.mxu1 %v14742_v55 }
0x1e1c   : > { %16306 = vmatprep.subr.mxu0 %v14725_v36  ;;  %16341 = vmatprep.subr.mxu1 %v14757_v43 }
0x1e1d   : > { %16307 = vmatpush3.msra.mxu0 %v14709_v46  ;;  %16342 = vmatpush3.msra.mxu1 %v14741_v24 }
0x1e1e   : > { %16308 = vmatprep.subr.mxu0 %v14724_v61  ;;  %16343 = vmatprep.subr.mxu1 %v14756_v34 }
0x1e1f   : > { %16309 = vmatpush3.msra.mxu0 %v14708_v20  ;;  %16344 = vmatpush3.msra.mxu1 %v14740_v21 }
0x1e20   : > { %16310 = vmatprep.subr.mxu0 %v14723_v44  ;;  %16345 = vmatprep.subr.mxu1 %v14755_v28 }
0x1e21   : > { %16311 = vmatpush3.msra.mxu0 %v14707_v35  ;;  %16346 = vmatpush3.msra.mxu1 %v14739_v3 }
0x1e22   : > { %16312 = vmatprep.subr.mxu0 %v14722_v16  ;;  %16347 = vmatprep.subr.mxu1 %v14754_v11 }
0x1e23   : > { %16313 = vmatpush3.msra.mxu0 %v14706_v62  ;;  %16348 = vmatpush3.msra.mxu1 %v14738_v8 }
0x1e24   : > { %16314 = vmatprep.subr.mxu0 %v14721_v13  ;;  %16349 = vmatprep.subr.mxu1 %v14753_v0 }
0x1e25   : > { %16315 = vmatpush3.msra.mxu0 %v14705_v17  ;;  %16350 = vmatpush3.msra.mxu1 %v14737_v2 }
0x1e26   : > { %16316 = vmatprep.subr.mxu0 %v14720_v56  ;;  %16351 = vmatprep.subr.mxu1 %v14752_v15 }
0x1e27   : > { %16317 = vmatpush3.msra.mxu0 %v14704_v29  ;;  %16352 = vmatpush3.msra.mxu1 %v14736_v12 }
0x1e28   : > { %16318 = vmatprep.subr.mxu0 %v14719_v22  ;;  %16353 = vmatprep.subr.mxu1 %v14751_v49 }
0x1e29   : > { %16319 = vmatpush3.msra.mxu0 %v14703_v27  ;;  %16354 = vmatpush3.msra.mxu1 %v14735_v14 }
0x1e2a   : > { %16320 = vmatprep.subr.mxu0 %v14718_v38  ;;  %16355 = vmatprep.subr.mxu1 %v14750_v23 }
0x1e2b   : > { %16321 = vmatpush3.msra.mxu0 %v14702_v5  ;;  %16356 = vmatpush3.msra.mxu1 %v14734_v31 }
0x1e2c   : > { %16322 = vmatprep.subr.mxu0 %v14717_v37  ;;  %16357 = vmatprep.subr.mxu1 %v14749_v26 }
0x1e2d   : > { %16323 = vmatpush3.msra.mxu0 %v14701_v25  ;;  %16358 = vmatpush3.msra.mxu1 %v14733_v50 }
0x1ece   : > { %v14621_v54 = vpop.f32.mrf.mxu0  ;;  %v14692_v32 = vpop.f32.mrf.mxu1 }
0x1ecf   : > { %v14622_v47 = vadd.f32 %v14621_v54, %v14538_v45  ;;  %v14693_v39 = vadd.f32 %v14692_v32, %v14546_v30 }
0x1ed0   : > { %v14623_v48 = vpop.f32.mrf.mxu0  ;;  %v14694_v60 = vpop.f32.mrf.mxu1 }
0x1ed1   : > { %v14624_v1 = vadd.f32 %v14623_v48, %v14542_v51  ;;  %v14695_v41 = vadd.f32 %v14694_v60, %v14550_v10  ;;  %v14697_v19 = vmax.f32 %v14622_v47, 0.0  ;;  %v14699_v52 = vmax.f32 %v14693_v39, 0.0 }
0x1ed3   : > { %v14698_v7 = vmax.f32 %v14624_v1, 0.0  ;;  %v14700_v18 = vmax.f32 %v14695_v41, 0.0 }
0x1ed5   : > { %14836 = vmatprep.mubr.f32.mxu0 %v14698_v7  ;;  %14906 = vmatprep.mubr.f32.mxu1 %v14700_v18 }
0x1ed6   : > { %14837 = vmatmul.mubr.f32.vlgmr.msra.gmra.mxu0 %v14697_v19  ;;  %14907 = vmatmul.mubr.f32.vlgmr.msra.gmra.mxu1 %v14699_v52 }
0x1f96   : > { %v16324_v6 = vpop.f32.mrf.mxu0  ;;  %v16359_v59 = vpop.f32.mrf.mxu1 }
0x1f98   : > { %v16325_v33 = vpop.f32.mrf.mxu0  ;;  %v16360_v63 = vpop.f32.mrf.mxu1 }
0x1f99   : > { %v16326_v42 = vadd.f32 %v16325_v33, %v16324_v6  ;;  %v16361_v53 = vadd.f32 %v16360_v63, %v16359_v59 }
0x1f9b   : > { %v14839_v40 = vadd.f32 %v16326_v42, %v15661_v58 }
0x1f9d   : > { %v14909_v55 = vadd.f32 %v16361_v53, %v14839_v40 }
0x1f9f   : > { %14913 = vst.msk [vmem:[%s595_s27] sm:$0xff] %vm14912_vm7, %v14909_v55 }
0x1fa0   : > { %18122 = shalt.err (!%p18119_p3)
}
0x1fa1   : > { %s18123_s5 = scalar_lea.hbm %s14926_s25, 128  ;;  %s18127_s27 = scalar_lea.hbm %s21849_s19, 256 }
0x1fa2   : > { %p18124_p4 = scmp.ne.s32.totalorder %s14926_s25, %s18123_s5  ;;  %p18128_p9 = scmp.lt.s32.totalorder %s14926_s25, %s21849_s19 }
0x1fa3   : > { %p18129_p10 = scmp.lt.s32.totalorder %s18127_s27, %s18123_s5 }
0x1fa4   : > { %p18125_p7 = pnand %p18124_p4, %p18313_p5 }
0x1fa5   : > { %p18130_p11 = por %p18129_p10, %p18128_p9 }
0x1fa6   : > { %p18126_p8 = pneg %p18125_p7 }
0x1fa8   : > { %p18131_p12 = pnand %p18130_p11, %p18126_p8 }
0x1faa   : > { %18134 = shalt.err (!%p18131_p12)
}
0x1fab   : > { %17748 = dma.vmem_to_hbm [thread:$0]  (%p18313_p5), %s14929_s22, 128, %s14926_s25, %s14915_s29  }
0x1fac PF: > { %p17754_p13 = scmp.ge.s32.totalorder %s18169_s21, 2  ;;  %s14940_s4 = sand.u32 1, %s18157_s0  }
0x1fad   : > { %s14941_s1 = scalar_lea.sflag [#allocation3], %s14940_s4 }
0x1fae   : > { %p17751_p0 = pnand %p17754_p13, %p18317_p6 }
0x1fb0   : > { %p17752_p1 = pneg %p17751_p0 }
0x1fb2   : > { %18152 = dma.done.wait (%p17752_p1), %s14941_s1, 128  }
0x1fb3   : > { %18154 = vsyncadd (%p17752_p1), %s14941_s1, 4294967168  ;;  %s21878_s21 = sld [smem:[#allocation6_spill]]  ;;  %s21881_s0 = smov %s18161_s30 }
0x1fb4   : > { %s21879_s5 = sld [smem:[#allocation5_spill]] }
0x1fb5   : > { %s21880_s20 = sld [smem:[#allocation7_spill]] }
0x1fb9   : > { %p29_p2 = scmp.ge.s32.totalorder %s21878_s21, 4  }
0x1fba   : > { %s21882_s30 = smov %s21879_s5 }
0x1fbb   :  { %31 = sbr.rel (!%p29_p2) target bundleno = 10 (0xa), region = 196 }
0x1fc0   :  { %14946 = vsyncpa [#allocation3], 1 }
0x1fc1   :  { %14948 = vsyncpa [#allocation3 + $0x1], 1 }

</bundles_post_ra>
